<compile_context>
chip_gen: v7x
topology: tpu7x:2x2x1
jax: 0.10.0
libtpu: 0.0.40
codegen_flags: <defaults>
</compile_context>

<pallas_src>
import functools

import jax
import jax.numpy as jnp
from jax.experimental import pallas as pl
from jax.experimental.pallas import tpu as pltpu


def walk_iter_kernel(gi4_ref, gif_ref, gjf_ref, keep_ref, wrep_ref, erep_ref, erept_ref,
                     out_ref, acc_ref, cnt_ref, *, beta):
    """One WalkLayer iteration for one (batch, i-tile, j-tile) grid step.

    gi4_ref : (1, ti, N, D)   f32  graph rows for the start-node tile (MXU path only)
    gif_ref : (1, ti, N*D)    f32  same rows, lane-dense flat layout (`old` at finalize)
    gjf_ref : (1, tj, N*D)    f32  intermediate-node rows, lane-dense flat layout
    keep_ref: (1, ti, tj, N)  f32  validity gate (mask3d & ~diagonals), 1 = keep
    wrep_ref: (D, N*D)        f32  W replicated over m:   Wrep[k, m*D+l] = W[k, l]
    erep_ref: (N, N*D)        f32  k-broadcast matrix:    Erep[m, m*D+k] = 1
    erept_ref:(N*D, N)        f32  k-reduce matrix (Erep transposed)
    out_ref : (1, ti, N*D)    f32  updated pair representations (written on last j tile)
    acc_ref : (ti, N*D)       f32  VMEM scratch: running sum_j gate * sigmoid(...)
    cnt_ref : (ti, N*D)       f32  VMEM scratch: running count of unmasked intermediates
    """
    jt = pl.program_id(2)
    nj = pl.num_programs(2)

    ti = gi4_ref.shape[1]
    N = gi4_ref.shape[2]
    D = gi4_ref.shape[3]
    tj = keep_ref.shape[2]
    ND = N * D

    @pl.when(jt == 0)
    def _init():
        acc_ref[...] = jnp.zeros_like(acc_ref)
        cnt_ref[...] = jnp.zeros_like(cnt_ref)

    # gw[i, j, k] for this (i_tile, j_tile), already replicated over m by the MXU:
    #   gw_rep[(i,j), m*D+l] = sum_k graph[b, i, j, k] * W[k, l]
    j0 = pl.multiple_of(jt * tj, tj)
    g_ij = gi4_ref[:, :, pl.ds(j0, tj), :]                        # (1, ti, tj, D)
    gw_rep = jnp.dot(g_ij.reshape(ti * tj, D), wrep_ref[...],
                     preferred_element_type=jnp.float32)          # (ti*tj, ND)

    # new5[i, j, m, k] = gw[i, j, k] * old[j, m, k]   (lane-dense: last dim is m*D+k)
    old_j = gjf_ref[0]                                            # (tj, ND)
    prod = gw_rep.reshape(ti, tj, ND) * old_j[None, :, :]         # (ti, tj, ND)

    # "edge does not exist": all D features of the product are exactly zero.
    # Segmented (per-m) lane reduction done on the MXU with the 0/1 reduce matrix.
    nz = (prod != 0.0).astype(jnp.float32)                        # (ti, tj, ND)
    nzcnt = jnp.dot(nz.reshape(ti * tj, ND), erept_ref[...],
                    preferred_element_type=jnp.float32)           # (ti*tj, N)

    keep = keep_ref[...].reshape(ti * tj, N)                      # (ti*tj, N)
    gate = keep * (nzcnt > 0.5).astype(jnp.float32)               # 1 = valid path
    gate_rep = jnp.dot(gate, erep_ref[...],
                       preferred_element_type=jnp.float32)        # (ti*tj, ND)
    gate_rep = gate_rep.reshape(ti, tj, ND)

    # sigmoid via tanh: one EUP push per element; masked paths contribute 0 via the gate.
    sig = 0.5 * jnp.tanh(0.5 * prod) + 0.5                        # (ti, tj, ND)

    acc_ref[...] += jnp.sum(gate_rep * sig, axis=1)               # sum over j -> (ti, ND)
    cnt_ref[...] += jnp.sum(gate_rep, axis=1)                     # (ti, ND)

    @pl.when(jt == nj - 1)
    def _finalize():
        old_i = gif_ref[0]                                        # (ti, ND)
        summed = acc_ref[...]
        # beta_mat = 1 where ALL intermediates were masked, else beta
        beta_mat = jnp.where(cnt_ref[...] > 0.5, jnp.float32(beta), jnp.float32(1.0))
        # torch.lerp(summed, old, beta_mat)
        out_ref[0] = (summed + beta_mat * (old_i - summed)).astype(out_ref.dtype)


def make_walk_iter_call(B, N, D, beta, ti, tj):
    ND = N * D
    kern = functools.partial(walk_iter_kernel, beta=beta)
    return pl.pallas_call(
        kern,
        out_shape=jax.ShapeDtypeStruct((B, N, ND), jnp.float32),
        grid_spec=pltpu.PrefetchScalarGridSpec(
            num_scalar_prefetch=0,
            grid=(B, N // ti, N // tj),
            in_specs=[
                # graph, i-tiled, 4D (MXU path; resident across the j sweep)
                pl.BlockSpec((1, ti, N, D), lambda b, it, jt: (b, it, 0, 0)),
                # graph, i-tiled, lane-dense flat (`old` at finalize)
                pl.BlockSpec((1, ti, ND), lambda b, it, jt: (b, it, 0)),
                # graph, j-tiled, lane-dense flat (intermediate-node rows)
                pl.BlockSpec((1, tj, ND), lambda b, it, jt: (b, jt, 0)),
                # combined validity gate (mask3d with diagonals folded in)
                pl.BlockSpec((1, ti, tj, N), lambda b, it, jt: (b, it, jt, 0)),
                # constant replication matrices (block index constant -> stay in VMEM)
                pl.BlockSpec((D, ND), lambda b, it, jt: (0, 0)),
                pl.BlockSpec((N, ND), lambda b, it, jt: (0, 0)),
                pl.BlockSpec((ND, N), lambda b, it, jt: (0, 0)),
            ],
            out_specs=pl.BlockSpec((1, ti, ND), lambda b, it, jt: (b, it, 0)),
            scratch_shapes=[
                pltpu.VMEM((ti, ND), jnp.float32),   # summed accumulator
                pltpu.VMEM((ti, ND), jnp.float32),   # unmasked-intermediate count
            ],
        ),
        compiler_params=pltpu.CompilerParams(
            dimension_semantics=("parallel", "parallel", "arbitrary"),
            vmem_limit_bytes=48 * 1024 * 1024,
        ),
    )


def _pick_tile(N, D, budget_bytes=4 * 1024 * 1024):
    """Largest aligned divisor of N whose (t, t, N*D) f32 product tile fits the budget."""
    cands = [t for t in range(1, N + 1) if N % t == 0 and (t == N or t % 8 == 0)]
    best = min(cands)
    for t in cands:
        if t * t * N * D * 4 <= budget_bytes:
            best = max(best, t)
    return best


def walk_layer_forward(graph, adj, mask3d, W, *, iters, beta, ti=None, tj=None):
    """Pallas implementation of WalkLayer.forward."""
    B, N, _, D = graph.shape
    t_def = _pick_tile(N, D)
    ti = t_def if ti is None else ti
    tj = t_def if tj is None else tj
    assert N % ti == 0 and N % tj == 0, "tile sizes must divide N"
    assert (ti == N or ti % 8 == 0) and (tj == N or tj % 8 == 0), "tiles must be aligned"

    # init_graph: zero out non-adjacent pairs (elementwise glue, plain JAX)
    g = jnp.where(adj[..., None], graph, jnp.zeros_like(graph))

    # Fold the iteration-invariant diagonal masking (i==j | j==m | i==m) into mask3d once.
    ii = jnp.arange(N)[:, None, None]
    jj = jnp.arange(N)[None, :, None]
    mm = jnp.arange(N)[None, None, :]
    diag = (ii == jj) | (jj == mm) | (ii == mm)                        # (N, N, N)
    keep_f = jnp.where(mask3d & ~diag[None], 1.0, 0.0).astype(jnp.float32)

    # Constant replication matrices (iteration-invariant, resident in VMEM).
    w_rep = jnp.tile(W.astype(jnp.float32), (1, N))                    # (D, N*D)
    e_rep = jnp.repeat(jnp.eye(N, dtype=jnp.float32), D, axis=1)       # (N, N*D)
    e_rep_t = e_rep.T                                                  # (N*D, N)

    call = make_walk_iter_call(B, N, D, beta, ti, tj)
    # Each iteration depends on the *complete* previous graph, so iterations stay as
    # separate pallas_call invocations.  The flat<->4D reshapes merge/split contiguous
    # trailing dims, so they are layout bitcasts (no extra HBM pass).
    g_flat = g.reshape(B, N, N * D)
    for _ in range(iters):
        g4 = g_flat.reshape(B, N, N, D)
        g_flat = call(g4, g_flat, g_flat, keep_f, w_rep, e_rep, e_rep_t)
    return g_flat.reshape(B, N, N, D)


def walk_layer_ref(graph, adj, mask3d, W, *, iters, beta):
    """Pure-JAX reference mirroring the PyTorch semantics, for validation."""
    B, N, _, D = graph.shape
    g = jnp.where(adj[..., None], graph, 0.0)
    ii = jnp.arange(N)[:, None, None]
    jj = jnp.arange(N)[None, :, None]
    mm = jnp.arange(N)[None, None, :]
    diag = (ii == jj) | (jj == mm) | (ii == mm)                        # (N, N, N)
    for _ in range(iters):
        old = g
        gw = jnp.einsum('bijk,kl->bijl', old, W)
        prod = gw[:, :, :, None, :] * old[:, None, :, :, :]            # (B, i, j, m, k)
        allzero = jnp.all(prod == 0.0, axis=-1)                        # (B, i, j, m)
        masked = diag[None] | jnp.logical_not(mask3d) | allzero
        sig = jnp.where(masked[..., None], 0.0, jax.nn.sigmoid(prod))
        summed = jnp.sum(sig, axis=2)                                  # (B, i, m, k)
        beta_mat = jnp.where(jnp.all(masked, axis=2)[..., None], 1.0, beta)
        g = summed + beta_mat * (old - summed)
    return g


if __name__ == "__main__":
    key = jax.random.PRNGKey(0)
    B, N, D = 2, 16, 32
    ITERS, BETA = 2, 0.9

    k1, k2, k3, k4 = jax.random.split(key, 4)
    graph = jax.random.normal(k1, (B, N, N, D), dtype=jnp.float32)
    adj = jax.random.bernoulli(k2, 0.7, (B, N, N))
    mask3d = jax.random.bernoulli(k3, 0.85, (B, N, N, N))
    # W ~ nn.init.normal_(torch.empty(D, D)): unit-normal, deterministic via PRNGKey
    W = jax.random.normal(k4, (D, D), dtype=jnp.float32)

    fwd = jax.jit(functools.partial(walk_layer_forward, iters=ITERS, beta=BETA))
    out = jax.block_until_ready(fwd(graph, adj, mask3d, W))

    ref = jax.block_until_ready(
        walk_layer_ref(graph, adj, mask3d, W, iters=ITERS, beta=BETA))

    max_err = float(jnp.max(jnp.abs(out - ref)))
    assert out.shape == (B, N, N, D)
    assert max_err < 5e-3, f"mismatch vs reference, max abs err = {max_err}"
    print("KERNEL_OK")
</pallas_src>

<mosaic_0001>
module attributes {stable_mosaic.version = 11 : i64} {
  func.func @walk_iter_kernel(%arg0: i32, %arg1: i32, %arg2: i32, %arg3: memref<1x16x16x32xf32, #tpu.memory_space<vmem>>, %arg4: memref<1x16x512xf32, #tpu.memory_space<vmem>>, %arg5: memref<1x16x512xf32, #tpu.memory_space<vmem>>, %arg6: memref<1x16x16x16xf32, #tpu.memory_space<vmem>>, %arg7: memref<32x512xf32, #tpu.memory_space<vmem>>, %arg8: memref<16x512xf32, #tpu.memory_space<vmem>>, %arg9: memref<512x16xf32, #tpu.memory_space<vmem>>, %arg10: memref<1x16x512xf32, #tpu.memory_space<vmem>>, %arg11: memref<16x512xf32, #tpu.memory_space<vmem>>, %arg12: memref<16x512xf32, #tpu.memory_space<vmem>>) attributes {dimension_semantics = [#tpu.dimension_semantics<parallel>, #tpu.dimension_semantics<parallel>, #tpu.dimension_semantics<arbitrary>], iteration_bounds = array<i64: 2, 1, 1>, scalar_prefetch = 0 : i64, scratch_operands = 2 : i64, tpu.core_type = #tpu.core_type<tc>, window_params = [{transform_indices = @transform_0, window_bounds = array<i64: 1, 16, 16, 32>}, {transform_indices = @transform_1, window_bounds = array<i64: 1, 16, 512>}, {transform_indices = @transform_2, window_bounds = array<i64: 1, 16, 512>}, {transform_indices = @transform_3, window_bounds = array<i64: 1, 16, 16, 16>}, {pipeline_mode = #tpu.pipeline_mode<synchronous>, transform_indices = @transform_4, window_bounds = array<i64: 32, 512>}, {pipeline_mode = #tpu.pipeline_mode<synchronous>, transform_indices = @transform_5, window_bounds = array<i64: 16, 512>}, {pipeline_mode = #tpu.pipeline_mode<synchronous>, transform_indices = @transform_6, window_bounds = array<i64: 512, 16>}, {transform_indices = @transform_7, window_bounds = array<i64: 1, 16, 512>}]} {
    %c0_i32 = arith.constant 0 : i32
    %0 = arith.cmpi eq, %arg2, %c0_i32 : i32
    %1 = arith.extui %0 : i1 to i32
    %c0_i32_0 = arith.constant 0 : i32
    %2 = arith.cmpi ne, %1, %c0_i32_0 : i32
    scf.if %2 {
      %cst_35 = arith.constant 0.000000e+00 : f32
      %52 = vector.broadcast %cst_35 : f32 to vector<16x512xf32>
      %c0_36 = arith.constant 0 : index
      %c0_37 = arith.constant 0 : index
      %53 = vector.load %arg11[%c0_36, %c0_37] : memref<16x512xf32, #tpu.memory_space<vmem>>, vector<16x512xf32>
      tpu.vector_store %arg11[%c0_36, %c0_37], %52 {strides = array<i32>} : memref<16x512xf32, #tpu.memory_space<vmem>>, vector<16x512xf32>,
      %cst_38 = arith.constant 0.000000e+00 : f32
      %54 = vector.broadcast %cst_38 : f32 to vector<16x512xf32>
      %c0_39 = arith.constant 0 : index
      %c0_40 = arith.constant 0 : index
      %55 = vector.load %arg12[%c0_39, %c0_40] : memref<16x512xf32, #tpu.memory_space<vmem>>, vector<16x512xf32>
      tpu.vector_store %arg12[%c0_39, %c0_40], %54 {strides = array<i32>} : memref<16x512xf32, #tpu.memory_space<vmem>>, vector<16x512xf32>,
    } else {
    }
    %c16_i32 = arith.constant 16 : i32
    %3 = arith.muli %arg2, %c16_i32 : i32
    %4 = tpu.assume_multiple %3, 16 : i32
    %c0 = arith.constant 0 : index
    %c0_1 = arith.constant 0 : index
    %5 = arith.index_cast %4 : i32 to index
    %c0_2 = arith.constant 0 : index
    %6 = vector.load %arg3[%c0, %c0_1, %5, %c0_2] : memref<1x16x16x32xf32, #tpu.memory_space<vmem>>, vector<1x16x16x32xf32>
    %7 = vector.shape_cast %6 : vector<1x16x16x32xf32> to vector<256x32xf32>
    %c0_3 = arith.constant 0 : index
    %c0_4 = arith.constant 0 : index
    %8 = vector.load %arg7[%c0_3, %c0_4] : memref<32x512xf32, #tpu.memory_space<vmem>>, vector<32x512xf32>
    %cst = arith.constant dense<0.000000e+00> : vector<256x512xf32>
    %9 = tpu.matmul %7, %8, %cst {dimension_numbers = #tpu.dot_dimension_numbers<[1], [0], [0], [1], [0, 0, 1, 1], [], []>} : vector<256x32xf32>, vector<32x512xf32>, vector<256x512xf32> -> vector<256x512xf32>
    %c0_5 = arith.constant 0 : index
    %c0_6 = arith.constant 0 : index
    %c0_7 = arith.constant 0 : index
    %10 = vector.load %arg5[%c0_5, %c0_6, %c0_7] : memref<1x16x512xf32, #tpu.memory_space<vmem>>, vector<1x16x512xf32>
    %11 = vector.shape_cast %10 : vector<1x16x512xf32> to vector<16x512xf32>
    %12 = vector.shape_cast %9 : vector<256x512xf32> to vector<16x16x512xf32>
    %13 = vector.shape_cast %11 : vector<16x512xf32> to vector<1x16x512xf32>
    %14 = vector.broadcast %13 : vector<1x16x512xf32> to vector<16x16x512xf32>
    %15 = arith.mulf %12, %14 : vector<16x16x512xf32>
    %cst_8 = arith.constant 0.000000e+00 : f32
    %16 = vector.broadcast %cst_8 : f32 to vector<16x16x512xf32>
    %17 = arith.cmpf one, %15, %16 : vector<16x16x512xf32>
    %18 = arith.extui %17 : vector<16x16x512xi1> to vector<16x16x512xi32>
    %19 = arith.sitofp %18 : vector<16x16x512xi32> to vector<16x16x512xf32>
    %20 = vector.shape_cast %19 : vector<16x16x512xf32> to vector<256x512xf32>
    %c0_9 = arith.constant 0 : index
    %c0_10 = arith.constant 0 : index
    %21 = vector.load %arg9[%c0_9, %c0_10] : memref<512x16xf32, #tpu.memory_space<vmem>>, vector<512x16xf32>
    %cst_11 = arith.constant dense<0.000000e+00> : vector<256x16xf32>
    %22 = tpu.matmul %20, %21, %cst_11 {dimension_numbers = #tpu.dot_dimension_numbers<[1], [0], [0], [1], [0, 0, 1, 1], [], []>} : vector<256x512xf32>, vector<512x16xf32>, vector<256x16xf32> -> vector<256x16xf32>
    %c0_12 = arith.constant 0 : index
    %c0_13 = arith.constant 0 : index
    %c0_14 = arith.constant 0 : index
    %c0_15 = arith.constant 0 : index
    %23 = vector.load %arg6[%c0_12, %c0_13, %c0_14, %c0_15] : memref<1x16x16x16xf32, #tpu.memory_space<vmem>>, vector<1x16x16x16xf32>
    %24 = vector.shape_cast %23 : vector<1x16x16x16xf32> to vector<256x16xf32>
    %cst_16 = arith.constant 5.000000e-01 : f32
    %25 = vector.broadcast %cst_16 : f32 to vector<256x16xf32>
    %26 = arith.cmpf ogt, %22, %25 : vector<256x16xf32>
    %27 = arith.extui %26 : vector<256x16xi1> to vector<256x16xi32>
    %28 = arith.sitofp %27 : vector<256x16xi32> to vector<256x16xf32>
    %29 = arith.mulf %24, %28 : vector<256x16xf32>
    %c0_17 = arith.constant 0 : index
    %c0_18 = arith.constant 0 : index
    %30 = vector.load %arg8[%c0_17, %c0_18] : memref<16x512xf32, #tpu.memory_space<vmem>>, vector<16x512xf32>
    %cst_19 = arith.constant dense<0.000000e+00> : vector<256x512xf32>
    %31 = tpu.matmul %29, %30, %cst_19 {dimension_numbers = #tpu.dot_dimension_numbers<[1], [0], [0], [1], [0, 0, 1, 1], [], []>} : vector<256x16xf32>, vector<16x512xf32>, vector<256x512xf32> -> vector<256x512xf32>
    %32 = vector.shape_cast %31 : vector<256x512xf32> to vector<16x16x512xf32>
    %cst_20 = arith.constant 5.000000e-01 : f32
    %33 = vector.broadcast %cst_20 : f32 to vector<16x16x512xf32>
    %34 = arith.mulf %33, %15 : vector<16x16x512xf32>
    %35 = math.tanh %34 : vector<16x16x512xf32>
    %cst_21 = arith.constant 5.000000e-01 : f32
    %36 = vector.broadcast %cst_21 : f32 to vector<16x16x512xf32>
    %37 = arith.mulf %36, %35 : vector<16x16x512xf32>
    %cst_22 = arith.constant 5.000000e-01 : f32
    %38 = vector.broadcast %cst_22 : f32 to vector<16x16x512xf32>
    %39 = arith.addf %37, %38 : vector<16x16x512xf32>
    %c0_23 = arith.constant 0 : index
    %c0_24 = arith.constant 0 : index
    %40 = vector.load %arg11[%c0_23, %c0_24] : memref<16x512xf32, #tpu.memory_space<vmem>>, vector<16x512xf32>
    %41 = arith.mulf %32, %39 : vector<16x16x512xf32>
    %cst_25 = arith.constant dense<0.000000e+00> : vector<16x512xf32>
    %42 = vector.multi_reduction <add>, %41, %cst_25 [1] : vector<16x16x512xf32> to vector<16x512xf32>
    %43 = arith.addf %40, %42 : vector<16x512xf32>
    %c0_26 = arith.constant 0 : index
    %c0_27 = arith.constant 0 : index
    %44 = vector.load %arg11[%c0_26, %c0_27] : memref<16x512xf32, #tpu.memory_space<vmem>>, vector<16x512xf32>
    tpu.vector_store %arg11[%c0_26, %c0_27], %43 {strides = array<i32>} : memref<16x512xf32, #tpu.memory_space<vmem>>, vector<16x512xf32>,
    %c0_28 = arith.constant 0 : index
    %c0_29 = arith.constant 0 : index
    %45 = vector.load %arg12[%c0_28, %c0_29] : memref<16x512xf32, #tpu.memory_space<vmem>>, vector<16x512xf32>
    %cst_30 = arith.constant dense<0.000000e+00> : vector<16x512xf32>
    %46 = vector.multi_reduction <add>, %32, %cst_30 [1] : vector<16x16x512xf32> to vector<16x512xf32>
    %47 = arith.addf %45, %46 : vector<16x512xf32>
    %c0_31 = arith.constant 0 : index
    %c0_32 = arith.constant 0 : index
    %48 = vector.load %arg12[%c0_31, %c0_32] : memref<16x512xf32, #tpu.memory_space<vmem>>, vector<16x512xf32>
    tpu.vector_store %arg12[%c0_31, %c0_32], %47 {strides = array<i32>} : memref<16x512xf32, #tpu.memory_space<vmem>>, vector<16x512xf32>,
    %c0_i32_33 = arith.constant 0 : i32
    %49 = arith.cmpi eq, %arg2, %c0_i32_33 : i32
    %50 = arith.extui %49 : i1 to i32
    %c0_i32_34 = arith.constant 0 : i32
    %51 = arith.cmpi ne, %50, %c0_i32_34 : i32
    scf.if %51 {
      %c0_35 = arith.constant 0 : index
      %c0_36 = arith.constant 0 : index
      %c0_37 = arith.constant 0 : index
      %52 = vector.load %arg4[%c0_35, %c0_36, %c0_37] : memref<1x16x512xf32, #tpu.memory_space<vmem>>, vector<1x16x512xf32>
      %53 = vector.shape_cast %52 : vector<1x16x512xf32> to vector<16x512xf32>
      %c0_38 = arith.constant 0 : index
      %c0_39 = arith.constant 0 : index
      %54 = vector.load %arg11[%c0_38, %c0_39] : memref<16x512xf32, #tpu.memory_space<vmem>>, vector<16x512xf32>
      %c0_40 = arith.constant 0 : index
      %c0_41 = arith.constant 0 : index
      %55 = vector.load %arg12[%c0_40, %c0_41] : memref<16x512xf32, #tpu.memory_space<vmem>>, vector<16x512xf32>
      %cst_42 = arith.constant 5.000000e-01 : f32
      %56 = vector.broadcast %cst_42 : f32 to vector<16x512xf32>
      %57 = arith.cmpf ogt, %55, %56 : vector<16x512xf32>
      %cst_43 = arith.constant 0.899999976 : f32
      %cst_44 = arith.constant 1.000000e+00 : f32
      %58 = vector.broadcast %cst_43 : f32 to vector<16x512xf32>
      %59 = vector.broadcast %cst_44 : f32 to vector<16x512xf32>
      %60 = arith.select %57, %58, %59 : vector<16x512xi1>, vector<16x512xf32>
      %61 = arith.subf %53, %54 : vector<16x512xf32>
      %62 = arith.mulf %60, %61 : vector<16x512xf32>
      %63 = arith.addf %54, %62 : vector<16x512xf32>
      %c0_45 = arith.constant 0 : index
      %c0_46 = arith.constant 0 : index
      %c0_47 = arith.constant 0 : index
      %64 = vector.load %arg10[%c0_45, %c0_46, %c0_47] : memref<1x16x512xf32, #tpu.memory_space<vmem>>, vector<1x16x512xf32>
      %65 = vector.shape_cast %64 : vector<1x16x512xf32> to vector<16x512xf32>
      %66 = vector.shape_cast %63 : vector<16x512xf32> to vector<1x16x512xf32>
      tpu.vector_store %arg10[%c0_45, %c0_46, %c0_47], %66 {strides = array<i32>} : memref<1x16x512xf32, #tpu.memory_space<vmem>>, vector<1x16x512xf32>,
    } else {
    }
    return
  }
  func.func @transform_0(%arg0: i32, %arg1: i32, %arg2: i32) -> (i32, i32, i32, i32) {
    %c0_i32 = arith.constant 0 : i32
    %c0_i32_0 = arith.constant 0 : i32
    %c0_i32_1 = arith.constant 0 : i32
    return %arg0, %arg1, %c0_i32, %c0_i32_0 : i32, i32, i32, i32
  }
  func.func @transform_1(%arg0: i32, %arg1: i32, %arg2: i32) -> (i32, i32, i32) {
    %c0_i32 = arith.constant 0 : i32
    %c0_i32_0 = arith.constant 0 : i32
    return %arg0, %arg1, %c0_i32 : i32, i32, i32
  }
  func.func @transform_2(%arg0: i32, %arg1: i32, %arg2: i32) -> (i32, i32, i32) {
    %c0_i32 = arith.constant 0 : i32
    %c0_i32_0 = arith.constant 0 : i32
    return %arg0, %arg2, %c0_i32 : i32, i32, i32
  }
  func.func @transform_3(%arg0: i32, %arg1: i32, %arg2: i32) -> (i32, i32, i32, i32) {
    %c0_i32 = arith.constant 0 : i32
    %c0_i32_0 = arith.constant 0 : i32
    return %arg0, %arg1, %arg2, %c0_i32 : i32, i32, i32, i32
  }
  func.func @transform_4(%arg0: i32, %arg1: i32, %arg2: i32) -> (i32, i32) {
    %c0_i32 = arith.constant 0 : i32
    %c0_i32_0 = arith.constant 0 : i32
    %c0_i32_1 = arith.constant 0 : i32
    return %c0_i32, %c0_i32_0 : i32, i32
  }
  func.func @transform_5(%arg0: i32, %arg1: i32, %arg2: i32) -> (i32, i32) {
    %c0_i32 = arith.constant 0 : i32
    %c0_i32_0 = arith.constant 0 : i32
    %c0_i32_1 = arith.constant 0 : i32
    return %c0_i32, %c0_i32_0 : i32, i32
  }
  func.func @transform_6(%arg0: i32, %arg1: i32, %arg2: i32) -> (i32, i32) {
    %c0_i32 = arith.constant 0 : i32
    %c0_i32_0 = arith.constant 0 : i32
    %c0_i32_1 = arith.constant 0 : i32
    return %c0_i32, %c0_i32_0 : i32, i32
  }
  func.func @transform_7(%arg0: i32, %arg1: i32, %arg2: i32) -> (i32, i32, i32) {
    %c0_i32 = arith.constant 0 : i32
    %c0_i32_0 = arith.constant 0 : i32
    return %arg0, %arg1, %c0_i32 : i32, i32, i32
  }
}

</mosaic_0001>

<bundles_post_ra>
// kernel: tile.9
= control target key start
LH: loop header
LB: loop body
LE: loop exit
PB: predicated region body
PF: predicated region fallthrough
CT: control target
= control target key end

     0   :  { %vm118_vm0 = vcmask 1043458   ;;  %s158_s6 = smov 3  ;;  %vm123_vm1 = vcmask 1045508   ;;  %vm128_vm2 = vcmask 1047558   ;;  %s161_s9 = smov 12  ;;  %vm3_vm3 = vcmask 261120   ;;  %s2648_s0 = inlined_call_operand.vmem [shape: f32[32,16,32], index: 0, kind: input, shape index: {}]   ;;  %s2649_s1 = inlined_call_operand.vmem [shape: f32[32,512], index: 1, kind: output, shape index: {}]  }
   0x1   :  { %v1268_v0 = vld [vmem:[%s2648_s0 + $0x103] ss:$16 sm:%s158_s6]   ;;  %s166_s10 = smov 48  ;;  %s171_s15 = smov 192  ;;  %v1223_v54 = vld [vmem:[%s2648_s0 + $0x80] ss:$4 sm:$0xff]  }
   0x2   :  { %v1269_v1 = vld [vmem:[%s2648_s0 + $0x103] ss:$16 sm:%s161_s9]   ;;  %s113_s16 = smov 3  ;;  %s116_s21 = smov 12  ;;  %vm132_vm4 = vcmask 1048320   ;;  %vm499_vm5 = vcmask 785920  }
   0x3   :  { %v1270_v2 = vld [vmem:[%s2648_s0 + $0x103] ss:$16 sm:%s166_s10]   ;;  %v164_v3 = vsel %vm118_vm0, %v1269_v1, %v1268_v0  ;;  %s121_s22 = smov 48  ;;  %s126_s27 = smov 192  ;;  %v1226_v0 = vld [vmem:[%s2648_s0 + $0xa0] ss:$4 sm:$0xff]  }
   0x4   :  { %v1271_v4 = vld [vmem:[%s2648_s0 + $0x103] ss:$16 sm:%s171_s15]   ;;  %v169_v6 = vsel %vm123_vm1, %v1270_v2, %v164_v3  ;;  %s181_s28 = smov 3  ;;  %s184_s4 = smov 12  ;;  %vm866_vm6 = vcmask 523520  }
   0x5   :  { %v1259_v5 = vld [vmem:[%s2648_s0 + $0x3] ss:$16 sm:%s113_s16]   ;;  %v174_v9 = vsel %vm128_vm2, %v1271_v4, %v169_v6  ;;  %s189_s5 = smov 48  ;;  %s1499_s6 = smov 96   ;;  %v1229_v6 = vld [vmem:[%s2648_s0 + $0xc0] ss:$4 sm:$0xff]  }
   0x6   :  { %v1260_v7 = vld [vmem:[%s2648_s0 + $0x3] ss:$16 sm:%s116_s21]   ;;  %175 = vrot.lane.b32.xlu1 %v174_v9, %s1499_s6  ;;  %s194_s9 = smov 192  ;;  %s135_s10 = smov 3 }
   0x7   :  { %v1261_v8 = vld [vmem:[%s2648_s0 + $0x3] ss:$16 sm:%s121_s22]   ;;  %v119_v10 = vsel %vm118_vm0, %v1260_v7, %v1259_v5  ;;  %s138_s15 = smov 12  ;;  %s143_s16 = smov 48 }
   0x8   :  { %v1262_v11 = vld [vmem:[%s2648_s0 + $0x3] ss:$16 sm:%s126_s27]   ;;  %v124_v13 = vsel %vm123_vm1, %v1261_v8, %v119_v10  ;;  %s148_s19 = smov 192  ;;  %s227_s20 = smov 3 }
   0x9   :  { %v1273_v12 = vld [vmem:[%s2648_s0 + $0x183] ss:$16 sm:%s181_s28]   ;;  %v129_v15 = vsel %vm128_vm2, %v1262_v11, %v124_v13  ;;  %s230_s25 = smov 12  ;;  %s235_s26 = smov 48  ;;  %v1283_v27 = vld [vmem:[%s2648_s0 + $0x87] ss:$16 sm:%s227_s20]  }
   0xa   :  { %v1274_v14 = vld [vmem:[%s2648_s0 + $0x183] ss:$16 sm:%s184_s4]   ;;  %130 = vrot.lane.b32.xlu0 %v129_v15, %s1499_s6  ;;  %s240_s29 = smov 192  ;;  %s204_s30 = smov 3 }
   0xb   :  { %v187_v16 = vsel %vm118_vm0, %v1274_v14, %v1273_v12  ;;  %v1275_v17 = vld [vmem:[%s2648_s0 + $0x183] ss:$16 sm:%s189_s5]   ;;  %v1284_v28 = vld [vmem:[%s2648_s0 + $0x87] ss:$16 sm:%s230_s25]   ;;  %s207_s7 = smov 12  ;;  %s212_s8 = smov 48 }
   0xc   :  { %v1276_v18 = vld [vmem:[%s2648_s0 + $0x183] ss:$16 sm:%s194_s9]   ;;  %v192_v19 = vsel %vm123_vm1, %v1275_v17, %v187_v16  ;;  %v233_v30 = vsel %vm118_vm0, %v1284_v28, %v1283_v27  ;;  %v1285_v31 = vld [vmem:[%s2648_s0 + $0x87] ss:$16 sm:%s235_s26]   ;;  %s217_s13 = smov 192  ;;  %s276_s17 = smov 12 }
   0xd   :  { %v1263_v20 = vld [vmem:[%s2648_s0 + $0x83] ss:$16 sm:%s135_s10]   ;;  %v197_v21 = vsel %vm128_vm2, %v1276_v18, %v192_v19  ;;  %v1286_v32 = vld [vmem:[%s2648_s0 + $0x87] ss:$16 sm:%s240_s29]   ;;  %v238_v33 = vsel %vm123_vm1, %v1285_v31, %v233_v30  ;;  %s281_s22 = smov 48  ;;  %s286_s23 = smov 192 }
   0xe   :  { %v1264_v22 = vld [vmem:[%s2648_s0 + $0x83] ss:$16 sm:%s138_s15]   ;;  %198 = vrot.lane.b32.xlu1 %v197_v21, %s1499_s6  ;;  %v243_v35 = vsel %vm128_vm2, %v1286_v32, %v238_v33  ;;  %s250_s26 = smov 3  ;;  %s253_s2 = smov 12  ;;  %v1232_v16 = vld [vmem:[%s2648_s0 + $0xe0] ss:$4 sm:$0xff]  }
   0xf   :  { %v1265_v23 = vld [vmem:[%s2648_s0 + $0x83] ss:$16 sm:%s143_s16]   ;;  %v141_v24 = vsel %vm118_vm0, %v1264_v22, %v1263_v20  ;;  %v1278_v34 = vld [vmem:[%s2648_s0 + $0x7] ss:$16 sm:%s204_s30]   ;;  %s273_s16 = smov 3  ;;  %s258_s3 = smov 48 }
  0x10   :  { %v1266_v25 = vld [vmem:[%s2648_s0 + $0x83] ss:$16 sm:%s148_s19]   ;;  %v146_v26 = vsel %vm123_vm1, %v1265_v23, %v141_v24  ;;  %v1279_v36 = vld [vmem:[%s2648_s0 + $0x7] ss:$16 sm:%s207_s7]   ;;  %s263_s9 = smov 192  ;;  %s319_s12 = smov 3 }
  0x11   :  { %v151_v29 = vsel %vm128_vm2, %v1266_v25, %v146_v26  ;;  %v1280_v37 = vld [vmem:[%s2648_s0 + $0x7] ss:$16 sm:%s212_s8]   ;;  %v210_v38 = vsel %vm118_vm0, %v1279_v36, %v1278_v34  ;;  %s327_s18 = smov 48  ;;  %s332_s19 = smov 192  ;;  %v1303_v56 = vld [vmem:[%s2648_s0 + $0x8b] ss:$16 sm:%s319_s12]  }
  0x12   :  { %152 = vrot.lane.b32.xlu0 %v151_v29, %s1499_s6  ;;  %244 = vrot.lane.b32.xlu1 %v243_v35, %s1499_s6  ;;  %v1281_v39 = vld [vmem:[%s2648_s0 + $0x7] ss:$16 sm:%s217_s13]   ;;  %v215_v40 = vsel %vm123_vm1, %v1280_v37, %v210_v38  ;;  %s322_s13 = smov 12  ;;  %s299_s29 = smov 12 }
  0x13   :  { %v1293_v41 = vld [vmem:[%s2648_s0 + $0x187] ss:$16 sm:%s273_s16]   ;;  %v220_v43 = vsel %vm128_vm2, %v1281_v39, %v215_v40  ;;  %v1304_v57 = vld [vmem:[%s2648_s0 + $0x8b] ss:$16 sm:%s322_s13]   ;;  %s304_s30 = smov 48  ;;  %s309_s11 = smov 192 }
  0x14   :  { %v1294_v42 = vld [vmem:[%s2648_s0 + $0x187] ss:$16 sm:%s276_s17]   ;;  %1224 = vst.msk [vmem:[%s2649_s1 + $0x20] ss:$8 sm:$0xf] %vm3_vm3, %v1223_v54   ;;  %v325_v59 = vsel %vm118_vm0, %v1304_v57, %v1303_v56  ;;  %s365_s14 = smov 3 }
  0x15   :  { %v279_v44 = vsel %vm118_vm0, %v1294_v42, %v1293_v41  ;;  %v1295_v45 = vld [vmem:[%s2648_s0 + $0x187] ss:$16 sm:%s281_s22]   ;;  %s296_s22 = smov 3  ;;  %1225 = vst.msk [vmem:[%s2649_s1 + $0x1] ss:$8 sm:$0xf0] %vm3_vm3, %v1223_v54  }
  0x16   :  { %v1296_v46 = vld [vmem:[%s2648_s0 + $0x187] ss:$16 sm:%s286_s23]   ;;  %221 = vrot.lane.b32.xlu0 %v220_v43, %s1499_s6  ;;  %v284_v47 = vsel %vm123_vm1, %v1295_v45, %v279_v44  ;;  %s368_s15 = smov 12  ;;  %s378_s23 = smov 192  ;;  %v2_v31 = vld [vmem:[%s2648_s0] ss:$4 sm:$0xff]  }
  0x17   :  { %v1288_v48 = vld [vmem:[%s2648_s0 + $0x107] ss:$16 sm:%s250_s26]   ;;  %v289_v49 = vsel %vm128_vm2, %v1296_v46, %v284_v47  ;;  %v1305_v60 = vld [vmem:[%s2648_s0 + $0x8b] ss:$16 sm:%s327_s18]   ;;  %s350_s10 = smov 48  ;;  %s396_s16 = smov 48 }
  0x18   :  { %v1289_v50 = vld [vmem:[%s2648_s0 + $0x107] ss:$16 sm:%s253_s2]   ;;  %290 = vrot.lane.b32.xlu1 %v289_v49, %s1499_s6  ;;  %v330_v62 = vsel %vm123_vm1, %v1305_v60, %v325_v59  ;;  %1227 = vst.msk [vmem:[%s2649_s1 + $0x22] ss:$8 sm:$0xf] %vm3_vm3, %v1226_v0   ;;  %s424_s2 = smov 192 }
  0x19   :  { %v1290_v51 = vld [vmem:[%s2648_s0 + $0x107] ss:$16 sm:%s258_s3]   ;;  %v256_v52 = vsel %vm118_vm0, %v1289_v50, %v1288_v48  ;;  %v1306_v61 = vld [vmem:[%s2648_s0 + $0x8b] ss:$16 sm:%s332_s19]   ;;  %s355_s19 = smov 192  ;;  %s401_s21 = smov 192 }
  0x1a   :  { %v1291_v53 = vld [vmem:[%s2648_s0 + $0x107] ss:$16 sm:%s263_s9]   ;;  %v261_v55 = vsel %vm123_vm1, %v1290_v51, %v256_v52  ;;  %v1298_v63 = vld [vmem:[%s2648_s0 + $0xb] ss:$16 sm:%s296_s22]   ;;  %v335_v1 = vsel %vm128_vm2, %v1306_v61, %v330_v62  ;;  %s373_s22 = smov 48  ;;  %s345_s9 = smov 12 }
  0x1b   :  { %v266_v58 = vsel %vm128_vm2, %v1291_v53, %v261_v55  ;;  %v1299_v2 = vld [vmem:[%s2648_s0 + $0xb] ss:$16 sm:%s299_s29]   ;;  %1228 = vst.msk [vmem:[%s2649_s1 + $0x3] ss:$8 sm:$0xf0] %vm3_vm3, %v1226_v0   ;;  %s457_s24 = smov 3 }
  0x1c   :  { %267 = vrot.lane.b32.xlu0 %v266_v58, %s1499_s6  ;;  %v1300_v3 = vld [vmem:[%s2648_s0 + $0xb] ss:$16 sm:%s304_s30]   ;;  %336 = vrot.lane.b32.xlu1 %v335_v1, %s1499_s6  ;;  %v302_v4 = vsel %vm118_vm0, %v1299_v2, %v1298_v63  ;;  %s342_s30 = smov 3  ;;  %s460_s25 = smov 12 }
  0x1d   :  { %v1301_v5 = vld [vmem:[%s2648_s0 + $0xb] ss:$16 sm:%s309_s11]   ;;  %v307_v7 = vsel %vm123_vm1, %v1300_v3, %v302_v4  ;;  %1230 = vst.msk [vmem:[%s2649_s1 + $0x24] ss:$8 sm:$0xf] %vm3_vm3, %v1229_v6   ;;  %s465_s3 = smov 48 }
  0x1e   :  { %v1313_v8 = vld [vmem:[%s2648_s0 + $0x18b] ss:$16 sm:%s365_s14]   ;;  %1231 = vst.msk [vmem:[%s2649_s1 + $0x5] ss:$8 sm:$0xf0] %vm3_vm3, %v1229_v6   ;;  %v312_v10 = vsel %vm128_vm2, %v1301_v5, %v307_v7  ;;  %s470_s4 = smov 192 }
  0x1f   :  { %v1314_v9 = vld [vmem:[%s2648_s0 + $0x18b] ss:$16 sm:%s368_s15]   ;;  %1233 = vst.msk [vmem:[%s2649_s1 + $0x26] ss:$8 sm:$0xf] %vm3_vm3, %v1232_v16   ;;  %s391_s15 = smov 12 }
  0x20   :  { %v371_v11 = vsel %vm118_vm0, %v1314_v9, %v1313_v8  ;;  %v1315_v12 = vld [vmem:[%s2648_s0 + $0x18b] ss:$16 sm:%s373_s22]   ;;  %313 = vrot.lane.b32.xlu0 %v312_v10, %s1499_s6  ;;  %s411_s22 = smov 3  ;;  %1234 = vst.msk [vmem:[%s2649_s1 + $0x7] ss:$8 sm:$0xf0] %vm3_vm3, %v1232_v16  }
  0x21   :  { %v1316_v13 = vld [vmem:[%s2648_s0 + $0x18b] ss:$16 sm:%s378_s23]   ;;  %v376_v14 = vsel %vm123_vm1, %v1315_v12, %v371_v11  ;;  %s414_s23 = smov 12  ;;  %v1323_v23 = vld [vmem:[%s2648_s0 + $0x8f] ss:$16 sm:%s411_s22]   ;;  %s434_s12 = smov 3 }
  0x22   :  { %v1308_v15 = vld [vmem:[%s2648_s0 + $0x10b] ss:$16 sm:%s342_s30]   ;;  %v381_v17 = vsel %vm128_vm2, %v1316_v13, %v376_v14  ;;  %s419_s30 = smov 48  ;;  %v1324_v24 = vld [vmem:[%s2648_s0 + $0x8f] ss:$16 sm:%s414_s23]   ;;  %s442_s20 = smov 48 }
  0x23   :  { %v1309_v18 = vld [vmem:[%s2648_s0 + $0x10b] ss:$16 sm:%s345_s9]   ;;  %382 = vrot.lane.b32.xlu1 %v381_v17, %s1499_s6  ;;  %v417_v26 = vsel %vm118_vm0, %v1324_v24, %v1323_v23  ;;  %4 = vst.msk [vmem:[%s2649_s1] ss:$8 sm:$0xf] %vm3_vm3, %v2_v31   ;;  %s447_s29 = smov 192 }
  0x24   :  { %v1310_v19 = vld [vmem:[%s2648_s0 + $0x10b] ss:$16 sm:%s350_s10]   ;;  %v348_v20 = vsel %vm118_vm0, %v1309_v18, %v1308_v15  ;;  %s388_s10 = smov 3  ;;  %v1325_v27 = vld [vmem:[%s2648_s0 + $0x8f] ss:$16 sm:%s419_s30]   ;;  %s515_s13 = smov 192 }
  0x25   :  { %v1311_v21 = vld [vmem:[%s2648_s0 + $0x10b] ss:$16 sm:%s355_s19]   ;;  %v353_v22 = vsel %vm123_vm1, %v1310_v19, %v348_v20  ;;  %v1326_v28 = vld [vmem:[%s2648_s0 + $0x8f] ss:$16 sm:%s424_s2]   ;;  %v422_v29 = vsel %vm123_vm1, %v1325_v27, %v417_v26  ;;  %s437_s19 = smov 12  ;;  %s483_s27 = smov 12 }
  0x26   :  { %v358_v25 = vsel %vm128_vm2, %v1311_v21, %v353_v22  ;;  %v1318_v30 = vld [vmem:[%s2648_s0 + $0xf] ss:$16 sm:%s388_s10]   ;;  %v427_v32 = vsel %vm128_vm2, %v1326_v28, %v422_v29  ;;  %1213 = vst.msk [vmem:[%s2649_s1 - $0x1f] ss:$8 sm:$0xf0] %vm3_vm3, %v2_v31   ;;  %s488_s28 = smov 48 }
  0x27   :  { %359 = vrot.lane.b32.xlu0 %v358_v25, %s1499_s6  ;;  %v1319_v33 = vld [vmem:[%s2648_s0 + $0xf] ss:$16 sm:%s391_s15]   ;;  %428 = vrot.lane.b32.xlu1 %v427_v32, %s1499_s6  ;;  %s493_s9 = smov 192  ;;  %s548_s11 = smov 3 }
  0x28   :  { %v1320_v34 = vld [vmem:[%s2648_s0 + $0xf] ss:$16 sm:%s396_s16]   ;;  %v394_v35 = vsel %vm118_vm0, %v1319_v33, %v1318_v30  ;;  %v1214_v37 = vld [vmem:[%s2648_s0 + $0x20] ss:$4 sm:$0xff]   ;;  %s528_s7 = smov 12  ;;  %s533_s8 = smov 48 }
  0x29   :  { %v1321_v36 = vld [vmem:[%s2648_s0 + $0xf] ss:$16 sm:%s401_s21]   ;;  %v399_v38 = vsel %vm123_vm1, %v1320_v34, %v394_v35  ;;  %1215 = vst.msk [vmem:[%s2649_s1 + $0x2] ss:$8 sm:$0xf] %vm3_vm3, %v1214_v37   ;;  %s538_s16 = smov 192 }
  0x2a   :  { %v1333_v39 = vld [vmem:[%s2648_s0 + $0x18f] ss:$16 sm:%s457_s24]   ;;  %1216 = vst.msk [vmem:[%s2649_s1 - $0x1d] ss:$8 sm:$0xf0] %vm3_vm3, %v1214_v37   ;;  %v404_v41 = vsel %vm128_vm2, %v1321_v36, %v399_v38  ;;  %s574_s14 = smov 12 }
  0x2b   :  { %v1334_v40 = vld [vmem:[%s2648_s0 + $0x18f] ss:$16 sm:%s460_s25]   ;;  %405 = vrot.lane.b32.xlu0 %v404_v41, %s1499_s6  ;;  %v1217_v47 = vld [vmem:[%s2648_s0 + $0x40] ss:$4 sm:$0xff]   ;;  %s1500_s25 = smov 64   ;;  %s579_s15 = smov 48 }
  0x2c   :  { %v463_v42 = vsel %vm118_vm0, %v1334_v40, %v1333_v39  ;;  %v1335_v43 = vld [vmem:[%s2648_s0 + $0x18f] ss:$16 sm:%s465_s3]   ;;  %s502_s3 = smov 3  ;;  %1218 = vst.msk [vmem:[%s2649_s1 + $0x4] ss:$8 sm:$0xf] %vm3_vm3, %v1217_v47  }
  0x2d   :  { %v1336_v44 = vld [vmem:[%s2648_s0 + $0x18f] ss:$16 sm:%s470_s4]   ;;  %v468_v45 = vsel %vm123_vm1, %v1335_v43, %v463_v42  ;;  %s505_s4 = smov 12  ;;  %1219 = vst.msk [vmem:[%s2649_s1 - $0x1b] ss:$8 sm:$0xf0] %vm3_vm3, %v1217_v47  }
  0x2e   :  { %v1328_v46 = vld [vmem:[%s2648_s0 + $0x10f] ss:$16 sm:%s434_s12]   ;;  %v473_v48 = vsel %vm128_vm2, %v1336_v44, %v468_v45  ;;  %s510_s12 = smov 48  ;;  %v1220_v53 = vld [vmem:[%s2648_s0 + $0x60] ss:$4 sm:$0xff]   ;;  %s584_s24 = smov 192 }
  0x2f   :  { %v1329_v49 = vld [vmem:[%s2648_s0 + $0x10f] ss:$16 sm:%s437_s19]   ;;  %474 = vrot.lane.b32.xlu1 %v473_v48, %s1499_s6  ;;  %1221 = vst.msk [vmem:[%s2649_s1 + $0x6] ss:$8 sm:$0xf] %vm3_vm3, %v1220_v53   ;;  %s556_s19 = smov 48 }
  0x30   :  { %v1330_v50 = vld [vmem:[%s2648_s0 + $0x10f] ss:$16 sm:%s442_s20]   ;;  %v440_v51 = vsel %vm118_vm0, %v1329_v49, %v1328_v46  ;;  %s480_s20 = smov 3  ;;  %v1342_v55 = vld [vmem:[%s2648_s0 + $0x82] ss:$16 sm:%s502_s3]   ;;  %s620_s22 = smov 12 }
  0x31   :  { %v1331_v52 = vld [vmem:[%s2648_s0 + $0x10f] ss:$16 sm:%s447_s29]   ;;  %v445_v54 = vsel %vm123_vm1, %v1330_v50, %v440_v51  ;;  %v1343_v56 = vld [vmem:[%s2648_s0 + $0x82] ss:$16 sm:%s505_s4]   ;;  %s607_s29 = smov 192  ;;  %s625_s23 = smov 48 }
  0x32   :  { %1222 = vst.msk [vmem:[%s2649_s1 - $0x19] ss:$8 sm:$0xf0] %vm3_vm3, %v1220_v53   ;;  %v450_v57 = vsel %vm128_vm2, %v1331_v52, %v445_v54  ;;  %v508_v58 = vsel %vm118_vm0, %v1343_v56, %v1342_v55  ;;  %v1344_v59 = vld [vmem:[%s2648_s0 + $0x82] ss:$16 sm:%s510_s12]   ;;  %s551_s12 = smov 12 }
  0x33   :  { %v1345_v60 = vld [vmem:[%s2648_s0 + $0x82] ss:$16 sm:%s515_s13]   ;;  %451 = vrot.lane.b32.xlu0 %v450_v57, %s1499_s6  ;;  %v513_v61 = vsel %vm123_vm1, %v1344_v59, %v508_v58  ;;  %v1247_v63 = vld [vmem:[%s2648_s0 + $0x180] ss:$4 sm:$0xff]   ;;  %s630_s4 = smov 192  ;;  %s666_s2 = smov 12 }
  0x34   :  { %v1338_v62 = vld [vmem:[%s2648_s0 + $0x2] ss:$16 sm:%s480_s20]   ;;  %v518_v0 = vsel %vm128_vm2, %v1345_v60, %v513_v61  ;;  %s561_s20 = smov 192  ;;  %1248 = vst.msk [vmem:[%s2649_s1 + $0x60] ss:$8 sm:$0xf] %vm3_vm3, %v1247_v63  }
  0x35   :  { %v1339_v1 = vld [vmem:[%s2648_s0 + $0x2] ss:$16 sm:%s483_s27]   ;;  %1249 = vst.msk [vmem:[%s2649_s1 + $0x41] ss:$8 sm:$0xf0] %vm3_vm3, %v1247_v63   ;;  %519 = vrot.lane.b32.xlu1 %v518_v0, %s1500_s25  ;;  %s671_s3 = smov 48 }
  0x36   :  { %v1340_v2 = vld [vmem:[%s2648_s0 + $0x2] ss:$16 sm:%s488_s28]   ;;  %v486_v3 = vsel %vm118_vm0, %v1339_v1, %v1338_v62  ;;  %s525_s28 = smov 3  ;;  %v1250_v5 = vld [vmem:[%s2648_s0 + $0x1a0] ss:$4 sm:$0xff]   ;;  %s740_s21 = smov 48 }
  0x37   :  { %v1341_v4 = vld [vmem:[%s2648_s0 + $0x2] ss:$16 sm:%s493_s9]   ;;  %v491_v6 = vsel %vm123_vm1, %v1340_v2, %v486_v3  ;;  %1251 = vst.msk [vmem:[%s2649_s1 + $0x62] ss:$8 sm:$0xf] %vm3_vm3, %v1250_v5   ;;  %s653_s9 = smov 192 }
  0x38   :  { %v1352_v7 = vld [vmem:[%s2648_s0 + $0x182] ss:$16 sm:%s548_s11]   ;;  %1252 = vst.msk [vmem:[%s2649_s1 + $0x43] ss:$8 sm:$0xf0] %vm3_vm3, %v1250_v5   ;;  %v496_v9 = vsel %vm128_vm2, %v1341_v4, %v491_v6  ;;  %s709_s26 = smov 3 }
  0x39   :  { %v1353_v8 = vld [vmem:[%s2648_s0 + $0x182] ss:$16 sm:%s551_s12]   ;;  %497 = vrot.lane.b32.xlu0 %v496_v9, %s1500_s25  ;;  %v1253_v15 = vld [vmem:[%s2648_s0 + $0x1c0] ss:$4 sm:$0xff]   ;;  %s676_s12 = smov 192  ;;  %s778_s11 = smov 3 }
  0x3a   :  { %v554_v10 = vsel %vm118_vm0, %v1353_v8, %v1352_v7  ;;  %v1354_v11 = vld [vmem:[%s2648_s0 + $0x182] ss:$16 sm:%s556_s19]   ;;  %s594_s19 = smov 3  ;;  %1254 = vst.msk [vmem:[%s2649_s1 + $0x64] ss:$8 sm:$0xf] %vm3_vm3, %v1253_v15  }
  0x3b   :  { %v1355_v12 = vld [vmem:[%s2648_s0 + $0x182] ss:$16 sm:%s561_s20]   ;;  %v559_v13 = vsel %vm123_vm1, %v1354_v11, %v554_v10  ;;  %s597_s20 = smov 12  ;;  %1255 = vst.msk [vmem:[%s2649_s1 + $0x45] ss:$8 sm:$0xf0] %vm3_vm3, %v1253_v15  }
  0x3c   :  { %v1347_v14 = vld [vmem:[%s2648_s0 + $0x102] ss:$16 sm:%s525_s28]   ;;  %v564_v16 = vsel %vm128_vm2, %v1355_v12, %v559_v13  ;;  %s602_s28 = smov 48  ;;  %v1256_v21 = vld [vmem:[%s2648_s0 + $0x1e0] ss:$4 sm:$0xff]   ;;  %s786_s17 = smov 48 }
  0x3d   :  { %v1348_v17 = vld [vmem:[%s2648_s0 + $0x102] ss:$16 sm:%s528_s7]   ;;  %565 = vrot.lane.b32.xlu1 %v564_v16, %s1500_s25  ;;  %1257 = vst.msk [vmem:[%s2649_s1 + $0x66] ss:$8 sm:$0xf] %vm3_vm3, %v1256_v21   ;;  %s791_s18 = smov 192 }
  0x3e   :  { %v1349_v18 = vld [vmem:[%s2648_s0 + $0x102] ss:$16 sm:%s533_s8]   ;;  %v531_v19 = vsel %vm118_vm0, %v1348_v17, %v1347_v14  ;;  %s571_s8 = smov 3  ;;  %v1362_v23 = vld [vmem:[%s2648_s0 + $0x86] ss:$16 sm:%s594_s19]   ;;  %s758_s27 = smov 12 }
  0x3f   :  { %v1350_v20 = vld [vmem:[%s2648_s0 + $0x102] ss:$16 sm:%s538_s16]   ;;  %v536_v22 = vsel %vm123_vm1, %v1349_v18, %v531_v19  ;;  %v1363_v24 = vld [vmem:[%s2648_s0 + $0x86] ss:$16 sm:%s597_s20]   ;;  %s699_s16 = smov 192  ;;  %s832_s13 = smov 48 }
  0x40   :  { %1258 = vst.msk [vmem:[%s2649_s1 + $0x47] ss:$8 sm:$0xf0] %vm3_vm3, %v1256_v21   ;;  %v541_v25 = vsel %vm128_vm2, %v1350_v20, %v536_v22  ;;  %v600_v26 = vsel %vm118_vm0, %v1363_v24, %v1362_v23  ;;  %v1364_v27 = vld [vmem:[%s2648_s0 + $0x86] ss:$16 sm:%s602_s28]   ;;  %s640_s28 = smov 3 }
  0x41   :  { %v1365_v28 = vld [vmem:[%s2648_s0 + $0x86] ss:$16 sm:%s607_s29]   ;;  %542 = vrot.lane.b32.xlu0 %v541_v25, %s1500_s25  ;;  %v605_v29 = vsel %vm123_vm1, %v1364_v27, %v600_v26  ;;  %s643_s29 = smov 12  ;;  %v1235_v31 = vld [vmem:[%s2648_s0 + $0x100] ss:$4 sm:$0xff]   ;;  %s877_s6 = smov 48 }
  0x42   :  { %v1357_v30 = vld [vmem:[%s2648_s0 + $0x6] ss:$16 sm:%s571_s8]   ;;  %v610_v32 = vsel %vm128_vm2, %v1365_v28, %v605_v29  ;;  %s648_s8 = smov 48  ;;  %1236 = vst.msk [vmem:[%s2649_s1 + $0x40] ss:$8 sm:$0xf] %vm3_vm3, %v1235_v31  }
  0x43   :  { %v1358_v33 = vld [vmem:[%s2648_s0 + $0x6] ss:$16 sm:%s574_s14]   ;;  %1237 = vst.msk [vmem:[%s2649_s1 + $0x21] ss:$8 sm:$0xf0] %vm3_vm3, %v1235_v31   ;;  %611 = vrot.lane.b32.xlu1 %v610_v32, %s1500_s25  ;;  %s837_s14 = smov 192 }
  0x44   :  { %v1359_v34 = vld [vmem:[%s2648_s0 + $0x6] ss:$16 sm:%s579_s15]   ;;  %v577_v35 = vsel %vm118_vm0, %v1358_v33, %v1357_v30  ;;  %s617_s15 = smov 3  ;;  %v1238_v37 = vld [vmem:[%s2648_s0 + $0x120] ss:$4 sm:$0xff]   ;;  %s882_s10 = smov 192 }
  0x45   :  { %v1360_v36 = vld [vmem:[%s2648_s0 + $0x6] ss:$16 sm:%s584_s24]   ;;  %v582_v38 = vsel %vm123_vm1, %v1359_v34, %v577_v35  ;;  %1239 = vst.msk [vmem:[%s2649_s1 + $0x42] ss:$8 sm:$0xf] %vm3_vm3, %v1238_v37   ;;  %s855_s19 = smov 48 }
  0x46   :  { %v1372_v39 = vld [vmem:[%s2648_s0 + $0x186] ss:$16 sm:%s640_s28]   ;;  %1240 = vst.msk [vmem:[%s2649_s1 + $0x23] ss:$8 sm:$0xf0] %vm3_vm3, %v1238_v37   ;;  %v587_v41 = vsel %vm128_vm2, %v1360_v36, %v582_v38  ;;  %s763_s28 = smov 48 }
  0x47   :  { %v1373_v40 = vld [vmem:[%s2648_s0 + $0x186] ss:$16 sm:%s643_s29]   ;;  %588 = vrot.lane.b32.xlu0 %v587_v41, %s1500_s25  ;;  %v1241_v47 = vld [vmem:[%s2648_s0 + $0x140] ss:$4 sm:$0xff]   ;;  %s814_s29 = smov 192  ;;  %s860_s24 = smov 192 }
  0x48   :  { %v646_v42 = vsel %vm118_vm0, %v1373_v40, %v1372_v39  ;;  %v1374_v43 = vld [vmem:[%s2648_s0 + $0x186] ss:$16 sm:%s648_s8]   ;;  %s686_s8 = smov 3  ;;  %1242 = vst.msk [vmem:[%s2649_s1 + $0x44] ss:$8 sm:$0xf] %vm3_vm3, %v1241_v47  }
  0x49   :  { %v1375_v44 = vld [vmem:[%s2648_s0 + $0x186] ss:$16 sm:%s653_s9]   ;;  %v651_v45 = vsel %vm123_vm1, %v1374_v43, %v646_v42  ;;  %s689_s9 = smov 12  ;;  %1243 = vst.msk [vmem:[%s2649_s1 + $0x25] ss:$8 sm:$0xf0] %vm3_vm3, %v1241_v47  }
  0x4a   :  { %v1367_v46 = vld [vmem:[%s2648_s0 + $0x106] ss:$16 sm:%s617_s15]   ;;  %v656_v48 = vsel %vm128_vm2, %v1375_v44, %v651_v45  ;;  %s694_s15 = smov 48  ;;  %v1244_v53 = vld [vmem:[%s2648_s0 + $0x160] ss:$4 sm:$0xff]   ;;  %s928_s5 = smov 192 }
  0x4b   :  { %v1368_v49 = vld [vmem:[%s2648_s0 + $0x106] ss:$16 sm:%s620_s22]   ;;  %657 = vrot.lane.b32.xlu1 %v656_v48, %s1500_s25  ;;  %1245 = vst.msk [vmem:[%s2649_s1 + $0x46] ss:$8 sm:$0xf] %vm3_vm3, %v1244_v53   ;;  %s745_s22 = smov 192 }
  0x4c   :  { %v1369_v50 = vld [vmem:[%s2648_s0 + $0x106] ss:$16 sm:%s625_s23]   ;;  %v623_v51 = vsel %vm118_vm0, %v1368_v49, %v1367_v46  ;;  %s663_s23 = smov 3  ;;  %v1382_v55 = vld [vmem:[%s2648_s0 + $0x8a] ss:$16 sm:%s686_s8]   ;;  %s824_s8 = smov 3 }
  0x4d   :  { %v1370_v52 = vld [vmem:[%s2648_s0 + $0x106] ss:$16 sm:%s630_s4]   ;;  %v628_v54 = vsel %vm123_vm1, %v1369_v50, %v623_v51  ;;  %v1383_v56 = vld [vmem:[%s2648_s0 + $0x8a] ss:$16 sm:%s689_s9]   ;;  %s722_s9 = smov 192  ;;  %s768_s4 = smov 192 }
  0x4e   :  { %1246 = vst.msk [vmem:[%s2649_s1 + $0x27] ss:$8 sm:$0xf0] %vm3_vm3, %v1244_v53   ;;  %v633_v57 = vsel %vm128_vm2, %v1370_v52, %v628_v54  ;;  %v692_v58 = vsel %vm118_vm0, %v1383_v56, %v1382_v55  ;;  %v1384_v59 = vld [vmem:[%s2648_s0 + $0x8a] ss:$16 sm:%s694_s15]   ;;  %s732_s15 = smov 3 }
  0x4f   :  { %v1385_v60 = vld [vmem:[%s2648_s0 + $0x8a] ss:$16 sm:%s699_s16]   ;;  %634 = vrot.lane.b32.xlu0 %v633_v57, %s1500_s25  ;;  %v697_v61 = vsel %vm123_vm1, %v1384_v59, %v692_v58  ;;  %s735_s16 = smov 12  ;;  %s1501_s7 = smov 32  }
  0x50   :  { %v1377_v62 = vld [vmem:[%s2648_s0 + $0xa] ss:$16 sm:%s663_s23]   ;;  %v702_v63 = vsel %vm128_vm2, %v1385_v60, %v697_v61  ;;  %v1402_v19 = vld [vmem:[%s2648_s0 + $0x8e] ss:$16 sm:%s778_s11]   ;;  %s809_s23 = smov 48  ;;  %s905_s20 = smov 192 }
  0x51   :  { %v1378_v0 = vld [vmem:[%s2648_s0 + $0xa] ss:$16 sm:%s666_s2]   ;;  %703 = vrot.lane.b32.xlu1 %v702_v63, %s1500_s25  ;;  %s712_s2 = smov 12  ;;  %s974_s30 = smov 192 }
  0x52   :  { %v1379_v1 = vld [vmem:[%s2648_s0 + $0xa] ss:$16 sm:%s671_s3]   ;;  %v669_v2 = vsel %vm118_vm0, %v1378_v0, %v1377_v62  ;;  %s717_s3 = smov 48  ;;  %v1404_v23 = vld [vmem:[%s2648_s0 + $0x8e] ss:$16 sm:%s786_s17]   ;;  %s801_s17 = smov 3 }
  0x53   :  { %v1380_v3 = vld [vmem:[%s2648_s0 + $0xa] ss:$16 sm:%s676_s12]   ;;  %v674_v4 = vsel %vm123_vm1, %v1379_v1, %v669_v2  ;;  %s781_s12 = smov 12  ;;  %v1405_v24 = vld [vmem:[%s2648_s0 + $0x8e] ss:$16 sm:%s791_s18]   ;;  %s850_s18 = smov 12 }
  0x54   :  { %v1392_v5 = vld [vmem:[%s2648_s0 + $0x18a] ss:$16 sm:%s732_s15]   ;;  %v679_v7 = vsel %vm128_vm2, %v1380_v3, %v674_v4  ;;  %v1403_v20 = vld [vmem:[%s2648_s0 + $0x8e] ss:$16 sm:%s781_s12]   ;;  %s900_s15 = smov 48  ;;  %s946_s11 = smov 48 }
  0x55   :  { %v1393_v6 = vld [vmem:[%s2648_s0 + $0x18a] ss:$16 sm:%s735_s16]   ;;  %680 = vrot.lane.b32.xlu0 %v679_v7, %s1500_s25  ;;  %v784_v22 = vsel %vm118_vm0, %v1403_v20, %v1402_v19  ;;  %s951_s16 = smov 192  ;;  %s997_s12 = smov 192 }
  0x56   :  { %v738_v8 = vsel %vm118_vm0, %v1393_v6, %v1392_v5  ;;  %v1394_v9 = vld [vmem:[%s2648_s0 + $0x18a] ss:$16 sm:%s740_s21]   ;;  %s755_s21 = smov 3  ;;  %v789_v25 = vsel %vm123_vm1, %v1404_v23, %v784_v22  ;;  %v1398_v28 = vld [vmem:[%s2648_s0 + $0xe] ss:$16 sm:%s758_s27]   ;;  %s915_s27 = smov 3 }
  0x57   :  { %v1395_v10 = vld [vmem:[%s2648_s0 + $0x18a] ss:$16 sm:%s745_s22]   ;;  %v743_v11 = vsel %vm123_vm1, %v1394_v9, %v738_v8  ;;  %v1397_v26 = vld [vmem:[%s2648_s0 + $0xe] ss:$16 sm:%s755_s21]   ;;  %v794_v27 = vsel %vm128_vm2, %v1405_v24, %v789_v25  ;;  %s804_s22 = smov 12  ;;  %s1061_s21 = smov 48 }
  0x58   :  { %v1387_v12 = vld [vmem:[%s2648_s0 + $0x10a] ss:$16 sm:%s709_s26]   ;;  %v748_v13 = vsel %vm128_vm2, %v1395_v10, %v743_v11  ;;  %v1399_v29 = vld [vmem:[%s2648_s0 + $0xe] ss:$16 sm:%s763_s28]   ;;  %v761_v30 = vsel %vm118_vm0, %v1398_v28, %v1397_v26  ;;  %s918_s28 = smov 12  ;;  %s1020_s26 = smov 192 }
  0x59   :  { %v1388_v14 = vld [vmem:[%s2648_s0 + $0x10a] ss:$16 sm:%s712_s2]   ;;  %749 = vrot.lane.b32.xlu1 %v748_v13, %s1500_s25  ;;  %v766_v32 = vsel %vm123_vm1, %v1399_v29, %v761_v30  ;;  %s1038_s2 = smov 48 }
  0x5a   :  { %v1389_v15 = vld [vmem:[%s2648_s0 + $0x10a] ss:$16 sm:%s717_s3]   ;;  %v715_v16 = vsel %vm118_vm0, %v1388_v14, %v1387_v12  ;;  %v1400_v31 = vld [vmem:[%s2648_s0 + $0xe] ss:$16 sm:%s768_s4]   ;;  %s869_s3 = smov 3  ;;  %s872_s4 = smov 12 }
  0x5b   :  { %v1390_v17 = vld [vmem:[%s2648_s0 + $0x10a] ss:$16 sm:%s722_s9]   ;;  %v720_v18 = vsel %vm123_vm1, %v1389_v15, %v715_v16  ;;  %s827_s9 = smov 12  ;;  %v1412_v33 = vld [vmem:[%s2648_s0 + $0x18e] ss:$16 sm:%s824_s8]   ;;  %v771_v35 = vsel %vm128_vm2, %v1400_v31, %v766_v32  ;;  %s992_s8 = smov 48 }
  0x5c   :  { %v725_v21 = vsel %vm128_vm2, %v1390_v17, %v720_v18  ;;  %v1413_v34 = vld [vmem:[%s2648_s0 + $0x18e] ss:$16 sm:%s827_s9]   ;;  %v1421_v47 = vld [vmem:[%s2648_s0 + $0x81] ss:$16 sm:%s869_s3]   ;;  %s1043_s9 = smov 192  ;;  %s1089_s3 = smov 192 }
  0x5d   :  { %726 = vrot.lane.b32.xlu0 %v725_v21, %s1500_s25  ;;  %795 = vrot.lane.b32.xlu1 %v794_v27, %s1500_s25  ;;  %v830_v36 = vsel %vm118_vm0, %v1413_v34, %v1412_v33  ;;  %v1414_v37 = vld [vmem:[%s2648_s0 + $0x18e] ss:$16 sm:%s832_s13]   ;;  %s847_s13 = smov 3 }
  0x5e   :  { %v1415_v38 = vld [vmem:[%s2648_s0 + $0x18e] ss:$16 sm:%s837_s14]   ;;  %v835_v39 = vsel %vm123_vm1, %v1414_v37, %v830_v36  ;;  %v1422_v48 = vld [vmem:[%s2648_s0 + $0x81] ss:$16 sm:%s872_s4]   ;;  %s923_s4 = smov 48  ;;  %s895_s14 = smov 12 }
  0x5f   :  { %v1407_v40 = vld [vmem:[%s2648_s0 + $0x10e] ss:$16 sm:%s801_s17]   ;;  %v840_v41 = vsel %vm128_vm2, %v1415_v38, %v835_v39  ;;  %v875_v50 = vsel %vm118_vm0, %v1422_v48, %v1421_v47  ;;  %v1423_v51 = vld [vmem:[%s2648_s0 + $0x81] ss:$16 sm:%s877_s6]   ;;  %s892_s6 = smov 3  ;;  %s1107_s17 = smov 48 }
  0x60   :  { %v1408_v42 = vld [vmem:[%s2648_s0 + $0x10e] ss:$16 sm:%s804_s22]   ;;  %v1424_v52 = vld [vmem:[%s2648_s0 + $0x81] ss:$16 sm:%s882_s10]   ;;  %v880_v53 = vsel %vm123_vm1, %v1423_v51, %v875_v50  ;;  %s941_s10 = smov 12  ;;  %s1066_s22 = smov 192 }
  0x61   :  { %772 = vrot.lane.b32.xlu0 %v771_v35, %s1500_s25  ;;  %v1409_v43 = vld [vmem:[%s2648_s0 + $0x10e] ss:$16 sm:%s809_s23]   ;;  %841 = vrot.lane.b32.xlu1 %v840_v41, %s1500_s25  ;;  %v807_v44 = vsel %vm118_vm0, %v1408_v42, %v1407_v40  ;;  %v885_v55 = vsel %vm128_vm2, %v1424_v52, %v880_v53  ;;  %s961_s23 = smov 3 }
  0x62   :  { %v1410_v45 = vld [vmem:[%s2648_s0 + $0x10e] ss:$16 sm:%s814_s29]   ;;  %v812_v46 = vsel %vm123_vm1, %v1409_v43, %v807_v44  ;;  %v1417_v54 = vld [vmem:[%s2648_s0 + $0x1] ss:$16 sm:%s847_s13]   ;;  %s969_s29 = smov 48  ;;  %s1153_s13 = smov 48 }
  0x63   :  { %v817_v49 = vsel %vm128_vm2, %v1410_v45, %v812_v46  ;;  %v1418_v56 = vld [vmem:[%s2648_s0 + $0x1] ss:$16 sm:%s850_s18]   ;;  %v1441_v11 = vld [vmem:[%s2648_s0 + $0x85] ss:$16 sm:%s961_s23]   ;;  %s1112_s18 = smov 192  ;;  %s1130_s23 = smov 48 }
  0x64   :  { %v1419_v57 = vld [vmem:[%s2648_s0 + $0x1] ss:$16 sm:%s855_s19]   ;;  %v853_v58 = vsel %vm118_vm0, %v1418_v56, %v1417_v54  ;;  %v1443_v15 = vld [vmem:[%s2648_s0 + $0x85] ss:$16 sm:%s969_s29]   ;;  %s1007_s19 = smov 3  ;;  %s984_s29 = smov 3 }
  0x65   :  { %818 = vrot.lane.b32.xlu0 %v817_v49, %s1500_s25  ;;  %886 = vrot.lane.b32.xlu1 %v885_v55, %s1501_s7  ;;  %v1420_v59 = vld [vmem:[%s2648_s0 + $0x1] ss:$16 sm:%s860_s24]   ;;  %v858_v60 = vsel %vm123_vm1, %v1419_v57, %v853_v58  ;;  %s964_s24 = smov 12  ;;  %s1015_s25 = smov 48 }
  0x66   :  { %v1431_v61 = vld [vmem:[%s2648_s0 + $0x181] ss:$16 sm:%s915_s27]   ;;  %v863_v63 = vsel %vm128_vm2, %v1420_v59, %v858_v60  ;;  %v1442_v12 = vld [vmem:[%s2648_s0 + $0x85] ss:$16 sm:%s964_s24]   ;;  %s1084_s27 = smov 48  ;;  %s1181_s24 = smov 192 }
  0x67   :  { %v1432_v62 = vld [vmem:[%s2648_s0 + $0x181] ss:$16 sm:%s918_s28]   ;;  %v967_v14 = vsel %vm118_vm0, %v1442_v12, %v1441_v11  ;;  %v1444_v16 = vld [vmem:[%s2648_s0 + $0x85] ss:$16 sm:%s974_s30]   ;;  %s1033_s30 = smov 12  ;;  %s1135_s28 = smov 192 }
  0x68   :  { %v921_v0 = vsel %vm118_vm0, %v1432_v62, %v1431_v61  ;;  %v1433_v1 = vld [vmem:[%s2648_s0 + $0x181] ss:$16 sm:%s923_s4]   ;;  %s938_s4 = smov 3  ;;  %v972_v17 = vsel %vm123_vm1, %v1443_v15, %v967_v14  ;;  %v1437_v20 = vld [vmem:[%s2648_s0 + $0x5] ss:$16 sm:%s941_s10]   ;;  %s1204_s10 = smov 192 }
  0x69   :  { %v1434_v2 = vld [vmem:[%s2648_s0 + $0x181] ss:$16 sm:%s928_s5]   ;;  %864 = vrot.lane.b32.xlu0 %v863_v63, %s1501_s7  ;;  %v926_v3 = vsel %vm123_vm1, %v1433_v1, %v921_v0  ;;  %v977_v19 = vsel %vm128_vm2, %v1444_v16, %v972_v17  ;;  %s987_s5 = smov 12 }
  0x6a   :  { %v1426_v4 = vld [vmem:[%s2648_s0 + $0x101] ss:$16 sm:%s892_s6]   ;;  %v931_v5 = vsel %vm128_vm2, %v1434_v2, %v926_v3  ;;  %v1436_v18 = vld [vmem:[%s2648_s0 + $0x5] ss:$16 sm:%s938_s4]   ;;  %s1199_s6 = smov 48 }
  0x6b   :  { %v1427_v6 = vld [vmem:[%s2648_s0 + $0x101] ss:$16 sm:%s895_s14]   ;;  %932 = vrot.lane.b32.xlu1 %v931_v5, %s1501_s7  ;;  %v944_v22 = vsel %vm118_vm0, %v1437_v20, %v1436_v18  ;;  %s1158_s14 = smov 192 }
  0x6c   :  { %v1428_v7 = vld [vmem:[%s2648_s0 + $0x101] ss:$16 sm:%s900_s15]   ;;  %v898_v8 = vsel %vm118_vm0, %v1427_v6, %v1426_v4  ;;  %v1438_v21 = vld [vmem:[%s2648_s0 + $0x5] ss:$16 sm:%s946_s11]   ;;  %s1053_s15 = smov 3  ;;  %s1099_s11 = smov 3 }
  0x6d   :  { %v1429_v9 = vld [vmem:[%s2648_s0 + $0x101] ss:$16 sm:%s905_s20]   ;;  %v903_v10 = vsel %vm123_vm1, %v1428_v7, %v898_v8  ;;  %s1010_s20 = smov 12  ;;  %v1439_v23 = vld [vmem:[%s2648_s0 + $0x5] ss:$16 sm:%s951_s16]   ;;  %v949_v24 = vsel %vm123_vm1, %v1438_v21, %v944_v22  ;;  %s1056_s16 = smov 12 }
  0x6e   :  { %v908_v13 = vsel %vm128_vm2, %v1429_v9, %v903_v10  ;;  %v1451_v25 = vld [vmem:[%s2648_s0 + $0x185] ss:$16 sm:%s1007_s19]   ;;  %v954_v27 = vsel %vm128_vm2, %v1439_v23, %v949_v24  ;;  %v1461_v39 = vld [vmem:[%s2648_s0 + $0x89] ss:$16 sm:%s1053_s15]   ;;  %s1176_s19 = smov 48 }
  0x6f   :  { %909 = vrot.lane.b32.xlu0 %v908_v13, %s1501_s7  ;;  %978 = vrot.lane.b32.xlu1 %v977_v19, %s1501_s7  ;;  %v1452_v26 = vld [vmem:[%s2648_s0 + $0x185] ss:$16 sm:%s1010_s20]  }
  0x70   :  { %v1013_v28 = vsel %vm118_vm0, %v1452_v26, %v1451_v25  ;;  %v1453_v29 = vld [vmem:[%s2648_s0 + $0x185] ss:$16 sm:%s1015_s25]   ;;  %s1030_s25 = smov 3  ;;  %v1462_v40 = vld [vmem:[%s2648_s0 + $0x89] ss:$16 sm:%s1056_s16]  }
  0x71   :  { %v1454_v30 = vld [vmem:[%s2648_s0 + $0x185] ss:$16 sm:%s1020_s26]   ;;  %v1018_v31 = vsel %vm123_vm1, %v1453_v29, %v1013_v28  ;;  %v1059_v42 = vsel %vm118_vm0, %v1462_v40, %v1461_v39  ;;  %v1463_v43 = vld [vmem:[%s2648_s0 + $0x89] ss:$16 sm:%s1061_s21]   ;;  %s1076_s21 = smov 3  ;;  %s1079_s26 = smov 12 }
  0x72   :  { %v1446_v32 = vld [vmem:[%s2648_s0 + $0x105] ss:$16 sm:%s984_s29]   ;;  %v1023_v33 = vsel %vm128_vm2, %v1454_v30, %v1018_v31  ;;  %v1464_v44 = vld [vmem:[%s2648_s0 + $0x89] ss:$16 sm:%s1066_s22]   ;;  %v1064_v45 = vsel %vm123_vm1, %v1463_v43, %v1059_v42  ;;  %s1125_s22 = smov 12 }
  0x73   :  { %955 = vrot.lane.b32.xlu0 %v954_v27, %s1501_s7  ;;  %v1447_v34 = vld [vmem:[%s2648_s0 + $0x105] ss:$16 sm:%s987_s5]   ;;  %1024 = vrot.lane.b32.xlu1 %v1023_v33, %s1501_s7  ;;  %v1069_v47 = vsel %vm128_vm2, %v1464_v44, %v1064_v45 }
  0x74   :  { %v1448_v35 = vld [vmem:[%s2648_s0 + $0x105] ss:$16 sm:%s992_s8]   ;;  %v990_v36 = vsel %vm118_vm0, %v1447_v34, %v1446_v32  ;;  %v1456_v46 = vld [vmem:[%s2648_s0 + $0x9] ss:$16 sm:%s1030_s25]   ;;  %s1145_s8 = smov 3 }
  0x75   :  { %v1449_v37 = vld [vmem:[%s2648_s0 + $0x105] ss:$16 sm:%s997_s12]   ;;  %v995_v38 = vsel %vm123_vm1, %v1448_v35, %v990_v36  ;;  %s1102_s12 = smov 12  ;;  %v1457_v48 = vld [vmem:[%s2648_s0 + $0x9] ss:$16 sm:%s1033_s30]  }
  0x76   :  { %v1000_v41 = vsel %vm128_vm2, %v1449_v37, %v995_v38  ;;  %v1458_v49 = vld [vmem:[%s2648_s0 + $0x9] ss:$16 sm:%s1038_s2]   ;;  %v1036_v50 = vsel %vm118_vm0, %v1457_v48, %v1456_v46  ;;  %v1481_v3 = vld [vmem:[%s2648_s0 + $0x8d] ss:$16 sm:%s1145_s8]   ;;  %s1191_s2 = smov 3 }
  0x77   :  { %1001 = vrot.lane.b32.xlu0 %v1000_v41, %s1501_s7  ;;  %1070 = vrot.lane.b32.xlu1 %v1069_v47, %s1501_s7  ;;  %v1459_v51 = vld [vmem:[%s2648_s0 + $0x9] ss:$16 sm:%s1043_s9]   ;;  %v1041_v52 = vsel %vm123_vm1, %v1458_v49, %v1036_v50  ;;  %s1148_s9 = smov 12 }
  0x78   :  { %v1471_v53 = vld [vmem:[%s2648_s0 + $0x189] ss:$16 sm:%s1099_s11]   ;;  %v1046_v55 = vsel %vm128_vm2, %v1459_v51, %v1041_v52  ;;  %v1482_v4 = vld [vmem:[%s2648_s0 + $0x8d] ss:$16 sm:%s1148_s9]   ;;  %v176_v30 = vpop.permute.xlu1 %175  }
  0x79   :  { %v1472_v54 = vld [vmem:[%s2648_s0 + $0x189] ss:$16 sm:%s1102_s12]   ;;  %v1151_v6 = vsel %vm118_vm0, %v1482_v4, %v1481_v3  ;;  %v1483_v7 = vld [vmem:[%s2648_s0 + $0x8d] ss:$16 sm:%s1153_s13]   ;;  %s1168_s13 = smov 3 }
  0x7a   :  { %v1105_v56 = vsel %vm118_vm0, %v1472_v54, %v1471_v53  ;;  %v1473_v57 = vld [vmem:[%s2648_s0 + $0x189] ss:$16 sm:%s1107_s17]   ;;  %s1122_s17 = smov 3  ;;  %v1484_v8 = vld [vmem:[%s2648_s0 + $0x8d] ss:$16 sm:%s1158_s14]   ;;  %v1156_v9 = vsel %vm123_vm1, %v1483_v7, %v1151_v6 }
  0x7b   :  { %v1474_v58 = vld [vmem:[%s2648_s0 + $0x189] ss:$16 sm:%s1112_s18]   ;;  %1047 = vrot.lane.b32.xlu0 %v1046_v55, %s1501_s7  ;;  %v1110_v59 = vsel %vm123_vm1, %v1473_v57, %v1105_v56  ;;  %v1161_v11 = vsel %vm128_vm2, %v1484_v8, %v1156_v9  ;;  %s1171_s18 = smov 12  ;;  %1272 = vst.msk [vmem:[%s2649_s1 + $0x40] sm:$0xff] %vm132_vm4, %v176_v30  }
  0x7c   :  { %v1466_v60 = vld [vmem:[%s2648_s0 + $0x109] ss:$16 sm:%s1076_s21]   ;;  %v1115_v61 = vsel %vm128_vm2, %v1474_v58, %v1110_v59  ;;  %v1476_v10 = vld [vmem:[%s2648_s0 + $0xd] ss:$16 sm:%s1122_s17]   ;;  %v131_v33 = vpop.permute.xlu0 %130  }
  0x7d   :  { %v1467_v62 = vld [vmem:[%s2648_s0 + $0x109] ss:$16 sm:%s1079_s26]   ;;  %1116 = vrot.lane.b32.xlu1 %v1115_v61, %s1501_s7  ;;  %133 = vst.msk [vmem:[%s2649_s1] sm:$0xff] %vm132_vm4, %v131_v33  }
  0x7e   :  { %v1468_v63 = vld [vmem:[%s2648_s0 + $0x109] ss:$16 sm:%s1084_s27]   ;;  %v1082_v0 = vsel %vm118_vm0, %v1467_v62, %v1466_v60  ;;  %v1477_v12 = vld [vmem:[%s2648_s0 + $0xd] ss:$16 sm:%s1125_s22]  }
  0x7f   :  { %v1469_v1 = vld [vmem:[%s2648_s0 + $0x109] ss:$16 sm:%s1089_s3]   ;;  %v1087_v2 = vsel %vm123_vm1, %v1468_v63, %v1082_v0  ;;  %s1194_s3 = smov 12  ;;  %v1478_v13 = vld [vmem:[%s2648_s0 + $0xd] ss:$16 sm:%s1130_s23]   ;;  %v1128_v14 = vsel %vm118_vm0, %v1477_v12, %v1476_v10 }
  0x80   :  { %v1092_v5 = vsel %vm128_vm2, %v1469_v1, %v1087_v2  ;;  %v1479_v15 = vld [vmem:[%s2648_s0 + $0xd] ss:$16 sm:%s1135_s28]   ;;  %v1133_v16 = vsel %vm123_vm1, %v1478_v13, %v1128_v14  ;;  %v199_v34 = vpop.permute.xlu1 %198  }
  0x81   :  { %1093 = vrot.lane.b32.xlu0 %v1092_v5, %s1501_s7  ;;  %1162 = vrot.lane.b32.xlu1 %v1161_v11, %s1501_s7  ;;  %v1491_v17 = vld [vmem:[%s2648_s0 + $0x18d] ss:$16 sm:%s1191_s2]   ;;  %v1138_v19 = vsel %vm128_vm2, %v1479_v15, %v1133_v16 }
  0x82   :  { %v1492_v18 = vld [vmem:[%s2648_s0 + $0x18d] ss:$16 sm:%s1194_s3]   ;;  %1277 = vst.msk [vmem:[%s2649_s1 + $0x60] sm:$0xff] %vm132_vm4, %v199_v34  }
  0x83   :  { %v1197_v20 = vsel %vm118_vm0, %v1492_v18, %v1491_v17  ;;  %v1493_v21 = vld [vmem:[%s2648_s0 + $0x18d] ss:$16 sm:%s1199_s6]  }
  0x84   :  { %v1494_v22 = vld [vmem:[%s2648_s0 + $0x18d] ss:$16 sm:%s1204_s10]   ;;  %v1202_v23 = vsel %vm123_vm1, %v1493_v21, %v1197_v20  ;;  %v153_v35 = vpop.permute.xlu0 %152   ;;  %v245_v36 = vpop.permute.xlu1 %244  }
  0x85   :  { %1139 = vrot.lane.b32.xlu0 %v1138_v19, %s1501_s7  ;;  %v1486_v24 = vld [vmem:[%s2648_s0 + $0x10d] ss:$16 sm:%s1168_s13]   ;;  %v1207_v25 = vsel %vm128_vm2, %v1494_v22, %v1202_v23  ;;  %1267 = vst.msk [vmem:[%s2649_s1 + $0x20] sm:$0xff] %vm132_vm4, %v153_v35  }
  0x86   :  { %v1487_v26 = vld [vmem:[%s2648_s0 + $0x10d] ss:$16 sm:%s1171_s18]   ;;  %1208 = vrot.lane.b32.xlu1 %v1207_v25, %s1501_s7  ;;  %1287 = vst.msk [vmem:[%s2649_s1 + $0x28] sm:$0xff] %vm132_vm4, %v245_v36  }
  0x87   :  { %v1488_v27 = vld [vmem:[%s2648_s0 + $0x10d] ss:$16 sm:%s1176_s19]   ;;  %v1174_v28 = vsel %vm118_vm0, %v1487_v26, %v1486_v24 }
  0x88   :  { %v1489_v29 = vld [vmem:[%s2648_s0 + $0x10d] ss:$16 sm:%s1181_s24]   ;;  %v1179_v31 = vsel %vm123_vm1, %v1488_v27, %v1174_v28  ;;  %v222_v37 = vpop.permute.xlu0 %221  }
  0x89   :  { %v1184_v32 = vsel %vm128_vm2, %v1489_v29, %v1179_v31  ;;  %1282 = vst.msk [vmem:[%s2649_s1 + $0x8] sm:$0xff] %vm132_vm4, %v222_v37  }
  0x8a   :  { %1185 = vrot.lane.b32.xlu0 %v1184_v32, %s1501_s7  ;;  %v291_v38 = vpop.permute.xlu1 %290  }
  0x8b   :  { %1297 = vst.msk [vmem:[%s2649_s1 + $0x68] sm:$0xff] %vm132_vm4, %v291_v38  }
  0x8e   :  { %v268_v39 = vpop.permute.xlu0 %267   ;;  %v337_v40 = vpop.permute.xlu1 %336  }
  0x8f   :  { %1292 = vst.msk [vmem:[%s2649_s1 + $0x48] sm:$0xff] %vm132_vm4, %v268_v39   ;;  %1307 = vst.msk [vmem:[%s2649_s1 + $0x30] sm:$0xff] %vm132_vm4, %v337_v40  }
  0x92   :  { %v314_v41 = vpop.permute.xlu0 %313  }
  0x93   :  { %1302 = vst.msk [vmem:[%s2649_s1 + $0x10] sm:$0xff] %vm132_vm4, %v314_v41  }
  0x95   :  { %v383_v42 = vpop.permute.xlu1 %382  }
  0x96   :  { %1317 = vst.msk [vmem:[%s2649_s1 + $0x70] sm:$0xff] %vm132_vm4, %v383_v42  }
  0x99   :  { %v360_v43 = vpop.permute.xlu0 %359   ;;  %v429_v44 = vpop.permute.xlu1 %428  }
  0x9a   :  { %1312 = vst.msk [vmem:[%s2649_s1 + $0x50] sm:$0xff] %vm132_vm4, %v360_v43   ;;  %1327 = vst.msk [vmem:[%s2649_s1 + $0x38] sm:$0xff] %vm132_vm4, %v429_v44  }
  0x9d   :  { %v406_v45 = vpop.permute.xlu0 %405  }
  0x9e   :  { %1322 = vst.msk [vmem:[%s2649_s1 + $0x18] sm:$0xff] %vm132_vm4, %v406_v45  }
  0xa1   :  { %v475_v46 = vpop.permute.xlu1 %474  }
  0xa2   :  { %1337 = vst.msk [vmem:[%s2649_s1 + $0x78] sm:$0xff] %vm132_vm4, %v475_v46  }
  0xa5   :  { %v452_v47 = vpop.permute.xlu0 %451  }
  0xa6   :  { %1332 = vst.msk [vmem:[%s2649_s1 + $0x58] sm:$0xff] %vm132_vm4, %v452_v47  }
  0xa7   :  { %v520_v48 = vpop.permute.xlu1 %519  }
  0xa8   :  { %1346 = vst.msk [vmem:[%s2649_s1 + $0x20] sm:$0xff] %vm499_vm5, %v520_v48  }
  0xab   :  { %v498_v49 = vpop.permute.xlu0 %497  }
  0xac   :  { %500 = vst.msk [vmem:[%s2649_s1] sm:$0xff] %vm499_vm5, %v498_v49  }
  0xaf   :  { %v566_v50 = vpop.permute.xlu1 %565  }
  0xb0   :  { %1356 = vst.msk [vmem:[%s2649_s1 + $0x60] sm:$0xff] %vm499_vm5, %v566_v50  }
  0xb3   :  { %v543_v51 = vpop.permute.xlu0 %542  }
  0xb4   :  { %1351 = vst.msk [vmem:[%s2649_s1 + $0x40] sm:$0xff] %vm499_vm5, %v543_v51  }
  0xb5   :  { %v612_v52 = vpop.permute.xlu1 %611  }
  0xb6   :  { %1366 = vst.msk [vmem:[%s2649_s1 + $0x28] sm:$0xff] %vm499_vm5, %v612_v52  }
  0xb9   :  { %v589_v53 = vpop.permute.xlu0 %588  }
  0xba   :  { %1361 = vst.msk [vmem:[%s2649_s1 + $0x8] sm:$0xff] %vm499_vm5, %v589_v53  }
  0xbd   :  { %v658_v54 = vpop.permute.xlu1 %657  }
  0xbe   :  { %1376 = vst.msk [vmem:[%s2649_s1 + $0x68] sm:$0xff] %vm499_vm5, %v658_v54  }
  0xc1   :  { %v635_v55 = vpop.permute.xlu0 %634  }
  0xc2   :  { %1371 = vst.msk [vmem:[%s2649_s1 + $0x48] sm:$0xff] %vm499_vm5, %v635_v55  }
  0xc3   :  { %v704_v56 = vpop.permute.xlu1 %703  }
  0xc4   :  { %1386 = vst.msk [vmem:[%s2649_s1 + $0x30] sm:$0xff] %vm499_vm5, %v704_v56  }
  0xc7   :  { %v681_v57 = vpop.permute.xlu0 %680  }
  0xc8   :  { %1381 = vst.msk [vmem:[%s2649_s1 + $0x10] sm:$0xff] %vm499_vm5, %v681_v57  }
  0xcb   :  { %v750_v58 = vpop.permute.xlu1 %749  }
  0xcc   :  { %1396 = vst.msk [vmem:[%s2649_s1 + $0x70] sm:$0xff] %vm499_vm5, %v750_v58  }
  0xcf   :  { %v727_v59 = vpop.permute.xlu0 %726   ;;  %v796_v60 = vpop.permute.xlu1 %795  }
  0xd0   :  { %1391 = vst.msk [vmem:[%s2649_s1 + $0x50] sm:$0xff] %vm499_vm5, %v727_v59   ;;  %1406 = vst.msk [vmem:[%s2649_s1 + $0x38] sm:$0xff] %vm499_vm5, %v796_v60  }
  0xd3   :  { %v773_v61 = vpop.permute.xlu0 %772   ;;  %v842_v62 = vpop.permute.xlu1 %841  }
  0xd4   :  { %1401 = vst.msk [vmem:[%s2649_s1 + $0x18] sm:$0xff] %vm499_vm5, %v773_v61   ;;  %1416 = vst.msk [vmem:[%s2649_s1 + $0x78] sm:$0xff] %vm499_vm5, %v842_v62  }
  0xd7   :  { %v819_v63 = vpop.permute.xlu0 %818   ;;  %v887_v0 = vpop.permute.xlu1 %886  }
  0xd8   :  { %1411 = vst.msk [vmem:[%s2649_s1 + $0x58] sm:$0xff] %vm499_vm5, %v819_v63  }
  0xd9   :  { %1425 = vst.msk [vmem:[%s2649_s1 + $0x20] sm:$0xff] %vm866_vm6, %v887_v0  }
  0xdb   :  { %v865_v1 = vpop.permute.xlu0 %864  }
  0xdc   :  { %867 = vst.msk [vmem:[%s2649_s1] sm:$0xff] %vm866_vm6, %v865_v1  }
  0xdd   :  { %v933_v2 = vpop.permute.xlu1 %932  }
  0xde   :  { %1435 = vst.msk [vmem:[%s2649_s1 + $0x60] sm:$0xff] %vm866_vm6, %v933_v2  }
  0xe1   :  { %v910_v3 = vpop.permute.xlu0 %909   ;;  %v979_v4 = vpop.permute.xlu1 %978  }
  0xe2   :  { %1430 = vst.msk [vmem:[%s2649_s1 + $0x40] sm:$0xff] %vm866_vm6, %v910_v3   ;;  %1445 = vst.msk [vmem:[%s2649_s1 + $0x28] sm:$0xff] %vm866_vm6, %v979_v4  }
  0xe5   :  { %v956_v5 = vpop.permute.xlu0 %955   ;;  %v1025_v6 = vpop.permute.xlu1 %1024  }
  0xe6   :  { %1440 = vst.msk [vmem:[%s2649_s1 + $0x8] sm:$0xff] %vm866_vm6, %v956_v5   ;;  %1455 = vst.msk [vmem:[%s2649_s1 + $0x68] sm:$0xff] %vm866_vm6, %v1025_v6  }
  0xe9   :  { %v1002_v7 = vpop.permute.xlu0 %1001   ;;  %v1071_v8 = vpop.permute.xlu1 %1070  }
  0xea   :  { %1450 = vst.msk [vmem:[%s2649_s1 + $0x48] sm:$0xff] %vm866_vm6, %v1002_v7   ;;  %1465 = vst.msk [vmem:[%s2649_s1 + $0x30] sm:$0xff] %vm866_vm6, %v1071_v8  }
  0xed   :  { %v1048_v9 = vpop.permute.xlu0 %1047  }
  0xee   :  { %1460 = vst.msk [vmem:[%s2649_s1 + $0x10] sm:$0xff] %vm866_vm6, %v1048_v9  }
  0xef   :  { %v1117_v10 = vpop.permute.xlu1 %1116  }
  0xf0   :  { %1475 = vst.msk [vmem:[%s2649_s1 + $0x70] sm:$0xff] %vm866_vm6, %v1117_v10  }
  0xf3   :  { %v1094_v11 = vpop.permute.xlu0 %1093   ;;  %v1163_v12 = vpop.permute.xlu1 %1162  }
  0xf4   :  { %1470 = vst.msk [vmem:[%s2649_s1 + $0x50] sm:$0xff] %vm866_vm6, %v1094_v11   ;;  %1485 = vst.msk [vmem:[%s2649_s1 + $0x38] sm:$0xff] %vm866_vm6, %v1163_v12  }
  0xf7   :  { %v1140_v13 = vpop.permute.xlu0 %1139  }
  0xf8   :  { %1480 = vst.msk [vmem:[%s2649_s1 + $0x18] sm:$0xff] %vm866_vm6, %v1140_v13   ;;  %v1209_v14 = vpop.permute.xlu1 %1208  }
  0xf9   :  { %1495 = vst.msk [vmem:[%s2649_s1 + $0x78] sm:$0xff] %vm866_vm6, %v1209_v14  }
  0xfc   :  { %v1186_v15 = vpop.permute.xlu0 %1185  }
  0xfd   :  { %1490 = vst.msk [vmem:[%s2649_s1 + $0x58] sm:$0xff] %vm866_vm6, %v1186_v15  }

// kernel: walk_layer_forward.2
= control target key start
LH: loop header
LB: loop body
LE: loop exit
PB: predicated region body
PF: predicated region fallthrough
CT: control target
= control target key end

     0   :  { %s6018_s24 = smov 0   ;;  %s6020_s25 = smov 0   ;;  %s9158_s0 = inlined_call_operand.vmem [shape: f32[2,16,16,32], index: 0, kind: input, shape index: {}]   ;;  %s9159_s1 = inlined_call_operand.vmem [shape: f32[2,16,512], index: 1, kind: input, shape index: {}, may-alias: {1,2}]   ;;  %s9160_s2 = inlined_call_operand.vmem [shape: f32[2,16,512], index: 2, kind: input, shape index: {}, may-alias: {1,2}]   ;;  %s9161_s3 = inlined_call_operand.vmem [shape: f32[2,16,16,16], index: 3, kind: input, shape index: {}]   ;;  %s9162_s4 = inlined_call_operand.vmem [shape: f32[32,512], index: 4, kind: input, shape index: {}]   ;;  %s9163_s5 = inlined_call_operand.vmem [shape: f32[16,512], index: 5, kind: input, shape index: {}]   ;;  %s9164_s6 = inlined_call_operand.vmem [shape: f32[512,16], index: 6, kind: input, shape index: {}]   ;;  %s9165_s7 = inlined_call_operand.vmem [shape: f32[2,16,512], index: 7, kind: output, shape index: {}]  }
   0x1   :  { %s6022_s26 = smov 0  }
   0x2 LB: > { %s36_s27 = sadd.s32 1, %s5969_s25  ;;  %p5050_p0 = scmp.ge.s32.totalorder %s5973_s26, 1  ;;  %s5973_s26 = sphi %s6022_s26, %s17_s26   ;;  %s5969_s25 = sphi %s6020_s25, %s9848_s25   ;;  %s5965_s24 = sphi %s6018_s24, %s9847_s24  }
   0x3   : > { %p38_p1 = scmp.ge.s32.totalorder %s36_s27, 2  ;;  %p327_p2 = scmp.lt.s32.totalorder %s5973_s26, 3 }
   0x5   : > { %s9850_s27 = smov (%p38_p1, %s36_s27), 0  ;;  %p328_p3 = pnand %p5050_p0, %p327_p2 }
   0x7   : > { %331 = sbr.rel (%p328_p3) target bundleno = 1121 (0x461), region = 48 }
   0xe   : > { %v518_v0 = vld [vmem:[%s9162_s4 + $0x8] sm:$0xff]  ;;  %v517_v2 = vld [vmem:[%s9162_s4] sm:$0xff]  ;;  %p404_p4 = scmp.lt.s32.totalorder %s5965_s24, 1  ;;  %v9166_v7 = vmov 0.0   ;;  %v520_v15 = vld [vmem:[%s9162_s4 + $0x18] sm:$0xff]  ;;  %vm533_vm0 = vcmask 261120  }
   0xf   : > { %v522_v1 = vld [vmem:[%s9162_s4 + $0x28] sm:$0xff]  ;;  %v521_v4 = vld [vmem:[%s9162_s4 + $0x20] sm:$0xff]  ;;  %694 = vmatprep.mubr.f32.mxu0 %v9166_v7  ;;  %951 = vmatprep.mubr.f32.mxu1 %v9166_v7  ;;  %v524_v16 = vld [vmem:[%s9162_s4 + $0x38] sm:$0xff]  ;;  %v9168_v20 = vmov 0.0|0.0  }
  0x10   : > { %v5484_v3 = vpack.c.bf16 %v522_v1, %v518_v0  ;;  %v526_v5 = vld [vmem:[%s9162_s4 + $0x48] sm:$0xff]  ;;  %v5486_v8 = vpack.c.bf16 %v521_v4, %v517_v2  ;;  %v525_v10 = vld [vmem:[%s9162_s4 + $0x40] sm:$0xff]  ;;  %s9852_s24 = smov (!%p404_p4, %s5965_s24), 1  ;;  %v5492_v17 = vpack.c.bf16 %v524_v16, %v520_v15  ;;  %v1666_v21 = vld [vmem:[%s9164_s6 + $0x10] sm:$0xff] }
  0x11   : > { %v530_v6 = vld [vmem:[%s9162_s4 + $0x68] sm:$0xff]  ;;  %v529_v11 = vld [vmem:[%s9162_s4 + $0x60] sm:$0xff]  ;;  %s5479_s21 = sshll.u32 %s9852_s24, 8  ;;  %v1667_v22 = vld [vmem:[%s9164_s6 + $0x18] sm:$0xff] }
  0x12   : > { %v5488_v9 = vpack.c.bf16 %v530_v6, %v526_v5  ;;  %5485 = vmatprep.subr.bf16.mxu0 %v5484_v3  ;;  %v5490_v12 = vpack.c.bf16 %v529_v11, %v525_v10  ;;  %v1664_v13 = vld [vmem:[%s9164_s6] sm:$0xff]  ;;  %s6073_s30 = scalar_lea.vmem %s9158_s0, %s5479_s21  ;;  %v1665_v14 = vld [vmem:[%s9164_s6 + $0x8] sm:$0xff]  ;;  %5493 = vmatprep.subr.bf16.mxu1 %v5492_v17  ;;  %v5504_v24 = vpack.c.bf16 %v1667_v22, %v1666_v21  ;;  %v519_v29 = vld [vmem:[%s9162_s4 + $0x10] sm:$0xff]  ;;  %s7367_s17 = scalar_lea.vmem %s9161_s3, %s5479_s21 }
  0x13   : > { %5487 = vmatpush1.bf16.msra.mxu0 %v5486_v8  ;;  %v485_v18 = vld [vmem:[%s6073_s30] sm:$0xff]  ;;  %v5501_v19 = vpack.c.bf16 %v1665_v14, %v1664_v13  ;;  %v486_v23 = vld [vmem:[%s6073_s30 + $0x8] sm:$0xff]  ;;  %v487_v27 = vld [vmem:[%s6073_s30 + $0x10] sm:$0xff] }
  0x14   : > { %5489 = vmatprep.subr.bf16.mxu0 %v5488_v9  ;;  %v1668_v25 = vld [vmem:[%s9164_s6 + $0x20] sm:$0xff]  ;;  %v1669_v26 = vld [vmem:[%s9164_s6 + $0x28] sm:$0xff]  ;;  %v523_v30 = vld [vmem:[%s9162_s4 + $0x30] sm:$0xff] }
  0x15   : > { %v5507_v28 = vpack.c.bf16 %v1669_v26, %v1668_v25  ;;  %v1670_v31 = vld [vmem:[%s9164_s6 + $0x30] sm:$0xff]  ;;  %v1671_v32 = vld [vmem:[%s9164_s6 + $0x38] sm:$0xff]  ;;  %v5494_v33 = vpack.c.bf16 %v523_v30, %v519_v29  ;;  %v1672_v42 = vld [vmem:[%s9164_s6 + $0x40] sm:$0xff] }
  0x16   : > { %v528_v34 = vld [vmem:[%s9162_s4 + $0x58] sm:$0xff]  ;;  %v527_v36 = vld [vmem:[%s9162_s4 + $0x50] sm:$0xff]  ;;  %v5510_v40 = vpack.c.bf16 %v1671_v32, %v1670_v31  ;;  %v1673_v43 = vld [vmem:[%s9164_s6 + $0x48] sm:$0xff] }
  0x17   : > { %5491 = vmatpush1.bf16.msra.mxu0 %v5490_v12  ;;  %v532_v35 = vld [vmem:[%s9162_s4 + $0x78] sm:$0xff]  ;;  %5495 = vmatpush1.bf16.msra.mxu1 %v5494_v33  ;;  %v531_v38 = vld [vmem:[%s9162_s4 + $0x70] sm:$0xff]  ;;  %v489_v44 = vld [vmem:[%s6073_s30 + $0x20] sm:$0xff]  ;;  %v5513_v45 = vpack.c.bf16 %v1673_v43, %v1672_v42 }
  0x18   : > { %5500 = vmatprep.subr.bf16.mxu0 %v9168_v20  ;;  %v5496_v37 = vpack.c.bf16 %v532_v35, %v528_v34  ;;  %v488_v39 = vld [vmem:[%s6073_s30 + $0x18] sm:$0xff]  ;;  %v5498_v41 = vpack.c.bf16 %v531_v38, %v527_v36  ;;  %v1674_v46 = vld [vmem:[%s9164_s6 + $0x50] sm:$0xff]  ;;  %v490_v48 = vld [vmem:[%s6073_s30 + $0x28] sm:$0xff] }
  0x19   : > { %v1675_v47 = vld [vmem:[%s9164_s6 + $0x58] sm:$0xff]  ;;  %v1676_v50 = vld [vmem:[%s9164_s6 + $0x60] sm:$0xff]  ;;  %v1677_v51 = vld [vmem:[%s9164_s6 + $0x68] sm:$0xff] }
  0x1a   : > { %5061 = vmatmul.mubr.msk.f32.vlgmr.msra.gmra.mrb[0].mxu0 %vm533_vm0, %v485_v18  ;;  %5497 = vmatprep.subr.bf16.mxu1 %v5496_v37  ;;  %v5516_v49 = vpack.c.bf16 %v1675_v47, %v1674_v46  ;;  %v491_v52 = vld [vmem:[%s6073_s30 + $0x30] sm:$0xff]  ;;  %v5519_v53 = vpack.c.bf16 %v1677_v51, %v1676_v50  ;;  %v1679_v55 = vld [vmem:[%s9164_s6 + $0x78] sm:$0xff]  ;;  %v1680_v58 = vld [vmem:[%s9164_s6 + $0x80] sm:$0xff] }
  0x1b   : > { %700 = vmatprep.mubr.f32.mxu0 %v9166_v7  ;;  %5502 = vmatpush1.bf16.msra.mxu0 %v5501_v19  ;;  %v1678_v54 = vld [vmem:[%s9164_s6 + $0x70] sm:$0xff]  ;;  %v492_v56 = vld [vmem:[%s6073_s30 + $0x38] sm:$0xff]  ;;  %v1681_v59 = vld [vmem:[%s9164_s6 + $0x88] sm:$0xff] }
  0x1c   : > { %5503 = vmatprep.subr.bf16.mxu0 %v9168_v20  ;;  %5499 = vmatpush1.bf16.msra.mxu1 %v5498_v41  ;;  %v5522_v57 = vpack.c.bf16 %v1679_v55, %v1678_v54  ;;  %v493_v60 = vld [vmem:[%s6073_s30 + $0x40] sm:$0xff]  ;;  %v5525_v61 = vpack.c.bf16 %v1681_v59, %v1680_v58  ;;  %v1682_v62 = vld [vmem:[%s9164_s6 + $0x90] sm:$0xff]  ;;  %v1683_v63 = vld [vmem:[%s9164_s6 + $0x98] sm:$0xff] }
  0x1d   : > { %v494_v0 = vld [vmem:[%s6073_s30 + $0x48] sm:$0xff]  ;;  %v5528_v1 = vpack.c.bf16 %v1683_v63, %v1682_v62  ;;  %v1684_v2 = vld [vmem:[%s9164_s6 + $0xa0] sm:$0xff]  ;;  %v495_v4 = vld [vmem:[%s6073_s30 + $0x50] sm:$0xff] }
  0x1e   : > { %5062 = vmatmul.mubr.msk.f32.gmra.mrb[2].mxu0 %vm533_vm0, %v486_v23  ;;  %v1685_v3 = vld [vmem:[%s9164_s6 + $0xa8] sm:$0xff]  ;;  %v1686_v6 = vld [vmem:[%s9164_s6 + $0xb0] sm:$0xff]  ;;  %v1687_v8 = vld [vmem:[%s9164_s6 + $0xb8] sm:$0xff] }
  0x1f   : > { %706 = vmatprep.mubr.f32.mxu0 %v9166_v7  ;;  %5505 = vmatpush1.bf16.msra.mxu0 %v5504_v24  ;;  %v5531_v5 = vpack.c.bf16 %v1685_v3, %v1684_v2  ;;  %v496_v9 = vld [vmem:[%s6073_s30 + $0x58] sm:$0xff]  ;;  %v5534_v10 = vpack.c.bf16 %v1687_v8, %v1686_v6  ;;  %v1688_v11 = vld [vmem:[%s9164_s6 + $0xc0] sm:$0xff]  ;;  %v1689_v12 = vld [vmem:[%s9164_s6 + $0xc8] sm:$0xff] }
  0x20   : > { %5506 = vmatprep.subr.bf16.mxu0 %v9168_v20  ;;  %5093 = vmatmul.mubr.msk.f32.vlgmr.msra.gmra.mrb[0].mxu1 %vm533_vm0, %v485_v18  ;;  %v497_v13 = vld [vmem:[%s6073_s30 + $0x60] sm:$0xff]  ;;  %v5537_v14 = vpack.c.bf16 %v1689_v12, %v1688_v11  ;;  %v1690_v15 = vld [vmem:[%s9164_s6 + $0xd0] sm:$0xff]  ;;  %v1691_v16 = vld [vmem:[%s9164_s6 + $0xd8] sm:$0xff] }
  0x21   : > { %957 = vmatprep.mubr.f32.mxu1 %v9166_v7  ;;  %v498_v17 = vld [vmem:[%s6073_s30 + $0x68] sm:$0xff]  ;;  %v5540_v18 = vpack.c.bf16 %v1691_v16, %v1690_v15  ;;  %v1692_v19 = vld [vmem:[%s9164_s6 + $0xe0] sm:$0xff]  ;;  %v499_v22 = vld [vmem:[%s6073_s30 + $0x70] sm:$0xff] }
  0x22   : > { %5063 = vmatmul.mubr.msk.f32.gmra.mrb[4].mxu0 %vm533_vm0, %v487_v27  ;;  %v1693_v21 = vld [vmem:[%s9164_s6 + $0xe8] sm:$0xff]  ;;  %v1694_v24 = vld [vmem:[%s9164_s6 + $0xf0] sm:$0xff]  ;;  %v1695_v25 = vld [vmem:[%s9164_s6 + $0xf8] sm:$0xff] }
  0x23   : > { %712 = vmatprep.mubr.f32.mxu0 %v9166_v7  ;;  %5508 = vmatpush1.bf16.msra.mxu0 %v5507_v28  ;;  %v500_v26 = vld [vmem:[%s6073_s30 + $0x78] sm:$0xff]  ;;  %v501_v28 = vld [vmem:[%s6073_s30 + $0x80] sm:$0xff]  ;;  %v502_v29 = vld [vmem:[%s6073_s30 + $0x88] sm:$0xff] }
  0x24   : > { %5509 = vmatprep.subr.bf16.mxu0 %v9168_v20  ;;  %5094 = vmatmul.mubr.msk.f32.gmra.mrb[2].mxu1 %vm533_vm0, %v486_v23  ;;  %v5543_v23 = vpack.c.bf16 %v1693_v21, %v1692_v19  ;;  %v503_v30 = vld [vmem:[%s6073_s30 + $0x90] sm:$0xff]  ;;  %v504_v31 = vld [vmem:[%s6073_s30 + $0x98] sm:$0xff]  ;;  %v505_v32 = vld [vmem:[%s6073_s30 + $0xa0] sm:$0xff] }
  0x25   : > { %963 = vmatprep.mubr.f32.mxu1 %v9166_v7  ;;  %v506_v33 = vld [vmem:[%s6073_s30 + $0xa8] sm:$0xff]  ;;  %v507_v34 = vld [vmem:[%s6073_s30 + $0xb0] sm:$0xff]  ;;  %v508_v35 = vld [vmem:[%s6073_s30 + $0xb8] sm:$0xff] }
  0x26   : > { %5064 = vmatmul.mubr.msk.f32.gmra.mrb[6].mxu0 %vm533_vm0, %v488_v39  ;;  %v509_v36 = vld [vmem:[%s6073_s30 + $0xc0] sm:$0xff]  ;;  %v510_v37 = vld [vmem:[%s6073_s30 + $0xc8] sm:$0xff]  ;;  %v511_v38 = vld [vmem:[%s6073_s30 + $0xd0] sm:$0xff] }
  0x27   : > { %718 = vmatprep.mubr.f32.mxu0 %v9166_v7  ;;  %5511 = vmatpush1.bf16.msra.mxu0 %v5510_v40  ;;  %v513_v40 = vld [vmem:[%s6073_s30 + $0xe0] sm:$0xff]  ;;  %v514_v41 = vld [vmem:[%s6073_s30 + $0xe8] sm:$0xff]  ;;  %v515_v42 = vld [vmem:[%s6073_s30 + $0xf0] sm:$0xff] }
  0x28   : > { %5512 = vmatprep.subr.bf16.mxu0 %v9168_v20  ;;  %5095 = vmatmul.mubr.msk.f32.gmra.mrb[4].mxu1 %vm533_vm0, %v487_v27  ;;  %v5546_v27 = vpack.c.bf16 %v1695_v25, %v1694_v24  ;;  %v516_v43 = vld [vmem:[%s6073_s30 + $0xf8] sm:$0xff]  ;;  %v1696_v47 = vld [vmem:[%s9164_s6 + $0x100] sm:$0xff]  ;;  %v1702_v8 = vld [vmem:[%s9164_s6 + $0x130] sm:$0xff] }
  0x29   : > { %969 = vmatprep.mubr.f32.mxu1 %v9166_v7  ;;  %v1704_v16 = vld [vmem:[%s9164_s6 + $0x140] sm:$0xff] }
  0x2a   : > { %5065 = vmatmul.mubr.msk.f32.gmra.mrb[8].mxu0 %vm533_vm0, %v489_v44 }
  0x2b   : > { %724 = vmatprep.mubr.f32.mxu0 %v9166_v7  ;;  %5514 = vmatpush1.bf16.msra.mxu0 %v5513_v45 }
  0x2c   : > { %5515 = vmatprep.subr.bf16.mxu0 %v9168_v20  ;;  %5096 = vmatmul.mubr.msk.f32.gmra.mrb[6].mxu1 %vm533_vm0, %v488_v39  ;;  %v512_v39 = vld [vmem:[%s6073_s30 + $0xd8] sm:$0xff]  ;;  %s6369_s30 = sshll.u32 %s9852_s24, 6 }
  0x2d   : > { %975 = vmatprep.mubr.f32.mxu1 %v9166_v7  ;;  %s6375_s20 = scalar_lea.vmem %s9160_s2, %s6369_s30  ;;  %s8532_s28 = scalar_lea.vmem %s9159_s1, %s6369_s30 }
  0x2e   : > { %5066 = vmatmul.mubr.msk.f32.gmra.mrb[10].mxu0 %vm533_vm0, %v490_v48  ;;  %v6381_v45 = vld [vmem:[%s6375_s20 + $0x8] sm:$0xff]  ;;  %s8550_s9 = scalar_lea.vmem %s9165_s7, %s6369_s30 }
  0x2f   : > { %730 = vmatprep.mubr.f32.mxu0 %v9166_v7  ;;  %5517 = vmatpush1.bf16.msra.mxu0 %v5516_v49 }
  0x30   : > { %5518 = vmatprep.subr.bf16.mxu0 %v9168_v20  ;;  %5097 = vmatmul.mubr.msk.f32.gmra.mrb[8].mxu1 %vm533_vm0, %v489_v44  ;;  %v6378_v44 = vld [vmem:[%s6375_s20] sm:$0xff] }
  0x31   : > { %981 = vmatprep.mubr.f32.mxu1 %v9166_v7 }
  0x32   : > { %5067 = vmatmul.mubr.msk.f32.gmra.mrb[12].mxu0 %vm533_vm0, %v491_v52 }
  0x33   : > { %736 = vmatprep.mubr.f32.mxu0 %v9166_v7  ;;  %5520 = vmatpush1.bf16.msra.mxu0 %v5519_v53  ;;  %v6399_v53 = vld [vmem:[%s6375_s20 + $0x28] sm:$0xff] }
  0x34   : > { %5521 = vmatprep.subr.bf16.mxu0 %v9168_v20  ;;  %5098 = vmatmul.mubr.msk.f32.gmra.mrb[10].mxu1 %vm533_vm0, %v490_v48  ;;  %v1697_v48 = vld [vmem:[%s9164_s6 + $0x108] sm:$0xff] }
  0x35   : > { %987 = vmatprep.mubr.f32.mxu1 %v9166_v7  ;;  %v5549_v54 = vpack.c.bf16 %v1697_v48, %v1696_v47  ;;  %v1711_v47 = vld [vmem:[%s9164_s6 + $0x178] sm:$0xff] }
  0x36   : > { %5068 = vmatmul.mubr.msk.f32.gmra.mrb[14].mxu0 %vm533_vm0, %v492_v56 }
  0x37   : > { %742 = vmatprep.mubr.f32.mxu0 %v9166_v7  ;;  %5523 = vmatpush1.bf16.msra.mxu0 %v5522_v57  ;;  %v1699_v57 = vld [vmem:[%s9164_s6 + $0x118] sm:$0xff] }
  0x38   : > { %5524 = vmatprep.subr.bf16.mxu0 %v9168_v20  ;;  %5099 = vmatmul.mubr.msk.f32.gmra.mrb[12].mxu1 %vm533_vm0, %v491_v52  ;;  %v6396_v52 = vld [vmem:[%s6375_s20 + $0x20] sm:$0xff] }
  0x39   : > { %993 = vmatprep.mubr.f32.mxu1 %v9166_v7 }
  0x3a   : > { %5069 = vmatmul.mubr.msk.f32.gmra.mrb[16].mxu0 %vm533_vm0, %v493_v60 }
  0x3b   : > { %748 = vmatprep.mubr.f32.mxu0 %v9166_v7  ;;  %5526 = vmatpush1.bf16.msra.mxu0 %v5525_v61 }
  0x3c   : > { %5527 = vmatprep.subr.bf16.mxu0 %v9168_v20  ;;  %5100 = vmatmul.mubr.msk.f32.gmra.mrb[14].mxu1 %vm533_vm0, %v492_v56  ;;  %v1698_v56 = vld [vmem:[%s9164_s6 + $0x110] sm:$0xff] }
  0x3d   : > { %999 = vmatprep.mubr.f32.mxu1 %v9166_v7  ;;  %v5552_v62 = vpack.c.bf16 %v1699_v57, %v1698_v56 }
  0x3e   : > { %5070 = vmatmul.mubr.msk.f32.gmra.mrb[18].mxu0 %vm533_vm0, %v494_v0 }
  0x3f   : > { %754 = vmatprep.mubr.f32.mxu0 %v9166_v7  ;;  %5529 = vmatpush1.bf16.msra.mxu0 %v5528_v1  ;;  %v1701_v1 = vld [vmem:[%s9164_s6 + $0x128] sm:$0xff] }
  0x40   : > { %5530 = vmatprep.subr.bf16.mxu0 %v9168_v20  ;;  %5101 = vmatmul.mubr.msk.f32.gmra.mrb[16].mxu1 %vm533_vm0, %v493_v60  ;;  %v9220_v60 = vmov 1.0  }
  0x41   : > { %1005 = vmatprep.mubr.f32.mxu1 %v9166_v7 }
  0x42   : > { %5071 = vmatmul.mubr.msk.f32.gmra.mrb[20].mxu0 %vm533_vm0, %v495_v4 }
  0x43   : > { %760 = vmatprep.mubr.f32.mxu0 %v9166_v7  ;;  %5532 = vmatpush1.bf16.msra.mxu0 %v5531_v5 }
  0x44   : > { %5533 = vmatprep.subr.bf16.mxu0 %v9168_v20  ;;  %5102 = vmatmul.mubr.msk.f32.gmra.mrb[18].mxu1 %vm533_vm0, %v494_v0  ;;  %v1700_v0 = vld [vmem:[%s9164_s6 + $0x120] sm:$0xff] }
  0x45   : > { %1011 = vmatprep.mubr.f32.mxu1 %v9166_v7  ;;  %v5555_v5 = vpack.c.bf16 %v1701_v1, %v1700_v0 }
  0x46   : > { %5072 = vmatmul.mubr.msk.f32.gmra.mrb[22].mxu0 %vm533_vm0, %v496_v9 }
  0x47   : > { %766 = vmatprep.mubr.f32.mxu0 %v9166_v7  ;;  %5535 = vmatpush1.bf16.msra.mxu0 %v5534_v10 }
  0x48   : > { %5536 = vmatprep.subr.bf16.mxu0 %v9168_v20  ;;  %5103 = vmatmul.mubr.msk.f32.gmra.mrb[20].mxu1 %vm533_vm0, %v495_v4 }
  0x49   : > { %1017 = vmatprep.mubr.f32.mxu1 %v9166_v7 }
  0x4a   : > { %5073 = vmatmul.mubr.msk.f32.gmra.mrb[24].mxu0 %vm533_vm0, %v497_v13 }
  0x4b   : > { %772 = vmatprep.mubr.f32.mxu0 %v9166_v7  ;;  %5538 = vmatpush1.bf16.msra.mxu0 %v5537_v14 }
  0x4c   : > { %5539 = vmatprep.subr.bf16.mxu0 %v9168_v20  ;;  %5104 = vmatmul.mubr.msk.f32.gmra.mrb[22].mxu1 %vm533_vm0, %v496_v9  ;;  %v1703_v9 = vld [vmem:[%s9164_s6 + $0x138] sm:$0xff] }
  0x4d   : > { %1023 = vmatprep.mubr.f32.mxu1 %v9166_v7 }
  0x4e   : > { %5074 = vmatmul.mubr.msk.f32.gmra.mrb[26].mxu0 %vm533_vm0, %v498_v17 }
  0x4f   : > { %778 = vmatprep.mubr.f32.mxu0 %v9166_v7  ;;  %5541 = vmatpush1.bf16.msra.mxu0 %v5540_v18 }
  0x50   : > { %5542 = vmatprep.subr.bf16.mxu0 %v9168_v20  ;;  %5105 = vmatmul.mubr.msk.f32.gmra.mrb[24].mxu1 %vm533_vm0, %v497_v13  ;;  %v5558_v13 = vpack.c.bf16 %v1703_v9, %v1702_v8 }
  0x51   : > { %1029 = vmatprep.mubr.f32.mxu1 %v9166_v7 }
  0x52   : > { %5075 = vmatmul.mubr.msk.f32.gmra.mrb[28].mxu0 %vm533_vm0, %v499_v22 }
  0x53   : > { %784 = vmatprep.mubr.f32.mxu0 %v9166_v7  ;;  %5544 = vmatpush1.bf16.msra.mxu0 %v5543_v23 }
  0x54   : > { %5545 = vmatprep.subr.bf16.mxu0 %v9168_v20  ;;  %5106 = vmatmul.mubr.msk.f32.gmra.mrb[26].mxu1 %vm533_vm0, %v498_v17  ;;  %v1705_v17 = vld [vmem:[%s9164_s6 + $0x148] sm:$0xff] }
  0x55   : > { %1035 = vmatprep.mubr.f32.mxu1 %v9166_v7  ;;  %v5561_v23 = vpack.c.bf16 %v1705_v17, %v1704_v16 }
  0x56   : > { %5076 = vmatmul.mubr.msk.f32.gmra.mrb[30].mxu0 %vm533_vm0, %v500_v26 }
  0x57   : > { %790 = vmatprep.mubr.f32.mxu0 %v9166_v7  ;;  %5547 = vmatpush1.bf16.msra.mxu0 %v5546_v27  ;;  %v1707_v27 = vld [vmem:[%s9164_s6 + $0x158] sm:$0xff] }
  0x58   : > { %5548 = vmatprep.subr.bf16.mxu0 %v9168_v20  ;;  %5107 = vmatmul.mubr.msk.f32.gmra.mrb[28].mxu1 %vm533_vm0, %v499_v22 }
  0x59   : > { %1041 = vmatprep.mubr.f32.mxu1 %v9166_v7 }
  0x5a   : > { %5077 = vmatmul.mubr.msk.f32.gmra.mrb[32].mxu0 %vm533_vm0, %v501_v28 }
  0x5b   : > { %796 = vmatprep.mubr.f32.mxu0 %v9166_v7 }
  0x5c   : > { %5108 = vmatmul.mubr.msk.f32.gmra.mrb[30].mxu1 %vm533_vm0, %v500_v26  ;;  %v1706_v26 = vld [vmem:[%s9164_s6 + $0x150] sm:$0xff] }
  0x5d   : > { %1047 = vmatprep.mubr.f32.mxu1 %v9166_v7 }
  0x5e   : > { %5078 = vmatmul.mubr.msk.f32.gmra.mrb[34].mxu0 %vm533_vm0, %v502_v29 }
  0x5f   : > { %802 = vmatprep.mubr.f32.mxu0 %v9166_v7 }
  0x60   : > { %5109 = vmatmul.mubr.msk.f32.gmra.mrb[32].mxu1 %vm533_vm0, %v501_v28 }
  0x61   : > { %1053 = vmatprep.mubr.f32.mxu1 %v9166_v7 }
  0x62   : > { %5079 = vmatmul.mubr.msk.f32.gmra.mrb[36].mxu0 %vm533_vm0, %v503_v30 }
  0x63   : > { %808 = vmatprep.mubr.f32.mxu0 %v9166_v7 }
  0x64   : > { %5110 = vmatmul.mubr.msk.f32.gmra.mrb[34].mxu1 %vm533_vm0, %v502_v29 }
  0x65   : > { %1059 = vmatprep.mubr.f32.mxu1 %v9166_v7 }
  0x66   : > { %5080 = vmatmul.mubr.msk.f32.gmra.mrb[38].mxu0 %vm533_vm0, %v504_v31 }
  0x67   : > { %814 = vmatprep.mubr.f32.mxu0 %v9166_v7 }
  0x68   : > { %5111 = vmatmul.mubr.msk.f32.gmra.mrb[36].mxu1 %vm533_vm0, %v503_v30 }
  0x69   : > { %1065 = vmatprep.mubr.f32.mxu1 %v9166_v7 }
  0x6a   : > { %5081 = vmatmul.mubr.msk.f32.gmra.mrb[40].mxu0 %vm533_vm0, %v505_v32 }
  0x6b   : > { %820 = vmatprep.mubr.f32.mxu0 %v9166_v7 }
  0x6c   : > { %5112 = vmatmul.mubr.msk.f32.gmra.mrb[38].mxu1 %vm533_vm0, %v504_v31 }
  0x6d   : > { %1071 = vmatprep.mubr.f32.mxu1 %v9166_v7 }
  0x6e   : > { %5082 = vmatmul.mubr.msk.f32.gmra.mrb[42].mxu0 %vm533_vm0, %v506_v33 }
  0x6f   : > { %826 = vmatprep.mubr.f32.mxu0 %v9166_v7 }
  0x70   : > { %5113 = vmatmul.mubr.msk.f32.gmra.mrb[40].mxu1 %vm533_vm0, %v505_v32  ;;  %v5564_v32 = vpack.c.bf16 %v1707_v27, %v1706_v26  ;;  %v1716_v27 = vld [vmem:[%s9164_s6 + $0x1a0] sm:$0xff] }
  0x71   : > { %1077 = vmatprep.mubr.f32.mxu1 %v9166_v7 }
  0x72   : > { %5083 = vmatmul.mubr.msk.f32.gmra.mrb[44].mxu0 %vm533_vm0, %v507_v34 }
  0x73   : > { %832 = vmatprep.mubr.f32.mxu0 %v9166_v7 }
  0x74   : > { %5114 = vmatmul.mubr.msk.f32.gmra.mrb[42].mxu1 %vm533_vm0, %v506_v33 }
  0x75   : > { %1083 = vmatprep.mubr.f32.mxu1 %v9166_v7 }
  0x76   : > { %5084 = vmatmul.mubr.msk.f32.gmra.mrb[46].mxu0 %vm533_vm0, %v508_v35 }
  0x77   : > { %838 = vmatprep.mubr.f32.mxu0 %v9166_v7 }
  0x78   : > { %5115 = vmatmul.mubr.msk.f32.gmra.mrb[44].mxu1 %vm533_vm0, %v507_v34 }
  0x79   : > { %1089 = vmatprep.mubr.f32.mxu1 %v9166_v7 }
  0x7a   : > { %5085 = vmatmul.mubr.msk.f32.gmra.mrb[48].mxu0 %vm533_vm0, %v509_v36 }
  0x7b   : > { %844 = vmatprep.mubr.f32.mxu0 %v9166_v7 }
  0x7c   : > { %5116 = vmatmul.mubr.msk.f32.gmra.mrb[46].mxu1 %vm533_vm0, %v508_v35  ;;  %v1708_v35 = vld [vmem:[%s9164_s6 + $0x160] sm:$0xff] }
  0x7d   : > { %1095 = vmatprep.mubr.f32.mxu1 %v9166_v7 }
  0x7e   : > { %5086 = vmatmul.mubr.msk.f32.gmra.mrb[50].mxu0 %vm533_vm0, %v510_v37 }
  0x7f   : > { %850 = vmatprep.mubr.f32.mxu0 %v9166_v7 }
  0x80   : > { %5117 = vmatmul.mubr.msk.f32.gmra.mrb[48].mxu1 %vm533_vm0, %v509_v36  ;;  %v1709_v36 = vld [vmem:[%s9164_s6 + $0x168] sm:$0xff] }
  0x81   : > { %1101 = vmatprep.mubr.f32.mxu1 %v9166_v7 }
  0x82   : > { %5087 = vmatmul.mubr.msk.f32.gmra.mrb[52].mxu0 %vm533_vm0, %v511_v38 }
  0x83   : > { %856 = vmatprep.mubr.f32.mxu0 %v9166_v7 }
  0x84   : > { %5118 = vmatmul.mubr.msk.f32.gmra.mrb[50].mxu1 %vm533_vm0, %v510_v37 }
  0x85   : > { %1107 = vmatprep.mubr.f32.mxu1 %v9166_v7 }
  0x86   : > { %5088 = vmatmul.mubr.msk.f32.gmra.mrb[54].mxu0 %vm533_vm0, %v512_v39 }
  0x87   : > { %862 = vmatprep.mubr.f32.mxu0 %v9166_v7 }
  0x88   : > { %5119 = vmatmul.mubr.msk.f32.gmra.mrb[52].mxu1 %vm533_vm0, %v511_v38 }
  0x89   : > { %1113 = vmatprep.mubr.f32.mxu1 %v9166_v7 }
  0x8a   : > { %5089 = vmatmul.mubr.msk.f32.gmra.mrb[56].mxu0 %vm533_vm0, %v513_v40 }
  0x8b   : > { %868 = vmatprep.mubr.f32.mxu0 %v9166_v7 }
  0x8c   : > { %5120 = vmatmul.mubr.msk.f32.gmra.mrb[54].mxu1 %vm533_vm0, %v512_v39 }
  0x8d   : > { %1119 = vmatprep.mubr.f32.mxu1 %v9166_v7 }
  0x8e   : > { %5090 = vmatmul.mubr.msk.f32.gmra.mrb[58].mxu0 %vm533_vm0, %v514_v41 }
  0x8f   : > { %874 = vmatprep.mubr.f32.mxu0 %v9166_v7 }
  0x90   : > { %5121 = vmatmul.mubr.msk.f32.gmra.mrb[56].mxu1 %vm533_vm0, %v513_v40 }
  0x91   : > { %1125 = vmatprep.mubr.f32.mxu1 %v9166_v7 }
  0x92   : > { %5091 = vmatmul.mubr.msk.f32.gmra.mrb[60].mxu0 %vm533_vm0, %v515_v42 }
  0x93   : > { %880 = vmatprep.mubr.f32.mxu0 %v9166_v7 }
  0x94   : > { %5122 = vmatmul.mubr.msk.f32.gmra.mrb[58].mxu1 %vm533_vm0, %v514_v41  ;;  %v5567_v41 = vpack.c.bf16 %v1709_v36, %v1708_v35 }
  0x95   : > { %1131 = vmatprep.mubr.f32.mxu1 %v9166_v7 }
  0x96   : > { %5092 = vmatmul.mubr.msk.f32.gmra.mrb[62].mxu0 %vm533_vm0, %v516_v43 }
  0x98   : > { %5123 = vmatmul.mubr.msk.f32.gmra.mrb[60].mxu1 %vm533_vm0, %v515_v42 }
  0x99   : > { %1137 = vmatprep.mubr.f32.mxu1 %v9166_v7 }
  0x9c   : > { %5124 = vmatmul.mubr.msk.f32.gmra.mrb[62].mxu1 %vm533_vm0, %v516_v43 }
  0x9d   : > { %2507 = vmatprep.mubr.f32.mxu1 %v9166_v7 }
  0xed   : > { %v696_v46 = vpop.f32.mrb[0].mxu0 }
  0xee   : > { %v6390_v49 = vmul.f32 %v6378_v44, %v696_v46  ;;  %v698_v50 = vpop.f32.mrb[1].mxu0  ;;  %v1710_v46 = vld [vmem:[%s9164_s6 + $0x170] sm:$0xff] }
  0xef   : > { %v6393_v51 = vmul.f32 %v6381_v45, %v698_v50  ;;  %v5570_v56 = vpack.c.bf16 %v1711_v47, %v1710_v46  ;;  %v1718_v46 = vld [vmem:[%s9164_s6 + $0x1b0] sm:$0xff]  ;;  %v1719_v47 = vld [vmem:[%s9164_s6 + $0x1b8] sm:$0xff] }
  0xf0   : > { %9287 = vst [vmem:[#allocation4_spill] sm:$0xff] %v6390_v49  ;;  %vm1280_vm2 = vcmp.ne.f32.partialorder %v6390_v49, 0.0  ;;  %v9349_v49 = vmov 1.0  }
  0xf1   : > { %9288 = vst [vmem:[#allocation5_spill] sm:$0xff] %v6393_v51  ;;  %vm1281_vm1 = vcmp.ne.f32.partialorder %v6393_v51, 0.0  ;;  %v702_v55 = vpop.f32.mrb[2].mxu0 }
  0xf2   : > { %v6410_v58 = vmul.f32 %v6396_v52, %v702_v55  ;;  %v704_v59 = vpop.f32.mrb[3].mxu0  ;;  %5253 = vmatprep.mubr.msk.f32.mxu0 %vm1281_vm1, %v9220_v60 }
  0xf3   : > { %v6414_v61 = vmul.f32 %v6399_v53, %v704_v59  ;;  %5254 = vmatmul.mubr.msk.f32.vlgmr.msra.gmra.mrb[64].mxu0 %vm1280_vm2, %v9220_v60  ;;  %v6451_v14 = vpop.f32.mrb[0].mxu1 }
  0xf4   : > { %9289 = vst [vmem:[#allocation6_spill] sm:$0xff] %v6410_v58  ;;  %5550 = vmatpush1.bf16.msra.mxu0 %v5549_v54  ;;  %vm1284_vm4 = vcmp.ne.f32.partialorder %v6410_v58, 0.0  ;;  %v6461_v18 = vpop.f32.mrb[1].mxu1 }
  0xf5   : > { %9290 = vst [vmem:[#allocation7_spill] sm:$0xff] %v6414_v61  ;;  %vm1285_vm3 = vcmp.ne.f32.partialorder %v6414_v61, 0.0  ;;  %v708_v63 = vpop.f32.mrb[4].mxu0  ;;  %5551 = vmatprep.subr.bf16.mxu0 %v9168_v20 }
  0xf6   : > { %v6427_v2 = vmul.f32 %v6378_v44, %v708_v63  ;;  %v710_v3 = vpop.f32.mrb[5].mxu0  ;;  %5255 = vmatprep.mubr.msk.f32.mxu0 %vm1285_vm3, %v9220_v60  ;;  %v1713_v63 = vld [vmem:[%s9164_s6 + $0x188] sm:$0xff] }
  0xf7   : > { %v6431_v4 = vmul.f32 %v6381_v45, %v710_v3  ;;  %5256 = vmatmul.mubr.msk.f32.gmra.mrb[66].mxu0 %vm1284_vm4, %v9220_v60  ;;  %v6472_v24 = vpop.f32.mrb[2].mxu1 }
  0xf8   : > { %9291 = vst [vmem:[#allocation8_spill] sm:$0xff] %v6427_v2  ;;  %5553 = vmatpush1.bf16.msra.mxu0 %v5552_v62  ;;  %vm1288_vm6 = vcmp.ne.f32.partialorder %v6427_v2, 0.0  ;;  %v6482_v28 = vpop.f32.mrb[3].mxu1  ;;  %v1712_v62 = vld [vmem:[%s9164_s6 + $0x180] sm:$0xff]  ;;  %v2343_v2 = vld [vmem:[%s9163_s5 + $0x28] sm:$0xff] }
  0xf9   : > { %9292 = vst [vmem:[#allocation9_spill] sm:$0xff] %v6431_v4  ;;  %vm1289_vm5 = vcmp.ne.f32.partialorder %v6431_v4, 0.0  ;;  %v714_v6 = vpop.f32.mrb[6].mxu0  ;;  %5554 = vmatprep.subr.bf16.mxu0 %v9168_v20 }
  0xfa   : > { %v6444_v10 = vmul.f32 %v6396_v52, %v714_v6  ;;  %v716_v11 = vpop.f32.mrb[7].mxu0  ;;  %5257 = vmatprep.mubr.msk.f32.mxu0 %vm1289_vm5, %v9220_v60  ;;  %v5573_v6 = vpack.c.bf16 %v1713_v63, %v1712_v62  ;;  %v5582_v63 = vpack.c.bf16 %v1719_v47, %v1718_v46 }
  0xfb   : > { %v6448_v12 = vmul.f32 %v6399_v53, %v716_v11  ;;  %5258 = vmatmul.mubr.msk.f32.gmra.mrb[68].mxu0 %vm1288_vm6, %v9220_v60  ;;  %v6493_v33 = vpop.f32.mrb[4].mxu1  ;;  %v1714_v11 = vld [vmem:[%s9164_s6 + $0x190] sm:$0xff] }
  0xfc   : > { %9293 = vst [vmem:[#allocation10_spill] sm:$0xff] %v6444_v10  ;;  %5556 = vmatpush1.bf16.msra.mxu0 %v5555_v5  ;;  %vm1292_vm8 = vcmp.ne.f32.partialorder %v6444_v10, 0.0  ;;  %v6503_v37 = vpop.f32.mrb[5].mxu1 }
  0xfd   : > { %9294 = vst [vmem:[#allocation11_spill] sm:$0xff] %v6448_v12  ;;  %vm1293_vm7 = vcmp.ne.f32.partialorder %v6448_v12, 0.0  ;;  %v720_v15 = vpop.f32.mrb[8].mxu0  ;;  %5557 = vmatprep.subr.bf16.mxu0 %v9168_v20 }
  0xfe   : > { %v6465_v19 = vmul.f32 %v6378_v44, %v720_v15  ;;  %v722_v21 = vpop.f32.mrb[9].mxu0  ;;  %5259 = vmatprep.mubr.msk.f32.mxu0 %vm1293_vm7, %v9220_v60 }
  0xff   : > { %v6469_v22 = vmul.f32 %v6381_v45, %v722_v21  ;;  %5260 = vmatmul.mubr.msk.f32.gmra.mrb[70].mxu0 %vm1292_vm8, %v9220_v60  ;;  %v6514_v42 = vpop.f32.mrb[6].mxu1 }
 0x100   : > { %9295 = vst [vmem:[#allocation12_spill] sm:$0xff] %v6465_v19  ;;  %5559 = vmatpush1.bf16.msra.mxu0 %v5558_v13  ;;  %vm1296_vm10 = vcmp.ne.f32.partialorder %v6465_v19, 0.0  ;;  %v6524_v48 = vpop.f32.mrb[7].mxu1  ;;  %v1715_v13 = vld [vmem:[%s9164_s6 + $0x198] sm:$0xff] }
 0x101   : > { %9296 = vst [vmem:[#allocation13_spill] sm:$0xff] %v6469_v22  ;;  %vm1297_vm9 = vcmp.ne.f32.partialorder %v6469_v22, 0.0  ;;  %v726_v25 = vpop.f32.mrb[10].mxu0  ;;  %5560 = vmatprep.subr.bf16.mxu0 %v9168_v20 }
 0x102   : > { %v6486_v29 = vmul.f32 %v6396_v52, %v726_v25  ;;  %v728_v30 = vpop.f32.mrb[11].mxu0  ;;  %5261 = vmatprep.mubr.msk.f32.mxu0 %vm1297_vm9, %v9220_v60 }
 0x103   : > { %v6490_v31 = vmul.f32 %v6399_v53, %v728_v30  ;;  %5262 = vmatmul.mubr.msk.f32.gmra.mrb[72].mxu0 %vm1296_vm10, %v9220_v60  ;;  %v6535_v57 = vpop.f32.mrb[8].mxu1  ;;  %v1717_v30 = vld [vmem:[%s9164_s6 + $0x1a8] sm:$0xff] }
 0x104   : > { %9297 = vst [vmem:[#allocation14_spill] sm:$0xff] %v6486_v29  ;;  %5562 = vmatpush1.bf16.msra.mxu0 %v5561_v23  ;;  %vm1300_vm12 = vcmp.ne.f32.partialorder %v6486_v29, 0.0  ;;  %v6545_v0 = vpop.f32.mrb[9].mxu1  ;;  %v5576_v23 = vpack.c.bf16 %v1715_v13, %v1714_v11  ;;  %v1721_v11 = vld [vmem:[%s9164_s6 + $0x1c8] sm:$0xff] }
 0x105   : > { %9298 = vst [vmem:[#allocation15_spill] sm:$0xff] %v6490_v31  ;;  %vm1301_vm11 = vcmp.ne.f32.partialorder %v6490_v31, 0.0  ;;  %v732_v34 = vpop.f32.mrb[12].mxu0  ;;  %5563 = vmatprep.subr.bf16.mxu0 %v9168_v20 }
 0x106   : > { %v6507_v38 = vmul.f32 %v6378_v44, %v732_v34  ;;  %v734_v39 = vpop.f32.mrb[13].mxu0  ;;  %5263 = vmatprep.mubr.msk.f32.mxu0 %vm1301_vm11, %v9220_v60 }
 0x107   : > { %v6511_v40 = vmul.f32 %v6381_v45, %v734_v39  ;;  %5264 = vmatmul.mubr.msk.f32.gmra.mrb[74].mxu0 %vm1300_vm12, %v9220_v60  ;;  %v6556_v8 = vpop.f32.mrb[10].mxu1  ;;  %v5579_v39 = vpack.c.bf16 %v1717_v30, %v1716_v27 }
 0x108   : > { %9299 = vst [vmem:[#allocation16_spill] sm:$0xff] %v6507_v38  ;;  %5565 = vmatpush1.bf16.msra.mxu0 %v5564_v32  ;;  %vm1304_vm14 = vcmp.ne.f32.partialorder %v6507_v38, 0.0  ;;  %v6566_v15 = vpop.f32.mrb[11].mxu1 }
 0x109   : > { %9300 = vst [vmem:[#allocation17_spill] sm:$0xff] %v6511_v40  ;;  %vm1305_vm13 = vcmp.ne.f32.partialorder %v6511_v40, 0.0  ;;  %v738_v43 = vpop.f32.mrb[14].mxu0  ;;  %5566 = vmatprep.subr.bf16.mxu0 %v9168_v20 }
 0x10a   : > { %v6528_v50 = vmul.f32 %v6396_v52, %v738_v43  ;;  %v740_v54 = vpop.f32.mrb[15].mxu0  ;;  %5265 = vmatprep.mubr.msk.f32.mxu0 %vm1305_vm13, %v9220_v60 }
 0x10b   : > { %v6532_v55 = vmul.f32 %v6399_v53, %v740_v54  ;;  %5266 = vmatmul.mubr.msk.f32.gmra.mrb[76].mxu0 %vm1304_vm14, %v9220_v60  ;;  %v6577_v25 = vpop.f32.mrb[12].mxu1 }
 0x10c   : > { %9301 = vst [vmem:[#allocation18_spill] sm:$0xff] %v6528_v50  ;;  %5568 = vmatpush1.bf16.msra.mxu0 %v5567_v41  ;;  %vm1308_vm0 = vcmp.ne.f32.partialorder %v6528_v50, 0.0  ;;  %v6587_v32 = vpop.f32.mrb[13].mxu1 }
 0x10d   : > { %9302 = vst [vmem:[#allocation19_spill] sm:$0xff] %v6532_v55  ;;  %vm1309_vm15 = vcmp.ne.f32.partialorder %v6532_v55, 0.0  ;;  %v744_v59 = vpop.f32.mrb[16].mxu0  ;;  %5569 = vmatprep.subr.bf16.mxu0 %v9168_v20 }
 0x10e   : > { %v6549_v1 = vmul.f32 %v6378_v44, %v744_v59  ;;  %v746_v3 = vpop.f32.mrb[17].mxu0  ;;  %5267 = vmatprep.mubr.msk.f32.mxu0 %vm1309_vm15, %v9220_v60 }
 0x10f   : > { %v6553_v5 = vmul.f32 %v6381_v45, %v746_v3  ;;  %5268 = vmatmul.mubr.msk.f32.gmra.mrb[78].mxu0 %vm1308_vm0, %v9220_v60  ;;  %v6598_v41 = vpop.f32.mrb[14].mxu1 }
 0x110   : > { %9303 = vst [vmem:[#allocation20_spill] sm:$0xff] %v6549_v1  ;;  %5571 = vmatpush1.bf16.msra.mxu0 %v5570_v56  ;;  %vm1312_vm2 = vcmp.ne.f32.partialorder %v6549_v1, 0.0  ;;  %v6608_v54 = vpop.f32.mrb[15].mxu1 }
 0x111   : > { %9304 = vst [vmem:[#allocation21_spill] sm:$0xff] %v6553_v5  ;;  %vm1313_vm1 = vcmp.ne.f32.partialorder %v6553_v5, 0.0  ;;  %v750_v9 = vpop.f32.mrb[18].mxu0  ;;  %5572 = vmatprep.subr.bf16.mxu0 %v9168_v20 }
 0x112   : > { %v6570_v16 = vmul.f32 %v6396_v52, %v750_v9  ;;  %v752_v17 = vpop.f32.mrb[19].mxu0  ;;  %5269 = vmatprep.mubr.msk.f32.mxu0 %vm1313_vm1, %v9220_v60  ;;  %v1720_v9 = vld [vmem:[%s9164_s6 + $0x1c0] sm:$0xff] }
 0x113   : > { %v6574_v21 = vmul.f32 %v6399_v53, %v752_v17  ;;  %5270 = vmatmul.mubr.msk.f32.gmra.mrb[80].mxu0 %vm1312_vm2, %v9220_v60  ;;  %v6619_v3 = vpop.f32.mrb[16].mxu1  ;;  %v5585_v27 = vpack.c.bf16 %v1721_v11, %v1720_v9 }
 0x114   : > { %9305 = vst [vmem:[#allocation22_spill] sm:$0xff] %v6570_v16  ;;  %5574 = vmatpush1.bf16.msra.mxu0 %v5573_v6  ;;  %vm1316_vm4 = vcmp.ne.f32.partialorder %v6570_v16, 0.0  ;;  %v6629_v13 = vpop.f32.mrb[17].mxu1 }
 0x115   : > { %9306 = vst [vmem:[#allocation23_spill] sm:$0xff] %v6574_v21  ;;  %vm1317_vm3 = vcmp.ne.f32.partialorder %v6574_v21, 0.0  ;;  %v756_v26 = vpop.f32.mrb[20].mxu0  ;;  %5575 = vmatprep.subr.bf16.mxu0 %v9168_v20 }
 0x116   : > { %v6591_v34 = vmul.f32 %v6378_v44, %v756_v26  ;;  %v758_v35 = vpop.f32.mrb[21].mxu0  ;;  %5271 = vmatprep.mubr.msk.f32.mxu0 %vm1317_vm3, %v9220_v60 }
 0x117   : > { %v6595_v36 = vmul.f32 %v6381_v45, %v758_v35  ;;  %5272 = vmatmul.mubr.msk.f32.gmra.mrb[82].mxu0 %vm1316_vm4, %v9220_v60  ;;  %v6640_v30 = vpop.f32.mrb[18].mxu1 }
 0x118   : > { %9307 = vst [vmem:[#allocation24_spill] sm:$0xff] %v6591_v34  ;;  %5577 = vmatpush1.bf16.msra.mxu0 %v5576_v23  ;;  %vm1320_vm6 = vcmp.ne.f32.partialorder %v6591_v34, 0.0  ;;  %v6650_v46 = vpop.f32.mrb[19].mxu1 }
 0x119   : > { %9308 = vst [vmem:[#allocation25_spill] sm:$0xff] %v6595_v36  ;;  %vm1321_vm5 = vcmp.ne.f32.partialorder %v6595_v36, 0.0  ;;  %v762_v43 = vpop.f32.mrb[22].mxu0  ;;  %5578 = vmatprep.subr.bf16.mxu0 %v9168_v20 }
 0x11a   : > { %v6612_v56 = vmul.f32 %v6396_v52, %v762_v43  ;;  %v764_v59 = vpop.f32.mrb[23].mxu0  ;;  %5273 = vmatprep.mubr.msk.f32.mxu0 %vm1321_vm5, %v9220_v60  ;;  %v1723_v43 = vld [vmem:[%s9164_s6 + $0x1d8] sm:$0xff] }
 0x11b   : > { %v6616_v62 = vmul.f32 %v6399_v53, %v764_v59  ;;  %5274 = vmatmul.mubr.msk.f32.gmra.mrb[84].mxu0 %vm1320_vm6, %v9220_v60  ;;  %v6661_v9 = vpop.f32.mrb[20].mxu1 }
 0x11c   : > { %9309 = vst [vmem:[#allocation26_spill] sm:$0xff] %v6612_v56  ;;  %5580 = vmatpush1.bf16.msra.mxu0 %v5579_v39  ;;  %vm1324_vm8 = vcmp.ne.f32.partialorder %v6612_v56, 0.0  ;;  %v1722_v39 = vld [vmem:[%s9164_s6 + $0x1d0] sm:$0xff] }
 0x11d   : > { %9310 = vst [vmem:[#allocation27_spill] sm:$0xff] %v6616_v62  ;;  %vm1325_vm7 = vcmp.ne.f32.partialorder %v6616_v62, 0.0  ;;  %v768_v6 = vpop.f32.mrb[24].mxu0  ;;  %5581 = vmatprep.subr.bf16.mxu0 %v9168_v20 }
 0x11e   : > { %v6633_v17 = vmul.f32 %v6378_v44, %v768_v6  ;;  %v770_v23 = vpop.f32.mrb[25].mxu0  ;;  %5275 = vmatprep.mubr.msk.f32.mxu0 %vm1325_vm7, %v9220_v60  ;;  %v5588_v6 = vpack.c.bf16 %v1723_v43, %v1722_v39 }
 0x11f   : > { %v6637_v26 = vmul.f32 %v6381_v45, %v770_v23  ;;  %5276 = vmatmul.mubr.msk.f32.gmra.mrb[86].mxu0 %vm1324_vm8, %v9220_v60  ;;  %v1724_v23 = vld [vmem:[%s9164_s6 + $0x1e0] sm:$0xff] }
 0x120   : > { %9311 = vst [vmem:[#allocation28_spill] sm:$0xff] %v6633_v17  ;;  %5583 = vmatpush1.bf16.msra.mxu0 %v5582_v63  ;;  %vm1328_vm10 = vcmp.ne.f32.partialorder %v6633_v17, 0.0 }
 0x121   : > { %9312 = vst [vmem:[#allocation29_spill] sm:$0xff] %v6637_v26  ;;  %vm1329_vm9 = vcmp.ne.f32.partialorder %v6637_v26, 0.0  ;;  %v774_v35 = vpop.f32.mrb[26].mxu0  ;;  %5584 = vmatprep.subr.bf16.mxu0 %v9168_v20  ;;  %v9317_v26 = vmov 0.0|0.0  }
 0x122   : > { %v6654_v47 = vmul.f32 %v6396_v52, %v774_v35  ;;  %v776_v59 = vpop.f32.mrb[27].mxu0  ;;  %5277 = vmatprep.mubr.msk.f32.mxu0 %vm1329_vm9, %v9220_v60  ;;  %v1725_v35 = vld [vmem:[%s9164_s6 + $0x1e8] sm:$0xff] }
 0x123   : > { %v6658_v63 = vmul.f32 %v6399_v53, %v776_v59  ;;  %5278 = vmatmul.mubr.msk.f32.gmra.mrb[88].mxu0 %vm1328_vm10, %v9220_v60  ;;  %v6671_v59 = vpop.f32.mrb[21].mxu1  ;;  %v5591_v7 = vpack.c.bf16 %v1725_v35, %v1724_v23 }
 0x124   : > { %9313 = vst [vmem:[#allocation30_spill] sm:$0xff] %v6654_v47  ;;  %5586 = vmatpush1.bf16.msra.mxu0 %v5585_v27  ;;  %vm1332_vm12 = vcmp.ne.f32.partialorder %v6654_v47, 0.0 }
 0x125   : > { %9314 = vst [vmem:[#allocation31_spill] sm:$0xff] %v6658_v63  ;;  %vm1333_vm11 = vcmp.ne.f32.partialorder %v6658_v63, 0.0  ;;  %v780_v11 = vpop.f32.mrb[28].mxu0  ;;  %5587 = vmatprep.subr.bf16.mxu0 %v9168_v20  ;;  %v6682_v20 = vpop.f32.mrb[22].mxu1 }
 0x126   : > { %v6675_v27 = vmul.f32 %v6378_v44, %v780_v11  ;;  %v782_v39 = vpop.f32.mrb[29].mxu0  ;;  %5279 = vmatprep.mubr.msk.f32.mxu0 %vm1333_vm11, %v9220_v60  ;;  %v1726_v11 = vld [vmem:[%s9164_s6 + $0x1f0] sm:$0xff]  ;;  %v6692_v47 = vpop.f32.mrb[23].mxu1 }
 0x127   : > { %v6679_v43 = vmul.f32 %v6381_v45, %v782_v39  ;;  %5280 = vmatmul.mubr.msk.f32.gmra.mrb[90].mxu0 %vm1332_vm12, %v9220_v60  ;;  %v1727_v39 = vld [vmem:[%s9164_s6 + $0x1f8] sm:$0xff]  ;;  %v6703_v17 = vpop.f32.mrb[24].mxu1 }
 0x128   : > { %9315 = vst [vmem:[#allocation32_spill] sm:$0xff] %v6675_v27  ;;  %5589 = vmatpush1.bf16.msra.mxu0 %v5588_v6  ;;  %vm1336_vm14 = vcmp.ne.f32.partialorder %v6675_v27, 0.0  ;;  %v6707_v27 = vpop.f32.mrb[25].mxu1 }
 0x129   : > { %9316 = vst [vmem:[#allocation33_spill] sm:$0xff] %v6679_v43  ;;  %vm1337_vm13 = vcmp.ne.f32.partialorder %v6679_v43, 0.0  ;;  %v786_v63 = vpop.f32.mrb[30].mxu0  ;;  %5590 = vmatprep.subr.bf16.mxu0 %v9317_v26  ;;  %v5594_v43 = vpack.c.bf16 %v1727_v39, %v1726_v11  ;;  %v6718_v11 = vpop.f32.mrb[26].mxu1 }
 0x12a   : > { %v6696_v6 = vmul.f32 %v6396_v52, %v786_v63  ;;  %v788_v23 = vpop.f32.mrb[31].mxu0  ;;  %5281 = vmatprep.mubr.msk.f32.mxu0 %vm1337_vm13, %v9220_v60  ;;  %v6721_v39 = vpop.f32.mrb[27].mxu1 }
 0x12b   : > { %v6700_v35 = vmul.f32 %v6399_v53, %v788_v23  ;;  %5282 = vmatmul.mubr.msk.f32.gmra.mrb[92].mxu0 %vm1336_vm14, %v9220_v60 }
 0x12c   : > { %9318 = vst [vmem:[#allocation34_spill] sm:$0xff] %v6696_v6  ;;  %5592 = vmatpush1.bf16.msra.mxu0 %v5591_v7  ;;  %vm1340_vm0 = vcmp.ne.f32.partialorder %v6696_v6, 0.0 }
 0x12d   : > { %9319 = vst [vmem:[#allocation35_spill] sm:$0xff] %v6700_v35  ;;  %vm1341_vm15 = vcmp.ne.f32.partialorder %v6700_v35, 0.0  ;;  %v792_v62 = vpop.f32.mrb[32].mxu0  ;;  %5593 = vmatprep.subr.bf16.mxu0 %v9317_v26 }
 0x12e   : > { %v6711_v63 = vmul.f32 %v6378_v44, %v792_v62  ;;  %v794_v23 = vpop.f32.mrb[33].mxu0  ;;  %5283 = vmatprep.mubr.msk.f32.mxu0 %vm1341_vm15, %v9220_v60 }
 0x12f   : > { %v6715_v7 = vmul.f32 %v6381_v45, %v794_v23  ;;  %5284 = vmatmul.mubr.msk.f32.gmra.mrb[94].mxu0 %vm1340_vm0, %v9220_v60 }
 0x130   : > { %9320 = vst [vmem:[#allocation36_spill] sm:$0xff] %v6711_v63  ;;  %5595 = vmatpush1.bf16.msra.mxu0 %v5594_v43  ;;  %vm1344_vm2 = vcmp.ne.f32.partialorder %v6711_v63, 0.0  ;;  %v6732_v43 = vpop.f32.mrb[28].mxu1 }
 0x131   : > { %9321 = vst [vmem:[#allocation37_spill] sm:$0xff] %v6715_v7  ;;  %vm1345_vm1 = vcmp.ne.f32.partialorder %v6715_v7, 0.0  ;;  %v798_v26 = vpop.f32.mrb[34].mxu0  ;;  %v6735_v6 = vpop.f32.mrb[29].mxu1 }
 0x132   : > { %v6725_v62 = vmul.f32 %v6396_v52, %v798_v26  ;;  %v800_v35 = vpop.f32.mrb[35].mxu0  ;;  %5285 = vmatprep.mubr.msk.f32.mxu0 %vm1345_vm1, %v9220_v60  ;;  %v6746_v56 = vpop.f32.mrb[30].mxu1 }
 0x133   : > { %v6729_v23 = vmul.f32 %v6399_v53, %v800_v35  ;;  %5286 = vmatmul.mubr.msk.f32.gmra.mrb[96].mxu0 %vm1344_vm2, %v9220_v60  ;;  %v6749_v36 = vpop.f32.mrb[31].mxu1 }
 0x134   : > { %9322 = vst [vmem:[#allocation38_spill] sm:$0xff] %v6725_v62  ;;  %vm1348_vm4 = vcmp.ne.f32.partialorder %v6725_v62, 0.0  ;;  %v6760_v34 = vpop.f32.mrb[32].mxu1 }
 0x135   : > { %9323 = vst [vmem:[#allocation39_spill] sm:$0xff] %v6729_v23  ;;  %vm1349_vm3 = vcmp.ne.f32.partialorder %v6729_v23, 0.0  ;;  %v804_v7 = vpop.f32.mrb[36].mxu0  ;;  %v6763_v21 = vpop.f32.mrb[33].mxu1 }
 0x136   : > { %v6739_v26 = vmul.f32 %v6378_v44, %v804_v7  ;;  %v806_v63 = vpop.f32.mrb[37].mxu0  ;;  %5287 = vmatprep.mubr.msk.f32.mxu0 %vm1349_vm3, %v9220_v60 }
 0x137   : > { %v6743_v35 = vmul.f32 %v6381_v45, %v806_v63  ;;  %5288 = vmatmul.mubr.msk.f32.gmra.mrb[98].mxu0 %vm1348_vm4, %v9220_v60  ;;  %v6774_v16 = vpop.f32.mrb[34].mxu1 }
 0x138   : > { %9324 = vst [vmem:[#allocation40_spill] sm:$0xff] %v6739_v26  ;;  %vm1352_vm6 = vcmp.ne.f32.partialorder %v6739_v26, 0.0  ;;  %v6777_v5 = vpop.f32.mrb[35].mxu1 }
 0x139   : > { %9325 = vst [vmem:[#allocation41_spill] sm:$0xff] %v6743_v35  ;;  %vm1353_vm5 = vcmp.ne.f32.partialorder %v6743_v35, 0.0  ;;  %v810_v23 = vpop.f32.mrb[38].mxu0 }
 0x13a   : > { %v6753_v7 = vmul.f32 %v6396_v52, %v810_v23  ;;  %v812_v62 = vpop.f32.mrb[39].mxu0  ;;  %5289 = vmatprep.mubr.msk.f32.mxu0 %vm1353_vm5, %v9220_v60 }
 0x13b   : > { %v6757_v63 = vmul.f32 %v6399_v53, %v812_v62  ;;  %5290 = vmatmul.mubr.msk.f32.gmra.mrb[100].mxu0 %vm1352_vm6, %v9220_v60  ;;  %v6788_v1 = vpop.f32.mrb[36].mxu1 }
 0x13c   : > { %9326 = vst [vmem:[#allocation42_spill] sm:$0xff] %v6753_v7  ;;  %vm1356_vm8 = vcmp.ne.f32.partialorder %v6753_v7, 0.0  ;;  %v6791_v55 = vpop.f32.mrb[37].mxu1 }
 0x13d   : > { %9327 = vst [vmem:[#allocation43_spill] sm:$0xff] %v6757_v63  ;;  %vm1357_vm7 = vcmp.ne.f32.partialorder %v6757_v63, 0.0  ;;  %v816_v35 = vpop.f32.mrb[40].mxu0 }
 0x13e   : > { %v6767_v23 = vmul.f32 %v6378_v44, %v816_v35  ;;  %v818_v26 = vpop.f32.mrb[41].mxu0  ;;  %5291 = vmatprep.mubr.msk.f32.mxu0 %vm1357_vm7, %v9220_v60 }
 0x13f   : > { %v6771_v62 = vmul.f32 %v6381_v45, %v818_v26  ;;  %5292 = vmatmul.mubr.msk.f32.gmra.mrb[102].mxu0 %vm1356_vm8, %v9220_v60  ;;  %v6802_v50 = vpop.f32.mrb[38].mxu1 }
 0x140   : > { %9328 = vst [vmem:[#allocation44_spill] sm:$0xff] %v6767_v23  ;;  %vm1360_vm10 = vcmp.ne.f32.partialorder %v6767_v23, 0.0  ;;  %v6805_v40 = vpop.f32.mrb[39].mxu1 }
 0x141   : > { %9329 = vst [vmem:[#allocation45_spill] sm:$0xff] %v6771_v62  ;;  %vm1361_vm9 = vcmp.ne.f32.partialorder %v6771_v62, 0.0  ;;  %v822_v63 = vpop.f32.mrb[42].mxu0 }
 0x142   : > { %v6781_v35 = vmul.f32 %v6396_v52, %v822_v63  ;;  %v824_v7 = vpop.f32.mrb[43].mxu0  ;;  %5293 = vmatprep.mubr.msk.f32.mxu0 %vm1361_vm9, %v9220_v60 }
 0x143   : > { %v6785_v26 = vmul.f32 %v6399_v53, %v824_v7  ;;  %5294 = vmatmul.mubr.msk.f32.gmra.mrb[104].mxu0 %vm1360_vm10, %v9220_v60  ;;  %v6816_v38 = vpop.f32.mrb[40].mxu1 }
 0x144   : > { %9330 = vst [vmem:[#allocation46_spill] sm:$0xff] %v6781_v35  ;;  %vm1364_vm12 = vcmp.ne.f32.partialorder %v6781_v35, 0.0  ;;  %v6819_v31 = vpop.f32.mrb[41].mxu1 }
 0x145   : > { %9331 = vst [vmem:[#allocation47_spill] sm:$0xff] %v6785_v26  ;;  %vm1365_vm11 = vcmp.ne.f32.partialorder %v6785_v26, 0.0  ;;  %v828_v62 = vpop.f32.mrb[44].mxu0 }
 0x146   : > { %v6795_v63 = vmul.f32 %v6378_v44, %v828_v62  ;;  %v830_v23 = vpop.f32.mrb[45].mxu0  ;;  %5295 = vmatprep.mubr.msk.f32.mxu0 %vm1365_vm11, %v9220_v60 }
 0x147   : > { %v6799_v7 = vmul.f32 %v6381_v45, %v830_v23  ;;  %5296 = vmatmul.mubr.msk.f32.gmra.mrb[106].mxu0 %vm1364_vm12, %v9220_v60  ;;  %v6830_v29 = vpop.f32.mrb[42].mxu1 }
 0x148   : > { %9332 = vst [vmem:[#allocation48_spill] sm:$0xff] %v6795_v63  ;;  %vm1368_vm14 = vcmp.ne.f32.partialorder %v6795_v63, 0.0  ;;  %v6833_v22 = vpop.f32.mrb[43].mxu1 }
 0x149   : > { %9333 = vst [vmem:[#allocation49_spill] sm:$0xff] %v6799_v7  ;;  %vm1369_vm13 = vcmp.ne.f32.partialorder %v6799_v7, 0.0  ;;  %v834_v26 = vpop.f32.mrb[46].mxu0 }
 0x14a   : > { %v6809_v62 = vmul.f32 %v6396_v52, %v834_v26  ;;  %v836_v35 = vpop.f32.mrb[47].mxu0  ;;  %5297 = vmatprep.mubr.msk.f32.mxu0 %vm1369_vm13, %v9220_v60 }
 0x14b   : > { %v6813_v23 = vmul.f32 %v6399_v53, %v836_v35  ;;  %5298 = vmatmul.mubr.msk.f32.gmra.mrb[108].mxu0 %vm1368_vm14, %v9220_v60  ;;  %v6844_v19 = vpop.f32.mrb[44].mxu1 }
 0x14c   : > { %9334 = vst [vmem:[#allocation50_spill] sm:$0xff] %v6809_v62  ;;  %vm1372_vm0 = vcmp.ne.f32.partialorder %v6809_v62, 0.0  ;;  %9340 = vst [vmem:[#allocation56_spill] sm:$0xff] %v6844_v19  ;;  %v6847_v12 = vpop.f32.mrb[45].mxu1 }
 0x14d   : > { %9335 = vst [vmem:[#allocation51_spill] sm:$0xff] %v6813_v23  ;;  %vm1373_vm15 = vcmp.ne.f32.partialorder %v6813_v23, 0.0  ;;  %v840_v7 = vpop.f32.mrb[48].mxu0 }
 0x14e   : > { %v6823_v26 = vmul.f32 %v6378_v44, %v840_v7  ;;  %v842_v63 = vpop.f32.mrb[49].mxu0  ;;  %5299 = vmatprep.mubr.msk.f32.mxu0 %vm1373_vm15, %v9220_v60 }
 0x14f   : > { %v6827_v35 = vmul.f32 %v6381_v45, %v842_v63  ;;  %5300 = vmatmul.mubr.msk.f32.gmra.mrb[110].mxu0 %vm1372_vm0, %v9220_v60  ;;  %v6858_v10 = vpop.f32.mrb[46].mxu1 }
 0x150   : > { %9336 = vst [vmem:[#allocation52_spill] sm:$0xff] %v6823_v26  ;;  %vm1376_vm2 = vcmp.ne.f32.partialorder %v6823_v26, 0.0  ;;  %9343 = vst [vmem:[#allocation59_spill] sm:$0xff] %v6858_v10  ;;  %v6861_v4 = vpop.f32.mrb[47].mxu1 }
 0x151   : > { %9337 = vst [vmem:[#allocation53_spill] sm:$0xff] %v6827_v35  ;;  %vm1377_vm1 = vcmp.ne.f32.partialorder %v6827_v35, 0.0  ;;  %v846_v23 = vpop.f32.mrb[50].mxu0 }
 0x152   : > { %v6837_v7 = vmul.f32 %v6396_v52, %v846_v23  ;;  %v848_v62 = vpop.f32.mrb[51].mxu0  ;;  %5301 = vmatprep.mubr.msk.f32.mxu0 %vm1377_vm1, %v9220_v60 }
 0x153   : > { %v6841_v63 = vmul.f32 %v6399_v53, %v848_v62  ;;  %5302 = vmatmul.mubr.msk.f32.gmra.mrb[112].mxu0 %vm1376_vm2, %v9220_v60 }
 0x154   : > { %9338 = vst [vmem:[#allocation54_spill] sm:$0xff] %v6837_v7  ;;  %vm1380_vm4 = vcmp.ne.f32.partialorder %v6837_v7, 0.0 }
 0x155   : > { %9339 = vst [vmem:[#allocation55_spill] sm:$0xff] %v6841_v63  ;;  %vm1381_vm3 = vcmp.ne.f32.partialorder %v6841_v63, 0.0  ;;  %v852_v35 = vpop.f32.mrb[52].mxu0 }
 0x156   : > { %v6851_v23 = vmul.f32 %v6378_v44, %v852_v35  ;;  %v854_v26 = vpop.f32.mrb[53].mxu0  ;;  %5303 = vmatprep.mubr.msk.f32.mxu0 %vm1381_vm3, %v9220_v60 }
 0x157   : > { %v6855_v62 = vmul.f32 %v6381_v45, %v854_v26  ;;  %5304 = vmatmul.mubr.msk.f32.gmra.mrb[114].mxu0 %vm1380_vm4, %v9220_v60 }
 0x158   : > { %9341 = vst [vmem:[#allocation57_spill] sm:$0xff] %v6851_v23  ;;  %vm1384_vm6 = vcmp.ne.f32.partialorder %v6851_v23, 0.0  ;;  %v6878_v23 = vpop.f32.mrb[48].mxu1 }
 0x159   : > { %9342 = vst [vmem:[#allocation58_spill] sm:$0xff] %v6855_v62  ;;  %vm1385_vm5 = vcmp.ne.f32.partialorder %v6855_v62, 0.0  ;;  %v858_v63 = vpop.f32.mrb[54].mxu0  ;;  %v2339_v62 = vld [vmem:[%s9163_s5 + $0x8] sm:$0xff]  ;;  %9346 = vst [vmem:[#allocation62_spill] sm:$0xff] %v6878_v23  ;;  %v6887_v61 = vpop.f32.mrb[49].mxu1 }
 0x15a   : > { %v6865_v35 = vmul.f32 %v6396_v52, %v858_v63  ;;  %v860_v7 = vpop.f32.mrb[55].mxu0  ;;  %5305 = vmatprep.mubr.msk.f32.mxu0 %vm1385_vm5, %v9220_v60  ;;  %9347 = vst [vmem:[#allocation63_spill] sm:$0xff] %v6887_v61  ;;  %v5596_v23 = vpack.c.bf16 %v2343_v2, %v2339_v62  ;;  %v6898_v19 = vpop.f32.mrb[50].mxu1 }
 0x15b   : > { %v6869_v26 = vmul.f32 %v6399_v53, %v860_v7  ;;  %5306 = vmatmul.mubr.msk.f32.gmra.mrb[116].mxu0 %vm1384_vm6, %v9220_v60  ;;  %v2338_v7 = vld [vmem:[%s9163_s5] sm:$0xff] }
 0x15c   : > { %9344 = vst [vmem:[#allocation60_spill] sm:$0xff] %v6865_v35  ;;  %v2342_v60 = vld [vmem:[%s9163_s5 + $0x20] sm:$0xff]  ;;  %vm1388_vm8 = vcmp.ne.f32.partialorder %v6865_v35, 0.0  ;;  %5597 = vmatprep.subr.bf16.mxu1 %v5596_v23  ;;  %v6901_v35 = vpop.f32.mrb[51].mxu1 }
 0x15d   : > { %9345 = vst [vmem:[#allocation61_spill] sm:$0xff] %v6869_v26  ;;  %vm1389_vm7 = vcmp.ne.f32.partialorder %v6869_v26, 0.0  ;;  %v864_v63 = vpop.f32.mrb[56].mxu0  ;;  %v5598_v10 = vpack.c.bf16 %v2342_v60, %v2338_v7  ;;  %v6912_v2 = vpop.f32.mrb[52].mxu1 }
 0x15e   : > { %v6891_v58 = vmul.f32 %v6378_v44, %v864_v63  ;;  %v866_v51 = vpop.f32.mrb[57].mxu0  ;;  %5307 = vmatprep.mubr.msk.f32.mxu0 %vm1389_vm7, %v9349_v49  ;;  %v6915_v62 = vpop.f32.mrb[53].mxu1 }
 0x15f   : > { %v6895_v26 = vmul.f32 %v6381_v45, %v866_v51  ;;  %5308 = vmatmul.mubr.msk.f32.gmra.mrb[118].mxu0 %vm1388_vm8, %v9349_v49  ;;  %5599 = vmatpush1.bf16.msra.mxu1 %v5598_v10  ;;  %v6923_v10 = vld [vmem:[%s6375_s20 + $0x18] sm:$0xff] }
 0x160   : > { %9348 = vst [vmem:[#allocation64_spill] sm:$0xff] %v6891_v58  ;;  %vm1392_vm10 = vcmp.ne.f32.partialorder %v6891_v58, 0.0 }
 0x161   : > { %9350 = vst [vmem:[#allocation65_spill] sm:$0xff] %v6895_v26  ;;  %vm1393_vm9 = vcmp.ne.f32.partialorder %v6895_v26, 0.0  ;;  %v870_v61 = vpop.f32.mrb[58].mxu0 }
 0x162   : > { %v6905_v63 = vmul.f32 %v6396_v52, %v870_v61  ;;  %v872_v51 = vpop.f32.mrb[59].mxu0  ;;  %5309 = vmatprep.mubr.msk.f32.mxu0 %vm1393_vm9, %v9349_v49 }
 0x163   : > { %v6909_v60 = vmul.f32 %v6399_v53, %v872_v51  ;;  %5310 = vmatmul.mubr.msk.f32.gmra.mrb[120].mxu0 %vm1392_vm10, %v9349_v49 }
 0x164   : > { %9351 = vst [vmem:[#allocation66_spill] sm:$0xff] %v6905_v63  ;;  %vm1396_vm12 = vcmp.ne.f32.partialorder %v6905_v63, 0.0 }
 0x165   : > { %9352 = vst [vmem:[#allocation67_spill] sm:$0xff] %v6909_v60  ;;  %vm1397_vm11 = vcmp.ne.f32.partialorder %v6909_v60, 0.0  ;;  %v876_v23 = vpop.f32.mrb[60].mxu0  ;;  %v6929_v60 = vpop.f32.mrb[54].mxu1 }
 0x166   : > { %v6919_v61 = vmul.f32 %v6378_v44, %v876_v23  ;;  %v878_v7 = vpop.f32.mrb[61].mxu0  ;;  %5311 = vmatprep.mubr.msk.f32.mxu0 %vm1397_vm11, %v9349_v49  ;;  %v6934_v44 = vmul.f32 %v6923_v10, %v6461_v18  ;;  %v6936_v23 = vpop.f32.mrb[55].mxu1  ;;  %v6951_v18 = vld [vmem:[%s6375_s20 + $0x10] sm:$0xff] }
 0x167   : > { %v6926_v51 = vmul.f32 %v6381_v45, %v878_v7  ;;  %5312 = vmatmul.mubr.msk.f32.gmra.mrb[122].mxu0 %vm1396_vm12, %v9349_v49  ;;  %v6944_v7 = vld [vmem:[%s6375_s20 + $0x38] sm:$0xff]  ;;  %v6953_v58 = vpop.f32.mrb[56].mxu1 }
 0x168   : > { %9353 = vst [vmem:[#allocation68_spill] sm:$0xff] %v6919_v61  ;;  %9355 = vst [vmem:[#allocation70_spill] sm:$0xff] %v6934_v44  ;;  %vm1400_vm14 = vcmp.ne.f32.partialorder %v6919_v61, 0.0  ;;  %vm1283_vm0 = vcmp.ne.f32.partialorder %v6934_v44, 0.0 }
 0x169   : > { %9354 = vst [vmem:[#allocation69_spill] sm:$0xff] %v6926_v51  ;;  %vm1401_vm13 = vcmp.ne.f32.partialorder %v6926_v51, 0.0  ;;  %v882_v63 = vpop.f32.mrb[62].mxu0 }
 0x16a   : > { %v6940_v26 = vmul.f32 %v6396_v52, %v882_v63  ;;  %v884_v45 = vpop.f32.mrb[63].mxu0  ;;  %5313 = vmatprep.mubr.msk.f32.mxu0 %vm1401_vm13, %v9349_v49  ;;  %v6959_v52 = vmul.f32 %v6944_v7, %v6482_v28  ;;  %v6961_v63 = vpop.f32.mrb[57].mxu1  ;;  %v6979_v28 = vmul.f32 %v6923_v10, %v6503_v37  ;;  %v6995_v37 = vmul.f32 %v6944_v7, %v6524_v48 }
 0x16b   : > { %v6947_v51 = vmul.f32 %v6399_v53, %v884_v45  ;;  %5314 = vmatmul.mubr.msk.f32.gmra.mrb[124].mxu0 %vm1400_vm14, %v9349_v49  ;;  %v6966_v53 = vmul.f32 %v6951_v18, %v6451_v14  ;;  %v6971_v45 = vld [vmem:[%s6375_s20 + $0x30] sm:$0xff]  ;;  %v7011_v48 = vmul.f32 %v6923_v10, %v6545_v0  ;;  %v7030_v0 = vmul.f32 %v6951_v18, %v6535_v57 }
 0x16c   : > { %9356 = vst [vmem:[#allocation71_spill] sm:$0xff] %v6940_v26  ;;  %9358 = vst [vmem:[#allocation73_spill] sm:$0xff] %v6959_v52  ;;  %vm1404_vm1 = vcmp.ne.f32.partialorder %v6940_v26, 0.0  ;;  %vm1287_vm2 = vcmp.ne.f32.partialorder %v6959_v52, 0.0  ;;  %v6986_v14 = vmul.f32 %v6971_v45, %v6472_v24  ;;  %vm1291_vm4 = vcmp.ne.f32.partialorder %v6979_v28, 0.0 }
 0x16d   : > { %9357 = vst [vmem:[#allocation72_spill] sm:$0xff] %v6947_v51  ;;  %vm1405_vm15 = vcmp.ne.f32.partialorder %v6947_v51, 0.0  ;;  %v6974_v51 = vpop.f32.mrb[58].mxu1  ;;  %9359 = vst [vmem:[#allocation74_spill] sm:$0xff] %v6979_v28  ;;  %vm1282_vm3 = vcmp.ne.f32.partialorder %v6966_v53, 0.0  ;;  %v7002_v24 = vmul.f32 %v6951_v18, %v6493_v33  ;;  %vm1295_vm6 = vcmp.ne.f32.partialorder %v6995_v37, 0.0 }
 0x16e   : > { %5315 = vmatprep.mubr.msk.f32.mxu0 %vm1405_vm15, %v9349_v49  ;;  %v6981_v26 = vpop.f32.mrb[59].mxu1  ;;  %9360 = vst [vmem:[#allocation75_spill] sm:$0xff] %v6995_v37  ;;  %vm1286_vm5 = vcmp.ne.f32.partialorder %v6986_v14, 0.0  ;;  %v7018_v33 = vmul.f32 %v6971_v45, %v6514_v42  ;;  %vm1299_vm8 = vcmp.ne.f32.partialorder %v7011_v48, 0.0  ;;  %v7025_v37 = vmul.f32 %v6944_v7, %v6566_v15 }
 0x16f   : > { %5316 = vmatmul.mubr.msk.f32.gmra.mrb[126].mxu0 %vm1404_vm1, %v9349_v49  ;;  %v6990_v61 = vpop.f32.mrb[60].mxu1  ;;  %vm1290_vm7 = vcmp.ne.f32.partialorder %v7002_v24, 0.0  ;;  %v7037_v42 = vmul.f32 %v6923_v10, %v6587_v32  ;;  %vm1298_vm11 = vcmp.ne.f32.partialorder %v7030_v0, 0.0  ;;  %v7042_v15 = vmul.f32 %v6971_v45, %v6556_v8 }
 0x170   : > { %5317 = vmatprep.mubr.msk.f32.mxu0 %vm1283_vm0, %v9349_v49  ;;  %v6997_v52 = vpop.f32.mrb[61].mxu1  ;;  %vm1294_vm9 = vcmp.ne.f32.partialorder %v7018_v33, 0.0  ;;  %vm1303_vm10 = vcmp.ne.f32.partialorder %v7025_v37, 0.0  ;;  %v7049_v57 = vmul.f32 %v6944_v7, %v6608_v54  ;;  %v7054_v32 = vmul.f32 %v6951_v18, %v6577_v25 }
 0x171   : > { %v7006_v44 = vpop.f32.mrb[62].mxu1  ;;  %vm1307_vm12 = vcmp.ne.f32.partialorder %v7037_v42, 0.0  ;;  %vm1302_vm13 = vcmp.ne.f32.partialorder %v7042_v15, 0.0  ;;  %v7061_v8 = vmul.f32 %v6923_v10, %v6629_v13  ;;  %v7066_v54 = vmul.f32 %v6971_v45, %v6598_v41 }
 0x172   : > { %v7013_v28 = vpop.f32.mrb[63].mxu1  ;;  %vm1311_vm14 = vcmp.ne.f32.partialorder %v7049_v57, 0.0  ;;  %vm1306_vm15 = vcmp.ne.f32.partialorder %v7054_v32, 0.0  ;;  %v7073_v25 = vmul.f32 %v6944_v7, %v6650_v46  ;;  %v7078_v13 = vmul.f32 %v6951_v18, %v6619_v3 }
 0x173   : > { %5318 = vmatmul.mubr.msk.f32.vlgmr.msra.gmra.mrb[64].mxu0 %vm1282_vm3, %v9349_v49  ;;  %vm1315_vm0 = vcmp.ne.f32.partialorder %v7061_v8, 0.0  ;;  %vm1310_vm1 = vcmp.ne.f32.partialorder %v7066_v54, 0.0  ;;  %v7085_v41 = vmul.f32 %v6923_v10, %v6671_v59  ;;  %v7090_v46 = vmul.f32 %v6971_v45, %v6640_v30 }
 0x174   : > { %5319 = vmatprep.mubr.msk.f32.mxu0 %vm1287_vm2, %v9349_v49  ;;  %vm1319_vm2 = vcmp.ne.f32.partialorder %v7073_v25, 0.0  ;;  %vm1314_vm3 = vcmp.ne.f32.partialorder %v7078_v13, 0.0  ;;  %v7097_v3 = vmul.f32 %v6944_v7, %v6692_v47  ;;  %v7102_v59 = vmul.f32 %v6951_v18, %v6661_v9 }
 0x175   : > { %v7109_v30 = vmul.f32 %v6923_v10, %v6707_v27  ;;  %v7114_v47 = vmul.f32 %v6971_v45, %v6682_v20  ;;  %v7121_v9 = vmul.f32 %v6944_v7, %v6721_v39  ;;  %v7126_v27 = vmul.f32 %v6951_v18, %v6703_v17 }
 0x176   : > { %v7133_v20 = vmul.f32 %v6923_v10, %v6735_v6  ;;  %v7138_v39 = vmul.f32 %v6971_v45, %v6718_v11  ;;  %v7145_v17 = vmul.f32 %v6944_v7, %v6749_v36  ;;  %v7150_v6 = vmul.f32 %v6951_v18, %v6732_v43 }
 0x177   : > { %5320 = vmatmul.mubr.msk.f32.gmra.mrb[66].mxu0 %vm1286_vm5, %v9349_v49  ;;  %vm1318_vm5 = vcmp.ne.f32.partialorder %v7090_v46, 0.0  ;;  %v7157_v11 = vmul.f32 %v6923_v10, %v6763_v21  ;;  %v7162_v36 = vmul.f32 %v6971_v45, %v6746_v56  ;;  %v7169_v43 = vmul.f32 %v6944_v7, %v6777_v5 }
 0x178   : > { %5321 = vmatprep.mubr.msk.f32.mxu0 %vm1291_vm4, %v9349_v49  ;;  %vm1323_vm4 = vcmp.ne.f32.partialorder %v7085_v41, 0.0  ;;  %v7174_v21 = vmul.f32 %v6951_v18, %v6760_v34  ;;  %v7181_v56 = vmul.f32 %v6923_v10, %v6791_v55  ;;  %v7186_v5 = vmul.f32 %v6971_v45, %v6774_v16 }
 0x179   : > { %v7193_v34 = vmul.f32 %v6944_v7, %v6805_v40  ;;  %v7198_v55 = vmul.f32 %v6951_v18, %v6788_v1  ;;  %v7205_v16 = vmul.f32 %v6923_v10, %v6819_v31  ;;  %v7210_v40 = vmul.f32 %v6971_v45, %v6802_v50 }
 0x17a   : > { %v7217_v1 = vmul.f32 %v6944_v7, %v6833_v22  ;;  %v7222_v31 = vmul.f32 %v6951_v18, %v6816_v38  ;;  %v7229_v50 = vmul.f32 %v6923_v10, %v6847_v12  ;;  %v7234_v22 = vmul.f32 %v6971_v45, %v6830_v29  ;;  %v9366_v12 = vld [vmem:[#allocation56_spill] sm:$0xff]  ;;  %v9368_v29 = vld [vmem:[#allocation63_spill] sm:$0xff] }
 0x17b   : > { %5322 = vmatmul.mubr.msk.f32.gmra.mrb[68].mxu0 %vm1290_vm7, %v9349_v49  ;;  %vm1322_vm7 = vcmp.ne.f32.partialorder %v7102_v59, 0.0  ;;  %9361 = vst [vmem:[#allocation76_spill] sm:$0xff] %v7205_v16  ;;  %v7241_v38 = vmul.f32 %v6944_v7, %v6861_v4  ;;  %v9370_v4 = vld [vmem:[#allocation59_spill] sm:$0xff] }
 0x17c   : > { %5323 = vmatprep.mubr.msk.f32.mxu0 %vm1295_vm6, %v9349_v49  ;;  %vm1327_vm6 = vcmp.ne.f32.partialorder %v7097_v3, 0.0  ;;  %9362 = vst [vmem:[#allocation77_spill] sm:$0xff] %v7217_v1  ;;  %9363 = vst [vmem:[#allocation78_spill] sm:$0xff] %v7229_v50 }
 0x17d   : > { %9364 = vst [vmem:[#allocation79_spill] sm:$0xff] %v7234_v22  ;;  %9365 = vst [vmem:[#allocation80_spill] sm:$0xff] %v7241_v38 }
 0x17f   : > { %5324 = vmatmul.mubr.msk.f32.gmra.mrb[70].mxu0 %vm1294_vm9, %v9349_v49  ;;  %vm1326_vm9 = vcmp.ne.f32.partialorder %v7114_v47, 0.0 }
 0x180   : > { %5325 = vmatprep.mubr.msk.f32.mxu0 %vm1299_vm8, %v9349_v49  ;;  %vm1331_vm8 = vcmp.ne.f32.partialorder %v7109_v30, 0.0 }
 0x183   : > { %5326 = vmatmul.mubr.msk.f32.gmra.mrb[72].mxu0 %vm1298_vm11, %v9349_v49  ;;  %vm1330_vm11 = vcmp.ne.f32.partialorder %v7126_v27, 0.0 }
 0x184   : > { %5327 = vmatprep.mubr.msk.f32.mxu0 %vm1303_vm10, %v9349_v49  ;;  %vm1335_vm10 = vcmp.ne.f32.partialorder %v7121_v9, 0.0 }
 0x187   : > { %5328 = vmatmul.mubr.msk.f32.gmra.mrb[74].mxu0 %vm1302_vm13, %v9349_v49  ;;  %vm1334_vm13 = vcmp.ne.f32.partialorder %v7138_v39, 0.0 }
 0x188   : > { %5329 = vmatprep.mubr.msk.f32.mxu0 %vm1307_vm12, %v9349_v49  ;;  %vm1339_vm12 = vcmp.ne.f32.partialorder %v7133_v20, 0.0 }
 0x18b   : > { %5330 = vmatmul.mubr.msk.f32.gmra.mrb[76].mxu0 %vm1306_vm15, %v9349_v49  ;;  %vm1338_vm15 = vcmp.ne.f32.partialorder %v7150_v6, 0.0 }
 0x18c   : > { %5331 = vmatprep.mubr.msk.f32.mxu0 %vm1311_vm14, %v9349_v49  ;;  %vm1343_vm14 = vcmp.ne.f32.partialorder %v7145_v17, 0.0 }
 0x18f   : > { %5332 = vmatmul.mubr.msk.f32.gmra.mrb[78].mxu0 %vm1310_vm1, %v9349_v49  ;;  %vm1342_vm1 = vcmp.ne.f32.partialorder %v7162_v36, 0.0 }
 0x190   : > { %5333 = vmatprep.mubr.msk.f32.mxu0 %vm1315_vm0, %v9349_v49  ;;  %vm1347_vm0 = vcmp.ne.f32.partialorder %v7157_v11, 0.0 }
 0x193   : > { %5334 = vmatmul.mubr.msk.f32.gmra.mrb[80].mxu0 %vm1314_vm3, %v9349_v49  ;;  %vm1346_vm3 = vcmp.ne.f32.partialorder %v7174_v21, 0.0 }
 0x194   : > { %5335 = vmatprep.mubr.msk.f32.mxu0 %vm1319_vm2, %v9349_v49  ;;  %vm1351_vm2 = vcmp.ne.f32.partialorder %v7169_v43, 0.0 }
 0x197   : > { %5336 = vmatmul.mubr.msk.f32.gmra.mrb[82].mxu0 %vm1318_vm5, %v9349_v49  ;;  %vm1350_vm5 = vcmp.ne.f32.partialorder %v7186_v5, 0.0 }
 0x198   : > { %5337 = vmatprep.mubr.msk.f32.mxu0 %vm1323_vm4, %v9349_v49  ;;  %vm1355_vm4 = vcmp.ne.f32.partialorder %v7181_v56, 0.0 }
 0x19b   : > { %5338 = vmatmul.mubr.msk.f32.gmra.mrb[84].mxu0 %vm1322_vm7, %v9349_v49  ;;  %vm1354_vm7 = vcmp.ne.f32.partialorder %v7198_v55, 0.0 }
 0x19c   : > { %5339 = vmatprep.mubr.msk.f32.mxu0 %vm1327_vm6, %v9349_v49  ;;  %vm1359_vm6 = vcmp.ne.f32.partialorder %v7193_v34, 0.0 }
 0x19f   : > { %5340 = vmatmul.mubr.msk.f32.gmra.mrb[86].mxu0 %vm1326_vm9, %v9349_v49  ;;  %vm1358_vm9 = vcmp.ne.f32.partialorder %v7210_v40, 0.0 }
 0x1a0   : > { %5341 = vmatprep.mubr.msk.f32.mxu0 %vm1331_vm8, %v9349_v49  ;;  %vm1363_vm8 = vcmp.ne.f32.partialorder %v7205_v16, 0.0  ;;  %v7253_v16 = vmul.f32 %v6923_v10, %v9368_v29  ;;  %v2341_v29 = vld [vmem:[%s9163_s5 + $0x18] sm:$0xff] }
 0x1a2   : > { %9369 = vst [vmem:[#allocation63_spill] sm:$0xff] %v7253_v16 }
 0x1a3   : > { %5342 = vmatmul.mubr.msk.f32.gmra.mrb[88].mxu0 %vm1330_vm11, %v9349_v49  ;;  %vm1362_vm11 = vcmp.ne.f32.partialorder %v7222_v31, 0.0 }
 0x1a4   : > { %5343 = vmatprep.mubr.msk.f32.mxu0 %vm1335_vm10, %v9349_v49  ;;  %vm1367_vm10 = vcmp.ne.f32.partialorder %v7217_v1, 0.0  ;;  %v7246_v1 = vmul.f32 %v6951_v18, %v9366_v12  ;;  %v7265_v12 = vmul.f32 %v6944_v7, %v6901_v35  ;;  %v7283_v35 = vmul.f32 %v6923_v10, %v6915_v62 }
 0x1a5   : > { %v7300_v62 = vmul.f32 %v6951_v18, %v6912_v2  ;;  %v7319_v2 = vmul.f32 %v6944_v7, %v6981_v26  ;;  %v7336_v26 = vmul.f32 %v6971_v45, %v6974_v51  ;;  %v7356_v51 = vmul.f32 %v6971_v45, %v7006_v44  ;;  %v2344_v44 = vld [vmem:[%s9163_s5 + $0x30] sm:$0xff] }
 0x1a6   : > { %9367 = vst [vmem:[#allocation56_spill] sm:$0xff] %v7246_v1  ;;  %9372 = vst [vmem:[#allocation59_spill] sm:$0xff] %v7283_v35 }
 0x1a7   : > { %5344 = vmatmul.mubr.msk.f32.gmra.mrb[90].mxu0 %vm1334_vm13, %v9349_v49  ;;  %vm1366_vm13 = vcmp.ne.f32.partialorder %v7234_v22, 0.0  ;;  %9376 = vst [vmem:[#allocation83_spill] sm:$0xff] %v7319_v2  ;;  %9379 = vst [vmem:[#allocation86_spill] sm:$0xff] %v7336_v26 }
 0x1a8   : > { %5345 = vmatprep.mubr.msk.f32.mxu0 %vm1339_vm12, %v9349_v49  ;;  %vm1371_vm12 = vcmp.ne.f32.partialorder %v7229_v50, 0.0  ;;  %v7258_v50 = vmul.f32 %v6971_v45, %v9370_v4  ;;  %v9371_v4 = vld [vmem:[#allocation62_spill] sm:$0xff]  ;;  %9382 = vst [vmem:[#allocation89_spill] sm:$0xff] %v7356_v51 }
 0x1ab   : > { %5346 = vmatmul.mubr.msk.f32.gmra.mrb[92].mxu0 %vm1338_vm15, %v9349_v49  ;;  %vm1370_vm15 = vcmp.ne.f32.partialorder %v7246_v1, 0.0  ;;  %v7276_v1 = vmul.f32 %v6951_v18, %v9371_v4 }
 0x1ac   : > { %5347 = vmatprep.mubr.msk.f32.mxu0 %vm1343_vm14, %v9349_v49  ;;  %vm1375_vm14 = vcmp.ne.f32.partialorder %v7241_v38, 0.0  ;;  %v2345_v38 = vld [vmem:[%s9163_s5 + $0x38] sm:$0xff] }
 0x1ad   : > { %v5600_v22 = vpack.c.bf16 %v2345_v38, %v2341_v29 }
 0x1af   : > { %5348 = vmatmul.mubr.msk.f32.gmra.mrb[94].mxu0 %vm1342_vm1, %v9349_v49  ;;  %vm1374_vm1 = vcmp.ne.f32.partialorder %v7258_v50, 0.0  ;;  %5601 = vmatprep.subr.bf16.mxu1 %v5600_v22  ;;  %v7295_v22 = vmul.f32 %v6944_v7, %v6936_v23  ;;  %v7312_v23 = vmul.f32 %v6971_v45, %v6929_v60  ;;  %v7331_v60 = vmul.f32 %v6923_v10, %v6997_v52 }
 0x1b0   : > { %5349 = vmatprep.mubr.msk.f32.mxu0 %vm1347_vm0, %v9349_v49  ;;  %vm1379_vm0 = vcmp.ne.f32.partialorder %v7253_v16, 0.0  ;;  %v7288_v16 = vmul.f32 %v6971_v45, %v6898_v19  ;;  %v7307_v19 = vmul.f32 %v6923_v10, %v6961_v63  ;;  %v7324_v63 = vmul.f32 %v6951_v18, %v6953_v58 }
 0x1b1   : > { %9373 = vst [vmem:[#allocation62_spill] sm:$0xff] %v7295_v22  ;;  %9375 = vst [vmem:[#allocation82_spill] sm:$0xff] %v7312_v23  ;;  %v7343_v58 = vmul.f32 %v6944_v7, %v7013_v28  ;;  %v7348_v10 = vmul.f32 %v6951_v18, %v6990_v61  ;;  %v2340_v61 = vld [vmem:[%s9163_s5 + $0x10] sm:$0xff]  ;;  %v2178_v18 = vld [vmem:[%s7367_s17] sm:$0xff]  ;;  %v9383_v45 = vmov 0.0  }
 0x1b2   : > { %9374 = vst [vmem:[#allocation81_spill] sm:$0xff] %v7307_v19  ;;  %9377 = vst [vmem:[#allocation84_spill] sm:$0xff] %v7324_v63  ;;  %v5602_v38 = vpack.c.bf16 %v2344_v44, %v2340_v61 }
 0x1b3   : > { %5350 = vmatmul.mubr.msk.f32.gmra.mrb[96].mxu0 %vm1346_vm3, %v9349_v49  ;;  %vm1378_vm3 = vcmp.ne.f32.partialorder %v7276_v1, 0.0  ;;  %9378 = vst [vmem:[#allocation85_spill] sm:$0xff] %v7331_v60  ;;  %9380 = vst [vmem:[#allocation87_spill] sm:$0xff] %v7343_v58 }
 0x1b4   : > { %5351 = vmatprep.mubr.msk.f32.mxu0 %vm1351_vm2, %v9349_v49  ;;  %vm1383_vm2 = vcmp.ne.f32.partialorder %v7265_v12, 0.0  ;;  %9381 = vst [vmem:[#allocation88_spill] sm:$0xff] %v7348_v10 }
 0x1b7   : > { %5352 = vmatmul.mubr.msk.f32.gmra.mrb[98].mxu0 %vm1350_vm5, %v9349_v49  ;;  %vm1382_vm5 = vcmp.ne.f32.partialorder %v7288_v16, 0.0 }
 0x1b8   : > { %5353 = vmatprep.mubr.msk.f32.mxu0 %vm1355_vm4, %v9349_v49  ;;  %vm1387_vm4 = vcmp.ne.f32.partialorder %v7283_v35, 0.0 }
 0x1bb   : > { %5354 = vmatmul.mubr.msk.f32.gmra.mrb[100].mxu0 %vm1354_vm7, %v9349_v49  ;;  %vm1386_vm7 = vcmp.ne.f32.partialorder %v7300_v62, 0.0 }
 0x1bc   : > { %5355 = vmatprep.mubr.msk.f32.mxu0 %vm1359_vm6, %v9349_v49  ;;  %vm1391_vm6 = vcmp.ne.f32.partialorder %v7295_v22, 0.0  ;;  %v9391_v22 = vld [vmem:[#allocation6_spill] sm:$0xff] }
 0x1bf   : > { %5356 = vmatmul.mubr.msk.f32.gmra.mrb[102].mxu0 %vm1358_vm9, %v9349_v49  ;;  %vm1390_vm9 = vcmp.ne.f32.partialorder %v7312_v23, 0.0 }
 0x1c0   : > { %5357 = vmatprep.mubr.msk.f32.mxu0 %vm1363_vm8, %v9349_v49  ;;  %vm1395_vm8 = vcmp.ne.f32.partialorder %v7307_v19, 0.0 }
 0x1c3   : > { %5358 = vmatmul.mubr.msk.f32.gmra.mrb[104].mxu0 %vm1362_vm11, %v9349_v49  ;;  %vm1394_vm11 = vcmp.ne.f32.partialorder %v7324_v63, 0.0 }
 0x1c4   : > { %5359 = vmatprep.mubr.msk.f32.mxu0 %vm1367_vm10, %v9349_v49  ;;  %vm1399_vm10 = vcmp.ne.f32.partialorder %v7319_v2, 0.0  ;;  %v2185_v2 = vld [vmem:[%s7367_s17 + $0x38] sm:$0xff] }
 0x1c7   : > { %5360 = vmatmul.mubr.msk.f32.gmra.mrb[106].mxu0 %vm1366_vm13, %v9349_v49  ;;  %vm1398_vm13 = vcmp.ne.f32.partialorder %v7336_v26, 0.0 }
 0x1c8   : > { %5361 = vmatprep.mubr.msk.f32.mxu0 %vm1371_vm12, %v9349_v49  ;;  %vm1403_vm12 = vcmp.ne.f32.partialorder %v7331_v60, 0.0  ;;  %v2180_v60 = vld [vmem:[%s7367_s17 + $0x10] sm:$0xff] }
 0x1cb   : > { %5362 = vmatmul.mubr.msk.f32.gmra.mrb[108].mxu0 %vm1370_vm15, %v9349_v49  ;;  %vm1402_vm15 = vcmp.ne.f32.partialorder %v7348_v10, 0.0  ;;  %v2184_v10 = vld [vmem:[%s7367_s17 + $0x30] sm:$0xff] }
 0x1cc   : > { %5363 = vmatprep.mubr.msk.f32.mxu0 %vm1375_vm14, %v9349_v49  ;;  %vm1407_vm14 = vcmp.ne.f32.partialorder %v7343_v58, 0.0 }
 0x1cf   : > { %5364 = vmatmul.mubr.msk.f32.gmra.mrb[110].mxu0 %vm1374_vm1, %v9349_v49 }
 0x1d0   : > { %5365 = vmatprep.mubr.msk.f32.mxu0 %vm1379_vm0, %v9349_v49  ;;  %vm1406_vm0 = vcmp.ne.f32.partialorder %v7356_v51, 0.0 }
 0x1d3   : > { %5366 = vmatmul.mubr.msk.f32.gmra.mrb[112].mxu0 %vm1378_vm3, %v9349_v49 }
 0x1d4   : > { %5367 = vmatprep.mubr.msk.f32.mxu0 %vm1383_vm2, %v9349_v49  ;;  %vm2346_vm2 = vcmask 130048  }
 0x1d7   : > { %5368 = vmatmul.mubr.msk.f32.gmra.mrb[114].mxu0 %vm1382_vm5, %v9349_v49 }
 0x1d8   : > { %5369 = vmatprep.mubr.msk.f32.mxu0 %vm1387_vm4, %v9349_v49 }
 0x1db   : > { %5370 = vmatmul.mubr.msk.f32.gmra.mrb[116].mxu0 %vm1386_vm7, %v9349_v49 }
 0x1dc   : > { %5371 = vmatprep.mubr.msk.f32.mxu0 %vm1391_vm6, %v9349_v49 }
 0x1df   : > { %5372 = vmatmul.mubr.msk.f32.gmra.mrb[118].mxu0 %vm1390_vm9, %v9349_v49 }
 0x1e0   : > { %5373 = vmatprep.mubr.msk.f32.mxu0 %vm1395_vm8, %v9349_v49 }
 0x1e3   : > { %5374 = vmatmul.mubr.msk.f32.gmra.mrb[120].mxu0 %vm1394_vm11, %v9349_v49 }
 0x1e4   : > { %5375 = vmatprep.mubr.msk.f32.mxu0 %vm1399_vm10, %v9349_v49 }
 0x1e7   : > { %5376 = vmatmul.mubr.msk.f32.gmra.mrb[122].mxu0 %vm1398_vm13, %v9349_v49 }
 0x1e8   : > { %5377 = vmatprep.mubr.msk.f32.mxu0 %vm1403_vm12, %v9349_v49 }
 0x1eb   : > { %5378 = vmatmul.mubr.msk.f32.gmra.mrb[124].mxu0 %vm1402_vm15, %v9349_v49 }
 0x1ec   : > { %5379 = vmatprep.mubr.msk.f32.mxu0 %vm1407_vm14, %v9349_v49 }
 0x1ef   : > { %5380 = vmatmul.mubr.msk.f32.gmra.mrb[126].mxu0 %vm1406_vm0, %v9349_v49  ;;  %v2179_v49 = vld [vmem:[%s7367_s17 + $0x8] sm:$0xff] }
 0x246   : > { %v2019_v7 = vpop.f32.mrb[64].mxu0 }
 0x247   : > { %vm2210_vm1 = vcmp.gt.f32.partialorder %v2019_v7, 0.5  ;;  %v2021_v52 = vpop.f32.mrb[65].mxu0 }
 0x248   : > { %v5381_v28 = vsel %vm2210_vm1, 1.0, %v9383_v45 }
 0x249   : > { %v7377_v29 = vmul.f32 %v5381_v28, %v2178_v18  ;;  %v2181_v28 = vld [vmem:[%s7367_s17 + $0x18] sm:$0xff] }
 0x24a   : > { %v2024_v4 = vpop.f32.mrb[66].mxu0 }
 0x24b   : > { %vm2211_vm3 = vcmp.gt.f32.partialorder %v2024_v4, 0.5  ;;  %v2026_v58 = vpop.f32.mrb[67].mxu0  ;;  %5413 = vmatmul.mubr.msk.f32.vlgmr.msra.gmra.mrb[64].mxu1 %vm2346_vm2, %v7377_v29 }
 0x24c   : > { %v5382_v51 = vsel %vm2211_vm3, 1.0, %v9383_v45  ;;  %5603 = vmatpush1.bf16.msra.mxu1 %v5602_v38  ;;  %2513 = vmatprep.mubr.f32.mxu1 %v9383_v45 }
 0x24d   : > { %v7384_v7 = vmul.f32 %v5382_v51, %v2179_v49 }
 0x24e   : > { %v2029_v52 = vpop.f32.mrb[68].mxu0 }
 0x24f   : > { %vm2212_vm4 = vcmp.gt.f32.partialorder %v2029_v52, 0.5  ;;  %v2031_v61 = vpop.f32.mrb[69].mxu0  ;;  %5414 = vmatmul.mubr.msk.f32.gmra.mrb[66].mxu1 %vm2346_vm2, %v7384_v7  ;;  %v2182_v52 = vld [vmem:[%s7367_s17 + $0x20] sm:$0xff] }
 0x250   : > { %v5383_v58 = vsel %vm2212_vm4, 1.0, %v9383_v45  ;;  %2519 = vmatprep.mubr.f32.mxu1 %v9383_v45 }
 0x251   : > { %v7391_v44 = vmul.f32 %v5383_v58, %v2180_v60 }
 0x252   : > { %v2034_v18 = vpop.f32.mrb[70].mxu0 }
 0x253   : > { %vm2213_vm5 = vcmp.gt.f32.partialorder %v2034_v18, 0.5  ;;  %v2036_v49 = vpop.f32.mrb[71].mxu0  ;;  %5415 = vmatmul.mubr.msk.f32.gmra.mrb[68].mxu1 %vm2346_vm2, %v7391_v44 }
 0x254   : > { %v5384_v51 = vsel %vm2213_vm5, 1.0, %v9383_v45  ;;  %2525 = vmatprep.mubr.f32.mxu1 %v9383_v45  ;;  %v2183_v49 = vld [vmem:[%s7367_s17 + $0x28] sm:$0xff] }
 0x255   : > { %v7398_v38 = vmul.f32 %v5384_v51, %v2181_v28 }
 0x256   : > { %v2039_v4 = vpop.f32.mrb[72].mxu0 }
 0x257   : > { %vm2214_vm6 = vcmp.gt.f32.partialorder %v2039_v4, 0.5  ;;  %v2041_v60 = vpop.f32.mrb[73].mxu0  ;;  %5416 = vmatmul.mubr.msk.f32.gmra.mrb[70].mxu1 %vm2346_vm2, %v7398_v38 }
 0x258   : > { %v5385_v61 = vsel %vm2214_vm6, 1.0, %v9383_v45  ;;  %2531 = vmatprep.mubr.f32.mxu1 %v9383_v45 }
 0x259   : > { %v7405_v58 = vmul.f32 %v5385_v61, %v2182_v52 }
 0x25a   : > { %v2044_v18 = vpop.f32.mrb[74].mxu0 }
 0x25b   : > { %9384 = vst [vmem:[#allocation90_spill] sm:$0xff] %v7405_v58  ;;  %vm2215_vm7 = vcmp.gt.f32.partialorder %v2044_v18, 0.5  ;;  %v2046_v28 = vpop.f32.mrb[75].mxu0  ;;  %5417 = vmatmul.mubr.msk.f32.gmra.mrb[72].mxu1 %vm2346_vm2, %v7405_v58 }
 0x25c   : > { %v5386_v51 = vsel %vm2215_vm7, 1.0, %v9383_v45  ;;  %2537 = vmatprep.mubr.f32.mxu1 %v9383_v45 }
 0x25d   : > { %v7412_v4 = vmul.f32 %v5386_v51, %v2183_v49 }
 0x25e   : > { %v2049_v60 = vpop.f32.mrb[76].mxu0 }
 0x25f   : > { %9385 = vst [vmem:[#allocation91_spill] sm:$0xff] %v7412_v4  ;;  %vm2216_vm8 = vcmp.gt.f32.partialorder %v2049_v60, 0.5  ;;  %v2051_v52 = vpop.f32.mrb[77].mxu0  ;;  %5418 = vmatmul.mubr.msk.f32.gmra.mrb[74].mxu1 %vm2346_vm2, %v7412_v4  ;;  %v2961_v4 = vmul.f32 0.5, %v9391_v22 }
 0x260   : > { %v5387_v61 = vsel %vm2216_vm8, 1.0, %v9383_v45  ;;  %2543 = vmatprep.mubr.f32.mxu1 %v9383_v45  ;;  %v2186_v52 = vld [vmem:[%s7367_s17 + $0x40] sm:$0xff] }
 0x261   : > { %v7419_v18 = vmul.f32 %v5387_v61, %v2184_v10 }
 0x262   : > { %v2054_v28 = vpop.f32.mrb[78].mxu0 }
 0x263   : > { %9386 = vst [vmem:[#allocation92_spill] sm:$0xff] %v7419_v18  ;;  %vm2217_vm9 = vcmp.gt.f32.partialorder %v2054_v28, 0.5  ;;  %v2056_v26 = vpop.f32.mrb[79].mxu0  ;;  %5419 = vmatmul.mubr.msk.f32.gmra.mrb[76].mxu1 %vm2346_vm2, %v7419_v18  ;;  %v9390_v18 = vld [vmem:[#allocation5_spill] sm:$0xff] }
 0x264   : > { %v5388_v49 = vsel %vm2217_vm9, 1.0, %v9383_v45  ;;  %2549 = vmatprep.mubr.f32.mxu1 %v9383_v45  ;;  %v9388_v26 = vld [vmem:[#allocation4_spill] sm:$0xff]  ;;  %v2958_v63 = vmul.f32 0.5, %v9390_v18 }
 0x265   : > { %v7426_v51 = vmul.f32 %v5388_v49, %v2185_v2  ;;  %v2957_v61 = vmul.f32 0.5, %v9388_v26  ;;  %v2187_v49 = vld [vmem:[%s7367_s17 + $0x48] sm:$0xff] }
 0x266   : > { %v2059_v60 = vpop.f32.mrb[80].mxu0  ;;  %v9395_v26 = vld [vmem:[#allocation9_spill] sm:$0xff] }
 0x267   : > { %9387 = vst [vmem:[#allocation93_spill] sm:$0xff] %v7426_v51  ;;  %vm2218_vm10 = vcmp.gt.f32.partialorder %v2059_v60, 0.5  ;;  %v2061_v19 = vpop.f32.mrb[81].mxu0  ;;  %5420 = vmatmul.mubr.msk.f32.gmra.mrb[78].mxu1 %vm2346_vm2, %v7426_v51  ;;  %v9392_v60 = vld [vmem:[#allocation7_spill] sm:$0xff]  ;;  %5695 = vtanh.f32 %v2957_v61  ;;  %v2966_v35 = vmul.f32 0.5, %v9395_v26 }
 0x268   : > { %v5389_v10 = vsel %vm2218_vm10, 1.0, %v9383_v45  ;;  %2555 = vmatprep.mubr.f32.mxu1 %v9383_v45  ;;  %v2962_v51 = vmul.f32 0.5, %v9392_v60  ;;  %5697 = vtanh.f32 %v2958_v63  ;;  %v9397_v61 = vld [vmem:[#allocation11_spill] sm:$0xff]  ;;  %v2959_v63 = vmul.f32 0.5, %v6966_v53 }
 0x269   : > { %v7434_v28 = vmul.f32 %v5389_v10, %v2186_v52  ;;  %v9393_v52 = vld [vmem:[#allocation8_spill] sm:$0xff]  ;;  %5699 = vtanh.f32 %v2961_v4  ;;  %v2970_v58 = vmul.f32 0.5, %v9397_v61 }
 0x26a   : > { %v2064_v2 = vpop.f32.mrb[82].mxu0  ;;  %v2965_v10 = vmul.f32 0.5, %v9393_v52  ;;  %5701 = vtanh.f32 %v2962_v51  ;;  %v9399_v4 = vld [vmem:[#allocation12_spill] sm:$0xff] }
 0x26b   : > { %9389 = vst [vmem:[#allocation4_spill] sm:$0xff] %v7434_v28  ;;  %vm2219_vm11 = vcmp.gt.f32.partialorder %v2064_v2, 0.5  ;;  %v2066_v19 = vpop.f32.mrb[83].mxu0  ;;  %5421 = vmatmul.mubr.msk.f32.gmra.mrb[80].mxu1 %vm2346_vm2, %v7434_v28  ;;  %v2188_v2 = vld [vmem:[%s7367_s17 + $0x50] sm:$0xff]  ;;  %v2973_v52 = vmul.f32 0.5, %v9399_v4 }
 0x26c   : > { %v5390_v23 = vsel %vm2219_vm11, 1.0, %v9383_v45  ;;  %2561 = vmatprep.mubr.f32.mxu1 %v9383_v45  ;;  %v9396_v19 = vld [vmem:[#allocation10_spill] sm:$0xff]  ;;  %5703 = vtanh.f32 %v2965_v10 }
 0x26d   : > { %v7445_v18 = vmul.f32 %v5390_v23, %v2187_v49  ;;  %v2969_v28 = vmul.f32 0.5, %v9396_v19  ;;  %5705 = vtanh.f32 %v2966_v35  ;;  %v9400_v19 = vld [vmem:[#allocation13_spill] sm:$0xff]  ;;  %v9401_v10 = vld [vmem:[#allocation70_spill] sm:$0xff]  ;;  %v2963_v35 = vmul.f32 0.5, %v6986_v14 }
 0x26e   : > { %v2069_v22 = vpop.f32.mrb[84].mxu0  ;;  %v2974_v51 = vmul.f32 0.5, %v9400_v19  ;;  %v2960_v61 = vmul.f32 0.5, %v9401_v10  ;;  %v9405_v14 = vld [vmem:[#allocation73_spill] sm:$0xff] }
 0x26f   : > { %9394 = vst [vmem:[#allocation5_spill] sm:$0xff] %v7445_v18  ;;  %vm2220_vm12 = vcmp.gt.f32.partialorder %v2069_v22, 0.5  ;;  %v2071_v60 = vpop.f32.mrb[85].mxu0  ;;  %5422 = vmatmul.mubr.msk.f32.gmra.mrb[82].mxu1 %vm2346_vm2, %v7445_v18  ;;  %v2189_v22 = vld [vmem:[%s7367_s17 + $0x58] sm:$0xff]  ;;  %5707 = vtanh.f32 %v2969_v28  ;;  %v9403_v28 = vld [vmem:[#allocation14_spill] sm:$0xff] }
 0x270   : > { %v5391_v23 = vsel %vm2220_vm12, 1.0, %v9383_v45  ;;  %2567 = vmatprep.mubr.f32.mxu1 %v9383_v45  ;;  %5709 = vtanh.f32 %v2970_v58  ;;  %v9404_v58 = vld [vmem:[#allocation15_spill] sm:$0xff] }
 0x271   : > { %v7456_v49 = vmul.f32 %v5391_v23, %v2188_v2  ;;  %5711 = vtanh.f32 %v2959_v63  ;;  %v2977_v23 = vmul.f32 0.5, %v9403_v28  ;;  %v7471_v19 = vpop.eup %5695 }
 0x272   : > { %v2074_v26 = vpop.f32.mrb[86].mxu0  ;;  %5713 = vtanh.f32 %v2973_v52  ;;  %v7476_v63 = vpop.eup %5697  ;;  %v2964_v52 = vmul.f32 0.5, %v9405_v14  ;;  %v2967_v14 = vmul.f32 0.5, %v7002_v24 }
 0x273   : > { %9398 = vst [vmem:[#allocation6_spill] sm:$0xff] %v7456_v49  ;;  %vm2221_vm13 = vcmp.gt.f32.partialorder %v2074_v26, 0.5  ;;  %v2076_v60 = vpop.f32.mrb[87].mxu0  ;;  %5423 = vmatmul.mubr.msk.f32.gmra.mrb[84].mxu1 %vm2346_vm2, %v7456_v49  ;;  %v2190_v26 = vld [vmem:[%s7367_s17 + $0x60] sm:$0xff]  ;;  %5715 = vtanh.f32 %v2974_v51 }
 0x274   : > { %v5392_v53 = vsel %vm2221_vm13, 1.0, %v9383_v45  ;;  %2573 = vmatprep.mubr.f32.mxu1 %v9383_v45  ;;  %v2978_v60 = vmul.f32 0.5, %v9404_v58  ;;  %5717 = vtanh.f32 %v2960_v61  ;;  %v9407_v51 = vld [vmem:[#allocation16_spill] sm:$0xff]  ;;  %v2191_v61 = vld [vmem:[%s7367_s17 + $0x68] sm:$0xff] }
 0x275   : > { %v7467_v2 = vmul.f32 %v5392_v53, %v2189_v22  ;;  %v7481_v53 = vpop.eup %5699  ;;  %v2981_v28 = vmul.f32 0.5, %v9407_v51  ;;  %5719 = vtanh.f32 %v2963_v35 }
 0x276   : > { %v2079_v4 = vpop.f32.mrb[88].mxu0  ;;  %9406 = vst [vmem:[#allocation8_spill] sm:$0xff] %v7481_v53  ;;  %v7486_v58 = vpop.eup %5701  ;;  %5721 = vtanh.f32 %v2977_v23 }
 0x277   : > { %9402 = vst [vmem:[#allocation7_spill] sm:$0xff] %v7467_v2  ;;  %vm2222_vm14 = vcmp.gt.f32.partialorder %v2079_v4, 0.5  ;;  %v2081_v10 = vpop.f32.mrb[89].mxu0  ;;  %5424 = vmatmul.mubr.msk.f32.gmra.mrb[86].mxu1 %vm2346_vm2, %v7467_v2  ;;  %v7490_v18 = vpop.eup %5703  ;;  %5723 = vtanh.f32 %v2978_v60  ;;  %v9414_v60 = vld [vmem:[#allocation18_spill] sm:$0xff] }
 0x278   : > { %v5393_v22 = vsel %vm2222_vm14, 1.0, %v9383_v45  ;;  %2579 = vmatprep.mubr.f32.mxu1 %v9383_v45  ;;  %v9409_v10 = vld [vmem:[#allocation17_spill] sm:$0xff]  ;;  %9410 = vst [vmem:[#allocation10_spill] sm:$0xff] %v7490_v18  ;;  %v7495_v35 = vpop.eup %5705  ;;  %5725 = vtanh.f32 %v2964_v52  ;;  %v2985_v24 = vmul.f32 0.5, %v9414_v60  ;;  %v2192_v52 = vld [vmem:[%s7367_s17 + $0x70] sm:$0xff] }
 0x279   : > { %v7484_v4 = vmul.f32 %v5393_v22, %v2190_v26  ;;  %v2982_v2 = vmul.f32 0.5, %v9409_v10  ;;  %9411 = vst [vmem:[#allocation11_spill] sm:$0xff] %v7495_v35  ;;  %v9412_v26 = vld [vmem:[#allocation74_spill] sm:$0xff]  ;;  %v7500_v51 = vpop.eup %5707  ;;  %5727 = vtanh.f32 %v2981_v28  ;;  %v9416_v10 = vld [vmem:[#allocation19_spill] sm:$0xff] }
 0x27a   : > { %v2084_v49 = vpop.f32.mrb[90].mxu0  ;;  %v2968_v23 = vmul.f32 0.5, %v9412_v26  ;;  %9413 = vst [vmem:[#allocation12_spill] sm:$0xff] %v7500_v51  ;;  %v2971_v26 = vmul.f32 0.5, %v7018_v33 }
 0x27b   : > { %9408 = vst [vmem:[#allocation9_spill] sm:$0xff] %v7484_v4  ;;  %vm2223_vm15 = vcmp.gt.f32.partialorder %v2084_v49, 0.5  ;;  %v2086_v53 = vpop.f32.mrb[91].mxu0  ;;  %5425 = vmatmul.mubr.msk.f32.gmra.mrb[88].mxu1 %vm2346_vm2, %v7484_v4  ;;  %5729 = vtanh.f32 %v2982_v2  ;;  %v2986_v4 = vmul.f32 0.5, %v9416_v10  ;;  %v9424_v10 = vld [vmem:[#allocation21_spill] sm:$0xff] }
 0x27c   : > { %v5394_v22 = vsel %vm2223_vm15, 1.0, %v9383_v45  ;;  %2585 = vmatprep.mubr.f32.mxu1 %v9383_v45  ;;  %v7505_v53 = vpop.eup %5709  ;;  %5731 = vtanh.f32 %v2967_v14  ;;  %v9421_v14 = vld [vmem:[#allocation20_spill] sm:$0xff] }
 0x27d   : > { %v7503_v49 = vmul.f32 %v5394_v22, %v2191_v61  ;;  %v7509_v18 = vpop.eup %5711  ;;  %5733 = vtanh.f32 %v2968_v23  ;;  %v9419_v61 = vld [vmem:[#allocation75_spill] sm:$0xff]  ;;  %v2989_v33 = vmul.f32 0.5, %v9421_v14 }
 0x27e   : > { %v2089_v35 = vpop.f32.mrb[92].mxu0  ;;  %9417 = vst [vmem:[#allocation70_spill] sm:$0xff] %v7509_v18  ;;  %v7514_v28 = vpop.eup %5713  ;;  %v2972_v2 = vmul.f32 0.5, %v9419_v61  ;;  %5735 = vtanh.f32 %v2985_v24  ;;  %v2990_v18 = vmul.f32 0.5, %v9424_v10  ;;  %v2193_v23 = vld [vmem:[%s7367_s17 + $0x78] sm:$0xff]  ;;  %v2975_v61 = vmul.f32 0.5, %v7030_v0 }
 0x27f   : > { %9415 = vst [vmem:[#allocation13_spill] sm:$0xff] %v7503_v49  ;;  %vm2224_vm0 = vcmp.gt.f32.partialorder %v2089_v35, 0.5  ;;  %v2091_v51 = vpop.f32.mrb[93].mxu0  ;;  %5426 = vmatmul.mubr.msk.f32.gmra.mrb[90].mxu1 %vm2346_vm2, %v7503_v49  ;;  %9418 = vst [vmem:[#allocation14_spill] sm:$0xff] %v7514_v28  ;;  %v7519_v60 = vpop.eup %5715  ;;  %5737 = vtanh.f32 %v2986_v4  ;;  %v2976_v4 = vmul.f32 0.5, %v7011_v48  ;;  %v9429_v14 = vld [vmem:[#allocation23_spill] sm:$0xff] }
 0x280   : > { %v5395_v22 = vsel %vm2224_vm0, 1.0, %v9383_v45  ;;  %2591 = vmatprep.mubr.f32.mxu1 %v9383_v45  ;;  %9420 = vst [vmem:[#allocation15_spill] sm:$0xff] %v7519_v60  ;;  %v7524_v51 = vpop.eup %5717  ;;  %5739 = vtanh.f32 %v2971_v26  ;;  %v9426_v26 = vld [vmem:[#allocation22_spill] sm:$0xff]  ;;  %v2994_v10 = vmul.f32 0.5, %v9429_v14  ;;  %v2979_v48 = vmul.f32 0.5, %v7042_v15 }
 0x281   : > { %v7522_v35 = vmul.f32 %v5395_v22, %v2192_v52  ;;  %9423 = vst [vmem:[#allocation16_spill] sm:$0xff] %v7524_v51  ;;  %v7528_v28 = vpop.eup %5719  ;;  %5741 = vtanh.f32 %v2972_v2  ;;  %v2993_v0 = vmul.f32 0.5, %v9426_v26  ;;  %v2194_v2 = vld [vmem:[%s7367_s17 + $0x80] sm:$0xff]  ;;  %v9434_v26 = vld [vmem:[#allocation25_spill] sm:$0xff] }
 0x282   : > { %v2094_v49 = vpop.f32.mrb[94].mxu0  ;;  %9425 = vst [vmem:[#allocation17_spill] sm:$0xff] %v7528_v28  ;;  %v7533_v24 = vpop.eup %5721  ;;  %5743 = vtanh.f32 %v2989_v33  ;;  %v2998_v14 = vmul.f32 0.5, %v9434_v26 }
 0x283   : > { %9422 = vst [vmem:[#allocation73_spill] sm:$0xff] %v7522_v35  ;;  %vm2225_vm1 = vcmp.gt.f32.partialorder %v2094_v49, 0.5  ;;  %v2096_v60 = vpop.f32.mrb[95].mxu0  ;;  %5427 = vmatmul.mubr.msk.f32.gmra.mrb[92].mxu1 %vm2346_vm2, %v7522_v35  ;;  %v7538_v22 = vpop.eup %5723  ;;  %5745 = vtanh.f32 %v2990_v18  ;;  %v2980_v18 = vmul.f32 0.5, %v7025_v37  ;;  %v2983_v37 = vmul.f32 0.5, %v7054_v32 }
 0x284   : > { %v5396_v52 = vsel %vm2225_vm1, 1.0, %v9383_v45  ;;  %2597 = vmatprep.mubr.f32.mxu1 %v9383_v45  ;;  %v7543_v60 = vpop.eup %5725  ;;  %5747 = vtanh.f32 %v2975_v61  ;;  %v9431_v61 = vld [vmem:[#allocation24_spill] sm:$0xff] }
 0x285   : > { %v7541_v49 = vmul.f32 %v5396_v52, %v2193_v23  ;;  %9428 = vst [vmem:[#allocation18_spill] sm:$0xff] %v7543_v60  ;;  %v7547_v51 = vpop.eup %5727  ;;  %5749 = vtanh.f32 %v2976_v4  ;;  %v2997_v15 = vmul.f32 0.5, %v9431_v61  ;;  %v2195_v4 = vld [vmem:[%s7367_s17 + $0x88] sm:$0xff]  ;;  %v9439_v61 = vld [vmem:[#allocation27_spill] sm:$0xff] }
 0x286   : > { %v2099_v28 = vpop.f32.mrb[96].mxu0  ;;  %v7552_v33 = vpop.eup %5729  ;;  %5751 = vtanh.f32 %v2993_v0  ;;  %v3002_v26 = vmul.f32 0.5, %v9439_v61 }
 0x287   : > { %9427 = vst [vmem:[#allocation74_spill] sm:$0xff] %v7541_v49  ;;  %vm2226_vm3 = vcmp.gt.f32.partialorder %v2099_v28, 0.5  ;;  %v2101_v35 = vpop.f32.mrb[97].mxu0  ;;  %5428 = vmatmul.mubr.msk.f32.gmra.mrb[94].mxu1 %vm2346_vm2, %v7541_v49  ;;  %v7557_v52 = vpop.eup %5731  ;;  %5753 = vtanh.f32 %v2994_v10  ;;  %v2984_v10 = vmul.f32 0.5, %v7037_v42  ;;  %v2987_v42 = vmul.f32 0.5, %v7066_v54 }
 0x288   : > { %v5397_v23 = vsel %vm2226_vm3, 1.0, %v9383_v45  ;;  %2603 = vmatprep.mubr.f32.mxu1 %v9383_v45  ;;  %9430 = vst [vmem:[#allocation19_spill] sm:$0xff] %v7557_v52  ;;  %v7562_v35 = vpop.eup %5733  ;;  %5755 = vtanh.f32 %v2979_v48  ;;  %v9436_v48 = vld [vmem:[#allocation26_spill] sm:$0xff] }
 0x289   : > { %v7560_v28 = vmul.f32 %v5397_v23, %v2194_v2  ;;  %9433 = vst [vmem:[#allocation20_spill] sm:$0xff] %v7562_v35  ;;  %v7566_v60 = vpop.eup %5735  ;;  %5757 = vtanh.f32 %v2980_v18  ;;  %v3001_v32 = vmul.f32 0.5, %v9436_v48  ;;  %v2196_v18 = vld [vmem:[%s7367_s17 + $0x90] sm:$0xff]  ;;  %v9444_v48 = vld [vmem:[#allocation29_spill] sm:$0xff] }
 0x28a   : > { %v2104_v49 = vpop.f32.mrb[98].mxu0  ;;  %v7571_v0 = vpop.eup %5737  ;;  %5759 = vtanh.f32 %v2997_v15  ;;  %v3006_v61 = vmul.f32 0.5, %v9444_v48 }
 0x28b   : > { %9432 = vst [vmem:[#allocation75_spill] sm:$0xff] %v7560_v28  ;;  %vm2227_vm4 = vcmp.gt.f32.partialorder %v2104_v49, 0.5  ;;  %v2106_v52 = vpop.f32.mrb[99].mxu0  ;;  %5429 = vmatmul.mubr.msk.f32.gmra.mrb[96].mxu1 %vm2346_vm2, %v7560_v28  ;;  %v7576_v23 = vpop.eup %5739  ;;  %5761 = vtanh.f32 %v2998_v14  ;;  %v2988_v14 = vmul.f32 0.5, %v7049_v57  ;;  %v2991_v57 = vmul.f32 0.5, %v7078_v13 }
 0x28c   : > { %v5398_v2 = vsel %vm2227_vm4, 1.0, %v9383_v45  ;;  %2609 = vmatprep.mubr.f32.mxu1 %v9383_v45  ;;  %9435 = vst [vmem:[#allocation21_spill] sm:$0xff] %v7576_v23  ;;  %v7581_v52 = vpop.eup %5741  ;;  %5763 = vtanh.f32 %v2983_v37  ;;  %v9441_v37 = vld [vmem:[#allocation28_spill] sm:$0xff]  ;;  %vm4117_vm4 = vcmask 1041409  }
 0x28d   : > { %v7579_v49 = vmul.f32 %v5398_v2, %v2195_v4  ;;  %9438 = vst [vmem:[#allocation23_spill] sm:$0xff] %v7581_v52  ;;  %v7585_v35 = vpop.eup %5743  ;;  %5765 = vtanh.f32 %v2984_v10  ;;  %v3005_v54 = vmul.f32 0.5, %v9441_v37  ;;  %v2197_v10 = vld [vmem:[%s7367_s17 + $0x98] sm:$0xff] }
 0x28e   : > { %v2109_v28 = vpop.f32.mrb[100].mxu0  ;;  %v7590_v15 = vpop.eup %5745  ;;  %5767 = vtanh.f32 %v3001_v32  ;;  %v9449_v37 = vld [vmem:[#allocation31_spill] sm:$0xff] }
 0x28f   : > { %9437 = vst [vmem:[#allocation22_spill] sm:$0xff] %v7579_v49  ;;  %vm2228_vm5 = vcmp.gt.f32.partialorder %v2109_v28, 0.5  ;;  %v2111_v23 = vpop.f32.mrb[101].mxu0  ;;  %5430 = vmatmul.mubr.msk.f32.gmra.mrb[98].mxu1 %vm2346_vm2, %v7579_v49  ;;  %v7595_v2 = vpop.eup %5747  ;;  %5769 = vtanh.f32 %v3002_v26  ;;  %v2992_v26 = vmul.f32 0.5, %v7061_v8  ;;  %v3010_v48 = vmul.f32 0.5, %v9449_v37 }
 0x290   : > { %v5399_v4 = vsel %vm2228_vm5, 1.0, %v9383_v45  ;;  %2615 = vmatprep.mubr.f32.mxu1 %v9383_v45  ;;  %9440 = vst [vmem:[#allocation24_spill] sm:$0xff] %v7595_v2  ;;  %v7600_v23 = vpop.eup %5749  ;;  %5771 = vtanh.f32 %v2987_v42  ;;  %v9446_v42 = vld [vmem:[#allocation30_spill] sm:$0xff]  ;;  %v2995_v8 = vmul.f32 0.5, %v7090_v46  ;;  %vm4119_vm5 = vcmask 1042434  }
 0x291   : > { %v7598_v28 = vmul.f32 %v5399_v4, %v2196_v18  ;;  %9443 = vst [vmem:[#allocation26_spill] sm:$0xff] %v7600_v23  ;;  %v7604_v52 = vpop.eup %5751  ;;  %5773 = vtanh.f32 %v2988_v14  ;;  %v3009_v13 = vmul.f32 0.5, %v9446_v42  ;;  %v2198_v14 = vld [vmem:[%s7367_s17 + $0xa0] sm:$0xff]  ;;  %v9454_v42 = vld [vmem:[#allocation33_spill] sm:$0xff] }
 0x292   : > { %v2114_v49 = vpop.f32.mrb[102].mxu0  ;;  %v7609_v32 = vpop.eup %5753  ;;  %5775 = vtanh.f32 %v3005_v54  ;;  %v3014_v37 = vmul.f32 0.5, %v9454_v42 }
 0x293   : > { %9442 = vst [vmem:[#allocation25_spill] sm:$0xff] %v7598_v28  ;;  %vm2229_vm6 = vcmp.gt.f32.partialorder %v2114_v49, 0.5  ;;  %v2116_v2 = vpop.f32.mrb[103].mxu0  ;;  %5431 = vmatmul.mubr.msk.f32.gmra.mrb[100].mxu1 %vm2346_vm2, %v7598_v28  ;;  %v7614_v4 = vpop.eup %5755  ;;  %5777 = vtanh.f32 %v3006_v61  ;;  %v2996_v61 = vmul.f32 0.5, %v7073_v25  ;;  %v2999_v25 = vmul.f32 0.5, %v7102_v59 }
 0x294   : > { %v5400_v18 = vsel %vm2229_vm6, 1.0, %v9383_v45  ;;  %2621 = vmatprep.mubr.f32.mxu1 %v9383_v45  ;;  %9445 = vst [vmem:[#allocation27_spill] sm:$0xff] %v7614_v4  ;;  %v7619_v2 = vpop.eup %5757  ;;  %5779 = vtanh.f32 %v2991_v57  ;;  %v9451_v57 = vld [vmem:[#allocation32_spill] sm:$0xff]  ;;  %vm4121_vm6 = vcmask 1043459  }
 0x295   : > { %v7617_v49 = vmul.f32 %v5400_v18, %v2197_v10  ;;  %9448 = vst [vmem:[#allocation29_spill] sm:$0xff] %v7619_v2  ;;  %v7623_v23 = vpop.eup %5759  ;;  %5781 = vtanh.f32 %v2992_v26  ;;  %v3013_v46 = vmul.f32 0.5, %v9451_v57  ;;  %v2199_v26 = vld [vmem:[%s7367_s17 + $0xa8] sm:$0xff]  ;;  %v9459_v57 = vld [vmem:[#allocation35_spill] sm:$0xff] }
 0x296   : > { %v2119_v28 = vpop.f32.mrb[104].mxu0  ;;  %v7628_v54 = vpop.eup %5761  ;;  %5783 = vtanh.f32 %v3009_v13  ;;  %v3018_v42 = vmul.f32 0.5, %v9459_v57 }
 0x297   : > { %9447 = vst [vmem:[#allocation28_spill] sm:$0xff] %v7617_v49  ;;  %vm2230_vm7 = vcmp.gt.f32.partialorder %v2119_v28, 0.5  ;;  %v2121_v4 = vpop.f32.mrb[105].mxu0  ;;  %5432 = vmatmul.mubr.msk.f32.gmra.mrb[102].mxu1 %vm2346_vm2, %v7617_v49  ;;  %v7633_v18 = vpop.eup %5763  ;;  %5785 = vtanh.f32 %v3010_v48  ;;  %v3000_v48 = vmul.f32 0.5, %v7085_v41  ;;  %v3003_v41 = vmul.f32 0.5, %v7114_v47 }
 0x298   : > { %v5401_v10 = vsel %vm2230_vm7, 1.0, %v9383_v45  ;;  %2627 = vmatprep.mubr.f32.mxu1 %v9383_v45  ;;  %9450 = vst [vmem:[#allocation30_spill] sm:$0xff] %v7633_v18  ;;  %v7638_v4 = vpop.eup %5765  ;;  %5787 = vtanh.f32 %v2995_v8  ;;  %v9456_v8 = vld [vmem:[#allocation34_spill] sm:$0xff]  ;;  %vm4123_vm7 = vcmask 1044484  }
 0x299   : > { %v7636_v28 = vmul.f32 %v5401_v10, %v2198_v14  ;;  %9453 = vst [vmem:[#allocation32_spill] sm:$0xff] %v7638_v4  ;;  %v7642_v2 = vpop.eup %5767  ;;  %5789 = vtanh.f32 %v2996_v61  ;;  %v3017_v59 = vmul.f32 0.5, %v9456_v8  ;;  %v2200_v61 = vld [vmem:[%s7367_s17 + $0xb0] sm:$0xff]  ;;  %v9464_v8 = vld [vmem:[#allocation37_spill] sm:$0xff] }
 0x29a   : > { %v2124_v49 = vpop.f32.mrb[106].mxu0  ;;  %v7647_v13 = vpop.eup %5769  ;;  %5791 = vtanh.f32 %v3013_v46  ;;  %v3022_v57 = vmul.f32 0.5, %v9464_v8 }
 0x29b   : > { %9452 = vst [vmem:[#allocation31_spill] sm:$0xff] %v7636_v28  ;;  %vm2231_vm8 = vcmp.gt.f32.partialorder %v2124_v49, 0.5  ;;  %v2126_v18 = vpop.f32.mrb[107].mxu0  ;;  %5433 = vmatmul.mubr.msk.f32.gmra.mrb[104].mxu1 %vm2346_vm2, %v7636_v28  ;;  %v7652_v10 = vpop.eup %5771  ;;  %5793 = vtanh.f32 %v3014_v37  ;;  %v3004_v37 = vmul.f32 0.5, %v7097_v3  ;;  %v3007_v3 = vmul.f32 0.5, %v7126_v27 }
 0x29c   : > { %v5402_v14 = vsel %vm2231_vm8, 1.0, %v9383_v45  ;;  %2633 = vmatprep.mubr.f32.mxu1 %v9383_v45  ;;  %9455 = vst [vmem:[#allocation33_spill] sm:$0xff] %v7652_v10  ;;  %v7657_v18 = vpop.eup %5773  ;;  %5795 = vtanh.f32 %v2999_v25  ;;  %v9461_v25 = vld [vmem:[#allocation36_spill] sm:$0xff]  ;;  %vm4127_vm8 = vcmask 1046534  }
 0x29d   : > { %v7655_v49 = vmul.f32 %v5402_v14, %v2199_v26  ;;  %9458 = vst [vmem:[#allocation94_spill] sm:$0xff] %v7657_v18  ;;  %v7661_v4 = vpop.eup %5775  ;;  %5797 = vtanh.f32 %v3000_v48  ;;  %v3021_v47 = vmul.f32 0.5, %v9461_v25  ;;  %v2201_v48 = vld [vmem:[%s7367_s17 + $0xb8] sm:$0xff] }
 0x29e   : > { %v2129_v28 = vpop.f32.mrb[108].mxu0  ;;  %v7666_v46 = vpop.eup %5777  ;;  %5799 = vtanh.f32 %v3017_v59  ;;  %v9469_v25 = vld [vmem:[#allocation39_spill] sm:$0xff] }
 0x29f   : > { %9457 = vst [vmem:[#allocation34_spill] sm:$0xff] %v7655_v49  ;;  %vm2232_vm9 = vcmp.gt.f32.partialorder %v2129_v28, 0.5  ;;  %v2131_v10 = vpop.f32.mrb[109].mxu0  ;;  %5434 = vmatmul.mubr.msk.f32.gmra.mrb[106].mxu1 %vm2346_vm2, %v7655_v49  ;;  %v7671_v14 = vpop.eup %5779  ;;  %5801 = vtanh.f32 %v3018_v42  ;;  %v3008_v42 = vmul.f32 0.5, %v7109_v30  ;;  %v3026_v8 = vmul.f32 0.5, %v9469_v25 }
 0x2a0   : > { %v5403_v26 = vsel %vm2232_vm9, 1.0, %v9383_v45  ;;  %2639 = vmatprep.mubr.f32.mxu1 %v9383_v45  ;;  %9460 = vst [vmem:[#allocation35_spill] sm:$0xff] %v7671_v14  ;;  %v7676_v10 = vpop.eup %5781  ;;  %5803 = vtanh.f32 %v3003_v41  ;;  %v9466_v41 = vld [vmem:[#allocation38_spill] sm:$0xff]  ;;  %v3011_v30 = vmul.f32 0.5, %v7138_v39  ;;  %vm4129_vm9 = vcmask 1047559  }
 0x2a1   : > { %v7674_v28 = vmul.f32 %v5403_v26, %v2200_v61  ;;  %9463 = vst [vmem:[#allocation95_spill] sm:$0xff] %v7676_v10  ;;  %v7680_v18 = vpop.eup %5783  ;;  %5805 = vtanh.f32 %v3004_v37  ;;  %v3025_v27 = vmul.f32 0.5, %v9466_v41  ;;  %v2202_v37 = vld [vmem:[%s7367_s17 + $0xc0] sm:$0xff]  ;;  %v9474_v41 = vld [vmem:[#allocation41_spill] sm:$0xff] }
 0x2a2   : > { %v2134_v49 = vpop.f32.mrb[110].mxu0  ;;  %v7685_v59 = vpop.eup %5785  ;;  %5807 = vtanh.f32 %v3021_v47  ;;  %v3030_v25 = vmul.f32 0.5, %v9474_v41 }
 0x2a3   : > { %9462 = vst [vmem:[#allocation36_spill] sm:$0xff] %v7674_v28  ;;  %vm2233_vm10 = vcmp.gt.f32.partialorder %v2134_v49, 0.5  ;;  %v2136_v14 = vpop.f32.mrb[111].mxu0  ;;  %5435 = vmatmul.mubr.msk.f32.gmra.mrb[108].mxu1 %vm2346_vm2, %v7674_v28  ;;  %v7690_v26 = vpop.eup %5787  ;;  %5809 = vtanh.f32 %v3022_v57  ;;  %v3012_v57 = vmul.f32 0.5, %v7121_v9  ;;  %v3015_v9 = vmul.f32 0.5, %v7150_v6 }
 0x2a4   : > { %v5404_v61 = vsel %vm2233_vm10, 1.0, %v9383_v45  ;;  %2645 = vmatprep.mubr.f32.mxu1 %v9383_v45  ;;  %9465 = vst [vmem:[#allocation37_spill] sm:$0xff] %v7690_v26  ;;  %v7695_v14 = vpop.eup %5789  ;;  %5811 = vtanh.f32 %v3007_v3  ;;  %v9471_v3 = vld [vmem:[#allocation40_spill] sm:$0xff] }
 0x2a5   : > { %v7693_v49 = vmul.f32 %v5404_v61, %v2201_v48  ;;  %9468 = vst [vmem:[#allocation96_spill] sm:$0xff] %v7695_v14  ;;  %v7699_v10 = vpop.eup %5791  ;;  %5813 = vtanh.f32 %v3008_v42  ;;  %v3029_v39 = vmul.f32 0.5, %v9471_v3  ;;  %v2203_v42 = vld [vmem:[%s7367_s17 + $0xc8] sm:$0xff]  ;;  %v9479_v3 = vld [vmem:[#allocation43_spill] sm:$0xff] }
 0x2a6   : > { %v2139_v28 = vpop.f32.mrb[112].mxu0  ;;  %v7704_v47 = vpop.eup %5793  ;;  %5815 = vtanh.f32 %v3025_v27  ;;  %v3034_v41 = vmul.f32 0.5, %v9479_v3 }
 0x2a7   : > { %9467 = vst [vmem:[#allocation38_spill] sm:$0xff] %v7693_v49  ;;  %vm2234_vm11 = vcmp.gt.f32.partialorder %v2139_v28, 0.5  ;;  %v2141_v26 = vpop.f32.mrb[113].mxu0  ;;  %5436 = vmatmul.mubr.msk.f32.gmra.mrb[110].mxu1 %vm2346_vm2, %v7693_v49  ;;  %v7709_v61 = vpop.eup %5795  ;;  %5817 = vtanh.f32 %v3026_v8  ;;  %v3016_v8 = vmul.f32 0.5, %v7133_v20  ;;  %v3019_v20 = vmul.f32 0.5, %v7162_v36 }
 0x2a8   : > { %v5405_v48 = vsel %vm2234_vm11, 1.0, %v9383_v45  ;;  %2651 = vmatprep.mubr.f32.mxu1 %v9383_v45  ;;  %9470 = vst [vmem:[#allocation39_spill] sm:$0xff] %v7709_v61  ;;  %v7714_v26 = vpop.eup %5797  ;;  %5819 = vtanh.f32 %v3011_v30  ;;  %v9476_v30 = vld [vmem:[#allocation42_spill] sm:$0xff] }
 0x2a9   : > { %v7712_v28 = vmul.f32 %v5405_v48, %v2202_v37  ;;  %9473 = vst [vmem:[#allocation97_spill] sm:$0xff] %v7714_v26  ;;  %v7718_v14 = vpop.eup %5799  ;;  %5821 = vtanh.f32 %v3012_v57  ;;  %v3033_v6 = vmul.f32 0.5, %v9476_v30  ;;  %v2204_v57 = vld [vmem:[%s7367_s17 + $0xd0] sm:$0xff]  ;;  %v9484_v30 = vld [vmem:[#allocation45_spill] sm:$0xff] }
 0x2aa   : > { %v2144_v49 = vpop.f32.mrb[114].mxu0  ;;  %v7723_v27 = vpop.eup %5801  ;;  %5823 = vtanh.f32 %v3029_v39  ;;  %v3038_v3 = vmul.f32 0.5, %v9484_v30 }
 0x2ab   : > { %9472 = vst [vmem:[#allocation40_spill] sm:$0xff] %v7712_v28  ;;  %vm2235_vm12 = vcmp.gt.f32.partialorder %v2144_v49, 0.5  ;;  %v2146_v61 = vpop.f32.mrb[115].mxu0  ;;  %5437 = vmatmul.mubr.msk.f32.gmra.mrb[112].mxu1 %vm2346_vm2, %v7712_v28  ;;  %v7728_v48 = vpop.eup %5803  ;;  %5825 = vtanh.f32 %v3030_v25  ;;  %v3020_v25 = vmul.f32 0.5, %v7145_v17  ;;  %v3023_v17 = vmul.f32 0.5, %v7174_v21 }
 0x2ac   : > { %v5406_v37 = vsel %vm2235_vm12, 1.0, %v9383_v45  ;;  %2657 = vmatprep.mubr.f32.mxu1 %v9383_v45  ;;  %9475 = vst [vmem:[#allocation41_spill] sm:$0xff] %v7728_v48  ;;  %v7733_v61 = vpop.eup %5805  ;;  %5827 = vtanh.f32 %v3015_v9  ;;  %v9481_v9 = vld [vmem:[#allocation44_spill] sm:$0xff] }
 0x2ad   : > { %v7731_v49 = vmul.f32 %v5406_v37, %v2203_v42  ;;  %9478 = vst [vmem:[#allocation98_spill] sm:$0xff] %v7733_v61  ;;  %v7737_v26 = vpop.eup %5807  ;;  %5829 = vtanh.f32 %v3016_v8  ;;  %v3037_v36 = vmul.f32 0.5, %v9481_v9  ;;  %v2205_v8 = vld [vmem:[%s7367_s17 + $0xd8] sm:$0xff] }
 0x2ae   : > { %v2149_v28 = vpop.f32.mrb[116].mxu0  ;;  %v7742_v39 = vpop.eup %5809  ;;  %5831 = vtanh.f32 %v3033_v6  ;;  %v9489_v9 = vld [vmem:[#allocation47_spill] sm:$0xff] }
 0x2af   : > { %9477 = vst [vmem:[#allocation42_spill] sm:$0xff] %v7731_v49  ;;  %vm2236_vm13 = vcmp.gt.f32.partialorder %v2149_v28, 0.5  ;;  %v2151_v48 = vpop.f32.mrb[117].mxu0  ;;  %5438 = vmatmul.mubr.msk.f32.gmra.mrb[114].mxu1 %vm2346_vm2, %v7731_v49  ;;  %v7747_v37 = vpop.eup %5811  ;;  %5833 = vtanh.f32 %v3034_v41  ;;  %v3024_v41 = vmul.f32 0.5, %v7157_v11  ;;  %v3042_v30 = vmul.f32 0.5, %v9489_v9 }
 0x2b0   : > { %v5407_v42 = vsel %vm2236_vm13, 1.0, %v9383_v45  ;;  %2663 = vmatprep.mubr.f32.mxu1 %v9383_v45  ;;  %9480 = vst [vmem:[#allocation43_spill] sm:$0xff] %v7747_v37  ;;  %v7752_v48 = vpop.eup %5813  ;;  %5835 = vtanh.f32 %v3019_v20  ;;  %v9486_v20 = vld [vmem:[#allocation46_spill] sm:$0xff]  ;;  %v3027_v11 = vmul.f32 0.5, %v7186_v5 }
 0x2b1   : > { %v7750_v28 = vmul.f32 %v5407_v42, %v2204_v57  ;;  %9483 = vst [vmem:[#allocation99_spill] sm:$0xff] %v7752_v48  ;;  %v7756_v61 = vpop.eup %5815  ;;  %5837 = vtanh.f32 %v3020_v25  ;;  %v3041_v21 = vmul.f32 0.5, %v9486_v20  ;;  %v2206_v25 = vld [vmem:[%s7367_s17 + $0xe0] sm:$0xff]  ;;  %v9494_v20 = vld [vmem:[#allocation49_spill] sm:$0xff] }
 0x2b2   : > { %v2154_v49 = vpop.f32.mrb[118].mxu0  ;;  %v7761_v6 = vpop.eup %5817  ;;  %5839 = vtanh.f32 %v3037_v36  ;;  %v3046_v9 = vmul.f32 0.5, %v9494_v20 }
 0x2b3   : > { %9482 = vst [vmem:[#allocation44_spill] sm:$0xff] %v7750_v28  ;;  %vm2237_vm14 = vcmp.gt.f32.partialorder %v2154_v49, 0.5  ;;  %v2156_v37 = vpop.f32.mrb[119].mxu0  ;;  %5439 = vmatmul.mubr.msk.f32.gmra.mrb[116].mxu1 %vm2346_vm2, %v7750_v28  ;;  %v7766_v42 = vpop.eup %5819  ;;  %5841 = vtanh.f32 %v3038_v3  ;;  %v3028_v3 = vmul.f32 0.5, %v7169_v43  ;;  %v3031_v43 = vmul.f32 0.5, %v7198_v55 }
 0x2b4   : > { %v5408_v57 = vsel %vm2237_vm14, 1.0, %v9383_v45  ;;  %2669 = vmatprep.mubr.f32.mxu1 %v9383_v45  ;;  %9485 = vst [vmem:[#allocation45_spill] sm:$0xff] %v7766_v42  ;;  %v7771_v37 = vpop.eup %5821  ;;  %5843 = vtanh.f32 %v3023_v17  ;;  %v9491_v17 = vld [vmem:[#allocation48_spill] sm:$0xff] }
 0x2b5   : > { %v7769_v49 = vmul.f32 %v5408_v57, %v2205_v8  ;;  %9488 = vst [vmem:[#allocation100_spill] sm:$0xff] %v7771_v37  ;;  %v7775_v48 = vpop.eup %5823  ;;  %5845 = vtanh.f32 %v3024_v41  ;;  %v3045_v5 = vmul.f32 0.5, %v9491_v17  ;;  %v2207_v41 = vld [vmem:[%s7367_s17 + $0xe8] sm:$0xff]  ;;  %v9499_v17 = vld [vmem:[#allocation51_spill] sm:$0xff] }
 0x2b6   : > { %v2159_v28 = vpop.f32.mrb[120].mxu0  ;;  %v7780_v36 = vpop.eup %5825  ;;  %5847 = vtanh.f32 %v3041_v21  ;;  %v3050_v20 = vmul.f32 0.5, %v9499_v17 }
 0x2b7   : > { %9487 = vst [vmem:[#allocation46_spill] sm:$0xff] %v7769_v49  ;;  %vm2238_vm15 = vcmp.gt.f32.partialorder %v2159_v28, 0.5  ;;  %v2161_v42 = vpop.f32.mrb[121].mxu0  ;;  %5440 = vmatmul.mubr.msk.f32.gmra.mrb[118].mxu1 %vm2346_vm2, %v7769_v49  ;;  %v7785_v57 = vpop.eup %5827  ;;  %5849 = vtanh.f32 %v3042_v30  ;;  %v3032_v30 = vmul.f32 0.5, %v7181_v56  ;;  %v3035_v56 = vmul.f32 0.5, %v7210_v40 }
 0x2b8   : > { %v5409_v8 = vsel %vm2238_vm15, 1.0, %v9383_v45  ;;  %2675 = vmatprep.mubr.f32.mxu1 %v9383_v45  ;;  %9490 = vst [vmem:[#allocation47_spill] sm:$0xff] %v7785_v57  ;;  %v7790_v42 = vpop.eup %5829  ;;  %5851 = vtanh.f32 %v3027_v11  ;;  %v9496_v11 = vld [vmem:[#allocation50_spill] sm:$0xff] }
 0x2b9   : > { %v7788_v28 = vmul.f32 %v5409_v8, %v2206_v25  ;;  %9493 = vst [vmem:[#allocation101_spill] sm:$0xff] %v7790_v42  ;;  %v7794_v37 = vpop.eup %5831  ;;  %5853 = vtanh.f32 %v3028_v3  ;;  %v3049_v55 = vmul.f32 0.5, %v9496_v11  ;;  %v2208_v3 = vld [vmem:[%s7367_s17 + $0xf0] sm:$0xff]  ;;  %v9505_v11 = vld [vmem:[#allocation53_spill] sm:$0xff] }
 0x2ba   : > { %v2164_v49 = vpop.f32.mrb[122].mxu0  ;;  %v7799_v21 = vpop.eup %5833  ;;  %5855 = vtanh.f32 %v3045_v5  ;;  %v3054_v17 = vmul.f32 0.5, %v9505_v11 }
 0x2bb   : > { %9492 = vst [vmem:[#allocation48_spill] sm:$0xff] %v7788_v28  ;;  %vm2239_vm0 = vcmp.gt.f32.partialorder %v2164_v49, 0.5  ;;  %v2166_v57 = vpop.f32.mrb[123].mxu0  ;;  %5441 = vmatmul.mubr.msk.f32.gmra.mrb[120].mxu1 %vm2346_vm2, %v7788_v28  ;;  %v7804_v8 = vpop.eup %5835  ;;  %5857 = vtanh.f32 %v3046_v9  ;;  %v3036_v9 = vmul.f32 0.5, %v7193_v34  ;;  %v3039_v34 = vmul.f32 0.5, %v7222_v31 }
 0x2bc   : > { %v5410_v25 = vsel %vm2239_vm0, 1.0, %v9383_v45  ;;  %2681 = vmatprep.mubr.f32.mxu1 %v9383_v45  ;;  %9495 = vst [vmem:[#allocation49_spill] sm:$0xff] %v7804_v8  ;;  %v7809_v57 = vpop.eup %5837  ;;  %5859 = vtanh.f32 %v3031_v43  ;;  %v9502_v43 = vld [vmem:[#allocation52_spill] sm:$0xff] }
 0x2bd   : > { %v7807_v49 = vmul.f32 %v5410_v25, %v2207_v41  ;;  %9498 = vst [vmem:[#allocation102_spill] sm:$0xff] %v7809_v57  ;;  %v7813_v42 = vpop.eup %5839  ;;  %5861 = vtanh.f32 %v3032_v30  ;;  %v3053_v40 = vmul.f32 0.5, %v9502_v43  ;;  %v2209_v30 = vld [vmem:[%s7367_s17 + $0xf8] sm:$0xff] }
 0x2be   : > { %v2169_v28 = vpop.f32.mrb[124].mxu0  ;;  %v7818_v5 = vpop.eup %5841  ;;  %5863 = vtanh.f32 %v3049_v55 }
 0x2bf   : > { %9497 = vst [vmem:[#allocation50_spill] sm:$0xff] %v7807_v49  ;;  %vm2240_vm1 = vcmp.gt.f32.partialorder %v2169_v28, 0.5  ;;  %v2171_v8 = vpop.f32.mrb[125].mxu0  ;;  %5442 = vmatmul.mubr.msk.f32.gmra.mrb[122].mxu1 %vm2346_vm2, %v7807_v49  ;;  %9500 = vst [vmem:[#allocation51_spill] sm:$0xff] %v7818_v5  ;;  %v7823_v25 = vpop.eup %5843  ;;  %5865 = vtanh.f32 %v3050_v20 }
 0x2c0   : > { %v5411_v41 = vsel %vm2240_vm1, 1.0, %v9383_v45  ;;  %2687 = vmatprep.mubr.f32.mxu1 %v9383_v45  ;;  %9501 = vst [vmem:[#allocation103_spill] sm:$0xff] %v7823_v25  ;;  %v7828_v8 = vpop.eup %5845  ;;  %5867 = vtanh.f32 %v3035_v56  ;;  %v9508_v56 = vld [vmem:[#allocation54_spill] sm:$0xff] }
 0x2c1   : > { %v7826_v28 = vmul.f32 %v5411_v41, %v2208_v3  ;;  %9504 = vst [vmem:[#allocation104_spill] sm:$0xff] %v7828_v8  ;;  %v7832_v57 = vpop.eup %5847  ;;  %5869 = vtanh.f32 %v3036_v9  ;;  %v9506_v3 = vld [vmem:[#allocation76_spill] sm:$0xff]  ;;  %v3057_v11 = vmul.f32 0.5, %v9508_v56  ;;  %v9512_v9 = vld [vmem:[#allocation79_spill] sm:$0xff] }
 0x2c2   : > { %v2174_v49 = vpop.f32.mrb[126].mxu0  ;;  %v7837_v55 = vpop.eup %5849  ;;  %v3040_v41 = vmul.f32 0.5, %v9506_v3  ;;  %5871 = vtanh.f32 %v3053_v40  ;;  %v3043_v3 = vmul.f32 0.5, %v9512_v9  ;;  %v9513_v40 = vld [vmem:[#allocation77_spill] sm:$0xff] }
 0x2c3   : > { %9503 = vst [vmem:[#allocation52_spill] sm:$0xff] %v7826_v28  ;;  %vm2241_vm3 = vcmp.gt.f32.partialorder %v2174_v49, 0.5  ;;  %v2176_v5 = vpop.f32.mrb[127].mxu0  ;;  %5443 = vmatmul.mubr.msk.f32.gmra.mrb[124].mxu1 %vm2346_vm2, %v7826_v28  ;;  %v7842_v43 = vpop.eup %5851  ;;  %5873 = vtanh.f32 %v3054_v17  ;;  %v3044_v56 = vmul.f32 0.5, %v9513_v40  ;;  %v9515_v17 = vld [vmem:[#allocation57_spill] sm:$0xff]  ;;  %v9519_v40 = vld [vmem:[#allocation78_spill] sm:$0xff] }
 0x2c4   : > { %v5412_v20 = vsel %vm2241_vm3, 1.0, %v9383_v45  ;;  %2693 = vmatprep.mubr.f32.mxu1 %v9383_v45  ;;  %9507 = vst [vmem:[#allocation53_spill] sm:$0xff] %v7842_v43  ;;  %v7847_v49 = vpop.eup %5853  ;;  %v9511_v5 = vld [vmem:[#allocation55_spill] sm:$0xff]  ;;  %5875 = vtanh.f32 %v3039_v34  ;;  %v9517_v34 = vld [vmem:[#allocation58_spill] sm:$0xff] }
 0x2c5   : > { %v7845_v31 = vmul.f32 %v5412_v20, %v2209_v30  ;;  %9510 = vst [vmem:[#allocation54_spill] sm:$0xff] %v7847_v49  ;;  %v3058_v28 = vmul.f32 0.5, %v9511_v5  ;;  %v7850_v8 = vpop.eup %5855  ;;  %5877 = vtanh.f32 %v3040_v41  ;;  %v3061_v20 = vmul.f32 0.5, %v9515_v17 }
 0x2c6   : > { %v7855_v25 = vpop.eup %5857  ;;  %5879 = vtanh.f32 %v3057_v11  ;;  %v3062_v9 = vmul.f32 0.5, %v9517_v34  ;;  %v3048_v11 = vmul.f32 0.5, %v9519_v40  ;;  %v9524_v40 = vld [vmem:[#allocation80_spill] sm:$0xff] }
 0x2c7   : > { %9509 = vst [vmem:[#allocation76_spill] sm:$0xff] %v7845_v31  ;;  %5444 = vmatmul.mubr.msk.f32.gmra.mrb[126].mxu1 %vm2346_vm2, %v7845_v31  ;;  %v7859_v30 = vpop.eup %5859  ;;  %5881 = vtanh.f32 %v3058_v28  ;;  %v9518_v31 = vld [vmem:[#allocation56_spill] sm:$0xff] }
 0x2c8   : > { %2764 = vmatprep.mubr.f32.mxu1 %v9383_v45  ;;  %9514 = vst [vmem:[#allocation55_spill] sm:$0xff] %v7859_v30  ;;  %v7862_v5 = vpop.eup %5861  ;;  %5883 = vtanh.f32 %v3043_v3  ;;  %v3047_v43 = vmul.f32 0.5, %v9518_v31  ;;  %v9521_v28 = vld [vmem:[#allocation60_spill] sm:$0xff]  ;;  %v9523_v3 = vld [vmem:[#allocation61_spill] sm:$0xff] }
 0x2c9   : > { %9516 = vst [vmem:[#allocation79_spill] sm:$0xff] %v7862_v5  ;;  %v7865_v49 = vpop.eup %5863  ;;  %5885 = vtanh.f32 %v3044_v56  ;;  %v3065_v34 = vmul.f32 0.5, %v9521_v28  ;;  %v3066_v31 = vmul.f32 0.5, %v9523_v3 }
 0x2ca   : > { %v7870_v41 = vpop.eup %5865  ;;  %5887 = vtanh.f32 %v3061_v20  ;;  %v3052_v20 = vmul.f32 0.5, %v9524_v40  ;;  %v9529_v40 = vld [vmem:[#allocation66_spill] sm:$0xff] }
 0x2cb   : > { %5445 = vmatmul.mubr.msk.f32.vlgmr.msra.gmra.mrb[128].mxu1 %vm2346_vm2, %v7377_v29  ;;  %v7874_v17 = vpop.eup %5867  ;;  %5889 = vtanh.f32 %v3062_v9  ;;  %v3051_v29 = vmul.f32 0.5, %v7258_v50  ;;  %v9526_v9 = vld [vmem:[#allocation64_spill] sm:$0xff] }
 0x2cc   : > { %2770 = vmatprep.mubr.f32.mxu1 %v9383_v45  ;;  %9520 = vst [vmem:[#allocation77_spill] sm:$0xff] %v7874_v17  ;;  %v7877_v5 = vpop.eup %5869  ;;  %5891 = vtanh.f32 %v3047_v43  ;;  %v3069_v3 = vmul.f32 0.5, %v9526_v9  ;;  %v9528_v43 = vld [vmem:[#allocation65_spill] sm:$0xff] }
 0x2cd   : > { %9522 = vst [vmem:[#allocation57_spill] sm:$0xff] %v7877_v5  ;;  %v7880_v30 = vpop.eup %5871  ;;  %5893 = vtanh.f32 %v3048_v11  ;;  %v3070_v50 = vmul.f32 0.5, %v9528_v43 }
 0x2ce   : > { %v7885_v56 = vpop.eup %5873  ;;  %5895 = vtanh.f32 %v3065_v34 }
 0x2cf   : > { %5446 = vmatmul.mubr.msk.f32.gmra.mrb[130].mxu1 %vm2346_vm2, %v7384_v7  ;;  %v7889_v28 = vpop.eup %5875  ;;  %5897 = vtanh.f32 %v3066_v31  ;;  %v3055_v7 = vmul.f32 0.5, %v7276_v1  ;;  %v9531_v31 = vld [vmem:[#allocation67_spill] sm:$0xff] }
 0x2d0   : > { %2776 = vmatprep.mubr.f32.mxu1 %v9383_v45  ;;  %9525 = vst [vmem:[#allocation58_spill] sm:$0xff] %v7889_v28  ;;  %v7892_v5 = vpop.eup %5877  ;;  %5899 = vtanh.f32 %v3051_v29  ;;  %v3073_v28 = vmul.f32 0.5, %v9529_v40  ;;  %v3074_v9 = vmul.f32 0.5, %v9531_v31  ;;  %v9533_v29 = vld [vmem:[#allocation63_spill] sm:$0xff]  ;;  %v9536_v40 = vld [vmem:[#allocation68_spill] sm:$0xff] }
 0x2d1   : > { %9527 = vst [vmem:[#allocation56_spill] sm:$0xff] %v7892_v5  ;;  %v7895_v17 = vpop.eup %5879  ;;  %5901 = vtanh.f32 %v3052_v20  ;;  %v3056_v1 = vmul.f32 0.5, %v9533_v29 }
 0x2d2   : > { %v7900_v11 = vpop.eup %5881  ;;  %5903 = vtanh.f32 %v3069_v3  ;;  %v3077_v3 = vmul.f32 0.5, %v9536_v40 }
 0x2d3   : > { %5447 = vmatmul.mubr.msk.f32.gmra.mrb[132].mxu1 %vm2346_vm2, %v7391_v44  ;;  %v7904_v34 = vpop.eup %5883  ;;  %5905 = vtanh.f32 %v3070_v50  ;;  %v3059_v44 = vmul.f32 0.5, %v7288_v16  ;;  %v9538_v50 = vld [vmem:[#allocation69_spill] sm:$0xff]  ;;  %v3060_v16 = vmul.f32 0.5, %v7265_v12 }
 0x2d4   : > { %2782 = vmatprep.mubr.f32.mxu1 %v9383_v45  ;;  %9530 = vst [vmem:[#allocation78_spill] sm:$0xff] %v7904_v34  ;;  %v7907_v43 = vpop.eup %5885  ;;  %5907 = vtanh.f32 %v3055_v7  ;;  %v3078_v29 = vmul.f32 0.5, %v9538_v50  ;;  %v3213_v34 = vmul.f32 0.5, %v7471_v19 }
 0x2d5   : > { %9532 = vst [vmem:[#allocation60_spill] sm:$0xff] %v7907_v43  ;;  %v7910_v5 = vpop.eup %5887  ;;  %5909 = vtanh.f32 %v3073_v28  ;;  %v9541_v28 = vld [vmem:[#allocation90_spill] sm:$0xff] }
 0x2d6   : > { %9534 = vst [vmem:[#allocation61_spill] sm:$0xff] %v7910_v5  ;;  %v7915_v20 = vpop.eup %5889  ;;  %5911 = vtanh.f32 %v3074_v9  ;;  %v9573_v5 = vld [vmem:[#allocation15_spill] sm:$0xff] }
 0x2d7   : > { %5448 = vmatmul.mubr.msk.f32.gmra.mrb[134].mxu1 %vm2346_vm2, %v7398_v38  ;;  %9535 = vst [vmem:[#allocation80_spill] sm:$0xff] %v7915_v20  ;;  %v7919_v31 = vpop.eup %5891  ;;  %5913 = vtanh.f32 %v3056_v1  ;;  %v3063_v38 = vmul.f32 0.5, %v7300_v62  ;;  %v9545_v1 = vld [vmem:[#allocation72_spill] sm:$0xff] }
 0x2d8   : > { %2788 = vmatprep.mubr.f32.mxu1 %v9383_v45  ;;  %9537 = vst [vmem:[#allocation64_spill] sm:$0xff] %v7919_v31  ;;  %v7922_v43 = vpop.eup %5893  ;;  %5915 = vtanh.f32 %v3059_v44  ;;  %v9543_v31 = vld [vmem:[#allocation71_spill] sm:$0xff]  ;;  %v3082_v12 = vmul.f32 0.5, %v9545_v1  ;;  %v9552_v1 = vld [vmem:[#allocation62_spill] sm:$0xff] }
 0x2d9   : > { %9539 = vst [vmem:[#allocation65_spill] sm:$0xff] %v7922_v43  ;;  %v7925_v7 = vpop.eup %5895  ;;  %5917 = vtanh.f32 %v3077_v3  ;;  %v3081_v9 = vmul.f32 0.5, %v9543_v31  ;;  %v9547_v44 = vld [vmem:[#allocation59_spill] sm:$0xff]  ;;  %v9549_v3 = vld [vmem:[#allocation82_spill] sm:$0xff] }
 0x2da   : > { %9540 = vst [vmem:[#allocation66_spill] sm:$0xff] %v7925_v7  ;;  %v7930_v40 = vpop.eup %5897  ;;  %5919 = vtanh.f32 %v3078_v29  ;;  %v3064_v62 = vmul.f32 0.5, %v9547_v44  ;;  %v3067_v31 = vmul.f32 0.5, %v9549_v3  ;;  %v9550_v7 = vld [vmem:[#allocation91_spill] sm:$0xff]  ;;  %v7957_v3 = vadd.f32 0.5, %v3213_v34 }
 0x2db   : > { %5449 = vmatmul.mubr.msk.f32.gmra.mrb[136].mxu1 %vm2346_vm2, %v9541_v28  ;;  %9542 = vst [vmem:[#allocation67_spill] sm:$0xff] %v7930_v40  ;;  %v7934_v50 = vpop.eup %5899  ;;  %5921 = vtanh.f32 %v3060_v16  ;;  %v3214_v28 = vmul.f32 0.5, %v7476_v63  ;;  %v9553_v16 = vld [vmem:[#allocation8_spill] sm:$0xff] }
 0x2dc   : > { %2794 = vmatprep.mubr.f32.mxu1 %v9383_v45  ;;  %9544 = vst [vmem:[#allocation63_spill] sm:$0xff] %v7934_v50  ;;  %v7937_v43 = vpop.eup %5901  ;;  %5923 = vtanh.f32 %v3063_v38  ;;  %v3217_v44 = vmul.f32 0.5, %v9553_v16  ;;  %v9555_v63 = vld [vmem:[#allocation84_spill] sm:$0xff]  ;;  %9557 = vst [vmem:[#allocation59_spill] sm:$0xff] %v7957_v3  ;;  %v3218_v16 = vmul.f32 0.5, %v7486_v58 }
 0x2dd   : > { %9546 = vst [vmem:[#allocation68_spill] sm:$0xff] %v7937_v43  ;;  %v7942_v40 = vpop.eup %5903  ;;  %5925 = vtanh.f32 %v3081_v9  ;;  %v3068_v43 = vmul.f32 0.5, %v9552_v1  ;;  %v3071_v50 = vmul.f32 0.5, %v9555_v63  ;;  %v9560_v9 = vld [vmem:[#allocation81_spill] sm:$0xff] }
 0x2de   : > { %9548 = vst [vmem:[#allocation69_spill] sm:$0xff] %v7942_v40  ;;  %v7947_v29 = vpop.eup %5905  ;;  %5927 = vtanh.f32 %v3082_v12  ;;  %v3072_v1 = vmul.f32 0.5, %v9560_v9  ;;  %v9561_v40 = vld [vmem:[#allocation92_spill] sm:$0xff]  ;;  %v9562_v12 = vld [vmem:[#allocation10_spill] sm:$0xff]  ;;  %v9568_v9 = vld [vmem:[#allocation83_spill] sm:$0xff] }
 0x2df   : > { %5450 = vmatmul.mubr.msk.f32.gmra.mrb[138].mxu1 %vm2346_vm2, %v9550_v7  ;;  %9551 = vst [vmem:[#allocation90_spill] sm:$0xff] %v7947_v29  ;;  %v7952_v19 = vpop.eup %5907  ;;  %5929 = vtanh.f32 %v3064_v62  ;;  %v7959_v7 = vadd.f32 0.5, %v3214_v28  ;;  %v9564_v62 = vld [vmem:[#allocation86_spill] sm:$0xff]  ;;  %v7972_v28 = vadd.f32 0.5, %v3217_v44  ;;  %v3230_v44 = vmul.f32 0.5, %v9573_v5 }
 0x2e0   : > { %2800 = vmatprep.mubr.f32.mxu1 %v9383_v45  ;;  %9554 = vst [vmem:[#allocation71_spill] sm:$0xff] %v7952_v19  ;;  %v7955_v38 = vpop.eup %5909  ;;  %5931 = vtanh.f32 %v3067_v31  ;;  %v3221_v19 = vmul.f32 0.5, %v9562_v12  ;;  %v3075_v34 = vmul.f32 0.5, %v9564_v62  ;;  %v3226_v12 = vmul.f32 0.5, %v7505_v53  ;;  %v9572_v62 = vld [vmem:[#allocation14_spill] sm:$0xff] }
 0x2e1   : > { %9556 = vst [vmem:[#allocation72_spill] sm:$0xff] %v7955_v38  ;;  %9558 = vst [vmem:[#allocation82_spill] sm:$0xff] %v7959_v7  ;;  %v7961_v29 = vpop.eup %5911  ;;  %5933 = vtanh.f32 %v3068_v43  ;;  %v9566_v7 = vld [vmem:[#allocation11_spill] sm:$0xff]  ;;  %v9571_v43 = vld [vmem:[#allocation88_spill] sm:$0xff]  ;;  %v3229_v20 = vmul.f32 0.5, %v9572_v62  ;;  %v3237_v5 = vmul.f32 0.5, %v7547_v51 }
 0x2e2   : > { %9559 = vst [vmem:[#allocation91_spill] sm:$0xff] %v7961_v29  ;;  %v7968_v63 = vpop.eup %5913  ;;  %9565 = vst [vmem:[#allocation8_spill] sm:$0xff] %v7972_v28  ;;  %v3222_v31 = vmul.f32 0.5, %v9566_v7  ;;  %5935 = vtanh.f32 %v3071_v50  ;;  %v9569_v29 = vld [vmem:[#allocation12_spill] sm:$0xff]  ;;  %v3233_v28 = vmul.f32 0.5, %v7533_v24  ;;  %v9574_v50 = vld [vmem:[#allocation85_spill] sm:$0xff] }
 0x2e3   : > { %5451 = vmatmul.mubr.msk.f32.gmra.mrb[140].mxu1 %vm2346_vm2, %v9561_v40  ;;  %9563 = vst [vmem:[#allocation62_spill] sm:$0xff] %v7968_v63  ;;  %v7975_v3 = vpop.eup %5915  ;;  %v3076_v40 = vmul.f32 0.5, %v9568_v9  ;;  %v3225_v58 = vmul.f32 0.5, %v9569_v29  ;;  %v3079_v63 = vmul.f32 0.5, %v9571_v43  ;;  %5937 = vtanh.f32 %v3072_v1  ;;  %v9575_v9 = vld [vmem:[#allocation93_spill] sm:$0xff]  ;;  %v9579_v51 = vld [vmem:[#allocation87_spill] sm:$0xff] }
 0x2e4   : > { %2806 = vmatprep.mubr.f32.mxu1 %v9383_v45  ;;  %9567 = vst [vmem:[#allocation84_spill] sm:$0xff] %v7975_v3  ;;  %v7980_v38 = vpop.eup %5917  ;;  %v3080_v3 = vmul.f32 0.5, %v9574_v50  ;;  %v7991_v29 = vadd.f32 0.5, %v3218_v16  ;;  %v7993_v53 = vadd.f32 0.5, %v3221_v19  ;;  %5939 = vtanh.f32 %v3075_v34  ;;  %v9577_v43 = vld [vmem:[#allocation89_spill] sm:$0xff] }
 0x2e5   : > { %9570 = vst [vmem:[#allocation81_spill] sm:$0xff] %v7980_v38  ;;  %v7986_v7 = vpop.eup %5919  ;;  %v3083_v62 = vmul.f32 0.5, %v9577_v43  ;;  %v3234_v24 = vmul.f32 0.5, %v7538_v22  ;;  %5941 = vtanh.f32 %v3076_v40  ;;  %v8003_v50 = vadd.f32 0.5, %v3222_v31  ;;  %v9580_v31 = vld [vmem:[#allocation4_spill] sm:$0xff] }
 0x2e6   : > { %9576 = vst [vmem:[#allocation92_spill] sm:$0xff] %v7993_v53  ;;  %v7995_v38 = vpop.eup %5921  ;;  %v8005_v16 = vadd.f32 0.5, %v3225_v58  ;;  %v8007_v19 = vadd.f32 0.5, %v3226_v12  ;;  %5943 = vtanh.f32 %v3079_v63  ;;  %v8011_v34 = vadd.f32 0.5, %v3229_v20 }
 0x2e7   : > { %5452 = vmatmul.mubr.msk.f32.gmra.mrb[142].mxu1 %vm2346_vm2, %v9575_v9  ;;  %v8001_v1 = vpop.eup %5923  ;;  %v8013_v43 = vadd.f32 0.5, %v3230_v44  ;;  %v8015_v53 = vadd.f32 0.5, %v3233_v28  ;;  %5945 = vtanh.f32 %v3080_v3  ;;  %v3084_v40 = vmul.f32 0.5, %v9579_v51 }
 0x2e8   : > { %2812 = vmatprep.mubr.f32.mxu1 %v9383_v45  ;;  %9578 = vst [vmem:[#allocation10_spill] sm:$0xff] %v8007_v19  ;;  %v8009_v9 = vpop.eup %5925  ;;  %v3238_v58 = vmul.f32 0.5, %v7552_v33  ;;  %v3241_v12 = vmul.f32 0.5, %v7566_v60  ;;  %5947 = vtanh.f32 %v3083_v62  ;;  %v8027_v20 = vadd.f32 0.5, %v3234_v24 }
 0x2e9   : > { %v8017_v22 = vpop.eup %5927  ;;  %v8029_v63 = vadd.f32 0.5, %v3237_v5  ;;  %v3242_v3 = vmul.f32 0.5, %v7571_v0  ;;  %v3245_v44 = vmul.f32 0.5, %v7585_v35  ;;  %v3246_v51 = vmul.f32 0.5, %v7590_v15 }
 0x2ea   : > { %v8024_v19 = vpop.eup %5929  ;;  %9581 = vst [vmem:[#allocation86_spill] sm:$0xff] %v8027_v20  ;;  %v3249_v33 = vmul.f32 0.5, %v7604_v52  ;;  %v3250_v60 = vmul.f32 0.5, %v7609_v32  ;;  %v3253_v62 = vmul.f32 0.5, %v7623_v23  ;;  %v3254_v24 = vmul.f32 0.5, %v7628_v54  ;;  %v9583_v20 = vld [vmem:[#allocation5_spill] sm:$0xff] }
 0x2eb   : > { %5453 = vmatmul.mubr.msk.f32.gmra.mrb[144].mxu1 %vm2346_vm2, %v9580_v31  ;;  %9582 = vst [vmem:[#allocation11_spill] sm:$0xff] %v8029_v63  ;;  %v8032_v28 = vpop.eup %5931  ;;  %v3257_v5 = vmul.f32 0.5, %v7642_v2  ;;  %v3258_v0 = vmul.f32 0.5, %v7647_v13  ;;  %v8048_v35 = vadd.f32 0.5, %v3238_v58  ;;  %v8050_v52 = vadd.f32 0.5, %v3241_v12 }
 0x2ec   : > { %2818 = vmatprep.mubr.f32.mxu1 %v9383_v45  ;;  %v8038_v31 = vpop.eup %5933  ;;  %v3261_v15 = vmul.f32 0.5, %v7661_v4  ;;  %v3262_v32 = vmul.f32 0.5, %v7666_v46  ;;  %5949 = vtanh.f32 %v3084_v40  ;;  %v8055_v23 = vadd.f32 0.5, %v3242_v3 }
 0x2ed   : > { %v8044_v63 = vpop.eup %5935  ;;  %v3265_v2 = vmul.f32 0.5, %v7680_v18  ;;  %v3266_v54 = vmul.f32 0.5, %v7685_v59  ;;  %v8063_v58 = vadd.f32 0.5, %v3246_v51  ;;  %v8065_v12 = vadd.f32 0.5, %v3249_v33 }
 0x2ee   : > { %9584 = vst [vmem:[#allocation83_spill] sm:$0xff] %v8055_v23  ;;  %v8059_v13 = vpop.eup %5937  ;;  %v8067_v4 = vadd.f32 0.5, %v3250_v60  ;;  %v8071_v40 = vadd.f32 0.5, %v3253_v62  ;;  %v8073_v3 = vadd.f32 0.5, %v3254_v24  ;;  %v8075_v23 = vadd.f32 0.5, %v3257_v5 }
 0x2ef   : > { %5454 = vmatmul.mubr.msk.f32.gmra.mrb[146].mxu1 %vm2346_vm2, %v9583_v20  ;;  %v8061_v20 = vadd.f32 0.5, %v3245_v44  ;;  %v8069_v46 = vpop.eup %5939  ;;  %v8077_v18 = vadd.f32 0.5, %v3258_v0  ;;  %v9587_v44 = vld [vmem:[#allocation6_spill] sm:$0xff]  ;;  %v8083_v51 = vadd.f32 0.5, %v3261_v15  ;;  %v8085_v33 = vadd.f32 0.5, %v3262_v32 }
 0x2f0   : > { %2824 = vmatprep.mubr.f32.mxu1 %v9383_v45  ;;  %9585 = vst [vmem:[#allocation12_spill] sm:$0xff] %v8071_v40  ;;  %v8079_v59 = vpop.eup %5941  ;;  %v3269_v60 = vmul.f32 0.5, %v7699_v10  ;;  %v3270_v62 = vmul.f32 0.5, %v7704_v47  ;;  %v8092_v24 = vadd.f32 0.5, %v3265_v2  ;;  %v8094_v5 = vadd.f32 0.5, %v3266_v54 }
 0x2f1   : > { %9586 = vst [vmem:[#allocation88_spill] sm:$0xff] %v8077_v18  ;;  %9588 = vst [vmem:[#allocation14_spill] sm:$0xff] %v8083_v51  ;;  %v8089_v40 = vpop.eup %5943  ;;  %v3273_v0 = vmul.f32 0.5, %v7718_v14  ;;  %v3277_v32 = vmul.f32 0.5, %v7737_v26  ;;  %v3278_v10 = vmul.f32 0.5, %v7742_v39  ;;  %v3281_v47 = vmul.f32 0.5, %v7756_v61 }
 0x2f2   : > { %9589 = vst [vmem:[#allocation15_spill] sm:$0xff] %v8085_v33  ;;  %9590 = vst [vmem:[#allocation85_spill] sm:$0xff] %v8092_v24  ;;  %v8098_v15 = vpop.eup %5945  ;;  %v3282_v33 = vmul.f32 0.5, %v7761_v6  ;;  %v3285_v2 = vmul.f32 0.5, %v7775_v48  ;;  %v3286_v54 = vmul.f32 0.5, %v7780_v36  ;;  %v3289_v14 = vmul.f32 0.5, %v7794_v37 }
 0x2f3   : > { %5455 = vmatmul.mubr.msk.f32.gmra.mrb[148].mxu1 %vm2346_vm2, %v9587_v44  ;;  %9591 = vst [vmem:[#allocation93_spill] sm:$0xff] %v8094_v5  ;;  %v3274_v44 = vmul.f32 0.5, %v7723_v27  ;;  %v8104_v51 = vpop.eup %5947  ;;  %v3290_v27 = vmul.f32 0.5, %v7799_v21  ;;  %v9592_v5 = vld [vmem:[#allocation7_spill] sm:$0xff]  ;;  %v8112_v26 = vadd.f32 0.5, %v3269_v60  ;;  %v8114_v39 = vadd.f32 0.5, %v3270_v62 }
 0x2f4   : > { %2830 = vmatprep.mubr.f32.mxu1 %v9383_v45  ;;  %v3293_v61 = vmul.f32 0.5, %v7813_v42  ;;  %v9593_v6 = vld [vmem:[#allocation51_spill] sm:$0xff]  ;;  %v8119_v48 = vadd.f32 0.5, %v3273_v0  ;;  %v3297_v37 = vmul.f32 0.5, %v7832_v57  ;;  %v3298_v21 = vmul.f32 0.5, %v7837_v55  ;;  %v9599_v57 = vld [vmem:[#allocation9_spill] sm:$0xff] }
 0x2f5   : > { %v3294_v24 = vmul.f32 0.5, %v9593_v6  ;;  %v8121_v36 = vadd.f32 0.5, %v3274_v44  ;;  %v8125_v18 = vadd.f32 0.5, %v3277_v32  ;;  %v8127_v60 = vadd.f32 0.5, %v3278_v10 }
 0x2f6   : > { %v8129_v62 = vadd.f32 0.5, %v3281_v47  ;;  %v8133_v42 = vpop.eup %5949  ;;  %v8135_v6 = vadd.f32 0.5, %v3285_v2  ;;  %v8137_v0 = vadd.f32 0.5, %v3286_v54  ;;  %v8139_v44 = vadd.f32 0.5, %v3289_v14 }
 0x2f7   : > { %5456 = vmatmul.mubr.msk.f32.gmra.mrb[150].mxu1 %vm2346_vm2, %v9592_v5  ;;  %9594 = vst [vmem:[#allocation89_spill] sm:$0xff] %v8121_v36  ;;  %v8131_v5 = vadd.f32 0.5, %v3282_v33  ;;  %v8141_v36 = vadd.f32 0.5, %v3290_v27  ;;  %v8145_v55 = vadd.f32 0.5, %v3293_v61  ;;  %v8147_v32 = vadd.f32 0.5, %v3294_v24 }
 0x2f8   : > { %2836 = vmatprep.mubr.f32.mxu1 %v9383_v45  ;;  %9595 = vst [vmem:[#allocation87_spill] sm:$0xff] %v8135_v6  ;;  %9596 = vst [vmem:[#allocation4_spill] sm:$0xff] %v8137_v0  ;;  %v3301_v33 = vmul.f32 0.5, %v7850_v8  ;;  %v3302_v10 = vmul.f32 0.5, %v7855_v25  ;;  %v8152_v47 = vadd.f32 0.5, %v3297_v37  ;;  %v8154_v2 = vadd.f32 0.5, %v3298_v21 }
 0x2f9   : > { %9597 = vst [vmem:[#allocation5_spill] sm:$0xff] %v8139_v44  ;;  %9598 = vst [vmem:[#allocation6_spill] sm:$0xff] %v8141_v36  ;;  %v3305_v54 = vmul.f32 0.5, %v7865_v49  ;;  %v3306_v14 = vmul.f32 0.5, %v7870_v41  ;;  %v3309_v27 = vmul.f32 0.5, %v7880_v30  ;;  %v3310_v61 = vmul.f32 0.5, %v7885_v56 }
 0x2fa   : > { %9600 = vst [vmem:[#allocation7_spill] sm:$0xff] %v8145_v55  ;;  %9601 = vst [vmem:[#allocation51_spill] sm:$0xff] %v8147_v32  ;;  %v3313_v24 = vmul.f32 0.5, %v7895_v17  ;;  %v3314_v8 = vmul.f32 0.5, %v7900_v11  ;;  %v9605_v32 = vld [vmem:[#allocation80_spill] sm:$0xff]  ;;  %v9606_v37 = vld [vmem:[#allocation66_spill] sm:$0xff] }
 0x2fb   : > { %5457 = vmatmul.mubr.msk.f32.gmra.mrb[152].mxu1 %vm2346_vm2, %v9599_v57  ;;  %9602 = vst [vmem:[#allocation9_spill] sm:$0xff] %v8152_v47  ;;  %9603 = vst [vmem:[#allocation105_spill] sm:$0xff] %v8154_v2  ;;  %v9604_v57 = vld [vmem:[#allocation61_spill] sm:$0xff]  ;;  %v3318_v55 = vmul.f32 0.5, %v9605_v32  ;;  %v3321_v47 = vmul.f32 0.5, %v9606_v37  ;;  %v9607_v21 = vld [vmem:[#allocation67_spill] sm:$0xff] }
 0x2fc   : > { %2842 = vmatprep.mubr.f32.mxu1 %v9383_v45  ;;  %v3317_v25 = vmul.f32 0.5, %v9604_v57  ;;  %v3322_v2 = vmul.f32 0.5, %v9607_v21  ;;  %v9608_v36 = vld [vmem:[#allocation13_spill] sm:$0xff]  ;;  %v8168_v49 = vadd.f32 0.5, %v3301_v33  ;;  %v8170_v30 = vadd.f32 0.5, %v3302_v10  ;;  %v9610_v17 = vld [vmem:[#allocation90_spill] sm:$0xff] }
 0x2fd   : > { %v9609_v41 = vld [vmem:[#allocation69_spill] sm:$0xff]  ;;  %v3326_v44 = vmul.f32 0.5, %v9610_v17  ;;  %v8175_v11 = vadd.f32 0.5, %v3305_v54  ;;  %v8177_v32 = vadd.f32 0.5, %v3306_v14  ;;  %v9612_v57 = vld [vmem:[#allocation72_spill] sm:$0xff]  ;;  %v9613_v21 = vld [vmem:[#allocation91_spill] sm:$0xff] }
 0x2fe   : > { %v3325_v56 = vmul.f32 0.5, %v9609_v41  ;;  %v3329_v37 = vmul.f32 0.5, %v9612_v57  ;;  %v3330_v0 = vmul.f32 0.5, %v9613_v21  ;;  %v8181_v6 = vadd.f32 0.5, %v3309_v27  ;;  %v9628_v21 = vld [vmem:[#allocation70_spill] sm:$0xff] }
 0x2ff   : > { %5458 = vmatmul.mubr.msk.f32.gmra.mrb[154].mxu1 %vm2346_vm2, %v9608_v36  ;;  %9611 = vst [vmem:[#allocation61_spill] sm:$0xff] %v8177_v32  ;;  %v8183_v36 = vadd.f32 0.5, %v3310_v61  ;;  %v8185_v33 = vadd.f32 0.5, %v3313_v24  ;;  %v8187_v10 = vadd.f32 0.5, %v3314_v8  ;;  %v8189_v41 = vadd.f32 0.5, %v3317_v25  ;;  %v9622_v32 = vld [vmem:[#allocation73_spill] sm:$0xff] }
 0x300   : > { %2848 = vmatprep.mubr.f32.mxu1 %v9383_v45  ;;  %9614 = vst [vmem:[#allocation80_spill] sm:$0xff] %v8181_v6  ;;  %v8191_v17 = vadd.f32 0.5, %v3318_v55  ;;  %v8193_v54 = vadd.f32 0.5, %v3321_v47  ;;  %v8195_v14 = vadd.f32 0.5, %v3322_v2  ;;  %v8199_v57 = vadd.f32 0.5, %v3325_v56  ;;  %v9625_v61 = vld [vmem:[#allocation81_spill] sm:$0xff] }
 0x301   : > { %9615 = vst [vmem:[#allocation66_spill] sm:$0xff] %v8183_v36  ;;  %9616 = vst [vmem:[#allocation67_spill] sm:$0xff] %v8185_v33  ;;  %v8201_v27 = vadd.f32 0.5, %v3326_v44  ;;  %v3333_v24 = vmul.f32 0.5, %v9625_v61  ;;  %v3334_v8 = vmul.f32 0.5, %v7986_v7  ;;  %v8206_v25 = vadd.f32 0.5, %v3329_v37 }
 0x302   : > { %9617 = vst [vmem:[#allocation13_spill] sm:$0xff] %v8187_v10  ;;  %9618 = vst [vmem:[#allocation69_spill] sm:$0xff] %v8189_v41  ;;  %v8208_v55 = vadd.f32 0.5, %v3330_v0  ;;  %v3337_v47 = vmul.f32 0.5, %v8009_v9  ;;  %v3338_v2 = vmul.f32 0.5, %v8017_v22  ;;  %v9629_v56 = vld [vmem:[#allocation16_spill] sm:$0xff] }
 0x303   : > { %9619 = vst [vmem:[#allocation90_spill] sm:$0xff] %v8191_v17  ;;  %9620 = vst [vmem:[#allocation72_spill] sm:$0xff] %v8193_v54  ;;  %5459 = vmatmul.mubr.msk.f32.gmra.mrb[156].mxu1 %vm2346_vm2, %v9622_v32  ;;  %v3215_v32 = vmul.f32 0.5, %v9628_v21  ;;  %v9630_v44 = vld [vmem:[#allocation17_spill] sm:$0xff]  ;;  %v9632_v54 = vld [vmem:[#allocation19_spill] sm:$0xff]  ;;  %v8222_v9 = vadd.f32 0.5, %v3333_v24 }
 0x304   : > { %9621 = vst [vmem:[#allocation91_spill] sm:$0xff] %v8195_v14  ;;  %9623 = vst [vmem:[#allocation73_spill] sm:$0xff] %v8199_v57  ;;  %2854 = vmatprep.mubr.f32.mxu1 %v9383_v45  ;;  %v3216_v57 = vmul.f32 0.5, %v9629_v56  ;;  %v9631_v14 = vld [vmem:[#allocation18_spill] sm:$0xff]  ;;  %v3223_v7 = vmul.f32 0.5, %v9632_v54  ;;  %v9633_v17 = vld [vmem:[#allocation20_spill] sm:$0xff] }
 0x305   : > { %9624 = vst [vmem:[#allocation106_spill] sm:$0xff] %v8201_v27  ;;  %9626 = vst [vmem:[#allocation81_spill] sm:$0xff] %v8206_v25  ;;  %v3219_v27 = vmul.f32 0.5, %v9630_v44  ;;  %v3220_v61 = vmul.f32 0.5, %v9631_v14  ;;  %v3224_v41 = vmul.f32 0.5, %v9633_v17  ;;  %v9634_v37 = vld [vmem:[#allocation21_spill] sm:$0xff] }
 0x306   : > { %9627 = vst [vmem:[#allocation107_spill] sm:$0xff] %v8208_v55  ;;  %v3227_v25 = vmul.f32 0.5, %v9634_v37  ;;  %v9635_v0 = vld [vmem:[#allocation23_spill] sm:$0xff]  ;;  %v9636_v10 = vld [vmem:[#allocation74_spill] sm:$0xff]  ;;  %9637 = vst [vmem:[#allocation70_spill] sm:$0xff] %v8222_v9  ;;  %v8224_v22 = vadd.f32 0.5, %v3334_v8 }
 0x307   : > { %v3228_v55 = vmul.f32 0.5, %v9635_v0  ;;  %5460 = vmatmul.mubr.msk.f32.gmra.mrb[158].mxu1 %vm2346_vm2, %v9636_v10  ;;  %v9639_v21 = vld [vmem:[#allocation24_spill] sm:$0xff]  ;;  %v9640_v44 = vld [vmem:[#allocation26_spill] sm:$0xff]  ;;  %v8229_v54 = vadd.f32 0.5, %v3337_v47  ;;  %v8231_v17 = vadd.f32 0.5, %v3338_v2  ;;  %v9643_v14 = vld [vmem:[#allocation27_spill] sm:$0xff] }
 0x308   : > { %9638 = vst [vmem:[#allocation16_spill] sm:$0xff] %v8224_v22  ;;  %v3231_v56 = vmul.f32 0.5, %v9639_v21  ;;  %v3232_v33 = vmul.f32 0.5, %v9640_v44  ;;  %2860 = vmatprep.mubr.f32.mxu1 %v9383_v45  ;;  %v3235_v37 = vmul.f32 0.5, %v9643_v14  ;;  %v9644_v0 = vld [vmem:[#allocation29_spill] sm:$0xff]  ;;  %v8235_v6 = vadd.f32 0.5, %v3215_v32 }
 0x309   : > { %9641 = vst [vmem:[#allocation17_spill] sm:$0xff] %v8229_v54  ;;  %9642 = vst [vmem:[#allocation18_spill] sm:$0xff] %v8231_v17  ;;  %v3236_v36 = vmul.f32 0.5, %v9644_v0  ;;  %v8237_v10 = vadd.f32 0.5, %v3216_v57  ;;  %v8239_v24 = vadd.f32 0.5, %v3219_v27  ;;  %v8241_v8 = vadd.f32 0.5, %v3220_v61 }
 0x30a   : > { %9645 = vst [vmem:[#allocation19_spill] sm:$0xff] %v8235_v6  ;;  %v8243_v21 = vadd.f32 0.5, %v3223_v7  ;;  %v8245_v44 = vadd.f32 0.5, %v3224_v41  ;;  %v8247_v47 = vadd.f32 0.5, %v3227_v25  ;;  %v8249_v2 = vadd.f32 0.5, %v3228_v55  ;;  %v9653_v17 = vld [vmem:[#allocation75_spill] sm:$0xff] }
 0x30b   : > { %9646 = vst [vmem:[#allocation20_spill] sm:$0xff] %v8237_v10  ;;  %9647 = vst [vmem:[#allocation21_spill] sm:$0xff] %v8239_v24  ;;  %5461 = vmatmul.mubr.msk.f32.gmra.mrb[160].mxu1 %vm2346_vm2, %v9653_v17  ;;  %v8253_v14 = vadd.f32 0.5, %v3231_v56  ;;  %v8255_v32 = vadd.f32 0.5, %v3232_v33  ;;  %v9656_v57 = vld [vmem:[#allocation30_spill] sm:$0xff]  ;;  %v9657_v0 = vld [vmem:[#allocation32_spill] sm:$0xff] }
 0x30c   : > { %9648 = vst [vmem:[#allocation23_spill] sm:$0xff] %v8241_v8  ;;  %9649 = vst [vmem:[#allocation74_spill] sm:$0xff] %v8243_v21  ;;  %v3239_v27 = vmul.f32 0.5, %v9656_v57  ;;  %v3240_v61 = vmul.f32 0.5, %v9657_v0  ;;  %2866 = vmatprep.mubr.f32.mxu1 %v9383_v45  ;;  %v8260_v7 = vadd.f32 0.5, %v3235_v37  ;;  %v8262_v41 = vadd.f32 0.5, %v3236_v36 }
 0x30d   : > { %9650 = vst [vmem:[#allocation24_spill] sm:$0xff] %v8245_v44  ;;  %9651 = vst [vmem:[#allocation26_spill] sm:$0xff] %v8247_v47  ;;  %v9660_v25 = vld [vmem:[#allocation33_spill] sm:$0xff]  ;;  %v9662_v44 = vld [vmem:[#allocation35_spill] sm:$0xff] }
 0x30e   : > { %9652 = vst [vmem:[#allocation27_spill] sm:$0xff] %v8249_v2  ;;  %9654 = vst [vmem:[#allocation29_spill] sm:$0xff] %v8253_v14  ;;  %v3243_v55 = vmul.f32 0.5, %v9660_v25  ;;  %v9661_v2 = vld [vmem:[#allocation94_spill] sm:$0xff]  ;;  %v3247_v17 = vmul.f32 0.5, %v9662_v44  ;;  %v9663_v56 = vld [vmem:[#allocation95_spill] sm:$0xff] }
 0x30f   : > { %9655 = vst [vmem:[#allocation75_spill] sm:$0xff] %v8255_v32  ;;  %9658 = vst [vmem:[#allocation30_spill] sm:$0xff] %v8260_v7  ;;  %v3244_v47 = vmul.f32 0.5, %v9661_v2  ;;  %v3248_v14 = vmul.f32 0.5, %v9663_v56  ;;  %v9664_v33 = vld [vmem:[#allocation37_spill] sm:$0xff]  ;;  %v9665_v21 = vld [vmem:[#allocation96_spill] sm:$0xff] }
 0x310   : > { %9659 = vst [vmem:[#allocation32_spill] sm:$0xff] %v8262_v41  ;;  %v3251_v32 = vmul.f32 0.5, %v9664_v33  ;;  %v3252_v57 = vmul.f32 0.5, %v9665_v21  ;;  %v9666_v8 = vld [vmem:[#allocation39_spill] sm:$0xff]  ;;  %v9667_v24 = vld [vmem:[#allocation97_spill] sm:$0xff]  ;;  %v9669_v36 = vld [vmem:[#allocation98_spill] sm:$0xff] }
 0x311   : > { %v3255_v0 = vmul.f32 0.5, %v9666_v8  ;;  %v3256_v10 = vmul.f32 0.5, %v9667_v24  ;;  %v9668_v37 = vld [vmem:[#allocation41_spill] sm:$0xff]  ;;  %v3260_v41 = vmul.f32 0.5, %v9669_v36  ;;  %v9670_v6 = vld [vmem:[#allocation22_spill] sm:$0xff]  ;;  %v8276_v2 = vadd.f32 0.5, %v3239_v27 }
 0x312   : > { %v3259_v7 = vmul.f32 0.5, %v9668_v37  ;;  %5462 = vmatmul.mubr.msk.f32.gmra.mrb[162].mxu1 %vm2346_vm2, %v9670_v6  ;;  %v8278_v44 = vadd.f32 0.5, %v3240_v61  ;;  %v9673_v25 = vld [vmem:[#allocation43_spill] sm:$0xff]  ;;  %v8283_v8 = vadd.f32 0.5, %v3243_v55  ;;  %v8285_v24 = vadd.f32 0.5, %v3244_v47  ;;  %v9677_v21 = vld [vmem:[#allocation45_spill] sm:$0xff] }
 0x313   : > { %9671 = vst [vmem:[#allocation33_spill] sm:$0xff] %v8276_v2  ;;  %v3263_v56 = vmul.f32 0.5, %v9673_v25  ;;  %v9674_v33 = vld [vmem:[#allocation99_spill] sm:$0xff]  ;;  %2872 = vmatprep.mubr.f32.mxu1 %v9383_v45  ;;  %v3267_v37 = vmul.f32 0.5, %v9677_v21  ;;  %v9678_v36 = vld [vmem:[#allocation100_spill] sm:$0xff]  ;;  %v8289_v9 = vadd.f32 0.5, %v3247_v17 }
 0x314   : > { %9672 = vst [vmem:[#allocation94_spill] sm:$0xff] %v8278_v44  ;;  %v3264_v54 = vmul.f32 0.5, %v9674_v33  ;;  %9675 = vst [vmem:[#allocation35_spill] sm:$0xff] %v8283_v8  ;;  %v3268_v22 = vmul.f32 0.5, %v9678_v36  ;;  %v8291_v6 = vadd.f32 0.5, %v3248_v14  ;;  %v8293_v27 = vadd.f32 0.5, %v3251_v32 }
 0x315   : > { %9676 = vst [vmem:[#allocation95_spill] sm:$0xff] %v8285_v24  ;;  %9679 = vst [vmem:[#allocation37_spill] sm:$0xff] %v8289_v9  ;;  %v8295_v61 = vadd.f32 0.5, %v3252_v57  ;;  %v8297_v25 = vadd.f32 0.5, %v3255_v0  ;;  %v8299_v33 = vadd.f32 0.5, %v3256_v10  ;;  %v8301_v55 = vadd.f32 0.5, %v3259_v7 }
 0x316   : > { %9680 = vst [vmem:[#allocation96_spill] sm:$0xff] %v8291_v6  ;;  %9681 = vst [vmem:[#allocation39_spill] sm:$0xff] %v8293_v27  ;;  %v8303_v47 = vadd.f32 0.5, %v3260_v41  ;;  %v9687_v24 = vld [vmem:[#allocation25_spill] sm:$0xff]  ;;  %v8307_v21 = vadd.f32 0.5, %v3263_v56  ;;  %v8309_v17 = vadd.f32 0.5, %v3264_v54 }
 0x317   : > { %9682 = vst [vmem:[#allocation97_spill] sm:$0xff] %v8295_v61  ;;  %9683 = vst [vmem:[#allocation41_spill] sm:$0xff] %v8297_v25  ;;  %5463 = vmatmul.mubr.msk.f32.gmra.mrb[164].mxu1 %vm2346_vm2, %v9687_v24  ;;  %v9690_v14 = vld [vmem:[#allocation47_spill] sm:$0xff]  ;;  %v9691_v36 = vld [vmem:[#allocation101_spill] sm:$0xff]  ;;  %v8314_v0 = vadd.f32 0.5, %v3267_v37  ;;  %v8316_v10 = vadd.f32 0.5, %v3268_v22 }
 0x318   : > { %9684 = vst [vmem:[#allocation98_spill] sm:$0xff] %v8299_v33  ;;  %9685 = vst [vmem:[#allocation22_spill] sm:$0xff] %v8301_v55  ;;  %v3271_v32 = vmul.f32 0.5, %v9690_v14  ;;  %v3272_v57 = vmul.f32 0.5, %v9691_v36  ;;  %2878 = vmatprep.mubr.f32.mxu1 %v9383_v45  ;;  %v9694_v7 = vld [vmem:[#allocation49_spill] sm:$0xff]  ;;  %v9696_v33 = vld [vmem:[#allocation103_spill] sm:$0xff] }
 0x319   : > { %9686 = vst [vmem:[#allocation43_spill] sm:$0xff] %v8303_v47  ;;  %9688 = vst [vmem:[#allocation99_spill] sm:$0xff] %v8307_v21  ;;  %v3275_v41 = vmul.f32 0.5, %v9694_v7  ;;  %v9695_v47 = vld [vmem:[#allocation102_spill] sm:$0xff]  ;;  %v3279_v24 = vmul.f32 0.5, %v9696_v33  ;;  %v9697_v56 = vld [vmem:[#allocation104_spill] sm:$0xff] }
 0x31a   : > { %9689 = vst [vmem:[#allocation45_spill] sm:$0xff] %v8309_v17  ;;  %9692 = vst [vmem:[#allocation100_spill] sm:$0xff] %v8314_v0  ;;  %v3276_v55 = vmul.f32 0.5, %v9695_v47  ;;  %v3280_v21 = vmul.f32 0.5, %v9697_v56  ;;  %v9698_v54 = vld [vmem:[#allocation53_spill] sm:$0xff]  ;;  %v9699_v25 = vld [vmem:[#allocation54_spill] sm:$0xff] }
 0x31b   : > { %9693 = vst [vmem:[#allocation25_spill] sm:$0xff] %v8316_v10  ;;  %v3283_v17 = vmul.f32 0.5, %v9698_v54  ;;  %v3284_v14 = vmul.f32 0.5, %v9699_v25  ;;  %v9700_v61 = vld [vmem:[#allocation55_spill] sm:$0xff]  ;;  %v9702_v37 = vld [vmem:[#allocation77_spill] sm:$0xff]  ;;  %v9704_v9 = vld [vmem:[#allocation28_spill] sm:$0xff] }
 0x31c   : > { %v3287_v36 = vmul.f32 0.5, %v9700_v61  ;;  %v9701_v27 = vld [vmem:[#allocation79_spill] sm:$0xff]  ;;  %v3291_v0 = vmul.f32 0.5, %v9702_v37  ;;  %v9703_v22 = vld [vmem:[#allocation57_spill] sm:$0xff]  ;;  %5464 = vmatmul.mubr.msk.f32.gmra.mrb[166].mxu1 %vm2346_vm2, %v9704_v9  ;;  %v8330_v47 = vadd.f32 0.5, %v3271_v32  ;;  %v8332_v33 = vadd.f32 0.5, %v3272_v57 }
 0x31d   : > { %v3288_v6 = vmul.f32 0.5, %v9701_v27  ;;  %v3292_v10 = vmul.f32 0.5, %v9703_v22  ;;  %v9705_v7 = vld [vmem:[#allocation58_spill] sm:$0xff]  ;;  %v9706_v54 = vld [vmem:[#allocation56_spill] sm:$0xff]  ;;  %2884 = vmatprep.mubr.f32.mxu1 %v9383_v45  ;;  %v8337_v61 = vadd.f32 0.5, %v3275_v41  ;;  %v8339_v27 = vadd.f32 0.5, %v3276_v55 }
 0x31e   : > { %v3295_v56 = vmul.f32 0.5, %v9705_v7  ;;  %v3296_v8 = vmul.f32 0.5, %v9706_v54  ;;  %v9708_v25 = vld [vmem:[#allocation78_spill] sm:$0xff]  ;;  %v9709_v22 = vld [vmem:[#allocation60_spill] sm:$0xff]  ;;  %v8343_v2 = vadd.f32 0.5, %v3279_v24  ;;  %v8345_v9 = vadd.f32 0.5, %v3280_v21 }
 0x31f   : > { %9707 = vst [vmem:[#allocation47_spill] sm:$0xff] %v8339_v27  ;;  %v3299_v37 = vmul.f32 0.5, %v9708_v25  ;;  %v3300_v44 = vmul.f32 0.5, %v9709_v22  ;;  %v8347_v32 = vadd.f32 0.5, %v3283_v17  ;;  %v8349_v57 = vadd.f32 0.5, %v3284_v14  ;;  %v9716_v27 = vld [vmem:[#allocation31_spill] sm:$0xff] }
 0x320   : > { %v8351_v7 = vadd.f32 0.5, %v3287_v36  ;;  %v8353_v54 = vadd.f32 0.5, %v3288_v6  ;;  %v8355_v41 = vadd.f32 0.5, %v3291_v0  ;;  %v8357_v55 = vadd.f32 0.5, %v3292_v10  ;;  %5465 = vmatmul.mubr.msk.f32.gmra.mrb[168].mxu1 %vm2346_vm2, %v9716_v27  ;;  %v9719_v21 = vld [vmem:[#allocation64_spill] sm:$0xff]  ;;  %v9720_v22 = vld [vmem:[#allocation65_spill] sm:$0xff] }
 0x321   : > { %9710 = vst [vmem:[#allocation101_spill] sm:$0xff] %v8347_v32  ;;  %9711 = vst [vmem:[#allocation49_spill] sm:$0xff] %v8349_v57  ;;  %v8361_v25 = vadd.f32 0.5, %v3295_v56  ;;  %v8363_v24 = vadd.f32 0.5, %v3296_v8  ;;  %v3303_v17 = vmul.f32 0.5, %v9719_v21  ;;  %v3304_v14 = vmul.f32 0.5, %v9720_v22  ;;  %2890 = vmatprep.mubr.f32.mxu1 %v9383_v45 }
 0x322   : > { %9712 = vst [vmem:[#allocation102_spill] sm:$0xff] %v8351_v7  ;;  %9713 = vst [vmem:[#allocation103_spill] sm:$0xff] %v8353_v54  ;;  %v8368_v36 = vadd.f32 0.5, %v3299_v37  ;;  %v8370_v6 = vadd.f32 0.5, %v3300_v44  ;;  %v9723_v0 = vld [vmem:[#allocation63_spill] sm:$0xff]  ;;  %v9726_v56 = vld [vmem:[#allocation62_spill] sm:$0xff] }
 0x323   : > { %9714 = vst [vmem:[#allocation104_spill] sm:$0xff] %v8355_v41  ;;  %9715 = vst [vmem:[#allocation53_spill] sm:$0xff] %v8357_v55  ;;  %v3307_v10 = vmul.f32 0.5, %v9723_v0  ;;  %v9724_v55 = vld [vmem:[#allocation68_spill] sm:$0xff]  ;;  %v9725_v54 = vld [vmem:[#allocation71_spill] sm:$0xff]  ;;  %v3316_v21 = vmul.f32 0.5, %v7995_v38 }
 0x324   : > { %9717 = vst [vmem:[#allocation54_spill] sm:$0xff] %v8361_v25  ;;  %9718 = vst [vmem:[#allocation55_spill] sm:$0xff] %v8363_v24  ;;  %v3308_v41 = vmul.f32 0.5, %v9724_v55  ;;  %v3311_v27 = vmul.f32 0.5, %v9725_v54  ;;  %v3312_v25 = vmul.f32 0.5, %v9726_v56  ;;  %v9727_v8 = vld [vmem:[#allocation84_spill] sm:$0xff] }
 0x325   : > { %9721 = vst [vmem:[#allocation79_spill] sm:$0xff] %v8368_v36  ;;  %9722 = vst [vmem:[#allocation77_spill] sm:$0xff] %v8370_v6  ;;  %v3315_v24 = vmul.f32 0.5, %v9727_v8  ;;  %v2509_v7 = vpop.f32.mrb[64].mxu1  ;;  %v3319_v22 = vmul.f32 0.5, %v8001_v1  ;;  %v3320_v37 = vmul.f32 0.5, %v8024_v19 }
 0x326   : > { %v3323_v44 = vmul.f32 0.5, %v8032_v28  ;;  %v3324_v6 = vmul.f32 0.5, %v8038_v31  ;;  %v9728_v0 = vld [vmem:[#allocation59_spill] sm:$0xff]  ;;  %v2511_v55 = vpop.f32.mrb[65].mxu1  ;;  %v9729_v57 = vld [vmem:[#allocation34_spill] sm:$0xff]  ;;  %v8385_v54 = vadd.f32 0.5, %v3303_v17 }
 0x327   : > { %v3477_v36 = vmul.f32 %v9728_v0, %v2509_v7  ;;  %5466 = vmatmul.mubr.msk.f32.gmra.mrb[170].mxu1 %vm2346_vm2, %v9729_v57  ;;  %v8387_v56 = vadd.f32 0.5, %v3304_v14  ;;  %v3327_v38 = vmul.f32 0.5, %v8044_v63  ;;  %v9731_v8 = vld [vmem:[#allocation82_spill] sm:$0xff]  ;;  %v8392_v19 = vadd.f32 0.5, %v3307_v10  ;;  %v2515_v14 = vpop.f32.mrb[66].mxu1 }
 0x328   : > { %v3478_v1 = vmul.f32 %v9731_v8, %v2511_v55  ;;  %2896 = vmatprep.mubr.f32.mxu1 %v9383_v45  ;;  %v8394_v28 = vadd.f32 0.5, %v3308_v41  ;;  %v3328_v31 = vmul.f32 0.5, %v8059_v13  ;;  %v8397_v0 = vadd.f32 0.5, %v3311_v27  ;;  %v9737_v41 = vld [vmem:[#allocation8_spill] sm:$0xff]  ;;  %v2517_v27 = vpop.f32.mrb[67].mxu1 }
 0x329   : > { %9730 = vst [vmem:[#allocation57_spill] sm:$0xff] %v8387_v56  ;;  %v8399_v32 = vadd.f32 0.5, %v3312_v25  ;;  %v8401_v57 = vadd.f32 0.5, %v3315_v24  ;;  %v8403_v17 = vadd.f32 0.5, %v3316_v21  ;;  %v8405_v63 = vadd.f32 0.5, %v3319_v22 }
 0x32a   : > { %9732 = vst [vmem:[#allocation28_spill] sm:$0xff] %v8394_v28  ;;  %9733 = vst [vmem:[#allocation58_spill] sm:$0xff] %v8397_v0  ;;  %v8407_v8 = vadd.f32 0.5, %v3320_v37  ;;  %v8409_v56 = vadd.f32 0.5, %v3323_v44  ;;  %v8411_v10 = vadd.f32 0.5, %v3324_v6  ;;  %v3481_v28 = vmul.f32 %v9737_v41, %v2515_v14  ;;  %v9738_v0 = vld [vmem:[#allocation36_spill] sm:$0xff] }
 0x32b   : > { %v4212_v13 = vadd.f32 %v2515_v14, %v2509_v7  ;;  %5467 = vmatmul.mubr.msk.f32.gmra.mrb[172].mxu1 %vm2346_vm2, %v9738_v0  ;;  %v8416_v25 = vadd.f32 0.5, %v3327_v38  ;;  %v3331_v24 = vmul.f32 0.5, %v8069_v46  ;;  %v3482_v21 = vmul.f32 %v7991_v29, %v2517_v27 }
 0x32c   : > { %9734 = vst [vmem:[#allocation56_spill] sm:$0xff] %v8407_v8  ;;  %9735 = vst [vmem:[#allocation78_spill] sm:$0xff] %v8409_v56  ;;  %v4219_v22 = vadd.f32 %v2517_v27, %v2511_v55  ;;  %2902 = vmatprep.mubr.f32.mxu1 %v9383_v45  ;;  %v8421_v37 = vadd.f32 0.5, %v3328_v31  ;;  %v3332_v6 = vmul.f32 0.5, %v8079_v59  ;;  %v3605_v44 = vadd.f32 %v3481_v28, %v3477_v36  ;;  %v9742_v56 = vld [vmem:[#allocation38_spill] sm:$0xff] }
 0x32d   : > { %9736 = vst [vmem:[#allocation60_spill] sm:$0xff] %v8411_v10  ;;  %9739 = vst [vmem:[#allocation31_spill] sm:$0xff] %v8416_v25  ;;  %v4213_v41 = vrot.slane %v4212_v13, 4  ;;  %v3335_v7 = vmul.f32 0.5, %v8089_v40  ;;  %v3336_v14 = vmul.f32 0.5, %v8098_v15  ;;  %v3612_v0 = vadd.f32 %v3482_v21, %v3478_v1  ;;  %v2521_v25 = vpop.f32.mrb[68].mxu1 }
 0x32e   : > { %9740 = vst [vmem:[#allocation64_spill] sm:$0xff] %v8421_v37  ;;  %v4220_v38 = vrot.slane %v4219_v22, 4  ;;  %v3339_v46 = vmul.f32 0.5, %v8104_v51  ;;  %v3340_v29 = vmul.f32 0.5, %v8133_v42  ;;  %v3606_v55 = vrot.slane %v3605_v44, 4  ;;  %v9741_v10 = vld [vmem:[#allocation92_spill] sm:$0xff] }
 0x32f   : > { %v4214_v27 = vadd.f32 %v4213_v41, %v4212_v13  ;;  %v3485_v31 = vmul.f32 %v9741_v10, %v2521_v25  ;;  %v2523_v37 = vpop.f32.mrb[69].mxu1  ;;  %5468 = vmatmul.mubr.msk.f32.gmra.mrb[174].mxu1 %vm2346_vm2, %v9742_v56  ;;  %v8431_v59 = vadd.f32 0.5, %v3331_v24  ;;  %v3613_v40 = vrot.slane %v3612_v0, 4 }
 0x330   : > { %v4221_v36 = vadd.f32 %v4220_v38, %v4219_v22  ;;  %v3486_v15 = vmul.f32 %v8003_v50, %v2523_v37  ;;  %2908 = vmatprep.mubr.f32.mxu1 %v9383_v45  ;;  %v8435_v1 = vadd.f32 0.5, %v3332_v6  ;;  %v3607_v51 = vadd.f32 %v3606_v55, %v3605_v44  ;;  %v2527_v41 = vpop.f32.mrb[70].mxu1 }
 0x331   : > { %9743 = vst [vmem:[#allocation65_spill] sm:$0xff] %v8431_v59  ;;  %v4215_v42 = vrot.slane %v4214_v27, 2  ;;  %v8437_v28 = vadd.f32 0.5, %v3335_v7  ;;  %v8439_v13 = vadd.f32 0.5, %v3336_v14  ;;  %v3614_v10 = vadd.f32 %v3613_v40, %v3612_v0  ;;  %v2529_v6 = vpop.f32.mrb[71].mxu1  ;;  %v9750_v14 = vld [vmem:[#allocation10_spill] sm:$0xff] }
 0x332   : > { %9744 = vst [vmem:[#allocation63_spill] sm:$0xff] %v8435_v1  ;;  %v4222_v21 = vrot.slane %v4221_v36, 2  ;;  %v8441_v56 = vadd.f32 0.5, %v3339_v46  ;;  %v8443_v24 = vadd.f32 0.5, %v3340_v29  ;;  %v3608_v22 = vrot.slane %v3607_v51, 2  ;;  %v9749_v1 = vld [vmem:[#allocation40_spill] sm:$0xff] }
 0x333   : > { %9745 = vst [vmem:[#allocation68_spill] sm:$0xff] %v8437_v28  ;;  %9746 = vst [vmem:[#allocation71_spill] sm:$0xff] %v8439_v13  ;;  %v4216_v38 = vadd.f32 %v4215_v42, %v4214_v27  ;;  %v3489_v50 = vmul.f32 %v8005_v16, %v2527_v41  ;;  %v4240_v59 = vadd.f32 %v2527_v41, %v2521_v25  ;;  %5469 = vmatmul.mubr.msk.f32.gmra.mrb[176].mxu1 %vm2346_vm2, %v9749_v1  ;;  %v2533_v42 = vpop.f32.mrb[72].mxu1 }
 0x334   : > { %9747 = vst [vmem:[#allocation62_spill] sm:$0xff] %v8441_v56  ;;  %9748 = vst [vmem:[#allocation84_spill] sm:$0xff] %v8443_v24  ;;  %v3615_v44 = vrot.slane %v3614_v10, 2  ;;  %v4223_v7 = vadd.f32 %v4222_v21, %v4221_v36  ;;  %v3490_v55 = vmul.f32 %v9750_v14, %v2529_v6  ;;  %v4247_v0 = vadd.f32 %v2529_v6, %v2523_v37  ;;  %v2535_v36 = vpop.f32.mrb[73].mxu1  ;;  %v9751_v21 = vld [vmem:[#allocation42_spill] sm:$0xff] }
 0x335   : > { %2914 = vmatprep.mubr.f32.mxu1 %v9383_v45  ;;  %v3609_v46 = vadd.f32 %v3608_v22, %v3607_v51  ;;  %v4217_v40 = vrot.slane %v4216_v38, 1  ;;  %v3633_v29 = vadd.f32 %v3489_v50, %v3485_v31  ;;  %v4241_v24 = vrot.slane %v4240_v59, 4 }
 0x336   : > { %v3616_v56 = vadd.f32 %v3615_v44, %v3614_v10  ;;  %v4224_v27 = vrot.slane %v4223_v7, 1  ;;  %v3640_v16 = vadd.f32 %v3490_v55, %v3486_v15  ;;  %v4248_v25 = vrot.slane %v4247_v0, 4 }
 0x337   : > { %v3610_v41 = vrot.slane %v3609_v46, 1  ;;  %v4218_v13 = vadd.f32 %v4217_v40, %v4216_v38  ;;  %v3634_v1 = vrot.slane %v3633_v29, 4  ;;  %v4242_v28 = vadd.f32 %v4241_v24, %v4240_v59  ;;  %5470 = vmatmul.mubr.msk.f32.gmra.mrb[178].mxu1 %vm2346_vm2, %v9751_v21  ;;  %v2539_v24 = vpop.f32.mrb[74].mxu1 }
 0x338   : > { %v3617_v37 = vrot.slane %v3616_v56, 1  ;;  %v4225_v6 = vadd.f32 %v4224_v27, %v4223_v7  ;;  %v3641_v51 = vrot.slane %v3640_v16, 4  ;;  %v4249_v22 = vadd.f32 %v4248_v25, %v4247_v0  ;;  %2920 = vmatprep.mubr.f32.mxu1 %v9383_v45  ;;  %v2541_v27 = vpop.f32.mrb[75].mxu1  ;;  %v9752_v0 = vld [vmem:[#allocation44_spill] sm:$0xff]  ;;  %v9753_v25 = vld [vmem:[#allocation86_spill] sm:$0xff] }
 0x339   : > { %v3611_v31 = vadd.f32 %v3610_v41, %v3609_v46  ;;  %v3635_v10 = vadd.f32 %v3634_v1, %v3633_v29  ;;  %v4243_v50 = vrot.slane %v4242_v28, 2  ;;  %v3493_v15 = vmul.f32 %v8011_v34, %v2533_v42 }
 0x33a   : > { %v3618_v44 = vadd.f32 %v3617_v37, %v3616_v56  ;;  %v3642_v14 = vadd.f32 %v3641_v51, %v3640_v16  ;;  %v4250_v38 = vrot.slane %v4249_v22, 2  ;;  %v3494_v59 = vmul.f32 %v8013_v43, %v2535_v36  ;;  %v2545_v51 = vpop.f32.mrb[76].mxu1 }
 0x33b   : > { %v3636_v55 = vrot.slane %v3635_v10, 2  ;;  %v4244_v40 = vadd.f32 %v4243_v50, %v4242_v28  ;;  %v3497_v21 = vmul.f32 %v8015_v53, %v2539_v24  ;;  %v4268_v7 = vadd.f32 %v2539_v24, %v2533_v42  ;;  %5471 = vmatmul.mubr.msk.f32.gmra.mrb[180].mxu1 %vm2346_vm2, %v9752_v0 }
 0x33c   : > { %v3643_v46 = vrot.slane %v3642_v14, 2  ;;  %v4251_v29 = vadd.f32 %v4250_v38, %v4249_v22  ;;  %v3498_v41 = vmul.f32 %v9753_v25, %v2541_v27  ;;  %v4275_v34 = vadd.f32 %v2541_v27, %v2535_v36  ;;  %2926 = vmatprep.mubr.f32.mxu1 %v9383_v45  ;;  %v2547_v22 = vpop.f32.mrb[77].mxu1  ;;  %v9754_v38 = vld [vmem:[#allocation46_spill] sm:$0xff] }
 0x33d   : > { %v3637_v56 = vadd.f32 %v3636_v55, %v3635_v10  ;;  %v4245_v16 = vrot.slane %v4244_v40, 1  ;;  %v3661_v43 = vadd.f32 %v3497_v21, %v3493_v15  ;;  %v4269_v1 = vrot.slane %v4268_v7, 4 }
 0x33e   : > { %v3644_v37 = vadd.f32 %v3643_v46, %v3642_v14  ;;  %v4252_v28 = vrot.slane %v4251_v29, 1  ;;  %v3668_v53 = vadd.f32 %v3498_v41, %v3494_v59  ;;  %v4276_v42 = vrot.slane %v4275_v34, 4  ;;  %v2551_v41 = vpop.f32.mrb[78].mxu1 }
 0x33f   : > { %v3638_v50 = vrot.slane %v3637_v56, 1  ;;  %v4246_v24 = vadd.f32 %v4245_v16, %v4244_v40  ;;  %v3662_v0 = vrot.slane %v3661_v43, 4  ;;  %v4270_v8 = vadd.f32 %v4269_v1, %v4268_v7  ;;  %5472 = vmatmul.mubr.msk.f32.gmra.mrb[182].mxu1 %vm2346_vm2, %v9754_v38 }
 0x340   : > { %v3645_v36 = vrot.slane %v3644_v37, 1  ;;  %v4253_v27 = vadd.f32 %v4252_v28, %v4251_v29  ;;  %v3669_v10 = vrot.slane %v3668_v53, 4  ;;  %v4277_v55 = vadd.f32 %v4276_v42, %v4275_v34  ;;  %2932 = vmatprep.mubr.f32.mxu1 %v9383_v45  ;;  %v9755_v29 = vld [vmem:[#allocation11_spill] sm:$0xff]  ;;  %v2553_v34 = vpop.f32.mrb[79].mxu1  ;;  %v9756_v42 = vld [vmem:[#allocation48_spill] sm:$0xff] }
 0x341   : > { %v3639_v15 = vadd.f32 %v3638_v50, %v3637_v56  ;;  %v4724_v14 = vsel %vm4117_vm4, %v4246_v24, %v4218_v13  ;;  %v3663_v59 = vadd.f32 %v3662_v0, %v3661_v43  ;;  %v4271_v21 = vrot.slane %v4270_v8, 2  ;;  %v9757_v0 = vld [vmem:[#allocation83_spill] sm:$0xff] }
 0x342   : > { %v3646_v46 = vadd.f32 %v3645_v36, %v3644_v37  ;;  %v4731_v40 = vsel %vm4117_vm4, %v4253_v27, %v4225_v6  ;;  %v3670_v25 = vadd.f32 %v3669_v10, %v3668_v53  ;;  %v4278_v7 = vrot.slane %v4277_v55, 2  ;;  %v2557_v10 = vpop.f32.mrb[80].mxu1 }
 0x343   : > { %v4118_v16 = vsel %vm4117_vm4, %v3639_v15, %v3611_v31  ;;  %v3664_v1 = vrot.slane %v3663_v59, 2  ;;  %v4272_v38 = vadd.f32 %v4271_v21, %v4270_v8  ;;  %v3501_v28 = vmul.f32 %v9755_v29, %v2545_v51  ;;  %5473 = vmatmul.mubr.msk.f32.gmra.mrb[184].mxu1 %vm2346_vm2, %v9756_v42 }
 0x344   : > { %v4131_v13 = vsel %vm4117_vm4, %v3646_v46, %v3618_v44  ;;  %v3671_v56 = vrot.slane %v3670_v25, 2  ;;  %v4279_v43 = vadd.f32 %v4278_v7, %v4277_v55  ;;  %v3502_v37 = vmul.f32 %v8048_v35, %v2547_v22  ;;  %2938 = vmatprep.mubr.f32.mxu1 %v9383_v45  ;;  %v2559_v55 = vpop.f32.mrb[81].mxu1  ;;  %v9758_v7 = vld [vmem:[#allocation50_spill] sm:$0xff] }
 0x345   : > { %v3665_v6 = vadd.f32 %v3664_v1, %v3663_v59  ;;  %v4273_v53 = vrot.slane %v4272_v38, 1  ;;  %v3505_v31 = vmul.f32 %v8050_v52, %v2551_v41  ;;  %v4296_v50 = vadd.f32 %v2551_v41, %v2545_v51  ;;  %v2563_v42 = vpop.f32.mrb[82].mxu1 }
 0x346   : > { %v3672_v8 = vadd.f32 %v3671_v56, %v3670_v25  ;;  %v4280_v24 = vrot.slane %v4279_v43, 1  ;;  %v3506_v36 = vmul.f32 %v9757_v0, %v2553_v34  ;;  %v4303_v27 = vadd.f32 %v2553_v34, %v2547_v22 }
 0x347   : > { %v3666_v15 = vrot.slane %v3665_v6, 1  ;;  %v4274_v21 = vadd.f32 %v4273_v53, %v4272_v38  ;;  %v3689_v44 = vadd.f32 %v3505_v31, %v3501_v28  ;;  %v4297_v46 = vrot.slane %v4296_v50, 4  ;;  %5474 = vmatmul.mubr.msk.f32.gmra.mrb[186].mxu1 %vm2346_vm2, %v9758_v7  ;;  %v2565_v31 = vpop.f32.mrb[83].mxu1 }
 0x348   : > { %v3673_v35 = vrot.slane %v3672_v8, 1  ;;  %v4281_v59 = vadd.f32 %v4280_v24, %v4279_v43  ;;  %v3696_v1 = vadd.f32 %v3506_v36, %v3502_v37  ;;  %v4304_v52 = vrot.slane %v4303_v27, 4  ;;  %2944 = vmatprep.mubr.f32.mxu1 %v9383_v45  ;;  %v9759_v24 = vld [vmem:[#allocation52_spill] sm:$0xff] }
 0x349   : > { %v3667_v51 = vadd.f32 %v3666_v15, %v3665_v6  ;;  %v4725_v25 = vsel %vm4119_vm5, %v4274_v21, %v4724_v14  ;;  %v3690_v22 = vrot.slane %v3689_v44, 4  ;;  %v4298_v41 = vadd.f32 %v4297_v46, %v4296_v50 }
 0x34a   : > { %v3674_v29 = vadd.f32 %v3673_v35, %v3672_v8  ;;  %v4732_v38 = vsel %vm4119_vm5, %v4281_v59, %v4731_v40  ;;  %v3697_v28 = vrot.slane %v3696_v1, 4  ;;  %v4305_v34 = vadd.f32 %v4304_v52, %v4303_v27 }
 0x34b   : > { %v4120_v56 = vsel %vm4119_vm5, %v3667_v51, %v4118_v16  ;;  %v3691_v53 = vadd.f32 %v3690_v22, %v3689_v44  ;;  %v4299_v43 = vrot.slane %v4298_v41, 2  ;;  %v3509_v37 = vmul.f32 %v8061_v20, %v2557_v10  ;;  %5475 = vmatmul.mubr.msk.f32.gmra.mrb[188].mxu1 %vm2346_vm2, %v9759_v24  ;;  %v2569_v44 = vpop.f32.mrb[84].mxu1 }
 0x34c   : > { %v4132_v14 = vsel %vm4119_vm5, %v3674_v29, %v4131_v13  ;;  %v3698_v6 = vadd.f32 %v3697_v28, %v3696_v1  ;;  %v4306_v50 = vrot.slane %v4305_v34, 2  ;;  %v3510_v8 = vmul.f32 %v8063_v58, %v2559_v55  ;;  %2950 = vmatprep.mubr.f32.mxu1 %v9383_v45  ;;  %v2571_v59 = vpop.f32.mrb[85].mxu1  ;;  %v9760_v1 = vld [vmem:[#allocation76_spill] sm:$0xff] }
 0x34d   : > { %v3692_v40 = vrot.slane %v3691_v53, 2  ;;  %v4300_v0 = vadd.f32 %v4299_v43, %v4298_v41  ;;  %v3513_v16 = vmul.f32 %v8065_v12, %v2563_v42  ;;  %v4324_v36 = vadd.f32 %v2563_v42, %v2557_v10 }
 0x34e   : > { %v3699_v27 = vrot.slane %v3698_v6, 2  ;;  %v4307_v15 = vadd.f32 %v4306_v50, %v4305_v34  ;;  %v3514_v20 = vmul.f32 %v8067_v4, %v2565_v31  ;;  %v4331_v21 = vadd.f32 %v2565_v31, %v2559_v55  ;;  %v2575_v34 = vpop.f32.mrb[86].mxu1 }
 0x34f   : > { %v3693_v46 = vadd.f32 %v3692_v40, %v3691_v53  ;;  %v4301_v7 = vrot.slane %v4300_v0, 1  ;;  %v3717_v13 = vadd.f32 %v3513_v16, %v3509_v37  ;;  %v4325_v35 = vrot.slane %v4324_v36, 4  ;;  %5476 = vmatmul.mubr.msk.f32.gmra.mrb[190].mxu1 %vm2346_vm2, %v9760_v1  ;;  %v2577_v31 = vpop.f32.mrb[87].mxu1 }
 0x350   : > { %v3700_v45 = vadd.f32 %v3699_v27, %v3698_v6  ;;  %v4308_v58 = vrot.slane %v4307_v15, 1  ;;  %v3724_v52 = vadd.f32 %v3514_v20, %v3510_v8  ;;  %v4332_v12 = vrot.slane %v4331_v21, 4 }
 0x351   : > { %v3694_v10 = vrot.slane %v3693_v46, 1  ;;  %v4302_v51 = vadd.f32 %v4301_v7, %v4300_v0  ;;  %v3718_v22 = vrot.slane %v3717_v13, 4  ;;  %v4326_v41 = vadd.f32 %v4325_v35, %v4324_v36  ;;  %v9761_v36 = vld [vmem:[#allocation12_spill] sm:$0xff] }
 0x352   : > { %v3701_v4 = vrot.slane %v3700_v45, 1  ;;  %v4309_v55 = vadd.f32 %v4308_v58, %v4307_v15  ;;  %v3725_v29 = vrot.slane %v3724_v52, 4  ;;  %v4333_v28 = vadd.f32 %v4332_v12, %v4331_v21 }
 0x353   : > { %v3695_v42 = vadd.f32 %v3694_v10, %v3693_v46  ;;  %v4726_v53 = vsel %vm4121_vm6, %v4302_v51, %v4725_v25  ;;  %v3719_v43 = vadd.f32 %v3718_v22, %v3717_v13  ;;  %v4327_v37 = vrot.slane %v4326_v41, 2  ;;  %v2581_v46 = vpop.f32.mrb[88].mxu1 }
 0x354   : > { %v3702_v24 = vadd.f32 %v3701_v4, %v3700_v45  ;;  %v4733_v6 = vsel %vm4121_vm6, %v4309_v55, %v4732_v38  ;;  %v3726_v50 = vadd.f32 %v3725_v29, %v3724_v52  ;;  %v4334_v8 = vrot.slane %v4333_v28, 2  ;;  %v2583_v1 = vpop.f32.mrb[89].mxu1 }
 0x355   : > { %v4122_v40 = vsel %vm4121_vm6, %v3695_v42, %v4120_v56  ;;  %v3720_v0 = vrot.slane %v3719_v43, 2  ;;  %v4328_v16 = vadd.f32 %v4327_v37, %v4326_v41  ;;  %v3517_v27 = vmul.f32 %v9761_v36, %v2569_v44  ;;  %v9762_v56 = vld [vmem:[#allocation88_spill] sm:$0xff]  ;;  %v2587_v29 = vpop.f32.mrb[90].mxu1 }
 0x356   : > { %v4133_v15 = vsel %vm4121_vm6, %v3702_v24, %v4132_v14  ;;  %v3727_v20 = vrot.slane %v3726_v50, 2  ;;  %v4335_v21 = vadd.f32 %v4334_v8, %v4333_v28  ;;  %v3518_v25 = vmul.f32 %v8073_v3, %v2571_v59  ;;  %v2589_v42 = vpop.f32.mrb[91].mxu1 }
 0x357   : > { %v3721_v7 = vadd.f32 %v3720_v0, %v3719_v43  ;;  %v4329_v13 = vrot.slane %v4328_v16, 1  ;;  %v3521_v35 = vmul.f32 %v8075_v23, %v2575_v34  ;;  %v4352_v38 = vadd.f32 %v2575_v34, %v2569_v44  ;;  %v9763_v0 = vld [vmem:[#allocation14_spill] sm:$0xff] }
 0x358   : > { %v3728_v45 = vadd.f32 %v3727_v20, %v3726_v50  ;;  %v4336_v58 = vrot.slane %v4335_v21, 1  ;;  %v3522_v52 = vmul.f32 %v9762_v56, %v2577_v31  ;;  %v4359_v12 = vadd.f32 %v2577_v31, %v2571_v59 }
 0x359   : > { %v3722_v10 = vrot.slane %v3721_v7, 1  ;;  %v4330_v51 = vadd.f32 %v4329_v13, %v4328_v16  ;;  %v3745_v22 = vadd.f32 %v3521_v35, %v3517_v27  ;;  %v4353_v14 = vrot.slane %v4352_v38, 4  ;;  %v9765_v35 = vld [vmem:[#allocation85_spill] sm:$0xff] }
 0x35a   : > { %v3729_v41 = vrot.slane %v3728_v45, 1  ;;  %v4337_v4 = vadd.f32 %v4336_v58, %v4335_v21  ;;  %vm4125_vm2 = vcmask 1045509   ;;  %v3752_v3 = vadd.f32 %v3522_v52, %v3518_v25  ;;  %v9764_v21 = vld [vmem:[#allocation15_spill] sm:$0xff]  ;;  %v2593_v25 = vpop.f32.mrb[92].mxu1 }
 0x35b   : > { %v4360_v55 = vrot.slane %v4359_v12, 4  ;;  %v3723_v28 = vadd.f32 %v3722_v10, %v3721_v7  ;;  %v4727_v23 = vsel %vm4123_vm7, %v4330_v51, %v4726_v53  ;;  %v3746_v44 = vrot.slane %v3745_v22, 4 }
 0x35c   : > { %v4354_v34 = vadd.f32 %v4353_v14, %v4352_v38  ;;  %v3730_v43 = vadd.f32 %v3729_v41, %v3728_v45  ;;  %v4734_v37 = vsel %vm4123_vm7, %v4337_v4, %v4733_v6  ;;  %v3753_v59 = vrot.slane %v3752_v3, 4  ;;  %v2595_v45 = vpop.f32.mrb[93].mxu1 }
 0x35d   : > { %v4361_v31 = vadd.f32 %v4360_v55, %v4359_v12  ;;  %v4124_v24 = vsel %vm4123_vm7, %v3723_v28, %v4122_v40  ;;  %v3747_v50 = vadd.f32 %v3746_v44, %v3745_v22  ;;  %v3525_v16 = vmul.f32 %v9763_v0, %v2581_v46  ;;  %v9766_v40 = vld [vmem:[#allocation93_spill] sm:$0xff]  ;;  %v2599_v55 = vpop.f32.mrb[94].mxu1 }
 0x35e   : > { %v4355_v8 = vrot.slane %v4354_v34, 2  ;;  %v4134_v36 = vsel %vm4123_vm7, %v3730_v43, %v4133_v15  ;;  %v3754_v27 = vadd.f32 %v3753_v59, %v3752_v3  ;;  %v3526_v53 = vmul.f32 %v9764_v21, %v2583_v1 }
 0x35f   : > { %v4362_v20 = vrot.slane %v4361_v31, 2  ;;  %v3748_v7 = vrot.slane %v3747_v50, 2  ;;  %v3529_v38 = vmul.f32 %v9765_v35, %v2587_v29  ;;  %v4380_v6 = vadd.f32 %v2587_v29, %v2581_v46  ;;  %v2601_v29 = vpop.f32.mrb[95].mxu1 }
 0x360   : > { %v4356_v13 = vadd.f32 %v4355_v8, %v4354_v34  ;;  %v3755_v58 = vrot.slane %v3754_v27, 2  ;;  %v3530_v52 = vmul.f32 %v9766_v40, %v2589_v42  ;;  %v4387_v12 = vadd.f32 %v2589_v42, %v2583_v1 }
 0x361   : > { %v4363_v56 = vadd.f32 %v4362_v20, %v4361_v31  ;;  %v3749_v10 = vadd.f32 %v3748_v7, %v3747_v50  ;;  %v3773_v22 = vadd.f32 %v3529_v38, %v3525_v16  ;;  %v4381_v15 = vrot.slane %v4380_v6, 4 }
 0x362   : > { %v4357_v51 = vrot.slane %v4356_v13, 1  ;;  %v3756_v14 = vadd.f32 %v3755_v58, %v3754_v27  ;;  %v3780_v4 = vadd.f32 %v3530_v52, %v3526_v53  ;;  %v4388_v3 = vrot.slane %v4387_v12, 4  ;;  %v2605_v53 = vpop.f32.mrb[96].mxu1 }
 0x363   : > { %v4364_v41 = vrot.slane %v4363_v56, 1  ;;  %v3750_v28 = vrot.slane %v3749_v10, 1  ;;  %v3774_v34 = vrot.slane %v3773_v22, 4  ;;  %v4382_v46 = vadd.f32 %v4381_v15, %v4380_v6  ;;  %v2607_v6 = vpop.f32.mrb[97].mxu1  ;;  %v9767_v15 = vld [vmem:[#allocation89_spill] sm:$0xff] }
 0x364   : > { %v4358_v44 = vadd.f32 %v4357_v51, %v4356_v13  ;;  %v3757_v43 = vrot.slane %v3756_v14, 1  ;;  %v3781_v31 = vrot.slane %v3780_v4, 4  ;;  %v4389_v8 = vadd.f32 %v4388_v3, %v4387_v12 }
 0x365   : > { %v4365_v59 = vadd.f32 %v4364_v41, %v4363_v56  ;;  %v3751_v1 = vadd.f32 %v3750_v28, %v3749_v10  ;;  %v3775_v50 = vadd.f32 %v3774_v34, %v3773_v22  ;;  %v4383_v0 = vrot.slane %v4382_v46, 2  ;;  %v2611_v41 = vpop.f32.mrb[98].mxu1 }
 0x366   : > { %v4728_v42 = vsel %vm4125_vm2, %v4358_v44, %v4727_v23  ;;  %v3758_v16 = vadd.f32 %v3757_v43, %v3756_v14  ;;  %v3782_v20 = vadd.f32 %v3781_v31, %v3780_v4  ;;  %v4390_v21 = vrot.slane %v4389_v8, 2 }
 0x367   : > { %v4735_v27 = vsel %vm4125_vm2, %v4365_v59, %v4734_v37  ;;  %v4126_v7 = vsel %vm4125_vm2, %v3751_v1, %v4124_v24  ;;  %v3776_v13 = vrot.slane %v3775_v50, 2  ;;  %v4384_v35 = vadd.f32 %v4383_v0, %v4382_v46 }
 0x368   : > { %v3533_v38 = vmul.f32 %v8112_v26, %v2593_v25  ;;  %v4135_v58 = vsel %vm4125_vm2, %v3758_v16, %v4134_v36  ;;  %v3783_v56 = vrot.slane %v3782_v20, 2  ;;  %v4391_v40 = vadd.f32 %v4390_v21, %v4389_v8  ;;  %v2613_v36 = vpop.f32.mrb[99].mxu1 }
 0x369   : > { %v3534_v23 = vmul.f32 %v8114_v39, %v2595_v45  ;;  %v3777_v52 = vadd.f32 %v3776_v13, %v3775_v50  ;;  %v4385_v12 = vrot.slane %v4384_v35, 1  ;;  %v3537_v37 = vmul.f32 %v8119_v48, %v2599_v55  ;;  %v8516_v8 = vpop.f32.mrb[100].mxu1 }
 0x36a   : > { %v4408_v10 = vadd.f32 %v2599_v55, %v2593_v25  ;;  %v3784_v51 = vadd.f32 %v3783_v56, %v3782_v20  ;;  %v4392_v22 = vrot.slane %v4391_v40, 1  ;;  %v3538_v24 = vmul.f32 %v9767_v15, %v2601_v29  ;;  %v8520_v20 = vpop.f32.mrb[101].mxu1 }
 0x36b   : > { %v4415_v14 = vadd.f32 %v2601_v29, %v2595_v45  ;;  %v3778_v4 = vrot.slane %v3777_v52, 1  ;;  %v4386_v26 = vadd.f32 %v4385_v12, %v4384_v35  ;;  %v3801_v3 = vadd.f32 %v3537_v37, %v3533_v38 }
 0x36c   : > { %v4409_v28 = vrot.slane %v4408_v10, 4  ;;  %v3785_v44 = vrot.slane %v3784_v51, 1  ;;  %v4393_v34 = vadd.f32 %v4392_v22, %v4391_v40  ;;  %v3808_v39 = vadd.f32 %v3538_v24, %v3534_v23 }
 0x36d   : > { %v4416_v46 = vrot.slane %v4415_v14, 4  ;;  %v3779_v43 = vadd.f32 %v3778_v4, %v3777_v52  ;;  %v4729_v48 = vsel %vm4127_vm8, %v4386_v26, %v4728_v42  ;;  %v3802_v25 = vrot.slane %v3801_v3, 4 }
 0x36e   : > { %v4410_v55 = vadd.f32 %v4409_v28, %v4408_v10  ;;  %v3786_v59 = vadd.f32 %v3785_v44, %v3784_v51  ;;  %v4736_v31 = vsel %vm4127_vm8, %v4393_v34, %v4735_v27  ;;  %v3809_v45 = vrot.slane %v3808_v39, 4  ;;  %v4807_v34 = vld [vmem:[%s8532_s28] sm:$0xff] }
 0x36f   : > { %v4417_v29 = vadd.f32 %v4416_v46, %v4415_v14  ;;  %v4128_v1 = vsel %vm4127_vm8, %v3779_v43, %v4126_v7  ;;  %v3803_v50 = vadd.f32 %v3802_v25, %v3801_v3  ;;  %v3541_v16 = vmul.f32 %v8125_v18, %v2605_v53  ;;  %v2623_v18 = vpop.f32.mrb[102].mxu1 }
 0x370   : > { %v4411_v0 = vrot.slane %v4410_v55, 2  ;;  %v4136_v21 = vsel %vm4127_vm8, %v3786_v59, %v4135_v58  ;;  %v3810_v42 = vadd.f32 %v3809_v45, %v3808_v39  ;;  %v3542_v35 = vmul.f32 %v8127_v60, %v2607_v6  ;;  %v8526_v22 = vpop.f32.mrb[103].mxu1  ;;  %v4808_v59 = vld [vmem:[%s8532_s28 + $0x8] sm:$0xff] }
 0x371   : > { %v4418_v13 = vrot.slane %v4417_v29, 2  ;;  %v3804_v27 = vrot.slane %v3803_v50, 2  ;;  %v3545_v56 = vmul.f32 %v8129_v62, %v2611_v41  ;;  %v4436_v40 = vadd.f32 %v2611_v41, %v2605_v53  ;;  %v2629_v28 = vpop.f32.mrb[104].mxu1 }
 0x372   : > { %v4412_v38 = vadd.f32 %v4411_v0, %v4410_v55  ;;  %v3811_v23 = vrot.slane %v3810_v42, 2  ;;  %v3546_v52 = vmul.f32 %v8131_v5, %v2613_v36  ;;  %v4443_v12 = vadd.f32 %v2613_v36, %v2607_v6  ;;  %v2631_v43 = vpop.f32.mrb[105].mxu1 }
 0x373   : > { %v4419_v7 = vadd.f32 %v4418_v13, %v4417_v29  ;;  %v3805_v37 = vadd.f32 %v3804_v27, %v3803_v50  ;;  %v3829_v51 = vadd.f32 %v3545_v56, %v3541_v16  ;;  %v4437_v58 = vrot.slane %v4436_v40, 4  ;;  %v2635_v27 = vpop.f32.mrb[106].mxu1 }
 0x374   : > { %v4413_v10 = vrot.slane %v4412_v38, 1  ;;  %v3812_v60 = vadd.f32 %v3811_v23, %v3810_v42  ;;  %v3836_v53 = vadd.f32 %v3546_v52, %v3542_v35  ;;  %v4444_v15 = vrot.slane %v4443_v12, 4  ;;  %v2637_v23 = vpop.f32.mrb[107].mxu1 }
 0x375   : > { %v4420_v62 = vrot.slane %v4419_v7, 1  ;;  %v3806_v24 = vrot.slane %v3805_v37, 1  ;;  %v3830_v6 = vrot.slane %v3829_v51, 4  ;;  %v4438_v14 = vadd.f32 %v4437_v58, %v4436_v40 }
 0x376   : > { %v4414_v5 = vadd.f32 %v4413_v10, %v4412_v38  ;;  %v3813_v41 = vrot.slane %v3812_v60, 1  ;;  %v3837_v26 = vrot.slane %v3836_v53, 4  ;;  %v4445_v3 = vadd.f32 %v4444_v15, %v4443_v12  ;;  %v9771_v15 = vld [vmem:[#allocation5_spill] sm:$0xff] }
 0x377   : > { %v4421_v4 = vadd.f32 %v4420_v62, %v4419_v7  ;;  %v3807_v36 = vadd.f32 %v3806_v24, %v3805_v37  ;;  %v3831_v39 = vadd.f32 %v3830_v6, %v3829_v51  ;;  %v4439_v46 = vrot.slane %v4438_v14, 2  ;;  %v9770_v37 = vld [vmem:[#allocation4_spill] sm:$0xff]  ;;  %v8556_v6 = vpop.f32.mrb[108].mxu1 }
 0x378   : > { %v4730_v44 = vsel %vm4129_vm9, %v4414_v5, %v4729_v48  ;;  %v3814_v25 = vadd.f32 %v3813_v41, %v3812_v60  ;;  %v3838_v45 = vadd.f32 %v3837_v26, %v3836_v53  ;;  %v9768_v50 = vmov 1.0  }
 0x379   : > { %vm4831_vm10 = vcmp.gt.f32.partialorder %v4730_v44, 0.5  ;;  %v4737_v55 = vsel %vm4129_vm9, %v4421_v4, %v4736_v31  ;;  %v4130_v29 = vsel %vm4129_vm9, %v3807_v36, %v4128_v1  ;;  %v3832_v16 = vrot.slane %v3831_v39, 2  ;;  %v9769_v1 = vld [vmem:[#allocation87_spill] sm:$0xff]  ;;  %v8560_v36 = vpop.f32.mrb[109].mxu1 }
 0x37a   : > { %v4839_v0 = vsel %vm4831_vm10, 0.9, %v9768_v50  ;;  %vm4832_vm11 = vcmp.gt.f32.partialorder %v4737_v55, 0.5  ;;  %v4847_v42 = vsub.f32 %v4807_v34, %v4130_v29  ;;  %v4137_v48 = vsel %vm4129_vm9, %v3814_v25, %v4136_v21  ;;  %v9772_v34 = vld [vmem:[#allocation6_spill] sm:$0xff]  ;;  %v9773_v25 = vld [vmem:[#allocation7_spill] sm:$0xff] }
 0x37b   : > { %v4840_v13 = vsel %vm4832_vm11, 0.9, %v9768_v50  ;;  %v4440_v35 = vadd.f32 %v4439_v46, %v4438_v14  ;;  %v4848_v38 = vsub.f32 %v4808_v59, %v4137_v48  ;;  %v3833_v56 = vadd.f32 %v3832_v16, %v3831_v39  ;;  %v9774_v59 = vld [vmem:[#allocation51_spill] sm:$0xff] }
 0x37c   : > { %v3839_v40 = vrot.slane %v3838_v45, 2  ;;  %v4446_v31 = vrot.slane %v4445_v3, 2  ;;  %v4855_v7 = vmul.f32 %v4847_v42, %v4839_v0  ;;  %v3549_v12 = vmul.f32 %v9769_v1, %v8516_v8 }
 0x37d   : > { %v4441_v52 = vrot.slane %v4440_v35, 1  ;;  %v3550_v10 = vmul.f32 %v9770_v37, %v8520_v20  ;;  %v4856_v21 = vmul.f32 %v4848_v38, %v4840_v13  ;;  %v3834_v51 = vrot.slane %v3833_v56, 1  ;;  %v9775_v13 = vld [vmem:[#allocation9_spill] sm:$0xff] }
 0x37e   : > { %v3840_v58 = vadd.f32 %v3839_v40, %v3838_v45  ;;  %v4447_v60 = vadd.f32 %v4446_v31, %v4445_v3  ;;  %v4863_v62 = vadd.f32 %v4855_v7, %v4130_v29  ;;  %v3553_v24 = vmul.f32 %v9771_v15, %v2623_v18 }
 0x37f   : > { %v8552_v53 = vadd.f32 %v4441_v52, %v4440_v35  ;;  %v4464_v5 = vadd.f32 %v2623_v18, %v8516_v8  ;;  %v4864_v14 = vadd.f32 %v4856_v21, %v4137_v48  ;;  %v8558_v41 = vadd.f32 %v3834_v51, %v3833_v56  ;;  %v8572_v48 = vpop.f32.mrb[110].mxu1  ;;  %v9776_v56 = vld [vmem:[#allocation105_spill] sm:$0xff] }
 0x380   : > { %v3841_v4 = vrot.slane %v3840_v58, 1  ;;  %v4448_v26 = vrot.slane %v4447_v60, 1  ;;  %4871 = vst [vmem:[%s8550_s9] sm:$0xff] %v4863_v62  ;;  %v3857_v44 = vadd.f32 %v3553_v24, %v3549_v12  ;;  %v3554_v39 = vmul.f32 %v9772_v34, %v8526_v22 }
 0x381   : > { %v4465_v3 = vrot.slane %v4464_v5, 4  ;;  %v4471_v46 = vadd.f32 %v8526_v22, %v8520_v20  ;;  %4872 = vst [vmem:[%s8550_s9 + $0x8] sm:$0xff] %v4864_v14  ;;  %v3557_v55 = vmul.f32 %v9773_v25, %v2629_v28  ;;  %v3558_v45 = vmul.f32 %v9774_v59, %v2631_v43  ;;  %v8576_v22 = vpop.f32.mrb[111].mxu1 }
 0x382   : > { %v8568_v8 = vadd.f32 %v3841_v4, %v3840_v58  ;;  %v4449_v18 = vadd.f32 %v4448_v26, %v4447_v60  ;;  %v3858_v29 = vrot.slane %v3857_v44, 4  ;;  %v3864_v16 = vadd.f32 %v3554_v39, %v3550_v10  ;;  %v8578_v15 = vpop.f32.mrb[112].mxu1 }
 0x383   : > { %v4466_v0 = vadd.f32 %v4465_v3, %v4464_v5  ;;  %v4472_v42 = vrot.slane %v4471_v46, 4  ;;  %v3561_v35 = vmul.f32 %v9775_v13, %v2635_v27  ;;  %v4492_v38 = vadd.f32 %v2635_v27, %v2629_v28 }
 0x384   : > { %v3562_v40 = vmul.f32 %v9776_v56, %v2637_v23  ;;  %v4499_v20 = vadd.f32 %v2637_v23, %v2631_v43  ;;  %v3859_v31 = vadd.f32 %v3858_v29, %v3857_v44  ;;  %v3865_v52 = vrot.slane %v3864_v16, 4  ;;  %v2655_v23 = vpop.f32.mrb[113].mxu1 }
 0x385   : > { %v4467_v7 = vrot.slane %v4466_v0, 2  ;;  %v4473_v1 = vadd.f32 %v4472_v42, %v4471_v46  ;;  %v3885_v12 = vadd.f32 %v3561_v35, %v3557_v55  ;;  %v4493_v37 = vrot.slane %v4492_v38, 4 }
 0x386   : > { %v3892_v21 = vadd.f32 %v3562_v40, %v3558_v45  ;;  %v4500_v51 = vrot.slane %v4499_v20, 4  ;;  %v3860_v10 = vrot.slane %v3859_v31, 2  ;;  %v3866_v60 = vadd.f32 %v3865_v52, %v3864_v16  ;;  %v2659_v45 = vpop.f32.mrb[114].mxu1 }
 0x387   : > { %v4468_v58 = vadd.f32 %v4467_v7, %v4466_v0  ;;  %v4474_v62 = vrot.slane %v4473_v1, 2  ;;  %v3886_v28 = vrot.slane %v3885_v12, 4  ;;  %v4494_v27 = vadd.f32 %v4493_v37, %v4492_v38  ;;  %v2661_v13 = vpop.f32.mrb[115].mxu1 }
 0x388   : > { %v3893_v24 = vrot.slane %v3892_v21, 4  ;;  %v4501_v43 = vadd.f32 %v4500_v51, %v4499_v20  ;;  %v3861_v5 = vadd.f32 %v3860_v10, %v3859_v31  ;;  %v3867_v4 = vrot.slane %v3866_v60, 2  ;;  %v8587_v51 = vpop.f32.mrb[116].mxu1 }
 0x389   : > { %v4469_v14 = vrot.slane %v4468_v58, 1  ;;  %v4475_v26 = vadd.f32 %v4474_v62, %v4473_v1  ;;  %v3887_v44 = vadd.f32 %v3886_v28, %v3885_v12  ;;  %v4495_v3 = vrot.slane %v4494_v27, 2  ;;  %v8589_v62 = vpop.f32.mrb[117].mxu1 }
 0x38a   : > { %v3894_v34 = vadd.f32 %v3893_v24, %v3892_v21  ;;  %v4502_v39 = vrot.slane %v4501_v43, 2  ;;  %v3862_v46 = vrot.slane %v3861_v5, 1  ;;  %v3868_v55 = vadd.f32 %v3867_v4, %v3866_v60 }
 0x38b   : > { %v4470_v25 = vadd.f32 %v4469_v14, %v4468_v58  ;;  %v4476_v59 = vrot.slane %v4475_v26, 1  ;;  %v3888_v29 = vrot.slane %v3887_v44, 2  ;;  %v4496_v0 = vadd.f32 %v4495_v3, %v4494_v27 }
 0x38c   : > { %v3895_v16 = vrot.slane %v3894_v34, 2  ;;  %v4503_v42 = vadd.f32 %v4502_v39, %v4501_v43  ;;  %v3863_v35 = vadd.f32 %v3862_v46, %v3861_v5  ;;  %v3869_v56 = vrot.slane %v3868_v55, 1 }
 0x38d   : > { %v4752_v38 = vsel %vm4117_vm4, %v4470_v25, %v8552_v53  ;;  %v4477_v40 = vadd.f32 %v4476_v59, %v4475_v26  ;;  %v3889_v20 = vadd.f32 %v3888_v29, %v3887_v44  ;;  %v4497_v31 = vrot.slane %v4496_v0, 1  ;;  %v8607_v44 = vpop.f32.mrb[118].mxu1 }
 0x38e   : > { %v3896_v7 = vadd.f32 %v3895_v16, %v3894_v34  ;;  %v4504_v52 = vrot.slane %v4503_v42, 1  ;;  %v4152_v1 = vsel %vm4117_vm4, %v3863_v35, %v8558_v41  ;;  %v3870_v12 = vadd.f32 %v3869_v56, %v3868_v55  ;;  %v9779_v34 = vld [vmem:[#allocation66_spill] sm:$0xff]  ;;  %v8616_v46 = vpop.f32.mrb[119].mxu1  ;;  %v9781_v16 = vld [vmem:[#allocation13_spill] sm:$0xff] }
 0x38f   : > { %v4759_v37 = vsel %vm4117_vm4, %v4477_v40, %v4449_v18  ;;  %v3565_v21 = vmul.f32 %v8168_v49, %v8556_v6  ;;  %v3890_v10 = vrot.slane %v3889_v20, 1  ;;  %v4498_v58 = vadd.f32 %v4497_v31, %v4496_v0  ;;  %v9780_v0 = vld [vmem:[#allocation67_spill] sm:$0xff]  ;;  %v8621_v31 = vpop.f32.mrb[120].mxu1 }
 0x390   : > { %v3897_v53 = vrot.slane %v3896_v7, 1  ;;  %v4505_v60 = vadd.f32 %v4504_v52, %v4503_v42  ;;  %v4159_v28 = vsel %vm4117_vm4, %v3870_v12, %v8568_v8  ;;  %v3566_v41 = vmul.f32 %v8170_v30, %v8560_v36  ;;  %v9777_v8 = vld [vmem:[#allocation61_spill] sm:$0xff] }
 0x391   : > { %v3569_v18 = vmul.f32 %v8175_v11, %v8572_v48  ;;  %v4520_v49 = vadd.f32 %v8572_v48, %v8556_v6  ;;  %v3891_v27 = vadd.f32 %v3890_v10, %v3889_v20  ;;  %v4753_v24 = vsel %vm4119_vm5, %v4498_v58, %v4752_v38  ;;  %v9778_v48 = vld [vmem:[#allocation80_spill] sm:$0xff] }
 0x392   : > { %v3898_v43 = vadd.f32 %v3897_v53, %v3896_v7  ;;  %v8601_v5 = vsel %vm4119_vm5, %v4505_v60, %v4759_v37  ;;  %v3570_v26 = vmul.f32 %v9777_v8, %v8576_v22  ;;  %v4527_v30 = vadd.f32 %v8576_v22, %v8560_v36  ;;  %v8623_v37 = vpop.f32.mrb[121].mxu1 }
 0x393   : > { %v3913_v14 = vadd.f32 %v3569_v18, %v3565_v21  ;;  %v4521_v4 = vrot.slane %v4520_v49, 4  ;;  %v4153_v11 = vsel %vm4119_vm5, %v3891_v27, %v4152_v1  ;;  %v3573_v3 = vmul.f32 %v9778_v48, %v8578_v15 }
 0x394   : > { %v8611_v6 = vsel %vm4119_vm5, %v3898_v43, %v4159_v28  ;;  %v3574_v39 = vmul.f32 %v9779_v34, %v2655_v23  ;;  %v3920_v59 = vadd.f32 %v3570_v26, %v3566_v41  ;;  %v4528_v29 = vrot.slane %v4527_v30, 4 }
 0x395   : > { %v3914_v25 = vrot.slane %v3913_v14, 4  ;;  %v4522_v55 = vadd.f32 %v4521_v4, %v4520_v49  ;;  %v3577_v36 = vmul.f32 %v9780_v0, %v2659_v45  ;;  %v4548_v22 = vadd.f32 %v2659_v45, %v8578_v15  ;;  %v2683_v49 = vpop.f32.mrb[122].mxu1 }
 0x396   : > { %v3578_v42 = vmul.f32 %v9781_v16, %v2661_v13  ;;  %v4555_v35 = vadd.f32 %v2661_v13, %v2655_v23  ;;  %v3921_v40 = vrot.slane %v3920_v59, 4  ;;  %v4529_v20 = vadd.f32 %v4528_v29, %v4527_v30  ;;  %v2685_v8 = vpop.f32.mrb[123].mxu1 }
 0x397   : > { %v3915_v38 = vadd.f32 %v3914_v25, %v3913_v14  ;;  %v4523_v56 = vrot.slane %v4522_v55, 2  ;;  %v3941_v7 = vadd.f32 %v3577_v36, %v3573_v3  ;;  %v4549_v52 = vrot.slane %v4548_v22, 4 }
 0x398   : > { %v3948_v1 = vadd.f32 %v3578_v42, %v3574_v39  ;;  %v4556_v12 = vrot.slane %v4555_v35, 4  ;;  %v3922_v58 = vadd.f32 %v3921_v40, %v3920_v59  ;;  %v4530_v53 = vrot.slane %v4529_v20, 2 }
 0x399   : > { %v3916_v21 = vrot.slane %v3915_v38, 2  ;;  %v4524_v10 = vadd.f32 %v4523_v56, %v4522_v55  ;;  %v3942_v15 = vrot.slane %v3941_v7, 4  ;;  %v4550_v45 = vadd.f32 %v4549_v52, %v4548_v22  ;;  %v8626_v22 = vpop.f32.mrb[124].mxu1  ;;  %v9782_v52 = vld [vmem:[#allocation69_spill] sm:$0xff] }
 0x39a   : > { %v3949_v60 = vrot.slane %v3948_v1, 4  ;;  %v4557_v23 = vadd.f32 %v4556_v12, %v4555_v35  ;;  %v3923_v41 = vrot.slane %v3922_v58, 2  ;;  %v4531_v18 = vadd.f32 %v4530_v53, %v4529_v20  ;;  %v8628_v56 = vpop.f32.mrb[125].mxu1  ;;  %v9783_v53 = vld [vmem:[#allocation90_spill] sm:$0xff] }
 0x39b   : > { %v3917_v13 = vadd.f32 %v3916_v21, %v3915_v38  ;;  %v4525_v28 = vrot.slane %v4524_v10, 1  ;;  %v3943_v27 = vadd.f32 %v3942_v15, %v3941_v7  ;;  %v4551_v43 = vrot.slane %v4550_v45, 2 }
 0x39c   : > { %v3950_v14 = vadd.f32 %v3949_v60, %v3948_v1  ;;  %v4558_v4 = vrot.slane %v4557_v23, 2  ;;  %v3924_v48 = vadd.f32 %v3923_v41, %v3922_v58  ;;  %v4532_v3 = vrot.slane %v4531_v18, 1 }
 0x39d   : > { %v3918_v26 = vrot.slane %v3917_v13, 1  ;;  %v4526_v30 = vadd.f32 %v4525_v28, %v4524_v10  ;;  %v3944_v34 = vrot.slane %v3943_v27, 2  ;;  %v4552_v39 = vadd.f32 %v4551_v43, %v4550_v45  ;;  %v9784_v45 = vld [vmem:[#allocation72_spill] sm:$0xff]  ;;  %v9785_v43 = vld [vmem:[#allocation91_spill] sm:$0xff] }
 0x39e   : > { %v3951_v25 = vrot.slane %v3950_v14, 2  ;;  %v4559_v55 = vadd.f32 %v4558_v4, %v4557_v23  ;;  %v3925_v0 = vrot.slane %v3924_v48, 1  ;;  %v4533_v36 = vadd.f32 %v4532_v3, %v4531_v18 }
 0x39f   : > { %v3919_v59 = vadd.f32 %v3918_v26, %v3917_v13  ;;  %v4754_v29 = vsel %vm4121_vm6, %v4526_v30, %v4753_v24  ;;  %v3945_v16 = vadd.f32 %v3944_v34, %v3943_v27  ;;  %v4553_v42 = vrot.slane %v4552_v39, 1  ;;  %v9786_v26 = vld [vmem:[#allocation73_spill] sm:$0xff] }
 0x3a0   : > { %v3952_v35 = vadd.f32 %v3951_v25, %v3950_v14  ;;  %v4560_v38 = vrot.slane %v4559_v55, 1  ;;  %v3926_v20 = vadd.f32 %v3925_v0, %v3924_v48  ;;  %v4761_v7 = vsel %vm4121_vm6, %v4533_v36, %v8601_v5  ;;  %v8643_v5 = vpop.f32.mrb[126].mxu1  ;;  %v9787_v48 = vld [vmem:[#allocation106_spill] sm:$0xff] }
 0x3a1   : > { %v4154_v40 = vsel %vm4121_vm6, %v3919_v59, %v4153_v11  ;;  %v3581_v1 = vmul.f32 %v9782_v52, %v8587_v51  ;;  %v3946_v24 = vrot.slane %v3945_v16, 1  ;;  %v4554_v12 = vadd.f32 %v4553_v42, %v4552_v39  ;;  %v8649_v18 = vpop.f32.mrb[127].mxu1 }
 0x3a2   : > { %v3953_v21 = vrot.slane %v3952_v35, 1  ;;  %v4561_v10 = vadd.f32 %v4560_v38, %v4559_v55  ;;  %v4161_v58 = vsel %vm4121_vm6, %v3926_v20, %v8611_v6  ;;  %v3582_v15 = vmul.f32 %v9783_v53, %v8589_v62  ;;  %v8663_v59 = vpop.f32.mrb[128].mxu1 }
 0x3a3   : > { %v3585_v11 = vmul.f32 %v9784_v45, %v8607_v44  ;;  %v4576_v60 = vadd.f32 %v8607_v44, %v8587_v51  ;;  %v3947_v23 = vadd.f32 %v3946_v24, %v3945_v16  ;;  %v4755_v13 = vsel %vm4123_vm7, %v4554_v12, %v4754_v29  ;;  %v9788_v29 = vld [vmem:[#allocation81_spill] sm:$0xff]  ;;  %v8669_v42 = vpop.f32.mrb[129].mxu1 }
 0x3a4   : > { %v3954_v28 = vadd.f32 %v3953_v21, %v3952_v35  ;;  %v8647_v41 = vsel %vm4123_vm7, %v4561_v10, %v4761_v7  ;;  %v3586_v14 = vmul.f32 %v9785_v43, %v8616_v46  ;;  %v4583_v4 = vadd.f32 %v8616_v46, %v8589_v62  ;;  %v9789_v46 = vld [vmem:[#allocation107_spill] sm:$0xff]  ;;  %v8671_v53 = vpop.f32.mrb[130].mxu1 }
 0x3a5   : > { %v3969_v6 = vadd.f32 %v3585_v11, %v3581_v1  ;;  %v4577_v27 = vrot.slane %v4576_v60, 4  ;;  %v4155_v51 = vsel %vm4123_vm7, %v3947_v23, %v4154_v40  ;;  %v3589_v30 = vmul.f32 %v9786_v26, %v8621_v31 }
 0x3a6   : > { %v8657_v44 = vsel %vm4123_vm7, %v3954_v28, %v4161_v58  ;;  %v3590_v3 = vmul.f32 %v9787_v48, %v8623_v37  ;;  %v3976_v25 = vadd.f32 %v3586_v14, %v3582_v15  ;;  %v4584_v55 = vrot.slane %v4583_v4, 4 }
 0x3a7   : > { %v3970_v34 = vrot.slane %v3969_v6, 4  ;;  %v4578_v39 = vadd.f32 %v4577_v27, %v4576_v60  ;;  %v3593_v0 = vmul.f32 %v9788_v29, %v2683_v49  ;;  %v4604_v62 = vadd.f32 %v2683_v49, %v8621_v31 }
 0x3a8   : > { %v3594_v36 = vmul.f32 %v9789_v46, %v2685_v8  ;;  %v4611_v16 = vadd.f32 %v2685_v8, %v8623_v37  ;;  %v3977_v40 = vrot.slane %v3976_v25, 4  ;;  %v4585_v20 = vadd.f32 %v4584_v55, %v4583_v4  ;;  %v2774_v8 = vpop.f32.mrb[131].mxu1 }
 0x3a9   : > { %v3971_v35 = vadd.f32 %v3970_v34, %v3969_v6  ;;  %v4579_v38 = vrot.slane %v4578_v39, 2  ;;  %v3997_v7 = vadd.f32 %v3593_v0, %v3589_v30  ;;  %v4605_v52 = vrot.slane %v4604_v62, 4  ;;  %v8673_v48 = vpop.f32.mrb[132].mxu1 }
 0x3aa   : > { %v4004_v1 = vadd.f32 %v3594_v36, %v3590_v3  ;;  %v4612_v24 = vrot.slane %v4611_v16, 4  ;;  %v3978_v10 = vadd.f32 %v3977_v40, %v3976_v25  ;;  %v4586_v58 = vrot.slane %v4585_v20, 2  ;;  %v8675_v55 = vpop.f32.mrb[133].mxu1 }
 0x3ab   : > { %v3972_v12 = vrot.slane %v3971_v35, 2  ;;  %v4580_v21 = vadd.f32 %v4579_v38, %v4578_v39  ;;  %v3998_v31 = vrot.slane %v3997_v7, 4  ;;  %v4606_v49 = vadd.f32 %v4605_v52, %v4604_v62  ;;  %v9790_v52 = vld [vmem:[#allocation70_spill] sm:$0xff] }
 0x3ac   : > { %v4005_v15 = vrot.slane %v4004_v1, 4  ;;  %v4613_v37 = vadd.f32 %v4612_v24, %v4611_v16  ;;  %v3979_v60 = vrot.slane %v3978_v10, 2  ;;  %v4587_v23 = vadd.f32 %v4586_v58, %v4585_v20  ;;  %v8683_v24 = vpop.f32.mrb[134].mxu1 }
 0x3ad   : > { %v3973_v45 = vadd.f32 %v3972_v12, %v3971_v35  ;;  %v4581_v11 = vrot.slane %v4580_v21, 1  ;;  %v3999_v28 = vadd.f32 %v3998_v31, %v3997_v7  ;;  %v4607_v6 = vrot.slane %v4606_v49, 2  ;;  %v8685_v58 = vpop.f32.mrb[135].mxu1 }
 0x3ae   : > { %v4006_v27 = vadd.f32 %v4005_v15, %v4004_v1  ;;  %v4614_v43 = vrot.slane %v4613_v37, 2  ;;  %v3980_v26 = vadd.f32 %v3979_v60, %v3978_v10  ;;  %v4588_v30 = vrot.slane %v4587_v23, 1  ;;  %v9792_v15 = vld [vmem:[#allocation17_spill] sm:$0xff] }
 0x3af   : > { %v3974_v14 = vrot.slane %v3973_v45, 1  ;;  %v4582_v4 = vadd.f32 %v4581_v11, %v4580_v21  ;;  %v4000_v3 = vrot.slane %v3999_v28, 2  ;;  %v4608_v34 = vadd.f32 %v4607_v6, %v4606_v49 }
 0x3b0   : > { %v4007_v39 = vrot.slane %v4006_v27, 2  ;;  %v4615_v25 = vadd.f32 %v4614_v43, %v4613_v37  ;;  %v3981_v62 = vrot.slane %v3980_v26, 1  ;;  %v4589_v46 = vadd.f32 %v4588_v30, %v4587_v23  ;;  %v9795_v30 = vld [vmem:[#allocation20_spill] sm:$0xff] }
 0x3b1   : > { %v3975_v29 = vadd.f32 %v3974_v14, %v3973_v45  ;;  %v4756_v0 = vsel %vm4125_vm2, %v4582_v4, %v4755_v13  ;;  %v4001_v36 = vadd.f32 %v4000_v3, %v3999_v28  ;;  %v4609_v16 = vrot.slane %v4608_v34, 1  ;;  %v8703_v14 = vpop.f32.mrb[136].mxu1 }
 0x3b2   : > { %v4008_v35 = vadd.f32 %v4007_v39, %v4006_v27  ;;  %v4616_v38 = vrot.slane %v4615_v25, 1  ;;  %v3982_v20 = vadd.f32 %v3981_v62, %v3980_v26  ;;  %v4763_v7 = vsel %vm4125_vm2, %v4589_v46, %v8647_v41  ;;  %v9797_v46 = vld [vmem:[#allocation23_spill] sm:$0xff] }
 0x3b3   : > { %v4156_v40 = vsel %vm4125_vm2, %v3975_v29, %v4155_v51  ;;  %v3597_v1 = vmul.f32 %v9790_v52, %v8626_v22  ;;  %v4002_v12 = vrot.slane %v4001_v36, 1  ;;  %v4610_v21 = vadd.f32 %v4609_v16, %v4608_v34  ;;  %v9791_v51 = vld [vmem:[#allocation16_spill] sm:$0xff]  ;;  %v8713_v34 = vpop.f32.mrb[137].mxu1 }
 0x3b4   : > { %v4009_v13 = vrot.slane %v4008_v35, 1  ;;  %v4617_v10 = vadd.f32 %v4616_v38, %v4615_v25  ;;  %v4163_v31 = vsel %vm4125_vm2, %v3982_v20, %v8657_v44  ;;  %v3598_v49 = vmul.f32 %v9791_v51, %v8628_v56  ;;  %v9793_v44 = vld [vmem:[#allocation18_spill] sm:$0xff] }
 0x3b5   : > { %v3601_v41 = vmul.f32 %v9792_v15, %v8643_v5  ;;  %v4632_v37 = vadd.f32 %v8643_v5, %v8626_v22  ;;  %v4003_v45 = vadd.f32 %v4002_v12, %v4001_v36  ;;  %v4757_v11 = vsel %vm4127_vm8, %v4610_v21, %v4756_v0  ;;  %v9794_v5 = vld [vmem:[#allocation19_spill] sm:$0xff] }
 0x3b6   : > { %v4010_v60 = vadd.f32 %v4009_v13, %v4008_v35  ;;  %v8697_v23 = vsel %vm4127_vm8, %v4617_v10, %v4763_v7  ;;  %v3602_v27 = vmul.f32 %v9793_v44, %v8649_v18  ;;  %v4639_v43 = vadd.f32 %v8649_v18, %v8628_v56  ;;  %v9796_v56 = vld [vmem:[#allocation21_spill] sm:$0xff]  ;;  %v8721_v7 = vpop.f32.mrb[138].mxu1 }
 0x3b7   : > { %v4025_v28 = vadd.f32 %v3601_v41, %v3597_v1  ;;  %v4633_v6 = vrot.slane %v4632_v37, 4  ;;  %v4157_v4 = vsel %vm4127_vm8, %v4003_v45, %v4156_v40  ;;  %v3479_v26 = vmul.f32 %v9794_v5, %v8663_v59  ;;  %v8723_v13 = vpop.f32.mrb[139].mxu1 }
 0x3b8   : > { %v8707_v22 = vsel %vm4127_vm8, %v4010_v60, %v4163_v31  ;;  %v3480_v3 = vmul.f32 %v9795_v30, %v8669_v42  ;;  %v4032_v29 = vadd.f32 %v3602_v27, %v3598_v49  ;;  %v4640_v0 = vrot.slane %v4639_v43, 4  ;;  %v8725_v60 = vpop.f32.mrb[140].mxu1 }
 0x3b9   : > { %v4026_v39 = vrot.slane %v4025_v28, 4  ;;  %v4634_v25 = vadd.f32 %v4633_v6, %v4632_v37  ;;  %v3483_v18 = vmul.f32 %v9796_v56, %v8671_v53  ;;  %v4226_v62 = vadd.f32 %v8671_v53, %v8663_v59 }
 0x3ba   : > { %v3484_v36 = vmul.f32 %v9797_v46, %v2774_v8  ;;  %v4233_v16 = vadd.f32 %v2774_v8, %v8669_v42  ;;  %v4033_v40 = vrot.slane %v4032_v29, 4  ;;  %v4641_v20 = vadd.f32 %v4640_v0, %v4639_v43  ;;  %v8727_v43 = vpop.f32.mrb[141].mxu1 }
 0x3bb   : > { %v4027_v35 = vadd.f32 %v4026_v39, %v4025_v28  ;;  %v4635_v38 = vrot.slane %v4634_v25, 2  ;;  %v3619_v52 = vadd.f32 %v3483_v18, %v3479_v26  ;;  %v4227_v1 = vrot.slane %v4226_v62, 4 }
 0x3bc   : > { %v3626_v12 = vadd.f32 %v3484_v36, %v3480_v3  ;;  %v4234_v21 = vrot.slane %v4233_v16, 4  ;;  %v4034_v51 = vadd.f32 %v4033_v40, %v4032_v29  ;;  %v4642_v59 = vrot.slane %v4641_v20, 2 }
 0x3bd   : > { %v4028_v10 = vrot.slane %v4027_v35, 2  ;;  %v4636_v31 = vadd.f32 %v4635_v38, %v4634_v25  ;;  %v3620_v53 = vrot.slane %v3619_v52, 4  ;;  %v4228_v49 = vadd.f32 %v4227_v1, %v4226_v62  ;;  %v4811_v62 = vld [vmem:[%s8532_s28 + $0x20] sm:$0xff] }
 0x3be   : > { %v3627_v15 = vrot.slane %v3626_v12, 4  ;;  %v4235_v42 = vadd.f32 %v4234_v21, %v4233_v16  ;;  %v4035_v37 = vrot.slane %v4034_v51, 2  ;;  %v4643_v45 = vadd.f32 %v4642_v59, %v4641_v20  ;;  %v8731_v16 = vpop.f32.mrb[142].mxu1 }
 0x3bf   : > { %v4029_v8 = vadd.f32 %v4028_v10, %v4027_v35  ;;  %v4637_v41 = vrot.slane %v4636_v31, 1  ;;  %v3621_v28 = vadd.f32 %v3620_v53, %v3619_v52  ;;  %v4229_v6 = vrot.slane %v4228_v49, 2  ;;  %v8733_v20 = vpop.f32.mrb[143].mxu1 }
 0x3c0   : > { %v3628_v44 = vadd.f32 %v3627_v15, %v3626_v12  ;;  %v4236_v27 = vrot.slane %v4235_v42, 2  ;;  %v4036_v30 = vadd.f32 %v4035_v37, %v4034_v51  ;;  %v4644_v3 = vrot.slane %v4643_v45, 1 }
 0x3c1   : > { %v4030_v5 = vrot.slane %v4029_v8, 1  ;;  %v4638_v26 = vadd.f32 %v4637_v41, %v4636_v31  ;;  %v3622_v39 = vrot.slane %v3621_v28, 2  ;;  %v4230_v25 = vadd.f32 %v4229_v6, %v4228_v49 }
 0x3c2   : > { %v3629_v29 = vrot.slane %v3628_v44, 2  ;;  %v4237_v0 = vadd.f32 %v4236_v27, %v4235_v42  ;;  %v4037_v46 = vrot.slane %v4036_v30, 1  ;;  %v4645_v36 = vadd.f32 %v4644_v3, %v4643_v45  ;;  %v9800_v27 = vld [vmem:[#allocation26_spill] sm:$0xff] }
 0x3c3   : > { %v4031_v56 = vadd.f32 %v4030_v5, %v4029_v8  ;;  %v4758_v18 = vsel %vm4129_vm9, %v4638_v26, %v4757_v11  ;;  %v3623_v35 = vadd.f32 %v3622_v39, %v3621_v28  ;;  %v4231_v38 = vrot.slane %v4230_v25, 1  ;;  %v4812_v11 = vld [vmem:[%s8532_s28 + $0x28] sm:$0xff]  ;;  %v9801_v39 = vld [vmem:[#allocation27_spill] sm:$0xff] }
 0x3c4   : > { %vm4835_vm12 = vcmp.gt.f32.partialorder %v4758_v18, 0.5  ;;  %v3630_v40 = vadd.f32 %v3629_v29, %v3628_v44  ;;  %v4038_v12 = vadd.f32 %v4037_v46, %v4036_v30  ;;  %v4765_v21 = vsel %vm4129_vm9, %v4645_v36, %v8697_v23  ;;  %v9798_v23 = vld [vmem:[#allocation74_spill] sm:$0xff] }
 0x3c5   : > { %v4158_v52 = vsel %vm4129_vm9, %v4031_v56, %v4157_v4  ;;  %v4843_v1 = vsel %vm4835_vm12, 0.9, %v9768_v50  ;;  %vm4836_vm13 = vcmp.gt.f32.partialorder %v4765_v21, 0.5  ;;  %v3624_v31 = vrot.slane %v3623_v35, 1  ;;  %v8745_v4 = vpop.f32.mrb[144].mxu1  ;;  %v9802_v56 = vld [vmem:[#allocation29_spill] sm:$0xff] }
 0x3c6   : > { %v4851_v10 = vsub.f32 %v4811_v62, %v4158_v52  ;;  %v8740_v51 = vadd.f32 %v4231_v38, %v4230_v25  ;;  %v4165_v59 = vsel %vm4129_vm9, %v4038_v12, %v8707_v22  ;;  %v4844_v53 = vsel %vm4836_vm13, 0.9, %v9768_v50  ;;  %v8751_v45 = vpop.f32.mrb[145].mxu1  ;;  %v9799_v22 = vld [vmem:[#allocation24_spill] sm:$0xff]  ;;  %v9803_v62 = vld [vmem:[#allocation75_spill] sm:$0xff] }
 0x3c7   : > { %v3631_v49 = vrot.slane %v3630_v40, 1  ;;  %v4238_v15 = vrot.slane %v4237_v0, 1  ;;  %v4852_v8 = vsub.f32 %v4812_v11, %v4165_v59  ;;  %v8747_v41 = vadd.f32 %v3624_v31, %v3623_v35  ;;  %v8771_v36 = vpop.f32.mrb[146].mxu1 }
 0x3c8   : > { %v4859_v42 = vmul.f32 %v4851_v10, %v4843_v1  ;;  %v3487_v37 = vmul.f32 %v9798_v23, %v8673_v48  ;;  %v3488_v44 = vmul.f32 %v9799_v22, %v8675_v55  ;;  %v3491_v5 = vmul.f32 %v9800_v27, %v8683_v24 }
 0x3c9   : > { %v8753_v28 = vadd.f32 %v3631_v49, %v3630_v40  ;;  %v8755_v6 = vadd.f32 %v4238_v15, %v4237_v0  ;;  %v4860_v30 = vmul.f32 %v4852_v8, %v4844_v53  ;;  %v4254_v3 = vadd.f32 %v8683_v24, %v8673_v48  ;;  %v9804_v24 = vld [vmem:[#allocation30_spill] sm:$0xff] }
 0x3ca   : > { %v4867_v26 = vadd.f32 %v4859_v42, %v4158_v52  ;;  %v3492_v25 = vmul.f32 %v9801_v39, %v8685_v58  ;;  %v3647_v29 = vadd.f32 %v3491_v5, %v3487_v37  ;;  %v4261_v0 = vadd.f32 %v8685_v58, %v8675_v55  ;;  %v8776_v52 = vpop.f32.mrb[147].mxu1  ;;  %v9805_v58 = vld [vmem:[#allocation32_spill] sm:$0xff] }
 0x3cb   : > { %v3495_v18 = vmul.f32 %v9802_v56, %v8703_v14  ;;  %v3496_v46 = vmul.f32 %v9803_v62, %v8713_v34  ;;  %v4868_v35 = vadd.f32 %v4860_v30, %v4165_v59  ;;  %v4255_v38 = vrot.slane %v4254_v3, 4  ;;  %v8785_v8 = vpop.f32.mrb[148].mxu1 }
 0x3cc   : > { %4875 = vst [vmem:[%s8550_s9 + $0x20] sm:$0xff] %v4867_v26  ;;  %v3654_v48 = vadd.f32 %v3492_v25, %v3488_v44  ;;  %v3499_v40 = vmul.f32 %v9804_v24, %v8721_v7  ;;  %v3648_v1 = vrot.slane %v3647_v29, 4  ;;  %v4262_v12 = vrot.slane %v4261_v0, 4 }
 0x3cd   : > { %v4282_v55 = vadd.f32 %v8721_v7, %v8703_v14  ;;  %v3500_v21 = vmul.f32 %v9805_v58, %v8723_v13  ;;  %4876 = vst [vmem:[%s8550_s9 + $0x28] sm:$0xff] %v4868_v35  ;;  %v4256_v11 = vadd.f32 %v4255_v38, %v4254_v3  ;;  %v4289_v59 = vadd.f32 %v8723_v13, %v8713_v34  ;;  %v8787_v7 = vpop.f32.mrb[149].mxu1 }
 0x3ce   : > { %v3655_v10 = vrot.slane %v3654_v48, 4  ;;  %v3675_v31 = vadd.f32 %v3499_v40, %v3495_v18  ;;  %v3649_v53 = vadd.f32 %v3648_v1, %v3647_v29  ;;  %v4263_v49 = vadd.f32 %v4262_v12, %v4261_v0  ;;  %v8789_v56 = vpop.f32.mrb[150].mxu1 }
 0x3cf   : > { %v4283_v15 = vrot.slane %v4282_v55, 4  ;;  %v3682_v42 = vadd.f32 %v3500_v21, %v3496_v46  ;;  %v4257_v23 = vrot.slane %v4256_v11, 2  ;;  %v4290_v14 = vrot.slane %v4289_v59, 4  ;;  %v8791_v38 = vpop.f32.mrb[151].mxu1 }
 0x3d0   : > { %v3656_v37 = vadd.f32 %v3655_v10, %v3654_v48  ;;  %v3676_v22 = vrot.slane %v3675_v31, 4  ;;  %v3650_v44 = vrot.slane %v3649_v53, 2  ;;  %v4264_v27 = vrot.slane %v4263_v49, 2 }
 0x3d1   : > { %v4284_v5 = vadd.f32 %v4283_v15, %v4282_v55  ;;  %v3683_v26 = vrot.slane %v3682_v42, 4  ;;  %v4258_v30 = vadd.f32 %v4257_v23, %v4256_v11  ;;  %v4291_v34 = vadd.f32 %v4290_v14, %v4289_v59 }
 0x3d2   : > { %v3657_v3 = vrot.slane %v3656_v37, 2  ;;  %v3677_v39 = vadd.f32 %v3676_v22, %v3675_v31  ;;  %v3651_v13 = vadd.f32 %v3650_v44, %v3649_v53  ;;  %v4265_v25 = vadd.f32 %v4264_v27, %v4263_v49  ;;  %v8793_v53 = vpop.f32.mrb[152].mxu1 }
 0x3d3   : > { %v4285_v29 = vrot.slane %v4284_v5, 2  ;;  %v3684_v0 = vadd.f32 %v3683_v26, %v3682_v42  ;;  %v4259_v18 = vrot.slane %v4258_v30, 1  ;;  %v4292_v35 = vrot.slane %v4291_v34, 2 }
 0x3d4   : > { %v3658_v62 = vadd.f32 %v3657_v3, %v3656_v37  ;;  %v3678_v46 = vrot.slane %v3677_v39, 2  ;;  %v3652_v48 = vrot.slane %v3651_v13, 1  ;;  %v4266_v24 = vrot.slane %v4265_v25, 1  ;;  %v8797_v37 = vpop.f32.mrb[153].mxu1 }
 0x3d5   : > { %v4286_v40 = vadd.f32 %v4285_v29, %v4284_v5  ;;  %v3685_v1 = vrot.slane %v3684_v0, 2  ;;  %v4260_v12 = vadd.f32 %v4259_v18, %v4258_v30  ;;  %v4293_v21 = vadd.f32 %v4292_v35, %v4291_v34  ;;  %v8814_v29 = vpop.f32.mrb[154].mxu1 }
 0x3d6   : > { %v3659_v55 = vrot.slane %v3658_v62, 1  ;;  %v3679_v58 = vadd.f32 %v3678_v46, %v3677_v39  ;;  %v3653_v11 = vadd.f32 %v3652_v48, %v3651_v13  ;;  %v4267_v10 = vadd.f32 %v4266_v24, %v4265_v25  ;;  %v9807_v13 = vld [vmem:[#allocation94_spill] sm:$0xff]  ;;  %v9808_v25 = vld [vmem:[#allocation35_spill] sm:$0xff]  ;;  %v8826_v35 = vpop.f32.mrb[155].mxu1 }
 0x3d7   : > { %v4287_v31 = vrot.slane %v4286_v40, 1  ;;  %v3686_v59 = vadd.f32 %v3685_v1, %v3684_v0  ;;  %v4738_v49 = vsel %vm4117_vm4, %v4260_v12, %v8740_v51  ;;  %v4294_v23 = vrot.slane %v4293_v21, 1  ;;  %v9806_v51 = vld [vmem:[#allocation33_spill] sm:$0xff] }
 0x3d8   : > { %v3660_v15 = vadd.f32 %v3659_v55, %v3658_v62  ;;  %v3680_v42 = vrot.slane %v3679_v58, 1  ;;  %v4138_v22 = vsel %vm4117_vm4, %v3653_v11, %v8747_v41  ;;  %v4745_v14 = vsel %vm4117_vm4, %v4267_v10, %v8755_v6  ;;  %v9809_v62 = vld [vmem:[#allocation95_spill] sm:$0xff]  ;;  %v9810_v1 = vld [vmem:[#allocation37_spill] sm:$0xff] }
 0x3d9   : > { %v4288_v44 = vadd.f32 %v4287_v31, %v4286_v40  ;;  %v3687_v27 = vrot.slane %v3686_v59, 1  ;;  %v4295_v30 = vadd.f32 %v4294_v23, %v4293_v21  ;;  %v3503_v3 = vmul.f32 %v9806_v51, %v8725_v60  ;;  %v9811_v21 = vld [vmem:[#allocation96_spill] sm:$0xff] }
 0x3da   : > { %v4145_v5 = vsel %vm4117_vm4, %v3660_v15, %v8753_v28  ;;  %v3681_v26 = vadd.f32 %v3680_v42, %v3679_v58  ;;  %v3504_v41 = vmul.f32 %v9807_v13, %v8727_v43  ;;  %v3507_v6 = vmul.f32 %v9808_v25, %v8731_v16 }
 0x3db   : > { %v8808_v39 = vsel %vm4119_vm5, %v4288_v44, %v4738_v49  ;;  %v3688_v34 = vadd.f32 %v3687_v27, %v3686_v59  ;;  %v8820_v28 = vsel %vm4119_vm5, %v4295_v30, %v4745_v14  ;;  %v4310_v18 = vadd.f32 %v8731_v16, %v8725_v60  ;;  %v9812_v16 = vld [vmem:[#allocation39_spill] sm:$0xff]  ;;  %v9813_v49 = vld [vmem:[#allocation97_spill] sm:$0xff] }
 0x3dc   : > { %v8817_v0 = vsel %vm4119_vm5, %v3681_v26, %v4138_v22  ;;  %v3508_v46 = vmul.f32 %v9809_v62, %v8733_v20  ;;  %v3703_v24 = vadd.f32 %v3507_v6, %v3503_v3  ;;  %v4317_v40 = vadd.f32 %v8733_v20, %v8727_v43  ;;  %v8843_v43 = vpop.f32.mrb[156].mxu1 }
 0x3dd   : > { %v8829_v48 = vsel %vm4119_vm5, %v3688_v34, %v4145_v5  ;;  %v3511_v12 = vmul.f32 %v9810_v1, %v8745_v4  ;;  %v4311_v55 = vrot.slane %v4310_v18, 4  ;;  %v3512_v60 = vmul.f32 %v9811_v21, %v8751_v45  ;;  %v8847_v14 = vpop.f32.mrb[157].mxu1 }
 0x3de   : > { %v3710_v58 = vadd.f32 %v3508_v46, %v3504_v41  ;;  %v3515_v11 = vmul.f32 %v9812_v16, %v8771_v36  ;;  %v3704_v10 = vrot.slane %v3703_v24, 4  ;;  %v4318_v31 = vrot.slane %v4317_v40, 4  ;;  %v8849_v25 = vpop.f32.mrb[158].mxu1 }
 0x3df   : > { %v4338_v59 = vadd.f32 %v8771_v36, %v8745_v4  ;;  %v3516_v15 = vmul.f32 %v9813_v49, %v8776_v52  ;;  %v4312_v20 = vadd.f32 %v4311_v55, %v4310_v18  ;;  %v4345_v22 = vadd.f32 %v8776_v52, %v8751_v45  ;;  %v8851_v52 = vpop.f32.mrb[159].mxu1 }
 0x3e0   : > { %v3711_v42 = vrot.slane %v3710_v58, 4  ;;  %v3731_v23 = vadd.f32 %v3515_v11, %v3511_v12  ;;  %v3705_v44 = vadd.f32 %v3704_v10, %v3703_v24  ;;  %v4319_v27 = vadd.f32 %v4318_v31, %v4317_v40  ;;  %v8853_v31 = vpop.f32.mrb[160].mxu1 }
 0x3e1   : > { %v4339_v5 = vrot.slane %v4338_v59, 4  ;;  %v3738_v26 = vadd.f32 %v3516_v15, %v3512_v60  ;;  %v4313_v30 = vrot.slane %v4312_v20, 2  ;;  %v4346_v36 = vrot.slane %v4345_v22, 4 }
 0x3e2   : > { %v3712_v51 = vadd.f32 %v3711_v42, %v3710_v58  ;;  %v3732_v4 = vrot.slane %v3731_v23, 4  ;;  %v3706_v3 = vrot.slane %v3705_v44, 2  ;;  %v4320_v34 = vrot.slane %v4319_v27, 2  ;;  %v8855_v42 = vpop.f32.mrb[161].mxu1 }
 0x3e3   : > { %v4340_v13 = vadd.f32 %v4339_v5, %v4338_v59  ;;  %v3739_v41 = vrot.slane %v3738_v26, 4  ;;  %v4314_v6 = vadd.f32 %v4313_v30, %v4312_v20  ;;  %v4347_v45 = vadd.f32 %v4346_v36, %v4345_v22 }
 0x3e4   : > { %v3713_v18 = vrot.slane %v3712_v51, 2  ;;  %v3733_v62 = vadd.f32 %v3732_v4, %v3731_v23  ;;  %v3707_v46 = vadd.f32 %v3706_v3, %v3705_v44  ;;  %v4321_v24 = vadd.f32 %v4320_v34, %v4319_v27 }
 0x3e5   : > { %v4341_v40 = vrot.slane %v4340_v13, 2  ;;  %v3740_v1 = vadd.f32 %v3739_v41, %v3738_v26  ;;  %v4315_v12 = vrot.slane %v4314_v6, 1  ;;  %v4348_v21 = vrot.slane %v4347_v45, 2 }
 0x3e6   : > { %v3714_v55 = vadd.f32 %v3713_v18, %v3712_v51  ;;  %v3734_v58 = vrot.slane %v3733_v62, 2  ;;  %v3708_v60 = vrot.slane %v3707_v46, 1  ;;  %v4322_v16 = vrot.slane %v4321_v24, 1 }
 0x3e7   : > { %v4342_v11 = vadd.f32 %v4341_v40, %v4340_v13  ;;  %v3741_v10 = vrot.slane %v3740_v1, 2  ;;  %v4316_v59 = vadd.f32 %v4315_v12, %v4314_v6  ;;  %v4349_v20 = vadd.f32 %v4348_v21, %v4347_v45  ;;  %v8863_v13 = vpop.f32.mrb[162].mxu1  ;;  %v9816_v40 = vld [vmem:[#allocation22_spill] sm:$0xff] }
 0x3e8   : > { %v3715_v49 = vrot.slane %v3714_v55, 1  ;;  %v3735_v15 = vadd.f32 %v3734_v58, %v3733_v62  ;;  %v3709_v23 = vadd.f32 %v3708_v60, %v3707_v46  ;;  %v4323_v22 = vadd.f32 %v4322_v16, %v4321_v24  ;;  %v8869_v45 = vpop.f32.mrb[163].mxu1  ;;  %v9817_v58 = vld [vmem:[#allocation43_spill] sm:$0xff] }
 0x3e9   : > { %v4343_v44 = vrot.slane %v4342_v11, 1  ;;  %v3742_v27 = vadd.f32 %v3741_v10, %v3740_v1  ;;  %v4740_v5 = vsel %vm4121_vm6, %v4316_v59, %v8808_v39  ;;  %v4350_v51 = vrot.slane %v4349_v20, 1  ;;  %v9814_v39 = vld [vmem:[#allocation41_spill] sm:$0xff]  ;;  %v9818_v10 = vld [vmem:[#allocation99_spill] sm:$0xff] }
 0x3ea   : > { %v3716_v26 = vadd.f32 %v3715_v49, %v3714_v55  ;;  %v3736_v30 = vrot.slane %v3735_v15, 1  ;;  %v4140_v4 = vsel %vm4121_vm6, %v3709_v23, %v8817_v0  ;;  %v4747_v36 = vsel %vm4121_vm6, %v4323_v22, %v8820_v28  ;;  %v9815_v28 = vld [vmem:[#allocation98_spill] sm:$0xff]  ;;  %v8895_v49 = vpop.f32.mrb[164].mxu1  ;;  %v9819_v23 = vld [vmem:[#allocation45_spill] sm:$0xff] }
 0x3eb   : > { %v4344_v3 = vadd.f32 %v4343_v44, %v4342_v11  ;;  %v3743_v34 = vrot.slane %v3742_v27, 1  ;;  %v4351_v18 = vadd.f32 %v4350_v51, %v4349_v20  ;;  %v3519_v62 = vmul.f32 %v9814_v39, %v8785_v8  ;;  %v8901_v44 = vpop.f32.mrb[165].mxu1 }
 0x3ec   : > { %v4147_v41 = vsel %vm4121_vm6, %v3716_v26, %v8829_v48  ;;  %v3737_v6 = vadd.f32 %v3736_v30, %v3735_v15  ;;  %v3520_v24 = vmul.f32 %v9815_v28, %v8787_v7  ;;  %v3523_v1 = vmul.f32 %v9816_v40, %v8789_v56 }
 0x3ed   : > { %v8872_v46 = vsel %vm4123_vm7, %v4344_v3, %v4740_v5  ;;  %v3744_v0 = vadd.f32 %v3743_v34, %v3742_v27  ;;  %v8882_v48 = vsel %vm4123_vm7, %v4351_v18, %v4747_v36  ;;  %v4366_v55 = vadd.f32 %v8789_v56, %v8785_v8  ;;  %v9820_v56 = vld [vmem:[#allocation100_spill] sm:$0xff] }
 0x3ee   : > { %v8879_v12 = vsel %vm4123_vm7, %v3737_v6, %v4140_v4  ;;  %v3524_v21 = vmul.f32 %v9817_v58, %v8791_v38  ;;  %v3759_v16 = vadd.f32 %v3523_v1, %v3519_v62  ;;  %v4373_v11 = vadd.f32 %v8791_v38, %v8787_v7  ;;  %v9821_v38 = vld [vmem:[#allocation25_spill] sm:$0xff] }
 0x3ef   : > { %v8889_v60 = vsel %vm4123_vm7, %v3744_v0, %v4147_v41  ;;  %v3527_v59 = vmul.f32 %v9818_v10, %v8793_v53  ;;  %v4367_v15 = vrot.slane %v4366_v55, 4  ;;  %v3528_v8 = vmul.f32 %v9819_v23, %v8797_v37  ;;  %v8909_v18 = vpop.f32.mrb[166].mxu1 }
 0x3f0   : > { %v3766_v20 = vadd.f32 %v3524_v21, %v3520_v24  ;;  %v3531_v22 = vmul.f32 %v9820_v56, %v8814_v29  ;;  %v3760_v27 = vrot.slane %v3759_v16, 4  ;;  %v4374_v5 = vrot.slane %v4373_v11, 4 }
 0x3f1   : > { %v4394_v7 = vadd.f32 %v8814_v29, %v8793_v53  ;;  %v3532_v26 = vmul.f32 %v9821_v38, %v8826_v35  ;;  %v4368_v30 = vadd.f32 %v4367_v15, %v4366_v55  ;;  %v4401_v36 = vadd.f32 %v8826_v35, %v8797_v37  ;;  %v8911_v53 = vpop.f32.mrb[167].mxu1 }
 0x3f2   : > { %v3767_v51 = vrot.slane %v3766_v20, 4  ;;  %v3787_v4 = vadd.f32 %v3531_v22, %v3527_v59  ;;  %v3761_v3 = vadd.f32 %v3760_v27, %v3759_v16  ;;  %v4375_v34 = vadd.f32 %v4374_v5, %v4373_v11 }
 0x3f3   : > { %v4395_v41 = vrot.slane %v4394_v7, 4  ;;  %v3794_v6 = vadd.f32 %v3532_v26, %v3528_v8  ;;  %v4369_v39 = vrot.slane %v4368_v30, 2  ;;  %v4402_v28 = vrot.slane %v4401_v36, 4  ;;  %v8913_v59 = vpop.f32.mrb[168].mxu1 }
 0x3f4   : > { %v3768_v62 = vadd.f32 %v3767_v51, %v3766_v20  ;;  %v3788_v0 = vrot.slane %v3787_v4, 4  ;;  %v3762_v29 = vrot.slane %v3761_v3, 2  ;;  %v4376_v24 = vrot.slane %v4375_v34, 2  ;;  %v8915_v56 = vpop.f32.mrb[169].mxu1 }
 0x3f5   : > { %v4396_v40 = vadd.f32 %v4395_v41, %v4394_v7  ;;  %v3795_v1 = vrot.slane %v3794_v6, 4  ;;  %v4370_v55 = vadd.f32 %v4369_v39, %v4368_v30  ;;  %v4403_v37 = vadd.f32 %v4402_v28, %v4401_v36 }
 0x3f6   : > { %v3769_v58 = vrot.slane %v3768_v62, 2  ;;  %v3789_v21 = vadd.f32 %v3788_v0, %v3787_v4  ;;  %v3763_v35 = vadd.f32 %v3762_v29, %v3761_v3  ;;  %v4377_v16 = vadd.f32 %v4376_v24, %v4375_v34 }
 0x3f7   : > { %v4397_v11 = vrot.slane %v4396_v40, 2  ;;  %v3796_v10 = vadd.f32 %v3795_v1, %v3794_v6  ;;  %v4371_v15 = vrot.slane %v4370_v55, 1  ;;  %v4404_v8 = vrot.slane %v4403_v37, 2 }
 0x3f8   : > { %v3770_v20 = vadd.f32 %v3769_v58, %v3768_v62  ;;  %v3790_v23 = vrot.slane %v3789_v21, 2  ;;  %v3764_v22 = vrot.slane %v3763_v35, 1  ;;  %v4378_v27 = vrot.slane %v4377_v16, 1 }
 0x3f9   : > { %v4398_v5 = vadd.f32 %v4397_v11, %v4396_v40  ;;  %v3797_v7 = vrot.slane %v3796_v10, 2  ;;  %v4372_v38 = vadd.f32 %v4371_v15, %v4370_v55  ;;  %v4405_v51 = vadd.f32 %v4404_v8, %v4403_v37 }
 0x3fa   : > { %v3771_v26 = vrot.slane %v3770_v20, 1  ;;  %v3791_v30 = vadd.f32 %v3790_v23, %v3789_v21  ;;  %v3765_v4 = vadd.f32 %v3764_v22, %v3763_v35  ;;  %v4379_v36 = vadd.f32 %v4378_v27, %v4377_v16  ;;  %v8917_v41 = vpop.f32.mrb[170].mxu1 }
 0x3fb   : > { %v4399_v3 = vrot.slane %v4398_v5, 1  ;;  %v3798_v34 = vadd.f32 %v3797_v7, %v3796_v10  ;;  %v4742_v6 = vsel %vm4125_vm2, %v4372_v38, %v8872_v46  ;;  %v4406_v0 = vrot.slane %v4405_v51, 1  ;;  %v8921_v28 = vpop.f32.mrb[171].mxu1  ;;  %v9822_v10 = vld [vmem:[#allocation47_spill] sm:$0xff] }
 0x3fc   : > { %v3772_v39 = vadd.f32 %v3771_v26, %v3770_v20  ;;  %v3792_v62 = vrot.slane %v3791_v30, 1  ;;  %v4142_v29 = vsel %vm4125_vm2, %v3765_v4, %v8879_v12  ;;  %v4749_v24 = vsel %vm4125_vm2, %v4379_v36, %v8882_v48 }
 0x3fd   : > { %v4400_v40 = vadd.f32 %v4399_v3, %v4398_v5  ;;  %v3799_v1 = vrot.slane %v3798_v34, 1  ;;  %v4407_v21 = vadd.f32 %v4406_v0, %v4405_v51  ;;  %v3535_v46 = vmul.f32 %v8330_v47, %v8843_v43 }
 0x3fe   : > { %v4149_v55 = vsel %vm4125_vm2, %v3772_v39, %v8889_v60  ;;  %v3793_v58 = vadd.f32 %v3792_v62, %v3791_v30  ;;  %v3536_v12 = vmul.f32 %v8332_v33, %v8847_v14  ;;  %v3539_v48 = vmul.f32 %v8337_v61, %v8849_v25  ;;  %v8938_v16 = vpop.f32.mrb[172].mxu1  ;;  %v9824_v30 = vld [vmem:[#allocation49_spill] sm:$0xff] }
 0x3ff   : > { %v8932_v37 = vsel %vm4127_vm8, %v4400_v40, %v4742_v6  ;;  %v3800_v35 = vadd.f32 %v3799_v1, %v3798_v34  ;;  %v8944_v60 = vsel %vm4127_vm8, %v4407_v21, %v4749_v24  ;;  %v4422_v47 = vadd.f32 %v8849_v25, %v8843_v43  ;;  %v8950_v20 = vpop.f32.mrb[173].mxu1  ;;  %v9823_v25 = vld [vmem:[#allocation101_spill] sm:$0xff] }
 0x400   : > { %v8941_v11 = vsel %vm4127_vm8, %v3793_v58, %v4142_v29  ;;  %v3540_v15 = vmul.f32 %v9822_v10, %v8851_v52  ;;  %v3815_v61 = vadd.f32 %v3539_v48, %v3535_v46  ;;  %v4429_v23 = vadd.f32 %v8851_v52, %v8847_v14 }
 0x401   : > { %v8953_v33 = vsel %vm4127_vm8, %v3800_v35, %v4149_v55  ;;  %v3543_v8 = vmul.f32 %v8343_v2, %v8853_v31  ;;  %v4423_v22 = vrot.slane %v4422_v47, 4  ;;  %v3544_v43 = vmul.f32 %v8345_v9, %v8855_v42 }
 0x402   : > { %v3822_v27 = vadd.f32 %v3540_v15, %v3536_v12  ;;  %v3547_v5 = vmul.f32 %v9823_v25, %v8863_v13  ;;  %v3816_v7 = vrot.slane %v3815_v61, 4  ;;  %v4430_v38 = vrot.slane %v4429_v23, 4  ;;  %v8967_v14 = vpop.f32.mrb[174].mxu1 }
 0x403   : > { %v4450_v26 = vadd.f32 %v8863_v13, %v8853_v31  ;;  %v3548_v51 = vmul.f32 %v9824_v30, %v8869_v45  ;;  %v4424_v52 = vadd.f32 %v4423_v22, %v4422_v47  ;;  %v4457_v36 = vadd.f32 %v8869_v45, %v8855_v42  ;;  %v8971_v9 = vpop.f32.mrb[175].mxu1 }
 0x404   : > { %v3823_v2 = vrot.slane %v3822_v27, 4  ;;  %v3843_v4 = vadd.f32 %v3547_v5, %v3543_v8  ;;  %v3817_v3 = vadd.f32 %v3816_v7, %v3815_v61  ;;  %v4431_v34 = vadd.f32 %v4430_v38, %v4429_v23 }
 0x405   : > { %v4451_v6 = vrot.slane %v4450_v26, 4  ;;  %v3850_v39 = vadd.f32 %v3548_v51, %v3544_v43  ;;  %v4425_v62 = vrot.slane %v4424_v52, 2  ;;  %v4458_v13 = vrot.slane %v4457_v36, 4 }
 0x406   : > { %v3824_v0 = vadd.f32 %v3823_v2, %v3822_v27  ;;  %v3844_v31 = vrot.slane %v3843_v4, 4  ;;  %v3818_v29 = vrot.slane %v3817_v3, 2  ;;  %v4432_v24 = vrot.slane %v4431_v34, 2  ;;  %v8973_v55 = vpop.f32.mrb[176].mxu1 }
 0x407   : > { %v4452_v40 = vadd.f32 %v4451_v6, %v4450_v26  ;;  %v3851_v1 = vrot.slane %v3850_v39, 4  ;;  %v4426_v58 = vadd.f32 %v4425_v62, %v4424_v52  ;;  %v4459_v42 = vadd.f32 %v4458_v13, %v4457_v36  ;;  %v8975_v45 = vpop.f32.mrb[177].mxu1  ;;  %v4809_v52 = vld [vmem:[%s8532_s28 + $0x10] sm:$0xff]  ;;  %v4810_v6 = vld [vmem:[%s8532_s28 + $0x18] sm:$0xff] }
 0x408   : > { %v3825_v21 = vrot.slane %v3824_v0, 2  ;;  %v3845_v46 = vadd.f32 %v3844_v31, %v3843_v4  ;;  %v3819_v35 = vadd.f32 %v3818_v29, %v3817_v3  ;;  %v4433_v12 = vadd.f32 %v4432_v24, %v4431_v34 }
 0x409   : > { %v4453_v48 = vrot.slane %v4452_v40, 2  ;;  %v3852_v47 = vadd.f32 %v3851_v1, %v3850_v39  ;;  %v4427_v10 = vrot.slane %v4426_v58, 1  ;;  %v4460_v23 = vrot.slane %v4459_v42, 2 }
 0x40a   : > { %v3826_v15 = vadd.f32 %v3825_v21, %v3824_v0  ;;  %v3846_v61 = vrot.slane %v3845_v46, 2  ;;  %v3820_v8 = vrot.slane %v3819_v35, 1  ;;  %v4434_v22 = vrot.slane %v4433_v12, 1  ;;  %v8977_v25 = vpop.f32.mrb[178].mxu1 }
 0x40b   : > { %v4454_v27 = vadd.f32 %v4453_v48, %v4452_v40  ;;  %v3853_v43 = vrot.slane %v3852_v47, 2  ;;  %v4428_v5 = vadd.f32 %v4427_v10, %v4426_v58  ;;  %v4461_v26 = vadd.f32 %v4460_v23, %v4459_v42  ;;  %v8979_v30 = vpop.f32.mrb[179].mxu1  ;;  %v9826_v48 = vld [vmem:[#allocation103_spill] sm:$0xff] }
 0x40c   : > { %v3827_v7 = vrot.slane %v3826_v15, 1  ;;  %v3847_v38 = vadd.f32 %v3846_v61, %v3845_v46  ;;  %v3821_v51 = vadd.f32 %v3820_v8, %v3819_v35  ;;  %v4435_v2 = vadd.f32 %v4434_v22, %v4433_v12  ;;  %v9825_v35 = vld [vmem:[#allocation102_spill] sm:$0xff] }
 0x40d   : > { %v4455_v4 = vrot.slane %v4454_v27, 1  ;;  %v3854_v36 = vadd.f32 %v3853_v43, %v3852_v47  ;;  %v4744_v3 = vsel %vm4129_vm9, %v4428_v5, %v8932_v37  ;;  %v4462_v62 = vrot.slane %v4461_v26, 1 }
 0x40e   : > { %v3828_v34 = vadd.f32 %v3827_v7, %v3826_v15  ;;  %v3848_v39 = vrot.slane %v3847_v38, 1  ;;  %v4144_v0 = vsel %vm4129_vm9, %v3821_v51, %v8941_v11  ;;  %vm4833_vm14 = vcmp.gt.f32.partialorder %v4744_v3, 0.5  ;;  %v8991_v29 = vpop.f32.mrb[180].mxu1  ;;  %v9827_v15 = vld [vmem:[#allocation104_spill] sm:$0xff]  ;;  %v9829_v7 = vld [vmem:[#allocation54_spill] sm:$0xff]  ;;  %v9831_v3 = vld [vmem:[#allocation79_spill] sm:$0xff] }
 0x40f   : > { %v4751_v31 = vsel %vm4129_vm9, %v4435_v2, %v8944_v60  ;;  %v8989_v13 = vadd.f32 %v4455_v4, %v4454_v27  ;;  %v4841_v24 = vsel %vm4833_vm14, 0.9, %v9768_v50  ;;  %v4849_v40 = vsub.f32 %v4809_v52, %v4144_v0  ;;  %v8996_v1 = vpop.f32.mrb[181].mxu1  ;;  %v9828_v27 = vld [vmem:[#allocation53_spill] sm:$0xff] }
 0x410   : > { %v4151_v37 = vsel %vm4129_vm9, %v3828_v34, %v8953_v33  ;;  %vm4834_vm15 = vcmp.gt.f32.partialorder %v4751_v31, 0.5  ;;  %v8999_v21 = vadd.f32 %v3848_v39, %v3847_v38  ;;  %v3855_v46 = vrot.slane %v3854_v36, 1  ;;  %v9832_v39 = vld [vmem:[#allocation77_spill] sm:$0xff] }
 0x411   : > { %v4842_v58 = vsel %vm4834_vm15, 0.9, %v9768_v50  ;;  %v4850_v11 = vsub.f32 %v4810_v6, %v4151_v37  ;;  %v4857_v60 = vmul.f32 %v4849_v40, %v4841_v24  ;;  %v9001_v42 = vadd.f32 %v4462_v62, %v4461_v26 }
 0x412   : > { %v3551_v12 = vmul.f32 %v9825_v35, %v8895_v49  ;;  %v3552_v47 = vmul.f32 %v9826_v48, %v8901_v44  ;;  %v9007_v10 = vadd.f32 %v3855_v46, %v3854_v36  ;;  %v3555_v61 = vmul.f32 %v9827_v15, %v8909_v18  ;;  %v9013_v8 = vpop.f32.mrb[182].mxu1 }
 0x413   : > { %v4858_v33 = vmul.f32 %v4850_v11, %v4842_v58  ;;  %v4478_v23 = vadd.f32 %v8909_v18, %v8895_v49  ;;  %v4865_v22 = vadd.f32 %v4857_v60, %v4144_v0  ;;  %v3556_v43 = vmul.f32 %v9828_v27, %v8911_v53  ;;  %v9021_v26 = vpop.f32.mrb[183].mxu1  ;;  %v9830_v49 = vld [vmem:[#allocation55_spill] sm:$0xff] }
 0x414   : > { %v4485_v5 = vadd.f32 %v8911_v53, %v8901_v44  ;;  %v3559_v38 = vmul.f32 %v9829_v7, %v8913_v59  ;;  %v3871_v52 = vadd.f32 %v3555_v61, %v3551_v12  ;;  %v3560_v18 = vmul.f32 %v9830_v49, %v8915_v56 }
 0x415   : > { %v4866_v51 = vadd.f32 %v4858_v33, %v4151_v37  ;;  %v4479_v2 = vrot.slane %v4478_v23, 4  ;;  %4873 = vst [vmem:[%s8550_s9 + $0x10] sm:$0xff] %v4865_v22  ;;  %v3878_v4 = vadd.f32 %v3556_v43, %v3552_v47  ;;  %v3563_v34 = vmul.f32 %v9831_v3, %v8917_v41 }
 0x416   : > { %v4486_v36 = vrot.slane %v4485_v5, 4  ;;  %v4506_v44 = vadd.f32 %v8917_v41, %v8913_v59  ;;  %v3872_v53 = vrot.slane %v3871_v52, 4  ;;  %v3564_v62 = vmul.f32 %v9832_v39, %v8921_v28  ;;  %v9035_v31 = vpop.f32.mrb[184].mxu1 }
 0x417   : > { %4874 = vst [vmem:[%s8550_s9 + $0x18] sm:$0xff] %v4866_v51  ;;  %v4480_v6 = vadd.f32 %v4479_v2, %v4478_v23  ;;  %v4513_v0 = vadd.f32 %v8921_v28, %v8915_v56  ;;  %v3879_v24 = vrot.slane %v3878_v4, 4  ;;  %v3899_v37 = vadd.f32 %v3563_v34, %v3559_v38  ;;  %v9037_v11 = vpop.f32.mrb[185].mxu1 }
 0x418   : > { %v4487_v40 = vadd.f32 %v4486_v36, %v4485_v5  ;;  %v4507_v58 = vrot.slane %v4506_v44, 4  ;;  %v3873_v46 = vadd.f32 %v3872_v53, %v3871_v52  ;;  %v3906_v59 = vadd.f32 %v3564_v62, %v3560_v18 }
 0x419   : > { %v4481_v60 = vrot.slane %v4480_v6, 2  ;;  %v4514_v41 = vrot.slane %v4513_v0, 4  ;;  %v3880_v35 = vadd.f32 %v3879_v24, %v3878_v4  ;;  %v3900_v48 = vrot.slane %v3899_v37, 4 }
 0x41a   : > { %v4488_v12 = vrot.slane %v4487_v40, 2  ;;  %v4508_v47 = vadd.f32 %v4507_v58, %v4506_v44  ;;  %v3874_v33 = vrot.slane %v3873_v46, 2  ;;  %v3907_v61 = vrot.slane %v3906_v59, 4  ;;  %v9039_v28 = vpop.f32.mrb[186].mxu1 }
 0x41b   : > { %v4482_v15 = vadd.f32 %v4481_v60, %v4480_v6  ;;  %v4515_v56 = vadd.f32 %v4514_v41, %v4513_v0  ;;  %v3881_v23 = vrot.slane %v3880_v35, 2  ;;  %v3901_v27 = vadd.f32 %v3900_v48, %v3899_v37  ;;  %v9041_v5 = vpop.f32.mrb[187].mxu1 }
 0x41c   : > { %v4489_v22 = vadd.f32 %v4488_v12, %v4487_v40  ;;  %v4509_v43 = vrot.slane %v4508_v47, 2  ;;  %v3875_v7 = vadd.f32 %v3874_v33, %v3873_v46  ;;  %v3908_v51 = vadd.f32 %v3907_v61, %v3906_v59 }
 0x41d   : > { %v4483_v38 = vrot.slane %v4482_v15, 1  ;;  %v4516_v52 = vrot.slane %v4515_v56, 2  ;;  %v3882_v2 = vadd.f32 %v3881_v23, %v3880_v35  ;;  %v3902_v18 = vrot.slane %v3901_v27, 2 }
 0x41e   : > { %v4490_v49 = vrot.slane %v4489_v22, 1  ;;  %v4510_v4 = vadd.f32 %v4509_v43, %v4508_v47  ;;  %v3876_v36 = vrot.slane %v3875_v7, 1  ;;  %v3909_v34 = vrot.slane %v3908_v51, 2  ;;  %v9043_v53 = vpop.f32.mrb[188].mxu1 }
 0x41f   : > { %v4484_v3 = vadd.f32 %v4483_v38, %v4482_v15  ;;  %v4517_v44 = vadd.f32 %v4516_v52, %v4515_v56  ;;  %v3883_v6 = vrot.slane %v3882_v2, 1  ;;  %v3903_v62 = vadd.f32 %v3902_v18, %v3901_v27  ;;  %v9045_v24 = vpop.f32.mrb[189].mxu1  ;;  %v9835_v52 = vld [vmem:[#allocation58_spill] sm:$0xff] }
 0x420   : > { %v4491_v39 = vadd.f32 %v4490_v49, %v4489_v22  ;;  %v4511_v0 = vrot.slane %v4510_v4, 1  ;;  %v3877_v40 = vadd.f32 %v3876_v36, %v3875_v7  ;;  %v3910_v58 = vadd.f32 %v3909_v34, %v3908_v51 }
 0x421   : > { %v4766_v37 = vsel %vm4117_vm4, %v4484_v3, %v8989_v13  ;;  %v4518_v46 = vrot.slane %v4517_v44, 1  ;;  %v3884_v60 = vadd.f32 %v3883_v6, %v3882_v2  ;;  %v3904_v41 = vrot.slane %v3903_v62, 1 }
 0x422   : > { %v4773_v59 = vsel %vm4117_vm4, %v4491_v39, %v9001_v42  ;;  %v4512_v35 = vadd.f32 %v4511_v0, %v4510_v4  ;;  %v4166_v12 = vsel %vm4117_vm4, %v3877_v40, %v8999_v21  ;;  %v3911_v48 = vrot.slane %v3910_v58, 1  ;;  %v9055_v15 = vpop.f32.mrb[190].mxu1  ;;  %v9833_v42 = vld [vmem:[#allocation57_spill] sm:$0xff] }
 0x423   : > { %v4519_v47 = vadd.f32 %v4518_v46, %v4517_v44  ;;  %v3567_v33 = vmul.f32 %v8385_v54, %v8938_v16  ;;  %v4173_v13 = vsel %vm4117_vm4, %v3884_v60, %v9007_v10  ;;  %v3905_v61 = vadd.f32 %v3904_v41, %v3903_v62  ;;  %v9062_v22 = vpop.f32.mrb[191].mxu1  ;;  %v9834_v10 = vld [vmem:[#allocation28_spill] sm:$0xff] }
 0x424   : > { %v4767_v56 = vsel %vm4119_vm5, %v4512_v35, %v4766_v37  ;;  %v3568_v23 = vmul.f32 %v9833_v42, %v8950_v20  ;;  %v3912_v27 = vadd.f32 %v3911_v48, %v3910_v58  ;;  %v3571_v43 = vmul.f32 %v8392_v19, %v8967_v14 }
 0x425   : > { %v4774_v21 = vsel %vm4119_vm5, %v4519_v47, %v4773_v59  ;;  %v4534_v54 = vadd.f32 %v8967_v14, %v8938_v16  ;;  %v4167_v7 = vsel %vm4119_vm5, %v3905_v61, %v4166_v12  ;;  %v3572_v38 = vmul.f32 %v9834_v10, %v8971_v9 }
 0x426   : > { %v4541_v51 = vadd.f32 %v8971_v9, %v8950_v20  ;;  %v3575_v2 = vmul.f32 %v9835_v52, %v8973_v55  ;;  %v4174_v49 = vsel %vm4119_vm5, %v3912_v27, %v4173_v13  ;;  %v3927_v18 = vadd.f32 %v3571_v43, %v3567_v33 }
 0x427   : > { %v4535_v4 = vrot.slane %v4534_v54, 4  ;;  %v3576_v19 = vmul.f32 %v8399_v32, %v8975_v45  ;;  %v3934_v36 = vadd.f32 %v3572_v38, %v3568_v23  ;;  %v3579_v14 = vmul.f32 %v8401_v57, %v8977_v25 }
 0x428   : > { %v4542_v16 = vrot.slane %v4541_v51, 4  ;;  %v4562_v3 = vadd.f32 %v8977_v25, %v8973_v55  ;;  %v3928_v34 = vrot.slane %v3927_v18, 4  ;;  %v3580_v9 = vmul.f32 %v8403_v17, %v8979_v30 }
 0x429   : > { %v4536_v20 = vadd.f32 %v4535_v4, %v4534_v54  ;;  %v4569_v44 = vadd.f32 %v8979_v30, %v8975_v45  ;;  %v3935_v6 = vrot.slane %v3934_v36, 4  ;;  %v3955_v62 = vadd.f32 %v3579_v14, %v3575_v2 }
 0x42a   : > { %v4543_v39 = vadd.f32 %v4542_v16, %v4541_v51  ;;  %v4563_v32 = vrot.slane %v4562_v3, 4  ;;  %v3929_v0 = vadd.f32 %v3928_v34, %v3927_v18  ;;  %v3962_v37 = vadd.f32 %v3580_v9, %v3576_v19 }
 0x42b   : > { %v4537_v40 = vrot.slane %v4536_v20, 2  ;;  %v4570_v58 = vrot.slane %v4569_v44, 4  ;;  %v3936_v57 = vadd.f32 %v3935_v6, %v3934_v36  ;;  %v3956_v60 = vrot.slane %v3955_v62, 4 }
 0x42c   : > { %v4544_v46 = vrot.slane %v4543_v39, 2  ;;  %v4564_v55 = vadd.f32 %v4563_v32, %v4562_v3  ;;  %v3930_v25 = vrot.slane %v3929_v0, 2  ;;  %v3963_v41 = vrot.slane %v3962_v37, 4 }
 0x42d   : > { %v4538_v59 = vadd.f32 %v4537_v40, %v4536_v20  ;;  %v4571_v35 = vadd.f32 %v4570_v58, %v4569_v44  ;;  %v3937_v17 = vrot.slane %v3936_v57, 2  ;;  %v3957_v48 = vadd.f32 %v3956_v60, %v3955_v62  ;;  %v9837_v58 = vld [vmem:[#allocation78_spill] sm:$0xff] }
 0x42e   : > { %v4545_v12 = vadd.f32 %v4544_v46, %v4543_v39  ;;  %v4565_v45 = vrot.slane %v4564_v55, 2  ;;  %v3931_v30 = vadd.f32 %v3930_v25, %v3929_v0  ;;  %v3964_v33 = vadd.f32 %v3963_v41, %v3962_v37 }
 0x42f   : > { %v4539_v47 = vrot.slane %v4538_v59, 1  ;;  %v4572_v13 = vrot.slane %v4571_v35, 2  ;;  %v3938_v61 = vadd.f32 %v3937_v17, %v3936_v57  ;;  %v3958_v23 = vrot.slane %v3957_v48, 2  ;;  %v9840_v17 = vld [vmem:[#allocation64_spill] sm:$0xff] }
 0x430   : > { %v4546_v42 = vrot.slane %v4545_v12, 1  ;;  %v4566_v27 = vadd.f32 %v4565_v45, %v4564_v55  ;;  %v3932_v43 = vrot.slane %v3931_v30, 1  ;;  %v3965_v10 = vrot.slane %v3964_v33, 2  ;;  %v9839_v55 = vld [vmem:[#allocation31_spill] sm:$0xff] }
 0x431   : > { %v4540_v54 = vadd.f32 %v4539_v47, %v4538_v59  ;;  %v4573_v38 = vadd.f32 %v4572_v13, %v4571_v35  ;;  %v3939_v51 = vrot.slane %v3938_v61, 1  ;;  %v3959_v2 = vadd.f32 %v3958_v23, %v3957_v48 }
 0x432   : > { %v4547_v52 = vadd.f32 %v4546_v42, %v4545_v12  ;;  %v4567_v18 = vrot.slane %v4566_v27, 1  ;;  %v3933_v4 = vadd.f32 %v3932_v43, %v3931_v30  ;;  %v3966_v36 = vadd.f32 %v3965_v10, %v3964_v33 }
 0x433   : > { %v4768_v19 = vsel %vm4121_vm6, %v4540_v54, %v4767_v56  ;;  %v4574_v16 = vrot.slane %v4573_v38, 1  ;;  %v3940_v14 = vadd.f32 %v3939_v51, %v3938_v61  ;;  %v3960_v34 = vrot.slane %v3959_v2, 1  ;;  %v9836_v56 = vld [vmem:[#allocation56_spill] sm:$0xff] }
 0x434   : > { %v4775_v3 = vsel %vm4121_vm6, %v4547_v52, %v4774_v21  ;;  %v4568_v20 = vadd.f32 %v4567_v18, %v4566_v27  ;;  %v4168_v9 = vsel %vm4121_vm6, %v3933_v4, %v4167_v7  ;;  %v3967_v44 = vrot.slane %v3966_v36, 1 }
 0x435   : > { %v4575_v6 = vadd.f32 %v4574_v16, %v4573_v38  ;;  %v3583_v39 = vmul.f32 %v8405_v63, %v8991_v29  ;;  %v4175_v62 = vsel %vm4121_vm6, %v3940_v14, %v4174_v49  ;;  %v3961_v32 = vadd.f32 %v3960_v34, %v3959_v2  ;;  %v9838_v63 = vld [vmem:[#allocation60_spill] sm:$0xff] }
 0x436   : > { %v4769_v0 = vsel %vm4123_vm7, %v4568_v20, %v4768_v19  ;;  %v3584_v40 = vmul.f32 %v9836_v56, %v8996_v1  ;;  %v3968_v37 = vadd.f32 %v3967_v44, %v3966_v36  ;;  %v3587_v57 = vmul.f32 %v9837_v58, %v9013_v8 }
 0x437   : > { %v4776_v21 = vsel %vm4123_vm7, %v4575_v6, %v4775_v3  ;;  %v4590_v7 = vadd.f32 %v9013_v8, %v8991_v29  ;;  %v4169_v46 = vsel %vm4123_vm7, %v3961_v32, %v4168_v9  ;;  %v3588_v49 = vmul.f32 %v9838_v63, %v9021_v26  ;;  %v9841_v8 = vld [vmem:[#allocation65_spill] sm:$0xff] }
 0x438   : > { %v4597_v60 = vadd.f32 %v9021_v26, %v8996_v1  ;;  %v3591_v25 = vmul.f32 %v9839_v55, %v9035_v31  ;;  %v4176_v59 = vsel %vm4123_vm7, %v3968_v37, %v4175_v62  ;;  %v3983_v41 = vadd.f32 %v3587_v57, %v3583_v39  ;;  %v9842_v26 = vld [vmem:[#allocation63_spill] sm:$0xff] }
 0x439   : > { %v4591_v35 = vrot.slane %v4590_v7, 4  ;;  %v3592_v12 = vmul.f32 %v9840_v17, %v9037_v11  ;;  %v3990_v48 = vadd.f32 %v3588_v49, %v3584_v40  ;;  %v3595_v45 = vmul.f32 %v9841_v8, %v9039_v28  ;;  %v9843_v8 = vld [vmem:[#allocation68_spill] sm:$0xff] }
 0x43a   : > { %v4598_v29 = vrot.slane %v4597_v60, 4  ;;  %v4618_v30 = vadd.f32 %v9039_v28, %v9035_v31  ;;  %v3984_v47 = vrot.slane %v3983_v41, 4  ;;  %v3596_v33 = vmul.f32 %v9842_v26, %v9041_v5 }
 0x43b   : > { %v4592_v1 = vadd.f32 %v4591_v35, %v4590_v7  ;;  %v4625_v13 = vadd.f32 %v9041_v5, %v9037_v11  ;;  %v3991_v61 = vrot.slane %v3990_v48, 4  ;;  %v4011_v23 = vadd.f32 %v3595_v45, %v3591_v25 }
 0x43c   : > { %v4599_v42 = vadd.f32 %v4598_v29, %v4597_v60  ;;  %v4619_v27 = vrot.slane %v4618_v30, 4  ;;  %v3985_v43 = vadd.f32 %v3984_v47, %v3983_v41  ;;  %v4018_v10 = vadd.f32 %v3596_v33, %v3592_v12 }
 0x43d   : > { %v4593_v54 = vrot.slane %v4592_v1, 2  ;;  %v4626_v38 = vrot.slane %v4625_v13, 4  ;;  %v3992_v51 = vadd.f32 %v3991_v61, %v3990_v48  ;;  %v4012_v2 = vrot.slane %v4011_v23, 4 }
 0x43e   : > { %v4600_v52 = vrot.slane %v4599_v42, 2  ;;  %v4620_v31 = vadd.f32 %v4619_v27, %v4618_v30  ;;  %v3986_v28 = vrot.slane %v3985_v43, 2  ;;  %v4019_v4 = vrot.slane %v4018_v10, 4 }
 0x43f   : > { %v4594_v18 = vadd.f32 %v4593_v54, %v4592_v1  ;;  %v4627_v19 = vadd.f32 %v4626_v38, %v4625_v13  ;;  %v3993_v36 = vrot.slane %v3992_v51, 2  ;;  %v4013_v14 = vadd.f32 %v4012_v2, %v4011_v23  ;;  %v9845_v13 = vld [vmem:[#allocation62_spill] sm:$0xff]  ;;  %v9846_v23 = vld [vmem:[#allocation84_spill] sm:$0xff] }
 0x440   : > { %v4601_v16 = vadd.f32 %v4600_v52, %v4599_v42  ;;  %v4621_v11 = vrot.slane %v4620_v31, 2  ;;  %v3987_v5 = vadd.f32 %v3986_v28, %v3985_v43  ;;  %v4020_v34 = vadd.f32 %v4019_v4, %v4018_v10 }
 0x441   : > { %v4595_v3 = vrot.slane %v4594_v18, 1  ;;  %v4628_v20 = vrot.slane %v4627_v19, 2  ;;  %v3994_v9 = vadd.f32 %v3993_v36, %v3992_v51  ;;  %v4014_v6 = vrot.slane %v4013_v14, 2 }
 0x442   : > { %v4602_v44 = vrot.slane %v4601_v16, 1  ;;  %v4622_v39 = vadd.f32 %v4621_v11, %v4620_v31  ;;  %v3988_v62 = vrot.slane %v3987_v5, 1  ;;  %v4021_v56 = vrot.slane %v4020_v34, 2 }
 0x443   : > { %v4596_v32 = vadd.f32 %v4595_v3, %v4594_v18  ;;  %v4629_v40 = vadd.f32 %v4628_v20, %v4627_v19  ;;  %v3995_v37 = vrot.slane %v3994_v9, 1  ;;  %v4015_v57 = vadd.f32 %v4014_v6, %v4013_v14 }
 0x444   : > { %v4603_v58 = vadd.f32 %v4602_v44, %v4601_v16  ;;  %v4623_v7 = vrot.slane %v4622_v39, 1  ;;  %v3989_v63 = vadd.f32 %v3988_v62, %v3987_v5  ;;  %v4022_v60 = vadd.f32 %v4021_v56, %v4020_v34  ;;  %v4814_v56 = vld [vmem:[%s8532_s28 + $0x38] sm:$0xff] }
 0x445   : > { %v4770_v49 = vsel %vm4125_vm2, %v4596_v32, %v4769_v0  ;;  %v4630_v55 = vrot.slane %v4629_v40, 1  ;;  %v3996_v25 = vadd.f32 %v3995_v37, %v3994_v9  ;;  %v4016_v35 = vrot.slane %v4015_v57, 1  ;;  %v9844_v0 = vld [vmem:[#allocation71_spill] sm:$0xff] }
 0x446   : > { %v4777_v41 = vsel %vm4125_vm2, %v4603_v58, %v4776_v21  ;;  %v4624_v17 = vadd.f32 %v4623_v7, %v4622_v39  ;;  %v4170_v12 = vsel %vm4125_vm2, %v3989_v63, %v4169_v46  ;;  %v4023_v48 = vrot.slane %v4022_v60, 1  ;;  %v4813_v39 = vld [vmem:[%s8532_s28 + $0x30] sm:$0xff] }
 0x447   : > { %v4631_v29 = vadd.f32 %v4630_v55, %v4629_v40  ;;  %v3599_v45 = vmul.f32 %v9843_v8, %v9043_v53  ;;  %v4177_v30 = vsel %vm4125_vm2, %v3996_v25, %v4176_v59  ;;  %v4017_v47 = vadd.f32 %v4016_v35, %v4015_v57 }
 0x448   : > { %v4771_v1 = vsel %vm4127_vm8, %v4624_v17, %v4770_v49  ;;  %v3600_v26 = vmul.f32 %v9844_v0, %v9045_v24  ;;  %v4024_v33 = vadd.f32 %v4023_v48, %v4022_v60  ;;  %v3603_v61 = vmul.f32 %v9845_v13, %v9055_v15 }
 0x449   : > { %v4778_v21 = vsel %vm4127_vm8, %v4631_v29, %v4777_v41  ;;  %v4646_v46 = vadd.f32 %v9055_v15, %v9043_v53  ;;  %v4171_v42 = vsel %vm4127_vm8, %v4017_v47, %v4170_v12  ;;  %v3604_v59 = vmul.f32 %v9846_v23, %v9062_v22 }
 0x44a   : > { %v4653_v27 = vadd.f32 %v9062_v22, %v9045_v24  ;;  %v4178_v43 = vsel %vm4127_vm8, %v4024_v33, %v4177_v30  ;;  %v4039_v54 = vadd.f32 %v3603_v61, %v3599_v45 }
 0x44b   : > { %v4647_v10 = vrot.slane %v4646_v46, 4  ;;  %v4046_v38 = vadd.f32 %v3604_v59, %v3600_v26 }
 0x44c   : > { %v4654_v51 = vrot.slane %v4653_v27, 4  ;;  %v4040_v52 = vrot.slane %v4039_v54, 4 }
 0x44d   : > { %v4648_v2 = vadd.f32 %v4647_v10, %v4646_v46  ;;  %v4047_v31 = vrot.slane %v4046_v38, 4 }
 0x44e   : > { %v4655_v28 = vadd.f32 %v4654_v51, %v4653_v27  ;;  %v4041_v18 = vadd.f32 %v4040_v52, %v4039_v54 }
 0x44f   : > { %v4649_v53 = vrot.slane %v4648_v2, 2  ;;  %v4048_v15 = vadd.f32 %v4047_v31, %v4046_v38 }
 0x450   : > { %v4656_v4 = vrot.slane %v4655_v28, 2  ;;  %v4042_v19 = vrot.slane %v4041_v18, 2 }
 0x451   : > { %v4650_v36 = vadd.f32 %v4649_v53, %v4648_v2  ;;  %v4049_v16 = vrot.slane %v4048_v15, 2 }
 0x452   : > { %v4657_v24 = vadd.f32 %v4656_v4, %v4655_v28  ;;  %v4043_v22 = vadd.f32 %v4042_v19, %v4041_v18 }
 0x453   : > { %v4651_v14 = vrot.slane %v4650_v36, 1  ;;  %v4050_v11 = vadd.f32 %v4049_v16, %v4048_v15 }
 0x454   : > { %v4658_v5 = vrot.slane %v4657_v24, 1  ;;  %v4044_v3 = vrot.slane %v4043_v22, 1 }
 0x455   : > { %v4652_v34 = vadd.f32 %v4651_v14, %v4650_v36  ;;  %v4051_v20 = vrot.slane %v4050_v11, 1 }
 0x456   : > { %v4659_v9 = vadd.f32 %v4658_v5, %v4657_v24  ;;  %v4045_v44 = vadd.f32 %v4044_v3, %v4043_v22 }
 0x457   : > { %v4772_v6 = vsel %vm4129_vm9, %v4652_v34, %v4771_v1  ;;  %v4052_v62 = vadd.f32 %v4051_v20, %v4050_v11 }
 0x458   : > { %vm4837_vm0 = vcmp.gt.f32.partialorder %v4772_v6, 0.5  ;;  %v4779_v32 = vsel %vm4129_vm9, %v4659_v9, %v4778_v21  ;;  %v4172_v40 = vsel %vm4129_vm9, %v4045_v44, %v4171_v42 }
 0x459   : > { %vm4838_vm1 = vcmp.gt.f32.partialorder %v4779_v32, 0.5  ;;  %v4853_v37 = vsub.f32 %v4813_v39, %v4172_v40  ;;  %v4179_v58 = vsel %vm4129_vm9, %v4052_v62, %v4178_v43  ;;  %v4845_v57 = vsel %vm4837_vm0, 0.9, %v9768_v50 }
 0x45a   : > { %v4854_v7 = vsub.f32 %v4814_v56, %v4179_v58  ;;  %v4846_v49 = vsel %vm4838_vm1, 0.9, %v9768_v50 }
 0x45b   : > { %v4861_v63 = vmul.f32 %v4853_v37, %v4845_v57 }
 0x45c   : > { %v4862_v60 = vmul.f32 %v4854_v7, %v4846_v49 }
 0x45d   : > { %v4869_v55 = vadd.f32 %v4861_v63, %v4172_v40 }
 0x45e   : > { %v4870_v25 = vadd.f32 %v4862_v60, %v4179_v58 }
 0x45f   : > { %4877 = vst [vmem:[%s8550_s9 + $0x30] sm:$0xff] %v4869_v55 }
 0x460   : > { %4878 = vst [vmem:[%s8550_s9 + $0x38] sm:$0xff] %v4870_v25 }
 0x461 PF: > { %s17_s26 = sadd.s32 1, %s5973_s26   ;;  %s9847_s24 = smov %s5969_s25 }
 0x462   : > { %p14_p5 = scmp.ge.s32.totalorder %s17_s26, 4   ;;  %s9848_s25 = smov %s9850_s27 }
 0x464   :  { %16 = sbr.rel (!%p14_p5) target bundleno = 2 (0x2), region = 96 }

</bundles_post_ra>
